<compile_context>
chip_gen: v7x
topology: tpu7x:2x2x1
jax: 0.10.0
libtpu: 0.0.40
codegen_flags: <defaults>
</compile_context>

<pallas_src>
import jax
import jax.numpy as jnp
import numpy as np
from jax import lax
from jax.experimental import pallas as pl
from jax.experimental.pallas import tpu as pltpu


GRID = 16                  # input spatial size (16x16 -> 1x1 after 4 pools)
M = GRID * GRID            # canvas rows per batch sample
C = 128                    # lane-padded channel width (vreg lane count)
N_LAYERS = 4
OUT_C = 64                 # channels of the last conv layer
PAD = 144                  # zero border rows; >= max tap/pool shift 17*8=136, multiple of 8
OUT_ROWS = 8               # one (8,128) output tile per sample; only row 0 is live


# ----------------------------------------------------------------------------
# Fused kernel: 4x (conv3x3 'same' + bias + ReLU + maxpool2x2), one sample per
# grid step, all intermediates in VMEM.
# ----------------------------------------------------------------------------
def fused_cnn_kernel(x_ref, w_ref, b_ref, o_ref, act_ref):
    # Zero only the border rows (out-of-image taps read these zeros = 'same'
    # padding); the middle M rows are overwritten by this sample's input.
    act_ref[0:PAD, :] = jnp.zeros((PAD, C), jnp.float32)
    act_ref[PAD + M:PAD + M + PAD, :] = jnp.zeros((PAD, C), jnp.float32)
    act_ref[PAD:PAD + M, :] = x_ref[...]

    # Per-row column coordinate on the 16x16 canvas (hoisted; reused by every
    # layer).  Left/right 'same' padding needs a lane... er, column mask; the
    # top/bottom out-of-bounds taps land in the zero border rows (no mask).
    col = lax.broadcasted_iota(jnp.int32, (M, C), 0) & (GRID - 1)

    for l in range(N_LAYERS):
        s = 1 << l   # layer-l feature map lives at stride-s sites of the canvas

        # Two hoisted edge masks per layer (only one comparison can fail per side).
        lmask = col >= s              # valid source column for dw == 0 taps
        rmask = col < (GRID - s)      # valid source column for dw == 2 taps

        # conv3x3 as 9 accumulated per-tap MXU matmuls (bf16 in, f32 accum).
        acc = None
        for t in range(9):
            dh, dw = divmod(t, 3)
            off = ((dh - 1) * GRID + (dw - 1)) * s
            tap = act_ref[PAD + off:PAD + off + M, :]
            if dw == 0:
                tap = jnp.where(lmask, tap, 0.0)
            elif dw == 2:
                tap = jnp.where(rmask, tap, 0.0)
            contrib = jnp.dot(tap.astype(jnp.bfloat16), w_ref[l, t],
                              preferred_element_type=jnp.float32)
            acc = contrib if acc is None else acc + contrib

        y = jnp.maximum(acc + b_ref[l], 0.0)
        act_ref[PAD:PAD + M, :] = y

        # 2x2 max-pool on the dilated grid: max over offsets {0,s} x {0,GRID*s}.
        p01 = act_ref[PAD + s:PAD + s + M, :]
        p10 = act_ref[PAD + GRID * s:PAD + GRID * s + M, :]
        p11 = act_ref[PAD + (GRID + 1) * s:PAD + (GRID + 1) * s + M, :]
        act_ref[PAD:PAD + M, :] = jnp.maximum(jnp.maximum(y, p01),
                                              jnp.maximum(p10, p11))
        # dropout(p=0.2) after layer 2 is the identity in eval mode.

    # After 4 pools the only live site is canvas row 0; store one (8,128) tile.
    o_ref[...] = act_ref[PAD:PAD + OUT_ROWS, :]


def cnn_pallas(x_pad, w_stack, b_stack):
    nb = x_pad.shape[0] // M
    flops = 2 * nb * N_LAYERS * M * (9 * C) * C
    bytes_accessed = (4 * x_pad.size + 2 * w_stack.size + 4 * b_stack.size
                      + 4 * nb * OUT_ROWS * C)
    return pl.pallas_call(
        fused_cnn_kernel,
        out_shape=jax.ShapeDtypeStruct((nb * OUT_ROWS, C), jnp.float32),
        grid=(nb,),
        in_specs=[
            pl.BlockSpec((M, C), lambda n: (n, 0)),                       # input rows
            pl.BlockSpec((N_LAYERS, 9, C, C), lambda n: (0, 0, 0, 0)),    # bf16 weights
            pl.BlockSpec((N_LAYERS, 1, C), lambda n: (0, 0, 0)),          # f32 biases
        ],
        out_specs=pl.BlockSpec((OUT_ROWS, C), lambda n: (n, 0)),
        scratch_shapes=[
            pltpu.VMEM((PAD + M + PAD, C), jnp.float32),   # activation canvas
        ],
        compiler_params=pltpu.CompilerParams(
            dimension_semantics=("parallel",)),
        cost_estimate=pl.CostEstimate(flops=flops, transcendentals=0,
                                      bytes_accessed=bytes_accessed),
    )(x_pad, w_stack, b_stack)


# ----------------------------------------------------------------------------
# Host-side glue: parameter packing (once) and thin input/output reshapes.
# ----------------------------------------------------------------------------
def pack_params(params):
    """PyTorch-style (Cout,Cin,3,3)/(Cout,) conv params -> zero-padded
    (L, 9, 128, 128) bf16 weight stack and (L, 1, 128) f32 bias stack.
    Padding is zero (exact in bf16), so padded lanes stay exactly zero through
    bias+ReLU and never leak."""
    w_stack = np.zeros((N_LAYERS, 9, C, C), np.float32)
    b_stack = np.zeros((N_LAYERS, 1, C), np.float32)
    for l, (w, b) in enumerate(params):
        w = np.asarray(w, np.float32)
        b = np.asarray(b, np.float32)
        cout, cin = w.shape[0], w.shape[1]
        # (Cout, Cin, kh, kw) -> (kh*kw, Cin, Cout); tap order t = dh*3 + dw.
        wt = np.transpose(w, (2, 3, 1, 0)).reshape(9, cin, cout)
        w_stack[l, :, :cin, :cout] = wt
        b_stack[l, 0, :cout] = b
    return jnp.asarray(w_stack, jnp.bfloat16), jnp.asarray(b_stack, jnp.float32)


@jax.jit
def cnn_forward(x_nchw, w_stack, b_stack):
    n, cin, h, w = x_nchw.shape
    # NCHW -> NHWC -> (N*H*W, Cin) -> zero-pad channels to the 128-lane width.
    rows = jnp.transpose(x_nchw, (0, 2, 3, 1)).reshape(n * h * w, cin)
    x_pad = jnp.pad(rows, ((0, 0), (0, C - cin)))
    out_rows = cnn_pallas(x_pad, w_stack, b_stack)        # (n*8, 128)
    # Only row 0 of each sample's tile is live; real channels are the first
    # OUT_C of the 128 padded lanes.
    out = out_rows.reshape(n, OUT_ROWS, C)[:, 0, :OUT_C]
    return out.reshape(n, OUT_C, 1, 1)


# ----------------------------------------------------------------------------
# Pure-JAX reference (correctness check only, full f32).
# ----------------------------------------------------------------------------
def cnn_forward_ref(x_nchw, params):
    x = x_nchw
    for w, b in params:
        y = lax.conv_general_dilated(
            x, w, window_strides=(1, 1), padding="SAME",
            dimension_numbers=("NCHW", "OIHW", "NCHW"))
        y = jnp.maximum(y + b[None, :, None, None], 0.0)
        x = lax.reduce_window(y, -jnp.inf, lax.max,
                              (1, 1, 2, 2), (1, 1, 2, 2), "VALID")
    return x


def init_params(key):
    """Deterministic parameter init matching nn.Conv2d shapes."""
    dims = [(3, 8), (8, 16), (16, 32), (32, 64)]
    params = []
    for i, (cin, cout) in enumerate(dims):
        kw, kb = jax.random.split(jax.random.fold_in(key, i))
        fan_in = cin * 9
        scale = 1.0 / jnp.sqrt(fan_in)
        w = jax.random.uniform(kw, (cout, cin, 3, 3), jnp.float32,
                               -scale, scale)
        b = jax.random.uniform(kb, (cout,), jnp.float32, -scale, scale)
        params.append((w, b))
    return params


if __name__ == "__main__":
    key = jax.random.PRNGKey(0)
    x = jax.random.normal(key, (2, 3, 16, 16), dtype=jnp.float32)   # NCHW
    params = init_params(jax.random.PRNGKey(1))
    assert x.shape[2] == GRID and x.shape[3] == GRID

    w_stack, b_stack = pack_params(params)

    out = cnn_forward(x, w_stack, b_stack)
    out = jax.block_until_ready(out)

    ref = cnn_forward_ref(x, params)
    assert out.shape == (2, 64, 1, 1), out.shape
    # bf16 MXU operands vs full-f32 reference: allow a few % tolerance.
    err = float(jnp.max(jnp.abs(out - ref)))
    assert jnp.allclose(out, ref, atol=5e-2, rtol=5e-2), err

    print("KERNEL_OK")
</pallas_src>

<mosaic_0001>
module attributes {stable_mosaic.version = 11 : i64} {
  func.func @fused_cnn_kernel(%arg0: i32, %arg1: memref<256x128xf32, #tpu.memory_space<vmem>>, %arg2: memref<4x9x128x128xbf16, #tpu.memory_space<vmem>>, %arg3: memref<4x1x128xf32, #tpu.memory_space<vmem>>, %arg4: memref<8x128xf32, #tpu.memory_space<vmem>>, %arg5: memref<544x128xf32, #tpu.memory_space<vmem>>) attributes {dimension_semantics = [#tpu.dimension_semantics<parallel>], iteration_bounds = array<i64: 2>, scalar_prefetch = 0 : i64, scratch_operands = 1 : i64, tpu.core_type = #tpu.core_type<tc>, window_params = [{transform_indices = @transform_0, window_bounds = array<i64: 256, 128>}, {pipeline_mode = #tpu.pipeline_mode<synchronous>, transform_indices = @transform_1, window_bounds = array<i64: 4, 9, 128, 128>}, {pipeline_mode = #tpu.pipeline_mode<synchronous>, transform_indices = @transform_2, window_bounds = array<i64: 4, 1, 128>}, {transform_indices = @transform_3, window_bounds = array<i64: 8, 128>}]} {
    %cst = arith.constant 0.000000e+00 : f32
    %0 = vector.broadcast %cst : f32 to vector<144x128xf32>
    %c0 = arith.constant 0 : index
    %c0_0 = arith.constant 0 : index
    %1 = vector.load %arg5[%c0, %c0_0] : memref<544x128xf32, #tpu.memory_space<vmem>>, vector<144x128xf32>
    tpu.vector_store %arg5[%c0, %c0_0], %0 {strides = array<i32>} : memref<544x128xf32, #tpu.memory_space<vmem>>, vector<144x128xf32>,
    %cst_1 = arith.constant 0.000000e+00 : f32
    %2 = vector.broadcast %cst_1 : f32 to vector<144x128xf32>
    %c400 = arith.constant 400 : index
    %c0_2 = arith.constant 0 : index
    %3 = vector.load %arg5[%c400, %c0_2] : memref<544x128xf32, #tpu.memory_space<vmem>>, vector<144x128xf32>
    tpu.vector_store %arg5[%c400, %c0_2], %2 {strides = array<i32>} : memref<544x128xf32, #tpu.memory_space<vmem>>, vector<144x128xf32>,
    %c0_3 = arith.constant 0 : index
    %c0_4 = arith.constant 0 : index
    %4 = vector.load %arg1[%c0_3, %c0_4] : memref<256x128xf32, #tpu.memory_space<vmem>>, vector<256x128xf32>
    %c144 = arith.constant 144 : index
    %c0_5 = arith.constant 0 : index
    %5 = vector.load %arg5[%c144, %c0_5] : memref<544x128xf32, #tpu.memory_space<vmem>>, vector<256x128xf32>
    tpu.vector_store %arg5[%c144, %c0_5], %4 {strides = array<i32>} : memref<544x128xf32, #tpu.memory_space<vmem>>, vector<256x128xf32>,
    %6 = tpu.iota {dimensions = array<i32: 0>} : vector<256x128xi32>
    %c15_i32 = arith.constant 15 : i32
    %7 = vector.broadcast %c15_i32 : i32 to vector<256x128xi32>
    %8 = arith.andi %6, %7 : vector<256x128xi32>
    %c1_i32 = arith.constant 1 : i32
    %9 = vector.broadcast %c1_i32 : i32 to vector<256x128xi32>
    %10 = arith.cmpi sge, %8, %9 : vector<256x128xi32>
    %c15_i32_6 = arith.constant 15 : i32
    %11 = vector.broadcast %c15_i32_6 : i32 to vector<256x128xi32>
    %12 = arith.cmpi slt, %8, %11 : vector<256x128xi32>
    %c127 = arith.constant 127 : index
    %c0_7 = arith.constant 0 : index
    %13 = vector.load %arg5[%c127, %c0_7] : memref<544x128xf32, #tpu.memory_space<vmem>>, vector<256x128xf32>
    %cst_8 = arith.constant 0.000000e+00 : f32
    %14 = vector.broadcast %cst_8 : f32 to vector<256x128xf32>
    %15 = arith.select %10, %13, %14 : vector<256x128xi1>, vector<256x128xf32>
    %16 = arith.truncf %15 : vector<256x128xf32> to vector<256x128xbf16>
    %c0_9 = arith.constant 0 : index
    %c0_10 = arith.constant 0 : index
    %c0_11 = arith.constant 0 : index
    %c0_12 = arith.constant 0 : index
    %17 = vector.load %arg2[%c0_9, %c0_10, %c0_11, %c0_12] : memref<4x9x128x128xbf16, #tpu.memory_space<vmem>>, vector<1x1x128x128xbf16>
    %18 = vector.shape_cast %17 : vector<1x1x128x128xbf16> to vector<128x128xbf16>
    %cst_13 = arith.constant dense<0.000000e+00> : vector<256x128xf32>
    %19 = tpu.matmul %16, %18, %cst_13 {dimension_numbers = #tpu.dot_dimension_numbers<[1], [0], [0], [1], [0, 0, 1, 1], [], []>} : vector<256x128xbf16>, vector<128x128xbf16>, vector<256x128xf32> -> vector<256x128xf32>
    %c128 = arith.constant 128 : index
    %c0_14 = arith.constant 0 : index
    %20 = vector.load %arg5[%c128, %c0_14] : memref<544x128xf32, #tpu.memory_space<vmem>>, vector<256x128xf32>
    %21 = arith.truncf %20 : vector<256x128xf32> to vector<256x128xbf16>
    %c0_15 = arith.constant 0 : index
    %c1 = arith.constant 1 : index
    %c0_16 = arith.constant 0 : index
    %c0_17 = arith.constant 0 : index
    %22 = vector.load %arg2[%c0_15, %c1, %c0_16, %c0_17] : memref<4x9x128x128xbf16, #tpu.memory_space<vmem>>, vector<1x1x128x128xbf16>
    %23 = vector.shape_cast %22 : vector<1x1x128x128xbf16> to vector<128x128xbf16>
    %cst_18 = arith.constant dense<0.000000e+00> : vector<256x128xf32>
    %24 = tpu.matmul %21, %23, %cst_18 {dimension_numbers = #tpu.dot_dimension_numbers<[1], [0], [0], [1], [0, 0, 1, 1], [], []>} : vector<256x128xbf16>, vector<128x128xbf16>, vector<256x128xf32> -> vector<256x128xf32>
    %25 = arith.addf %19, %24 : vector<256x128xf32>
    %c129 = arith.constant 129 : index
    %c0_19 = arith.constant 0 : index
    %26 = vector.load %arg5[%c129, %c0_19] : memref<544x128xf32, #tpu.memory_space<vmem>>, vector<256x128xf32>
    %cst_20 = arith.constant 0.000000e+00 : f32
    %27 = vector.broadcast %cst_20 : f32 to vector<256x128xf32>
    %28 = arith.select %12, %26, %27 : vector<256x128xi1>, vector<256x128xf32>
    %29 = arith.truncf %28 : vector<256x128xf32> to vector<256x128xbf16>
    %c0_21 = arith.constant 0 : index
    %c2 = arith.constant 2 : index
    %c0_22 = arith.constant 0 : index
    %c0_23 = arith.constant 0 : index
    %30 = vector.load %arg2[%c0_21, %c2, %c0_22, %c0_23] : memref<4x9x128x128xbf16, #tpu.memory_space<vmem>>, vector<1x1x128x128xbf16>
    %31 = vector.shape_cast %30 : vector<1x1x128x128xbf16> to vector<128x128xbf16>
    %cst_24 = arith.constant dense<0.000000e+00> : vector<256x128xf32>
    %32 = tpu.matmul %29, %31, %cst_24 {dimension_numbers = #tpu.dot_dimension_numbers<[1], [0], [0], [1], [0, 0, 1, 1], [], []>} : vector<256x128xbf16>, vector<128x128xbf16>, vector<256x128xf32> -> vector<256x128xf32>
    %33 = arith.addf %25, %32 : vector<256x128xf32>
    %c143 = arith.constant 143 : index
    %c0_25 = arith.constant 0 : index
    %34 = vector.load %arg5[%c143, %c0_25] : memref<544x128xf32, #tpu.memory_space<vmem>>, vector<256x128xf32>
    %cst_26 = arith.constant 0.000000e+00 : f32
    %35 = vector.broadcast %cst_26 : f32 to vector<256x128xf32>
    %36 = arith.select %10, %34, %35 : vector<256x128xi1>, vector<256x128xf32>
    %37 = arith.truncf %36 : vector<256x128xf32> to vector<256x128xbf16>
    %c0_27 = arith.constant 0 : index
    %c3 = arith.constant 3 : index
    %c0_28 = arith.constant 0 : index
    %c0_29 = arith.constant 0 : index
    %38 = vector.load %arg2[%c0_27, %c3, %c0_28, %c0_29] : memref<4x9x128x128xbf16, #tpu.memory_space<vmem>>, vector<1x1x128x128xbf16>
    %39 = vector.shape_cast %38 : vector<1x1x128x128xbf16> to vector<128x128xbf16>
    %cst_30 = arith.constant dense<0.000000e+00> : vector<256x128xf32>
    %40 = tpu.matmul %37, %39, %cst_30 {dimension_numbers = #tpu.dot_dimension_numbers<[1], [0], [0], [1], [0, 0, 1, 1], [], []>} : vector<256x128xbf16>, vector<128x128xbf16>, vector<256x128xf32> -> vector<256x128xf32>
    %41 = arith.addf %33, %40 : vector<256x128xf32>
    %c144_31 = arith.constant 144 : index
    %c0_32 = arith.constant 0 : index
    %42 = vector.load %arg5[%c144_31, %c0_32] : memref<544x128xf32, #tpu.memory_space<vmem>>, vector<256x128xf32>
    %43 = arith.truncf %42 : vector<256x128xf32> to vector<256x128xbf16>
    %c0_33 = arith.constant 0 : index
    %c4 = arith.constant 4 : index
    %c0_34 = arith.constant 0 : index
    %c0_35 = arith.constant 0 : index
    %44 = vector.load %arg2[%c0_33, %c4, %c0_34, %c0_35] : memref<4x9x128x128xbf16, #tpu.memory_space<vmem>>, vector<1x1x128x128xbf16>
    %45 = vector.shape_cast %44 : vector<1x1x128x128xbf16> to vector<128x128xbf16>
    %cst_36 = arith.constant dense<0.000000e+00> : vector<256x128xf32>
    %46 = tpu.matmul %43, %45, %cst_36 {dimension_numbers = #tpu.dot_dimension_numbers<[1], [0], [0], [1], [0, 0, 1, 1], [], []>} : vector<256x128xbf16>, vector<128x128xbf16>, vector<256x128xf32> -> vector<256x128xf32>
    %47 = arith.addf %41, %46 : vector<256x128xf32>
    %c145 = arith.constant 145 : index
    %c0_37 = arith.constant 0 : index
    %48 = vector.load %arg5[%c145, %c0_37] : memref<544x128xf32, #tpu.memory_space<vmem>>, vector<256x128xf32>
    %cst_38 = arith.constant 0.000000e+00 : f32
    %49 = vector.broadcast %cst_38 : f32 to vector<256x128xf32>
    %50 = arith.select %12, %48, %49 : vector<256x128xi1>, vector<256x128xf32>
    %51 = arith.truncf %50 : vector<256x128xf32> to vector<256x128xbf16>
    %c0_39 = arith.constant 0 : index
    %c5 = arith.constant 5 : index
    %c0_40 = arith.constant 0 : index
    %c0_41 = arith.constant 0 : index
    %52 = vector.load %arg2[%c0_39, %c5, %c0_40, %c0_41] : memref<4x9x128x128xbf16, #tpu.memory_space<vmem>>, vector<1x1x128x128xbf16>
    %53 = vector.shape_cast %52 : vector<1x1x128x128xbf16> to vector<128x128xbf16>
    %cst_42 = arith.constant dense<0.000000e+00> : vector<256x128xf32>
    %54 = tpu.matmul %51, %53, %cst_42 {dimension_numbers = #tpu.dot_dimension_numbers<[1], [0], [0], [1], [0, 0, 1, 1], [], []>} : vector<256x128xbf16>, vector<128x128xbf16>, vector<256x128xf32> -> vector<256x128xf32>
    %55 = arith.addf %47, %54 : vector<256x128xf32>
    %c159 = arith.constant 159 : index
    %c0_43 = arith.constant 0 : index
    %56 = vector.load %arg5[%c159, %c0_43] : memref<544x128xf32, #tpu.memory_space<vmem>>, vector<256x128xf32>
    %cst_44 = arith.constant 0.000000e+00 : f32
    %57 = vector.broadcast %cst_44 : f32 to vector<256x128xf32>
    %58 = arith.select %10, %56, %57 : vector<256x128xi1>, vector<256x128xf32>
    %59 = arith.truncf %58 : vector<256x128xf32> to vector<256x128xbf16>
    %c0_45 = arith.constant 0 : index
    %c6 = arith.constant 6 : index
    %c0_46 = arith.constant 0 : index
    %c0_47 = arith.constant 0 : index
    %60 = vector.load %arg2[%c0_45, %c6, %c0_46, %c0_47] : memref<4x9x128x128xbf16, #tpu.memory_space<vmem>>, vector<1x1x128x128xbf16>
    %61 = vector.shape_cast %60 : vector<1x1x128x128xbf16> to vector<128x128xbf16>
    %cst_48 = arith.constant dense<0.000000e+00> : vector<256x128xf32>
    %62 = tpu.matmul %59, %61, %cst_48 {dimension_numbers = #tpu.dot_dimension_numbers<[1], [0], [0], [1], [0, 0, 1, 1], [], []>} : vector<256x128xbf16>, vector<128x128xbf16>, vector<256x128xf32> -> vector<256x128xf32>
    %63 = arith.addf %55, %62 : vector<256x128xf32>
    %c160 = arith.constant 160 : index
    %c0_49 = arith.constant 0 : index
    %64 = vector.load %arg5[%c160, %c0_49] : memref<544x128xf32, #tpu.memory_space<vmem>>, vector<256x128xf32>
    %65 = arith.truncf %64 : vector<256x128xf32> to vector<256x128xbf16>
    %c0_50 = arith.constant 0 : index
    %c7 = arith.constant 7 : index
    %c0_51 = arith.constant 0 : index
    %c0_52 = arith.constant 0 : index
    %66 = vector.load %arg2[%c0_50, %c7, %c0_51, %c0_52] : memref<4x9x128x128xbf16, #tpu.memory_space<vmem>>, vector<1x1x128x128xbf16>
    %67 = vector.shape_cast %66 : vector<1x1x128x128xbf16> to vector<128x128xbf16>
    %cst_53 = arith.constant dense<0.000000e+00> : vector<256x128xf32>
    %68 = tpu.matmul %65, %67, %cst_53 {dimension_numbers = #tpu.dot_dimension_numbers<[1], [0], [0], [1], [0, 0, 1, 1], [], []>} : vector<256x128xbf16>, vector<128x128xbf16>, vector<256x128xf32> -> vector<256x128xf32>
    %69 = arith.addf %63, %68 : vector<256x128xf32>
    %c161 = arith.constant 161 : index
    %c0_54 = arith.constant 0 : index
    %70 = vector.load %arg5[%c161, %c0_54] : memref<544x128xf32, #tpu.memory_space<vmem>>, vector<256x128xf32>
    %cst_55 = arith.constant 0.000000e+00 : f32
    %71 = vector.broadcast %cst_55 : f32 to vector<256x128xf32>
    %72 = arith.select %12, %70, %71 : vector<256x128xi1>, vector<256x128xf32>
    %73 = arith.truncf %72 : vector<256x128xf32> to vector<256x128xbf16>
    %c0_56 = arith.constant 0 : index
    %c8 = arith.constant 8 : index
    %c0_57 = arith.constant 0 : index
    %c0_58 = arith.constant 0 : index
    %74 = vector.load %arg2[%c0_56, %c8, %c0_57, %c0_58] : memref<4x9x128x128xbf16, #tpu.memory_space<vmem>>, vector<1x1x128x128xbf16>
    %75 = vector.shape_cast %74 : vector<1x1x128x128xbf16> to vector<128x128xbf16>
    %cst_59 = arith.constant dense<0.000000e+00> : vector<256x128xf32>
    %76 = tpu.matmul %73, %75, %cst_59 {dimension_numbers = #tpu.dot_dimension_numbers<[1], [0], [0], [1], [0, 0, 1, 1], [], []>} : vector<256x128xbf16>, vector<128x128xbf16>, vector<256x128xf32> -> vector<256x128xf32>
    %77 = arith.addf %69, %76 : vector<256x128xf32>
    %c0_60 = arith.constant 0 : index
    %c0_61 = arith.constant 0 : index
    %c0_62 = arith.constant 0 : index
    %78 = vector.load %arg3[%c0_60, %c0_61, %c0_62] : memref<4x1x128xf32, #tpu.memory_space<vmem>>, vector<1x1x128xf32>
    %79 = vector.shape_cast %78 : vector<1x1x128xf32> to vector<1x128xf32>
    %80 = vector.broadcast %79 : vector<1x128xf32> to vector<256x128xf32>
    %81 = arith.addf %77, %80 : vector<256x128xf32>
    %cst_63 = arith.constant 0.000000e+00 : f32
    %82 = vector.broadcast %cst_63 : f32 to vector<256x128xf32>
    %83 = arith.maximumf %81, %82 : vector<256x128xf32>
    %c144_64 = arith.constant 144 : index
    %c0_65 = arith.constant 0 : index
    %84 = vector.load %arg5[%c144_64, %c0_65] : memref<544x128xf32, #tpu.memory_space<vmem>>, vector<256x128xf32>
    tpu.vector_store %arg5[%c144_64, %c0_65], %83 {strides = array<i32>} : memref<544x128xf32, #tpu.memory_space<vmem>>, vector<256x128xf32>,
    %c145_66 = arith.constant 145 : index
    %c0_67 = arith.constant 0 : index
    %85 = vector.load %arg5[%c145_66, %c0_67] : memref<544x128xf32, #tpu.memory_space<vmem>>, vector<256x128xf32>
    %c160_68 = arith.constant 160 : index
    %c0_69 = arith.constant 0 : index
    %86 = vector.load %arg5[%c160_68, %c0_69] : memref<544x128xf32, #tpu.memory_space<vmem>>, vector<256x128xf32>
    %c161_70 = arith.constant 161 : index
    %c0_71 = arith.constant 0 : index
    %87 = vector.load %arg5[%c161_70, %c0_71] : memref<544x128xf32, #tpu.memory_space<vmem>>, vector<256x128xf32>
    %88 = arith.maximumf %83, %85 : vector<256x128xf32>
    %89 = arith.maximumf %86, %87 : vector<256x128xf32>
    %90 = arith.maximumf %88, %89 : vector<256x128xf32>
    %c144_72 = arith.constant 144 : index
    %c0_73 = arith.constant 0 : index
    %91 = vector.load %arg5[%c144_72, %c0_73] : memref<544x128xf32, #tpu.memory_space<vmem>>, vector<256x128xf32>
    tpu.vector_store %arg5[%c144_72, %c0_73], %90 {strides = array<i32>} : memref<544x128xf32, #tpu.memory_space<vmem>>, vector<256x128xf32>,
    %c2_i32 = arith.constant 2 : i32
    %92 = vector.broadcast %c2_i32 : i32 to vector<256x128xi32>
    %93 = arith.cmpi sge, %8, %92 : vector<256x128xi32>
    %c14_i32 = arith.constant 14 : i32
    %94 = vector.broadcast %c14_i32 : i32 to vector<256x128xi32>
    %95 = arith.cmpi slt, %8, %94 : vector<256x128xi32>
    %c110 = arith.constant 110 : index
    %c0_74 = arith.constant 0 : index
    %96 = vector.load %arg5[%c110, %c0_74] : memref<544x128xf32, #tpu.memory_space<vmem>>, vector<256x128xf32>
    %cst_75 = arith.constant 0.000000e+00 : f32
    %97 = vector.broadcast %cst_75 : f32 to vector<256x128xf32>
    %98 = arith.select %93, %96, %97 : vector<256x128xi1>, vector<256x128xf32>
    %99 = arith.truncf %98 : vector<256x128xf32> to vector<256x128xbf16>
    %c1_76 = arith.constant 1 : index
    %c0_77 = arith.constant 0 : index
    %c0_78 = arith.constant 0 : index
    %c0_79 = arith.constant 0 : index
    %100 = vector.load %arg2[%c1_76, %c0_77, %c0_78, %c0_79] : memref<4x9x128x128xbf16, #tpu.memory_space<vmem>>, vector<1x1x128x128xbf16>
    %101 = vector.shape_cast %100 : vector<1x1x128x128xbf16> to vector<128x128xbf16>
    %cst_80 = arith.constant dense<0.000000e+00> : vector<256x128xf32>
    %102 = tpu.matmul %99, %101, %cst_80 {dimension_numbers = #tpu.dot_dimension_numbers<[1], [0], [0], [1], [0, 0, 1, 1], [], []>} : vector<256x128xbf16>, vector<128x128xbf16>, vector<256x128xf32> -> vector<256x128xf32>
    %c112 = arith.constant 112 : index
    %c0_81 = arith.constant 0 : index
    %103 = vector.load %arg5[%c112, %c0_81] : memref<544x128xf32, #tpu.memory_space<vmem>>, vector<256x128xf32>
    %104 = arith.truncf %103 : vector<256x128xf32> to vector<256x128xbf16>
    %c1_82 = arith.constant 1 : index
    %c1_83 = arith.constant 1 : index
    %c0_84 = arith.constant 0 : index
    %c0_85 = arith.constant 0 : index
    %105 = vector.load %arg2[%c1_82, %c1_83, %c0_84, %c0_85] : memref<4x9x128x128xbf16, #tpu.memory_space<vmem>>, vector<1x1x128x128xbf16>
    %106 = vector.shape_cast %105 : vector<1x1x128x128xbf16> to vector<128x128xbf16>
    %cst_86 = arith.constant dense<0.000000e+00> : vector<256x128xf32>
    %107 = tpu.matmul %104, %106, %cst_86 {dimension_numbers = #tpu.dot_dimension_numbers<[1], [0], [0], [1], [0, 0, 1, 1], [], []>} : vector<256x128xbf16>, vector<128x128xbf16>, vector<256x128xf32> -> vector<256x128xf32>
    %108 = arith.addf %102, %107 : vector<256x128xf32>
    %c114 = arith.constant 114 : index
    %c0_87 = arith.constant 0 : index
    %109 = vector.load %arg5[%c114, %c0_87] : memref<544x128xf32, #tpu.memory_space<vmem>>, vector<256x128xf32>
    %cst_88 = arith.constant 0.000000e+00 : f32
    %110 = vector.broadcast %cst_88 : f32 to vector<256x128xf32>
    %111 = arith.select %95, %109, %110 : vector<256x128xi1>, vector<256x128xf32>
    %112 = arith.truncf %111 : vector<256x128xf32> to vector<256x128xbf16>
    %c1_89 = arith.constant 1 : index
    %c2_90 = arith.constant 2 : index
    %c0_91 = arith.constant 0 : index
    %c0_92 = arith.constant 0 : index
    %113 = vector.load %arg2[%c1_89, %c2_90, %c0_91, %c0_92] : memref<4x9x128x128xbf16, #tpu.memory_space<vmem>>, vector<1x1x128x128xbf16>
    %114 = vector.shape_cast %113 : vector<1x1x128x128xbf16> to vector<128x128xbf16>
    %cst_93 = arith.constant dense<0.000000e+00> : vector<256x128xf32>
    %115 = tpu.matmul %112, %114, %cst_93 {dimension_numbers = #tpu.dot_dimension_numbers<[1], [0], [0], [1], [0, 0, 1, 1], [], []>} : vector<256x128xbf16>, vector<128x128xbf16>, vector<256x128xf32> -> vector<256x128xf32>
    %116 = arith.addf %108, %115 : vector<256x128xf32>
    %c142 = arith.constant 142 : index
    %c0_94 = arith.constant 0 : index
    %117 = vector.load %arg5[%c142, %c0_94] : memref<544x128xf32, #tpu.memory_space<vmem>>, vector<256x128xf32>
    %cst_95 = arith.constant 0.000000e+00 : f32
    %118 = vector.broadcast %cst_95 : f32 to vector<256x128xf32>
    %119 = arith.select %93, %117, %118 : vector<256x128xi1>, vector<256x128xf32>
    %120 = arith.truncf %119 : vector<256x128xf32> to vector<256x128xbf16>
    %c1_96 = arith.constant 1 : index
    %c3_97 = arith.constant 3 : index
    %c0_98 = arith.constant 0 : index
    %c0_99 = arith.constant 0 : index
    %121 = vector.load %arg2[%c1_96, %c3_97, %c0_98, %c0_99] : memref<4x9x128x128xbf16, #tpu.memory_space<vmem>>, vector<1x1x128x128xbf16>
    %122 = vector.shape_cast %121 : vector<1x1x128x128xbf16> to vector<128x128xbf16>
    %cst_100 = arith.constant dense<0.000000e+00> : vector<256x128xf32>
    %123 = tpu.matmul %120, %122, %cst_100 {dimension_numbers = #tpu.dot_dimension_numbers<[1], [0], [0], [1], [0, 0, 1, 1], [], []>} : vector<256x128xbf16>, vector<128x128xbf16>, vector<256x128xf32> -> vector<256x128xf32>
    %124 = arith.addf %116, %123 : vector<256x128xf32>
    %c144_101 = arith.constant 144 : index
    %c0_102 = arith.constant 0 : index
    %125 = vector.load %arg5[%c144_101, %c0_102] : memref<544x128xf32, #tpu.memory_space<vmem>>, vector<256x128xf32>
    %126 = arith.truncf %125 : vector<256x128xf32> to vector<256x128xbf16>
    %c1_103 = arith.constant 1 : index
    %c4_104 = arith.constant 4 : index
    %c0_105 = arith.constant 0 : index
    %c0_106 = arith.constant 0 : index
    %127 = vector.load %arg2[%c1_103, %c4_104, %c0_105, %c0_106] : memref<4x9x128x128xbf16, #tpu.memory_space<vmem>>, vector<1x1x128x128xbf16>
    %128 = vector.shape_cast %127 : vector<1x1x128x128xbf16> to vector<128x128xbf16>
    %cst_107 = arith.constant dense<0.000000e+00> : vector<256x128xf32>
    %129 = tpu.matmul %126, %128, %cst_107 {dimension_numbers = #tpu.dot_dimension_numbers<[1], [0], [0], [1], [0, 0, 1, 1], [], []>} : vector<256x128xbf16>, vector<128x128xbf16>, vector<256x128xf32> -> vector<256x128xf32>
    %130 = arith.addf %124, %129 : vector<256x128xf32>
    %c146 = arith.constant 146 : index
    %c0_108 = arith.constant 0 : index
    %131 = vector.load %arg5[%c146, %c0_108] : memref<544x128xf32, #tpu.memory_space<vmem>>, vector<256x128xf32>
    %cst_109 = arith.constant 0.000000e+00 : f32
    %132 = vector.broadcast %cst_109 : f32 to vector<256x128xf32>
    %133 = arith.select %95, %131, %132 : vector<256x128xi1>, vector<256x128xf32>
    %134 = arith.truncf %133 : vector<256x128xf32> to vector<256x128xbf16>
    %c1_110 = arith.constant 1 : index
    %c5_111 = arith.constant 5 : index
    %c0_112 = arith.constant 0 : index
    %c0_113 = arith.constant 0 : index
    %135 = vector.load %arg2[%c1_110, %c5_111, %c0_112, %c0_113] : memref<4x9x128x128xbf16, #tpu.memory_space<vmem>>, vector<1x1x128x128xbf16>
    %136 = vector.shape_cast %135 : vector<1x1x128x128xbf16> to vector<128x128xbf16>
    %cst_114 = arith.constant dense<0.000000e+00> : vector<256x128xf32>
    %137 = tpu.matmul %134, %136, %cst_114 {dimension_numbers = #tpu.dot_dimension_numbers<[1], [0], [0], [1], [0, 0, 1, 1], [], []>} : vector<256x128xbf16>, vector<128x128xbf16>, vector<256x128xf32> -> vector<256x128xf32>
    %138 = arith.addf %130, %137 : vector<256x128xf32>
    %c174 = arith.constant 174 : index
    %c0_115 = arith.constant 0 : index
    %139 = vector.load %arg5[%c174, %c0_115] : memref<544x128xf32, #tpu.memory_space<vmem>>, vector<256x128xf32>
    %cst_116 = arith.constant 0.000000e+00 : f32
    %140 = vector.broadcast %cst_116 : f32 to vector<256x128xf32>
    %141 = arith.select %93, %139, %140 : vector<256x128xi1>, vector<256x128xf32>
    %142 = arith.truncf %141 : vector<256x128xf32> to vector<256x128xbf16>
    %c1_117 = arith.constant 1 : index
    %c6_118 = arith.constant 6 : index
    %c0_119 = arith.constant 0 : index
    %c0_120 = arith.constant 0 : index
    %143 = vector.load %arg2[%c1_117, %c6_118, %c0_119, %c0_120] : memref<4x9x128x128xbf16, #tpu.memory_space<vmem>>, vector<1x1x128x128xbf16>
    %144 = vector.shape_cast %143 : vector<1x1x128x128xbf16> to vector<128x128xbf16>
    %cst_121 = arith.constant dense<0.000000e+00> : vector<256x128xf32>
    %145 = tpu.matmul %142, %144, %cst_121 {dimension_numbers = #tpu.dot_dimension_numbers<[1], [0], [0], [1], [0, 0, 1, 1], [], []>} : vector<256x128xbf16>, vector<128x128xbf16>, vector<256x128xf32> -> vector<256x128xf32>
    %146 = arith.addf %138, %145 : vector<256x128xf32>
    %c176 = arith.constant 176 : index
    %c0_122 = arith.constant 0 : index
    %147 = vector.load %arg5[%c176, %c0_122] : memref<544x128xf32, #tpu.memory_space<vmem>>, vector<256x128xf32>
    %148 = arith.truncf %147 : vector<256x128xf32> to vector<256x128xbf16>
    %c1_123 = arith.constant 1 : index
    %c7_124 = arith.constant 7 : index
    %c0_125 = arith.constant 0 : index
    %c0_126 = arith.constant 0 : index
    %149 = vector.load %arg2[%c1_123, %c7_124, %c0_125, %c0_126] : memref<4x9x128x128xbf16, #tpu.memory_space<vmem>>, vector<1x1x128x128xbf16>
    %150 = vector.shape_cast %149 : vector<1x1x128x128xbf16> to vector<128x128xbf16>
    %cst_127 = arith.constant dense<0.000000e+00> : vector<256x128xf32>
    %151 = tpu.matmul %148, %150, %cst_127 {dimension_numbers = #tpu.dot_dimension_numbers<[1], [0], [0], [1], [0, 0, 1, 1], [], []>} : vector<256x128xbf16>, vector<128x128xbf16>, vector<256x128xf32> -> vector<256x128xf32>
    %152 = arith.addf %146, %151 : vector<256x128xf32>
    %c178 = arith.constant 178 : index
    %c0_128 = arith.constant 0 : index
    %153 = vector.load %arg5[%c178, %c0_128] : memref<544x128xf32, #tpu.memory_space<vmem>>, vector<256x128xf32>
    %cst_129 = arith.constant 0.000000e+00 : f32
    %154 = vector.broadcast %cst_129 : f32 to vector<256x128xf32>
    %155 = arith.select %95, %153, %154 : vector<256x128xi1>, vector<256x128xf32>
    %156 = arith.truncf %155 : vector<256x128xf32> to vector<256x128xbf16>
    %c1_130 = arith.constant 1 : index
    %c8_131 = arith.constant 8 : index
    %c0_132 = arith.constant 0 : index
    %c0_133 = arith.constant 0 : index
    %157 = vector.load %arg2[%c1_130, %c8_131, %c0_132, %c0_133] : memref<4x9x128x128xbf16, #tpu.memory_space<vmem>>, vector<1x1x128x128xbf16>
    %158 = vector.shape_cast %157 : vector<1x1x128x128xbf16> to vector<128x128xbf16>
    %cst_134 = arith.constant dense<0.000000e+00> : vector<256x128xf32>
    %159 = tpu.matmul %156, %158, %cst_134 {dimension_numbers = #tpu.dot_dimension_numbers<[1], [0], [0], [1], [0, 0, 1, 1], [], []>} : vector<256x128xbf16>, vector<128x128xbf16>, vector<256x128xf32> -> vector<256x128xf32>
    %160 = arith.addf %152, %159 : vector<256x128xf32>
    %c1_135 = arith.constant 1 : index
    %c0_136 = arith.constant 0 : index
    %c0_137 = arith.constant 0 : index
    %161 = vector.load %arg3[%c1_135, %c0_136, %c0_137] : memref<4x1x128xf32, #tpu.memory_space<vmem>>, vector<1x1x128xf32>
    %162 = vector.shape_cast %161 : vector<1x1x128xf32> to vector<1x128xf32>
    %163 = vector.broadcast %162 : vector<1x128xf32> to vector<256x128xf32>
    %164 = arith.addf %160, %163 : vector<256x128xf32>
    %cst_138 = arith.constant 0.000000e+00 : f32
    %165 = vector.broadcast %cst_138 : f32 to vector<256x128xf32>
    %166 = arith.maximumf %164, %165 : vector<256x128xf32>
    %c144_139 = arith.constant 144 : index
    %c0_140 = arith.constant 0 : index
    %167 = vector.load %arg5[%c144_139, %c0_140] : memref<544x128xf32, #tpu.memory_space<vmem>>, vector<256x128xf32>
    tpu.vector_store %arg5[%c144_139, %c0_140], %166 {strides = array<i32>} : memref<544x128xf32, #tpu.memory_space<vmem>>, vector<256x128xf32>,
    %c146_141 = arith.constant 146 : index
    %c0_142 = arith.constant 0 : index
    %168 = vector.load %arg5[%c146_141, %c0_142] : memref<544x128xf32, #tpu.memory_space<vmem>>, vector<256x128xf32>
    %c176_143 = arith.constant 176 : index
    %c0_144 = arith.constant 0 : index
    %169 = vector.load %arg5[%c176_143, %c0_144] : memref<544x128xf32, #tpu.memory_space<vmem>>, vector<256x128xf32>
    %c178_145 = arith.constant 178 : index
    %c0_146 = arith.constant 0 : index
    %170 = vector.load %arg5[%c178_145, %c0_146] : memref<544x128xf32, #tpu.memory_space<vmem>>, vector<256x128xf32>
    %171 = arith.maximumf %166, %168 : vector<256x128xf32>
    %172 = arith.maximumf %169, %170 : vector<256x128xf32>
    %173 = arith.maximumf %171, %172 : vector<256x128xf32>
    %c144_147 = arith.constant 144 : index
    %c0_148 = arith.constant 0 : index
    %174 = vector.load %arg5[%c144_147, %c0_148] : memref<544x128xf32, #tpu.memory_space<vmem>>, vector<256x128xf32>
    tpu.vector_store %arg5[%c144_147, %c0_148], %173 {strides = array<i32>} : memref<544x128xf32, #tpu.memory_space<vmem>>, vector<256x128xf32>,
    %c4_i32 = arith.constant 4 : i32
    %175 = vector.broadcast %c4_i32 : i32 to vector<256x128xi32>
    %176 = arith.cmpi sge, %8, %175 : vector<256x128xi32>
    %c12_i32 = arith.constant 12 : i32
    %177 = vector.broadcast %c12_i32 : i32 to vector<256x128xi32>
    %178 = arith.cmpi slt, %8, %177 : vector<256x128xi32>
    %c76 = arith.constant 76 : index
    %c0_149 = arith.constant 0 : index
    %179 = vector.load %arg5[%c76, %c0_149] : memref<544x128xf32, #tpu.memory_space<vmem>>, vector<256x128xf32>
    %cst_150 = arith.constant 0.000000e+00 : f32
    %180 = vector.broadcast %cst_150 : f32 to vector<256x128xf32>
    %181 = arith.select %176, %179, %180 : vector<256x128xi1>, vector<256x128xf32>
    %182 = arith.truncf %181 : vector<256x128xf32> to vector<256x128xbf16>
    %c2_151 = arith.constant 2 : index
    %c0_152 = arith.constant 0 : index
    %c0_153 = arith.constant 0 : index
    %c0_154 = arith.constant 0 : index
    %183 = vector.load %arg2[%c2_151, %c0_152, %c0_153, %c0_154] : memref<4x9x128x128xbf16, #tpu.memory_space<vmem>>, vector<1x1x128x128xbf16>
    %184 = vector.shape_cast %183 : vector<1x1x128x128xbf16> to vector<128x128xbf16>
    %cst_155 = arith.constant dense<0.000000e+00> : vector<256x128xf32>
    %185 = tpu.matmul %182, %184, %cst_155 {dimension_numbers = #tpu.dot_dimension_numbers<[1], [0], [0], [1], [0, 0, 1, 1], [], []>} : vector<256x128xbf16>, vector<128x128xbf16>, vector<256x128xf32> -> vector<256x128xf32>
    %c80 = arith.constant 80 : index
    %c0_156 = arith.constant 0 : index
    %186 = vector.load %arg5[%c80, %c0_156] : memref<544x128xf32, #tpu.memory_space<vmem>>, vector<256x128xf32>
    %187 = arith.truncf %186 : vector<256x128xf32> to vector<256x128xbf16>
    %c2_157 = arith.constant 2 : index
    %c1_158 = arith.constant 1 : index
    %c0_159 = arith.constant 0 : index
    %c0_160 = arith.constant 0 : index
    %188 = vector.load %arg2[%c2_157, %c1_158, %c0_159, %c0_160] : memref<4x9x128x128xbf16, #tpu.memory_space<vmem>>, vector<1x1x128x128xbf16>
    %189 = vector.shape_cast %188 : vector<1x1x128x128xbf16> to vector<128x128xbf16>
    %cst_161 = arith.constant dense<0.000000e+00> : vector<256x128xf32>
    %190 = tpu.matmul %187, %189, %cst_161 {dimension_numbers = #tpu.dot_dimension_numbers<[1], [0], [0], [1], [0, 0, 1, 1], [], []>} : vector<256x128xbf16>, vector<128x128xbf16>, vector<256x128xf32> -> vector<256x128xf32>
    %191 = arith.addf %185, %190 : vector<256x128xf32>
    %c84 = arith.constant 84 : index
    %c0_162 = arith.constant 0 : index
    %192 = vector.load %arg5[%c84, %c0_162] : memref<544x128xf32, #tpu.memory_space<vmem>>, vector<256x128xf32>
    %cst_163 = arith.constant 0.000000e+00 : f32
    %193 = vector.broadcast %cst_163 : f32 to vector<256x128xf32>
    %194 = arith.select %178, %192, %193 : vector<256x128xi1>, vector<256x128xf32>
    %195 = arith.truncf %194 : vector<256x128xf32> to vector<256x128xbf16>
    %c2_164 = arith.constant 2 : index
    %c2_165 = arith.constant 2 : index
    %c0_166 = arith.constant 0 : index
    %c0_167 = arith.constant 0 : index
    %196 = vector.load %arg2[%c2_164, %c2_165, %c0_166, %c0_167] : memref<4x9x128x128xbf16, #tpu.memory_space<vmem>>, vector<1x1x128x128xbf16>
    %197 = vector.shape_cast %196 : vector<1x1x128x128xbf16> to vector<128x128xbf16>
    %cst_168 = arith.constant dense<0.000000e+00> : vector<256x128xf32>
    %198 = tpu.matmul %195, %197, %cst_168 {dimension_numbers = #tpu.dot_dimension_numbers<[1], [0], [0], [1], [0, 0, 1, 1], [], []>} : vector<256x128xbf16>, vector<128x128xbf16>, vector<256x128xf32> -> vector<256x128xf32>
    %199 = arith.addf %191, %198 : vector<256x128xf32>
    %c140 = arith.constant 140 : index
    %c0_169 = arith.constant 0 : index
    %200 = vector.load %arg5[%c140, %c0_169] : memref<544x128xf32, #tpu.memory_space<vmem>>, vector<256x128xf32>
    %cst_170 = arith.constant 0.000000e+00 : f32
    %201 = vector.broadcast %cst_170 : f32 to vector<256x128xf32>
    %202 = arith.select %176, %200, %201 : vector<256x128xi1>, vector<256x128xf32>
    %203 = arith.truncf %202 : vector<256x128xf32> to vector<256x128xbf16>
    %c2_171 = arith.constant 2 : index
    %c3_172 = arith.constant 3 : index
    %c0_173 = arith.constant 0 : index
    %c0_174 = arith.constant 0 : index
    %204 = vector.load %arg2[%c2_171, %c3_172, %c0_173, %c0_174] : memref<4x9x128x128xbf16, #tpu.memory_space<vmem>>, vector<1x1x128x128xbf16>
    %205 = vector.shape_cast %204 : vector<1x1x128x128xbf16> to vector<128x128xbf16>
    %cst_175 = arith.constant dense<0.000000e+00> : vector<256x128xf32>
    %206 = tpu.matmul %203, %205, %cst_175 {dimension_numbers = #tpu.dot_dimension_numbers<[1], [0], [0], [1], [0, 0, 1, 1], [], []>} : vector<256x128xbf16>, vector<128x128xbf16>, vector<256x128xf32> -> vector<256x128xf32>
    %207 = arith.addf %199, %206 : vector<256x128xf32>
    %c144_176 = arith.constant 144 : index
    %c0_177 = arith.constant 0 : index
    %208 = vector.load %arg5[%c144_176, %c0_177] : memref<544x128xf32, #tpu.memory_space<vmem>>, vector<256x128xf32>
    %209 = arith.truncf %208 : vector<256x128xf32> to vector<256x128xbf16>
    %c2_178 = arith.constant 2 : index
    %c4_179 = arith.constant 4 : index
    %c0_180 = arith.constant 0 : index
    %c0_181 = arith.constant 0 : index
    %210 = vector.load %arg2[%c2_178, %c4_179, %c0_180, %c0_181] : memref<4x9x128x128xbf16, #tpu.memory_space<vmem>>, vector<1x1x128x128xbf16>
    %211 = vector.shape_cast %210 : vector<1x1x128x128xbf16> to vector<128x128xbf16>
    %cst_182 = arith.constant dense<0.000000e+00> : vector<256x128xf32>
    %212 = tpu.matmul %209, %211, %cst_182 {dimension_numbers = #tpu.dot_dimension_numbers<[1], [0], [0], [1], [0, 0, 1, 1], [], []>} : vector<256x128xbf16>, vector<128x128xbf16>, vector<256x128xf32> -> vector<256x128xf32>
    %213 = arith.addf %207, %212 : vector<256x128xf32>
    %c148 = arith.constant 148 : index
    %c0_183 = arith.constant 0 : index
    %214 = vector.load %arg5[%c148, %c0_183] : memref<544x128xf32, #tpu.memory_space<vmem>>, vector<256x128xf32>
    %cst_184 = arith.constant 0.000000e+00 : f32
    %215 = vector.broadcast %cst_184 : f32 to vector<256x128xf32>
    %216 = arith.select %178, %214, %215 : vector<256x128xi1>, vector<256x128xf32>
    %217 = arith.truncf %216 : vector<256x128xf32> to vector<256x128xbf16>
    %c2_185 = arith.constant 2 : index
    %c5_186 = arith.constant 5 : index
    %c0_187 = arith.constant 0 : index
    %c0_188 = arith.constant 0 : index
    %218 = vector.load %arg2[%c2_185, %c5_186, %c0_187, %c0_188] : memref<4x9x128x128xbf16, #tpu.memory_space<vmem>>, vector<1x1x128x128xbf16>
    %219 = vector.shape_cast %218 : vector<1x1x128x128xbf16> to vector<128x128xbf16>
    %cst_189 = arith.constant dense<0.000000e+00> : vector<256x128xf32>
    %220 = tpu.matmul %217, %219, %cst_189 {dimension_numbers = #tpu.dot_dimension_numbers<[1], [0], [0], [1], [0, 0, 1, 1], [], []>} : vector<256x128xbf16>, vector<128x128xbf16>, vector<256x128xf32> -> vector<256x128xf32>
    %221 = arith.addf %213, %220 : vector<256x128xf32>
    %c204 = arith.constant 204 : index
    %c0_190 = arith.constant 0 : index
    %222 = vector.load %arg5[%c204, %c0_190] : memref<544x128xf32, #tpu.memory_space<vmem>>, vector<256x128xf32>
    %cst_191 = arith.constant 0.000000e+00 : f32
    %223 = vector.broadcast %cst_191 : f32 to vector<256x128xf32>
    %224 = arith.select %176, %222, %223 : vector<256x128xi1>, vector<256x128xf32>
    %225 = arith.truncf %224 : vector<256x128xf32> to vector<256x128xbf16>
    %c2_192 = arith.constant 2 : index
    %c6_193 = arith.constant 6 : index
    %c0_194 = arith.constant 0 : index
    %c0_195 = arith.constant 0 : index
    %226 = vector.load %arg2[%c2_192, %c6_193, %c0_194, %c0_195] : memref<4x9x128x128xbf16, #tpu.memory_space<vmem>>, vector<1x1x128x128xbf16>
    %227 = vector.shape_cast %226 : vector<1x1x128x128xbf16> to vector<128x128xbf16>
    %cst_196 = arith.constant dense<0.000000e+00> : vector<256x128xf32>
    %228 = tpu.matmul %225, %227, %cst_196 {dimension_numbers = #tpu.dot_dimension_numbers<[1], [0], [0], [1], [0, 0, 1, 1], [], []>} : vector<256x128xbf16>, vector<128x128xbf16>, vector<256x128xf32> -> vector<256x128xf32>
    %229 = arith.addf %221, %228 : vector<256x128xf32>
    %c208 = arith.constant 208 : index
    %c0_197 = arith.constant 0 : index
    %230 = vector.load %arg5[%c208, %c0_197] : memref<544x128xf32, #tpu.memory_space<vmem>>, vector<256x128xf32>
    %231 = arith.truncf %230 : vector<256x128xf32> to vector<256x128xbf16>
    %c2_198 = arith.constant 2 : index
    %c7_199 = arith.constant 7 : index
    %c0_200 = arith.constant 0 : index
    %c0_201 = arith.constant 0 : index
    %232 = vector.load %arg2[%c2_198, %c7_199, %c0_200, %c0_201] : memref<4x9x128x128xbf16, #tpu.memory_space<vmem>>, vector<1x1x128x128xbf16>
    %233 = vector.shape_cast %232 : vector<1x1x128x128xbf16> to vector<128x128xbf16>
    %cst_202 = arith.constant dense<0.000000e+00> : vector<256x128xf32>
    %234 = tpu.matmul %231, %233, %cst_202 {dimension_numbers = #tpu.dot_dimension_numbers<[1], [0], [0], [1], [0, 0, 1, 1], [], []>} : vector<256x128xbf16>, vector<128x128xbf16>, vector<256x128xf32> -> vector<256x128xf32>
    %235 = arith.addf %229, %234 : vector<256x128xf32>
    %c212 = arith.constant 212 : index
    %c0_203 = arith.constant 0 : index
    %236 = vector.load %arg5[%c212, %c0_203] : memref<544x128xf32, #tpu.memory_space<vmem>>, vector<256x128xf32>
    %cst_204 = arith.constant 0.000000e+00 : f32
    %237 = vector.broadcast %cst_204 : f32 to vector<256x128xf32>
    %238 = arith.select %178, %236, %237 : vector<256x128xi1>, vector<256x128xf32>
    %239 = arith.truncf %238 : vector<256x128xf32> to vector<256x128xbf16>
    %c2_205 = arith.constant 2 : index
    %c8_206 = arith.constant 8 : index
    %c0_207 = arith.constant 0 : index
    %c0_208 = arith.constant 0 : index
    %240 = vector.load %arg2[%c2_205, %c8_206, %c0_207, %c0_208] : memref<4x9x128x128xbf16, #tpu.memory_space<vmem>>, vector<1x1x128x128xbf16>
    %241 = vector.shape_cast %240 : vector<1x1x128x128xbf16> to vector<128x128xbf16>
    %cst_209 = arith.constant dense<0.000000e+00> : vector<256x128xf32>
    %242 = tpu.matmul %239, %241, %cst_209 {dimension_numbers = #tpu.dot_dimension_numbers<[1], [0], [0], [1], [0, 0, 1, 1], [], []>} : vector<256x128xbf16>, vector<128x128xbf16>, vector<256x128xf32> -> vector<256x128xf32>
    %243 = arith.addf %235, %242 : vector<256x128xf32>
    %c2_210 = arith.constant 2 : index
    %c0_211 = arith.constant 0 : index
    %c0_212 = arith.constant 0 : index
    %244 = vector.load %arg3[%c2_210, %c0_211, %c0_212] : memref<4x1x128xf32, #tpu.memory_space<vmem>>, vector<1x1x128xf32>
    %245 = vector.shape_cast %244 : vector<1x1x128xf32> to vector<1x128xf32>
    %246 = vector.broadcast %245 : vector<1x128xf32> to vector<256x128xf32>
    %247 = arith.addf %243, %246 : vector<256x128xf32>
    %cst_213 = arith.constant 0.000000e+00 : f32
    %248 = vector.broadcast %cst_213 : f32 to vector<256x128xf32>
    %249 = arith.maximumf %247, %248 : vector<256x128xf32>
    %c144_214 = arith.constant 144 : index
    %c0_215 = arith.constant 0 : index
    %250 = vector.load %arg5[%c144_214, %c0_215] : memref<544x128xf32, #tpu.memory_space<vmem>>, vector<256x128xf32>
    tpu.vector_store %arg5[%c144_214, %c0_215], %249 {strides = array<i32>} : memref<544x128xf32, #tpu.memory_space<vmem>>, vector<256x128xf32>,
    %c148_216 = arith.constant 148 : index
    %c0_217 = arith.constant 0 : index
    %251 = vector.load %arg5[%c148_216, %c0_217] : memref<544x128xf32, #tpu.memory_space<vmem>>, vector<256x128xf32>
    %c208_218 = arith.constant 208 : index
    %c0_219 = arith.constant 0 : index
    %252 = vector.load %arg5[%c208_218, %c0_219] : memref<544x128xf32, #tpu.memory_space<vmem>>, vector<256x128xf32>
    %c212_220 = arith.constant 212 : index
    %c0_221 = arith.constant 0 : index
    %253 = vector.load %arg5[%c212_220, %c0_221] : memref<544x128xf32, #tpu.memory_space<vmem>>, vector<256x128xf32>
    %254 = arith.maximumf %249, %251 : vector<256x128xf32>
    %255 = arith.maximumf %252, %253 : vector<256x128xf32>
    %256 = arith.maximumf %254, %255 : vector<256x128xf32>
    %c144_222 = arith.constant 144 : index
    %c0_223 = arith.constant 0 : index
    %257 = vector.load %arg5[%c144_222, %c0_223] : memref<544x128xf32, #tpu.memory_space<vmem>>, vector<256x128xf32>
    tpu.vector_store %arg5[%c144_222, %c0_223], %256 {strides = array<i32>} : memref<544x128xf32, #tpu.memory_space<vmem>>, vector<256x128xf32>,
    %c8_i32 = arith.constant 8 : i32
    %258 = vector.broadcast %c8_i32 : i32 to vector<256x128xi32>
    %259 = arith.cmpi sge, %8, %258 : vector<256x128xi32>
    %c8_i32_224 = arith.constant 8 : i32
    %260 = vector.broadcast %c8_i32_224 : i32 to vector<256x128xi32>
    %261 = arith.cmpi slt, %8, %260 : vector<256x128xi32>
    %c8_225 = arith.constant 8 : index
    %c0_226 = arith.constant 0 : index
    %262 = vector.load %arg5[%c8_225, %c0_226] : memref<544x128xf32, #tpu.memory_space<vmem>>, vector<256x128xf32>
    %cst_227 = arith.constant 0.000000e+00 : f32
    %263 = vector.broadcast %cst_227 : f32 to vector<256x128xf32>
    %264 = arith.select %259, %262, %263 : vector<256x128xi1>, vector<256x128xf32>
    %265 = arith.truncf %264 : vector<256x128xf32> to vector<256x128xbf16>
    %c3_228 = arith.constant 3 : index
    %c0_229 = arith.constant 0 : index
    %c0_230 = arith.constant 0 : index
    %c0_231 = arith.constant 0 : index
    %266 = vector.load %arg2[%c3_228, %c0_229, %c0_230, %c0_231] : memref<4x9x128x128xbf16, #tpu.memory_space<vmem>>, vector<1x1x128x128xbf16>
    %267 = vector.shape_cast %266 : vector<1x1x128x128xbf16> to vector<128x128xbf16>
    %cst_232 = arith.constant dense<0.000000e+00> : vector<256x128xf32>
    %268 = tpu.matmul %265, %267, %cst_232 {dimension_numbers = #tpu.dot_dimension_numbers<[1], [0], [0], [1], [0, 0, 1, 1], [], []>} : vector<256x128xbf16>, vector<128x128xbf16>, vector<256x128xf32> -> vector<256x128xf32>
    %c16 = arith.constant 16 : index
    %c0_233 = arith.constant 0 : index
    %269 = vector.load %arg5[%c16, %c0_233] : memref<544x128xf32, #tpu.memory_space<vmem>>, vector<256x128xf32>
    %270 = arith.truncf %269 : vector<256x128xf32> to vector<256x128xbf16>
    %c3_234 = arith.constant 3 : index
    %c1_235 = arith.constant 1 : index
    %c0_236 = arith.constant 0 : index
    %c0_237 = arith.constant 0 : index
    %271 = vector.load %arg2[%c3_234, %c1_235, %c0_236, %c0_237] : memref<4x9x128x128xbf16, #tpu.memory_space<vmem>>, vector<1x1x128x128xbf16>
    %272 = vector.shape_cast %271 : vector<1x1x128x128xbf16> to vector<128x128xbf16>
    %cst_238 = arith.constant dense<0.000000e+00> : vector<256x128xf32>
    %273 = tpu.matmul %270, %272, %cst_238 {dimension_numbers = #tpu.dot_dimension_numbers<[1], [0], [0], [1], [0, 0, 1, 1], [], []>} : vector<256x128xbf16>, vector<128x128xbf16>, vector<256x128xf32> -> vector<256x128xf32>
    %274 = arith.addf %268, %273 : vector<256x128xf32>
    %c24 = arith.constant 24 : index
    %c0_239 = arith.constant 0 : index
    %275 = vector.load %arg5[%c24, %c0_239] : memref<544x128xf32, #tpu.memory_space<vmem>>, vector<256x128xf32>
    %cst_240 = arith.constant 0.000000e+00 : f32
    %276 = vector.broadcast %cst_240 : f32 to vector<256x128xf32>
    %277 = arith.select %261, %275, %276 : vector<256x128xi1>, vector<256x128xf32>
    %278 = arith.truncf %277 : vector<256x128xf32> to vector<256x128xbf16>
    %c3_241 = arith.constant 3 : index
    %c2_242 = arith.constant 2 : index
    %c0_243 = arith.constant 0 : index
    %c0_244 = arith.constant 0 : index
    %279 = vector.load %arg2[%c3_241, %c2_242, %c0_243, %c0_244] : memref<4x9x128x128xbf16, #tpu.memory_space<vmem>>, vector<1x1x128x128xbf16>
    %280 = vector.shape_cast %279 : vector<1x1x128x128xbf16> to vector<128x128xbf16>
    %cst_245 = arith.constant dense<0.000000e+00> : vector<256x128xf32>
    %281 = tpu.matmul %278, %280, %cst_245 {dimension_numbers = #tpu.dot_dimension_numbers<[1], [0], [0], [1], [0, 0, 1, 1], [], []>} : vector<256x128xbf16>, vector<128x128xbf16>, vector<256x128xf32> -> vector<256x128xf32>
    %282 = arith.addf %274, %281 : vector<256x128xf32>
    %c136 = arith.constant 136 : index
    %c0_246 = arith.constant 0 : index
    %283 = vector.load %arg5[%c136, %c0_246] : memref<544x128xf32, #tpu.memory_space<vmem>>, vector<256x128xf32>
    %cst_247 = arith.constant 0.000000e+00 : f32
    %284 = vector.broadcast %cst_247 : f32 to vector<256x128xf32>
    %285 = arith.select %259, %283, %284 : vector<256x128xi1>, vector<256x128xf32>
    %286 = arith.truncf %285 : vector<256x128xf32> to vector<256x128xbf16>
    %c3_248 = arith.constant 3 : index
    %c3_249 = arith.constant 3 : index
    %c0_250 = arith.constant 0 : index
    %c0_251 = arith.constant 0 : index
    %287 = vector.load %arg2[%c3_248, %c3_249, %c0_250, %c0_251] : memref<4x9x128x128xbf16, #tpu.memory_space<vmem>>, vector<1x1x128x128xbf16>
    %288 = vector.shape_cast %287 : vector<1x1x128x128xbf16> to vector<128x128xbf16>
    %cst_252 = arith.constant dense<0.000000e+00> : vector<256x128xf32>
    %289 = tpu.matmul %286, %288, %cst_252 {dimension_numbers = #tpu.dot_dimension_numbers<[1], [0], [0], [1], [0, 0, 1, 1], [], []>} : vector<256x128xbf16>, vector<128x128xbf16>, vector<256x128xf32> -> vector<256x128xf32>
    %290 = arith.addf %282, %289 : vector<256x128xf32>
    %c144_253 = arith.constant 144 : index
    %c0_254 = arith.constant 0 : index
    %291 = vector.load %arg5[%c144_253, %c0_254] : memref<544x128xf32, #tpu.memory_space<vmem>>, vector<256x128xf32>
    %292 = arith.truncf %291 : vector<256x128xf32> to vector<256x128xbf16>
    %c3_255 = arith.constant 3 : index
    %c4_256 = arith.constant 4 : index
    %c0_257 = arith.constant 0 : index
    %c0_258 = arith.constant 0 : index
    %293 = vector.load %arg2[%c3_255, %c4_256, %c0_257, %c0_258] : memref<4x9x128x128xbf16, #tpu.memory_space<vmem>>, vector<1x1x128x128xbf16>
    %294 = vector.shape_cast %293 : vector<1x1x128x128xbf16> to vector<128x128xbf16>
    %cst_259 = arith.constant dense<0.000000e+00> : vector<256x128xf32>
    %295 = tpu.matmul %292, %294, %cst_259 {dimension_numbers = #tpu.dot_dimension_numbers<[1], [0], [0], [1], [0, 0, 1, 1], [], []>} : vector<256x128xbf16>, vector<128x128xbf16>, vector<256x128xf32> -> vector<256x128xf32>
    %296 = arith.addf %290, %295 : vector<256x128xf32>
    %c152 = arith.constant 152 : index
    %c0_260 = arith.constant 0 : index
    %297 = vector.load %arg5[%c152, %c0_260] : memref<544x128xf32, #tpu.memory_space<vmem>>, vector<256x128xf32>
    %cst_261 = arith.constant 0.000000e+00 : f32
    %298 = vector.broadcast %cst_261 : f32 to vector<256x128xf32>
    %299 = arith.select %261, %297, %298 : vector<256x128xi1>, vector<256x128xf32>
    %300 = arith.truncf %299 : vector<256x128xf32> to vector<256x128xbf16>
    %c3_262 = arith.constant 3 : index
    %c5_263 = arith.constant 5 : index
    %c0_264 = arith.constant 0 : index
    %c0_265 = arith.constant 0 : index
    %301 = vector.load %arg2[%c3_262, %c5_263, %c0_264, %c0_265] : memref<4x9x128x128xbf16, #tpu.memory_space<vmem>>, vector<1x1x128x128xbf16>
    %302 = vector.shape_cast %301 : vector<1x1x128x128xbf16> to vector<128x128xbf16>
    %cst_266 = arith.constant dense<0.000000e+00> : vector<256x128xf32>
    %303 = tpu.matmul %300, %302, %cst_266 {dimension_numbers = #tpu.dot_dimension_numbers<[1], [0], [0], [1], [0, 0, 1, 1], [], []>} : vector<256x128xbf16>, vector<128x128xbf16>, vector<256x128xf32> -> vector<256x128xf32>
    %304 = arith.addf %296, %303 : vector<256x128xf32>
    %c264 = arith.constant 264 : index
    %c0_267 = arith.constant 0 : index
    %305 = vector.load %arg5[%c264, %c0_267] : memref<544x128xf32, #tpu.memory_space<vmem>>, vector<256x128xf32>
    %cst_268 = arith.constant 0.000000e+00 : f32
    %306 = vector.broadcast %cst_268 : f32 to vector<256x128xf32>
    %307 = arith.select %259, %305, %306 : vector<256x128xi1>, vector<256x128xf32>
    %308 = arith.truncf %307 : vector<256x128xf32> to vector<256x128xbf16>
    %c3_269 = arith.constant 3 : index
    %c6_270 = arith.constant 6 : index
    %c0_271 = arith.constant 0 : index
    %c0_272 = arith.constant 0 : index
    %309 = vector.load %arg2[%c3_269, %c6_270, %c0_271, %c0_272] : memref<4x9x128x128xbf16, #tpu.memory_space<vmem>>, vector<1x1x128x128xbf16>
    %310 = vector.shape_cast %309 : vector<1x1x128x128xbf16> to vector<128x128xbf16>
    %cst_273 = arith.constant dense<0.000000e+00> : vector<256x128xf32>
    %311 = tpu.matmul %308, %310, %cst_273 {dimension_numbers = #tpu.dot_dimension_numbers<[1], [0], [0], [1], [0, 0, 1, 1], [], []>} : vector<256x128xbf16>, vector<128x128xbf16>, vector<256x128xf32> -> vector<256x128xf32>
    %312 = arith.addf %304, %311 : vector<256x128xf32>
    %c272 = arith.constant 272 : index
    %c0_274 = arith.constant 0 : index
    %313 = vector.load %arg5[%c272, %c0_274] : memref<544x128xf32, #tpu.memory_space<vmem>>, vector<256x128xf32>
    %314 = arith.truncf %313 : vector<256x128xf32> to vector<256x128xbf16>
    %c3_275 = arith.constant 3 : index
    %c7_276 = arith.constant 7 : index
    %c0_277 = arith.constant 0 : index
    %c0_278 = arith.constant 0 : index
    %315 = vector.load %arg2[%c3_275, %c7_276, %c0_277, %c0_278] : memref<4x9x128x128xbf16, #tpu.memory_space<vmem>>, vector<1x1x128x128xbf16>
    %316 = vector.shape_cast %315 : vector<1x1x128x128xbf16> to vector<128x128xbf16>
    %cst_279 = arith.constant dense<0.000000e+00> : vector<256x128xf32>
    %317 = tpu.matmul %314, %316, %cst_279 {dimension_numbers = #tpu.dot_dimension_numbers<[1], [0], [0], [1], [0, 0, 1, 1], [], []>} : vector<256x128xbf16>, vector<128x128xbf16>, vector<256x128xf32> -> vector<256x128xf32>
    %318 = arith.addf %312, %317 : vector<256x128xf32>
    %c280 = arith.constant 280 : index
    %c0_280 = arith.constant 0 : index
    %319 = vector.load %arg5[%c280, %c0_280] : memref<544x128xf32, #tpu.memory_space<vmem>>, vector<256x128xf32>
    %cst_281 = arith.constant 0.000000e+00 : f32
    %320 = vector.broadcast %cst_281 : f32 to vector<256x128xf32>
    %321 = arith.select %261, %319, %320 : vector<256x128xi1>, vector<256x128xf32>
    %322 = arith.truncf %321 : vector<256x128xf32> to vector<256x128xbf16>
    %c3_282 = arith.constant 3 : index
    %c8_283 = arith.constant 8 : index
    %c0_284 = arith.constant 0 : index
    %c0_285 = arith.constant 0 : index
    %323 = vector.load %arg2[%c3_282, %c8_283, %c0_284, %c0_285] : memref<4x9x128x128xbf16, #tpu.memory_space<vmem>>, vector<1x1x128x128xbf16>
    %324 = vector.shape_cast %323 : vector<1x1x128x128xbf16> to vector<128x128xbf16>
    %cst_286 = arith.constant dense<0.000000e+00> : vector<256x128xf32>
    %325 = tpu.matmul %322, %324, %cst_286 {dimension_numbers = #tpu.dot_dimension_numbers<[1], [0], [0], [1], [0, 0, 1, 1], [], []>} : vector<256x128xbf16>, vector<128x128xbf16>, vector<256x128xf32> -> vector<256x128xf32>
    %326 = arith.addf %318, %325 : vector<256x128xf32>
    %c3_287 = arith.constant 3 : index
    %c0_288 = arith.constant 0 : index
    %c0_289 = arith.constant 0 : index
    %327 = vector.load %arg3[%c3_287, %c0_288, %c0_289] : memref<4x1x128xf32, #tpu.memory_space<vmem>>, vector<1x1x128xf32>
    %328 = vector.shape_cast %327 : vector<1x1x128xf32> to vector<1x128xf32>
    %329 = vector.broadcast %328 : vector<1x128xf32> to vector<256x128xf32>
    %330 = arith.addf %326, %329 : vector<256x128xf32>
    %cst_290 = arith.constant 0.000000e+00 : f32
    %331 = vector.broadcast %cst_290 : f32 to vector<256x128xf32>
    %332 = arith.maximumf %330, %331 : vector<256x128xf32>
    %c144_291 = arith.constant 144 : index
    %c0_292 = arith.constant 0 : index
    %333 = vector.load %arg5[%c144_291, %c0_292] : memref<544x128xf32, #tpu.memory_space<vmem>>, vector<256x128xf32>
    tpu.vector_store %arg5[%c144_291, %c0_292], %332 {strides = array<i32>} : memref<544x128xf32, #tpu.memory_space<vmem>>, vector<256x128xf32>,
    %c152_293 = arith.constant 152 : index
    %c0_294 = arith.constant 0 : index
    %334 = vector.load %arg5[%c152_293, %c0_294] : memref<544x128xf32, #tpu.memory_space<vmem>>, vector<256x128xf32>
    %c272_295 = arith.constant 272 : index
    %c0_296 = arith.constant 0 : index
    %335 = vector.load %arg5[%c272_295, %c0_296] : memref<544x128xf32, #tpu.memory_space<vmem>>, vector<256x128xf32>
    %c280_297 = arith.constant 280 : index
    %c0_298 = arith.constant 0 : index
    %336 = vector.load %arg5[%c280_297, %c0_298] : memref<544x128xf32, #tpu.memory_space<vmem>>, vector<256x128xf32>
    %337 = arith.maximumf %332, %334 : vector<256x128xf32>
    %338 = arith.maximumf %335, %336 : vector<256x128xf32>
    %339 = arith.maximumf %337, %338 : vector<256x128xf32>
    %c144_299 = arith.constant 144 : index
    %c0_300 = arith.constant 0 : index
    %340 = vector.load %arg5[%c144_299, %c0_300] : memref<544x128xf32, #tpu.memory_space<vmem>>, vector<256x128xf32>
    tpu.vector_store %arg5[%c144_299, %c0_300], %339 {strides = array<i32>} : memref<544x128xf32, #tpu.memory_space<vmem>>, vector<256x128xf32>,
    %c144_301 = arith.constant 144 : index
    %c0_302 = arith.constant 0 : index
    %341 = vector.load %arg5[%c144_301, %c0_302] : memref<544x128xf32, #tpu.memory_space<vmem>>, vector<8x128xf32>
    %c0_303 = arith.constant 0 : index
    %c0_304 = arith.constant 0 : index
    %342 = vector.load %arg4[%c0_303, %c0_304] : memref<8x128xf32, #tpu.memory_space<vmem>>, vector<8x128xf32>
    tpu.vector_store %arg4[%c0_303, %c0_304], %341 {strides = array<i32>} : memref<8x128xf32, #tpu.memory_space<vmem>>, vector<8x128xf32>,
    return
  }
  func.func @transform_0(%arg0: i32) -> (i32, i32) {
    %c0_i32 = arith.constant 0 : i32
    %c0_i32_0 = arith.constant 0 : i32
    return %arg0, %c0_i32 : i32, i32
  }
  func.func @transform_1(%arg0: i32) -> (i32, i32, i32, i32) {
    %c0_i32 = arith.constant 0 : i32
    %c0_i32_0 = arith.constant 0 : i32
    %c0_i32_1 = arith.constant 0 : i32
    %c0_i32_2 = arith.constant 0 : i32
    %c0_i32_3 = arith.constant 0 : i32
    return %c0_i32, %c0_i32_0, %c0_i32_1, %c0_i32_2 : i32, i32, i32, i32
  }
  func.func @transform_2(%arg0: i32) -> (i32, i32, i32) {
    %c0_i32 = arith.constant 0 : i32
    %c0_i32_0 = arith.constant 0 : i32
    %c0_i32_1 = arith.constant 0 : i32
    %c0_i32_2 = arith.constant 0 : i32
    return %c0_i32, %c0_i32_0, %c0_i32_1 : i32, i32, i32
  }
  func.func @transform_3(%arg0: i32) -> (i32, i32) {
    %c0_i32 = arith.constant 0 : i32
    %c0_i32_0 = arith.constant 0 : i32
    return %arg0, %c0_i32 : i32, i32
  }
}

</mosaic_0001>

<bundles_post_ra>
// kernel: cnn_forward.1
= control target key start
LH: loop header
LB: loop body
LE: loop exit
PB: predicated region body
PF: predicated region fallthrough
CT: control target
= control target key end

     0   :  { %8 = vsyncpa [#allocation4], 0  ;;  %s21959_s0 = inlined_call_operand.vmem [shape: f32[512,128], index: 0, kind: input, shape index: {}]   ;;  %s21960_s1 = inlined_call_operand.hbm [shape: bf16[4,9,128,128], index: 1, kind: input, shape index: {}]   ;;  %s21961_s2 = inlined_call_operand.hbm [shape: f32[4,1,128], index: 2, kind: input, shape index: {}]   ;;  %s21962_s3 = inlined_call_operand.vmem [shape: f32[16,128], index: 3, kind: output, shape index: {}]  }
   0x1   :  { %9 = vsyncpa [#allocation6], 0  ;;  %s18606_s12 = smov 0  }
   0x2 LB: > { %s18577_s13 = smov [#allocation3]   ;;  %s18612_s15 = sadd.s32 4294967295, %s18575_s12   ;;  %s18575_s12 = sphi %s18606_s12, %s15_s12  }
   0x3   : > { %s126_s14 = sshll.u32 %s18577_s13, 4  ;;  %p13379_p0 = scmp.ge.s32.totalorder %s18575_s12, 1  ;;  %s127_s14 = int_to_ptr.vmem [resolvable:$true] %s126_s14 }
   0x4   : > { %p114_p1 = scmp.lt.s32.totalorder %s18575_s12, 3  ;;  %p21963_p3 = scmp.eq.s32.totalorder %s18612_s15, 0 }
   0x5   : > { %s18578_s17 = smov [#allocation5]   ;;  %s18505_s22 = scalar_lea.hbm %s21960_s1, 36864 }
   0x6   : > { %p18616_p2 = pnand %p13379_p0, %p114_p1  ;;  %s139_s18 = sshll.u32 %s18578_s17, 4  ;;  %s18629_s18 = int_to_ptr.vmem [resolvable:$true] %s139_s18 }
   0x7   : > { %p18506_p6 = scmp.ne.s32.totalorder %s21960_s1, %s18505_s22  ;;  %p18512_p10 = scmp.lt.u32.totalorder %s18505_s22, %s21960_s1 }
   0x8   : > { %s22223_s16 = scalar_select %p18616_p2, 1, 0 }
   0x9   : > { %p18171_p4 = pneg %p18616_p2 }
   0xb   : > { %p18625_p5 = pnand %p21963_p3, %p18171_p4 }
   0xd   : > { %p18507_p7 = pneg %p18625_p5 }
   0xf   : > { %p18508_p8 = pnand %p18507_p7, %p18506_p6 }
  0x11   : > { %p18509_p9 = pneg %p18508_p8 }
  0x13   : > { %p18514_p11 = pnand %p18512_p10, %p18509_p9 }
  0x15   : > { %18517 = shalt.err (!%p18514_p11)
}
  0x16   : > { %s18518_s27 = scalar_lea.vmem %s127_s14, 36864  ;;  %p18526_p1 = scmp.lt.s32.totalorder %s127_s14, %s127_s14 }
  0x17   : > { %p18519_p12 = scmp.ne.s32.totalorder %s127_s14, %s18518_s27  ;;  %p18527_p4 = scmp.lt.s32.totalorder %s18518_s27, %s18518_s27 }
  0x19   : > { %p18521_p13 = pnand %p18519_p12, %p18507_p7  ;;  %p18528_p3 = por %p18527_p4, %p18526_p1 }
  0x1b   : > { %p18522_p0 = pneg %p18521_p13 }
  0x1d   : > { %p18529_p2 = pnand %p18528_p3, %p18522_p0 }
  0x1f   : > { %18532 = shalt.err (!%p18529_p2)
}
  0x20   : > { %s18579_s28 = smov 64   ;;  %s18580_s29 = smov 4  }
  0x21   : > { %18174 = dma.hbm_to_vmem [thread:$0]  (!%p18625_p5), %s21960_s1, 36864, %s127_s14, [#allocation4], %s18579_s28, %s18579_s28, %s18580_s29  }
  0x22   : > { %s18533_s7 = scalar_lea.hbm %s21961_s2, 64 }
  0x23   : > { %p18534_p6 = scmp.ne.s32.totalorder %s21961_s2, %s18533_s7  ;;  %p18540_p8 = scmp.lt.u32.totalorder %s18533_s7, %s21961_s2 }
  0x25   : > { %p18536_p2 = pnand %p18534_p6, %p18507_p7 }
  0x27   : > { %p18537_p3 = pneg %p18536_p2 }
  0x29   : > { %p18542_p9 = pnand %p18540_p8, %p18537_p3 }
  0x2b   : > { %18545 = shalt.err (!%p18542_p9)
}
  0x2c   : > { %s18546_s13 = scalar_lea.vmem %s18629_s18, 64  ;;  %p18554_p13 = scmp.lt.s32.totalorder %s18629_s18, %s18629_s18 }
  0x2d   : > { %p18547_p10 = scmp.ne.s32.totalorder %s18629_s18, %s18546_s13  ;;  %p18555_p0 = scmp.lt.s32.totalorder %s18546_s13, %s18546_s13 }
  0x2f   : > { %p18549_p11 = pnand %p18547_p10, %p18507_p7  ;;  %p18556_p1 = por %p18555_p0, %p18554_p13 }
  0x31   : > { %p18550_p12 = pneg %p18549_p11 }
  0x33   : > { %p18557_p4 = pnand %p18556_p1, %p18550_p12 }
  0x35   : > { %18560 = shalt.err (!%p18557_p4)
}
  0x36   : > { %s18581_s14 = smov 16   ;;  %s18582_s17 = smov 1  }
  0x37   : > { %18177 = dma.hbm_to_vmem [thread:$0]  (!%p18625_p5), %s21961_s2, 64, %s18629_s18, [#allocation6], %s18581_s14, %s18581_s14, %s18582_s17  }
  0x38   : > { %p22225_p6 = scmp.ne.s32.totalorder %s22223_s16, 0 }
  0x3a   : > { %164 = sbr.rel (%p22225_p6) target bundleno = 3126 (0xc36), region = 32 }
  0x41   : > { %p22226_p7 = scmp.eq.s32.totalorder %s18612_s15, 0 }
  0x43   : > { %18566 = dma.done.wait (%p22226_p7), [#allocation4], 36864   ;;  %p22227_p2 = pmov %p22226_p7 }
  0x45   : > { %18568 = vsyncadd (%p22227_p2), [#allocation4], 4294930432  ;;  %p22228_p3 = pmov %p22227_p2 }
  0x46   : > { %p22229_p8 = pmov %p22227_p2 }
  0x47   : > { %18570 = dma.done.wait (%p22228_p3), [#allocation6], 64  }
  0x48   : > { %18572 = vsyncadd (%p22229_p8), [#allocation6], 4294967232  ;;  %s13386_s19 = sshll.u32 %s18612_s15, 5  ;;  %v18583_v0 = vmov 0.0   ;;  %v18584_v1 = vmov 0.0|0.0   ;;  %v18198_v2 = vld [vmem:[#allocation3 + $0x40] sm:$0xff]   ;;  %v302_v59 = vlaneseq }
  0x49   : > { %202 = vst [vmem:[#allocation2] sm:$0xff] %v18583_v0  ;;  %211 = vst [vmem:[#allocation2 + $0x48] sm:$0xff] %v18583_v0  ;;  %p192_p5 = scmp.lt.s32.totalorder %s13386_s19, 63  ;;  %15427 = vmatprep.mubr.bf16.mxu0 %v18584_v1  ;;  %v18199_v3 = vld [vmem:[#allocation3 + $0x48] sm:$0xff]   ;;  %15411 = vmatprep.subr.bf16.mxu0 %v18198_v2  ;;  %v18200_v4 = vld [vmem:[#allocation3 + $0x50] sm:$0xff]   ;;  %vm22080_vm5 = vmmov 1  }
  0x4a   : > { %212 = vst [vmem:[#allocation2 + $0x50] sm:$0xff] %v18583_v0  ;;  %213 = vst [vmem:[#allocation2 + $0x58] sm:$0xff] %v18583_v0  ;;  %15412 = vmatpush3.bf16.msra.mxu0 %v18198_v2  ;;  %v18201_v5 = vld [vmem:[#allocation3 + $0x58] sm:$0xff]   ;;  %v18202_v12 = vld [vmem:[#allocation3 + $0x60] sm:$0xff]   ;;  %v18838_v61 = vshrl.u32 %v302_v59, 7  ;;  %p197_p9 = scmp.lt.s32.totalorder %s18612_s15, 1 }
  0x4b   : > { %214 = vst [vmem:[#allocation2 + $0x60] sm:$0xff] %v18583_v0  ;;  %215 = vst [vmem:[#allocation2 + $0x68] sm:$0xff] %v18583_v0  ;;  %s22748_s19 = smov (!%p192_p5, %s13386_s19), 63  ;;  %15413 = vmatprep.subr.bf16.mxu0 %v18199_v3  ;;  %v18203_v21 = vld [vmem:[#allocation3 + $0x68] sm:$0xff]   ;;  %v18204_v22 = vld [vmem:[#allocation3 + $0x70] sm:$0xff]  }
  0x4c   : > { %216 = vst [vmem:[#allocation2 + $0x70] sm:$0xff] %v18583_v0  ;;  %217 = vst [vmem:[#allocation2 + $0x78] sm:$0xff] %v18583_v0  ;;  %s13387_s16 = sshll.u32 %s22748_s19, 3  ;;  %v18205_v23 = vld [vmem:[#allocation3 + $0x78] sm:$0xff]   ;;  %v18206_v28 = vld [vmem:[#allocation3] sm:$0xff]   ;;  %v305_v63 = vadd.s32 16, %v18838_v61 }
  0x4d   : > { %218 = vst [vmem:[#allocation2 + $0x80] sm:$0xff] %v18583_v0  ;;  %219 = vst [vmem:[#allocation2 + $0x88] sm:$0xff] %v18583_v0  ;;  %s18692_s23 = scalar_lea.vmem %s21959_s0, %s13387_s16  ;;  %v18207_v39 = vld [vmem:[#allocation3 + $0x8] sm:$0xff]   ;;  %v18208_v42 = vld [vmem:[#allocation3 + $0x10] sm:$0xff]   ;;  %v307_v1 = vadd.s32 32, %v18838_v61  ;;  %v18847_v2 = vand.u32 15, %v18838_v61 }
  0x4e   : > { %220 = vst [vmem:[#allocation2 + $0x190] sm:$0xff] %v18583_v0  ;;  %221 = vst [vmem:[#allocation2 + $0x198] sm:$0xff] %v18583_v0  ;;  %15414 = vmatpush3.bf16.msra.mxu0 %v18199_v3  ;;  %v18695_v6 = vld [vmem:[%s18692_s23] sm:$0xff]  ;;  %v18698_v7 = vld [vmem:[%s18692_s23 + $0x8] sm:$0xff]  ;;  %v309_v3 = vadd.s32 48, %v18838_v61  ;;  %s22750_s15 = smov (!%p197_p9, %s18612_s15), 1 }
  0x4f   : > { %222 = vst [vmem:[#allocation2 + $0x1a0] sm:$0xff] %v18583_v0  ;;  %223 = vst [vmem:[#allocation2 + $0x1a8] sm:$0xff] %v18583_v0  ;;  %15415 = vmatprep.subr.bf16.mxu0 %v18200_v4  ;;  %v18703_v8 = vld [vmem:[%s18692_s23 + $0x10] sm:$0xff]  ;;  %v18706_v9 = vld [vmem:[%s18692_s23 + $0x18] sm:$0xff]  ;;  %v560_v33 = vpack.c.bf16 %v18698_v7, %v18695_v6  ;;  %vm367_vm0 = vcmp.ge.s32.totalorder %v18847_v2, 1  ;;  %s13388_s24 = sshll.u32 %s22750_s15, 3 }
  0x50   : > { %224 = vst [vmem:[#allocation2 + $0x1b0] sm:$0xff] %v18583_v0  ;;  %225 = vst [vmem:[#allocation2 + $0x1b8] sm:$0xff] %v18583_v0  ;;  %v18710_v10 = vld [vmem:[%s18692_s23 + $0x20] sm:$0xff]  ;;  %v18713_v11 = vld [vmem:[%s18692_s23 + $0x28] sm:$0xff]  ;;  %v561_v37 = vpack.c.bf16 %v18706_v9, %v18703_v8  ;;  %s200_s27 = scalar_lea.vmem %s21962_s3, %s13388_s24 }
  0x51   : > { %226 = vst [vmem:[#allocation2 + $0x1c0] sm:$0xff] %v18583_v0  ;;  %227 = vst [vmem:[#allocation2 + $0x1c8] sm:$0xff] %v18583_v0  ;;  %v18719_v13 = vld [vmem:[%s18692_s23 + $0x30] sm:$0xff]  ;;  %v18722_v14 = vld [vmem:[%s18692_s23 + $0x38] sm:$0xff]  ;;  %v562_v43 = vpack.c.bf16 %v18713_v11, %v18710_v10 }
  0x52   : > { %228 = vst [vmem:[#allocation2 + $0x1d0] sm:$0xff] %v18583_v0  ;;  %270 = vst [vmem:[#allocation2 + $0x90] sm:$0xff] %v18695_v6  ;;  %15416 = vmatpush3.bf16.msra.mxu0 %v18200_v4  ;;  %v18725_v15 = vld [vmem:[%s18692_s23 + $0x40] sm:$0xff]  ;;  %v18730_v16 = vld [vmem:[%s18692_s23 + $0x48] sm:$0xff]  ;;  %v563_v44 = vpack.c.bf16 %v18722_v14, %v18719_v13  ;;  %v18850_v4 = vand.u32 15, %v305_v63  ;;  %v313_v6 = vadd.s32 80, %v18838_v61 }
  0x53   : > { %271 = vst [vmem:[#allocation2 + $0x98] sm:$0xff] %v18698_v7  ;;  %272 = vst [vmem:[#allocation2 + $0xa0] sm:$0xff] %v18703_v8  ;;  %15417 = vmatprep.subr.bf16.mxu0 %v18201_v5  ;;  %v18735_v17 = vld [vmem:[%s18692_s23 + $0x50] sm:$0xff]  ;;  %v18738_v18 = vld [vmem:[%s18692_s23 + $0x58] sm:$0xff]  ;;  %v564_v50 = vpack.c.bf16 %v18730_v16, %v18725_v15  ;;  %v18854_v7 = vand.u32 15, %v307_v1  ;;  %v315_v8 = vadd.s32 96, %v18838_v61 }
  0x54   : > { %273 = vst [vmem:[#allocation2 + $0xa8] sm:$0xff] %v18706_v9  ;;  %274 = vst [vmem:[#allocation2 + $0xb0] sm:$0xff] %v18710_v10  ;;  %v18743_v19 = vld [vmem:[%s18692_s23 + $0x60] sm:$0xff]  ;;  %v18746_v20 = vld [vmem:[%s18692_s23 + $0x68] sm:$0xff]  ;;  %v565_v51 = vpack.c.bf16 %v18738_v18, %v18735_v17  ;;  %v317_v9 = vadd.s32 112, %v18838_v61  ;;  %v18859_v10 = vand.u32 15, %v309_v3 }
  0x55   : > { %275 = vst [vmem:[#allocation2 + $0xb8] sm:$0xff] %v18713_v11  ;;  %276 = vst [vmem:[#allocation2 + $0xc0] sm:$0xff] %v18719_v13  ;;  %v18751_v24 = vld [vmem:[%s18692_s23 + $0x70] sm:$0xff]  ;;  %v18754_v25 = vld [vmem:[%s18692_s23 + $0x78] sm:$0xff]  ;;  %v566_v54 = vpack.c.bf16 %v18746_v20, %v18743_v19  ;;  %vm369_vm1 = vcmp.ge.s32.totalorder %v18850_v4, 1  ;;  %vm371_vm2 = vcmp.ge.s32.totalorder %v18854_v7, 1 }
  0x56   : > { %277 = vst [vmem:[#allocation2 + $0xc8] sm:$0xff] %v18722_v14  ;;  %278 = vst [vmem:[#allocation2 + $0xd0] sm:$0xff] %v18725_v15  ;;  %15418 = vmatpush3.bf16.msra.mxu0 %v18201_v5  ;;  %v18759_v26 = vld [vmem:[%s18692_s23 + $0x80] sm:$0xff]  ;;  %v18762_v27 = vld [vmem:[%s18692_s23 + $0x88] sm:$0xff]  ;;  %v567_v55 = vpack.c.bf16 %v18754_v25, %v18751_v24  ;;  %v311_v5 = vadd.s32 64, %v18838_v61  ;;  %v18873_v14 = vand.u32 15, %v313_v6 }
  0x57   : > { %279 = vst [vmem:[#allocation2 + $0xd8] sm:$0xff] %v18730_v16  ;;  %280 = vst [vmem:[#allocation2 + $0xe0] sm:$0xff] %v18735_v17  ;;  %15419 = vmatprep.subr.bf16.mxu0 %v18202_v12  ;;  %v18767_v29 = vld [vmem:[%s18692_s23 + $0x90] sm:$0xff]  ;;  %v18770_v30 = vld [vmem:[%s18692_s23 + $0x98] sm:$0xff]  ;;  %v568_v58 = vpack.c.bf16 %v18762_v27, %v18759_v26  ;;  %v18875_v15 = vand.u32 15, %v315_v8  ;;  %v319_v16 = vadd.s32 128, %v18838_v61 }
  0x58   : > { %281 = vst [vmem:[#allocation2 + $0xe8] sm:$0xff] %v18738_v18  ;;  %282 = vst [vmem:[#allocation2 + $0xf0] sm:$0xff] %v18743_v19  ;;  %v18774_v31 = vld [vmem:[%s18692_s23 + $0xa0] sm:$0xff]  ;;  %v18777_v32 = vld [vmem:[%s18692_s23 + $0xa8] sm:$0xff]  ;;  %v569_v60 = vpack.c.bf16 %v18770_v30, %v18767_v29  ;;  %v321_v17 = vadd.s32 144, %v18838_v61  ;;  %v323_v18 = vadd.s32 160, %v18838_v61 }
  0x59   : > { %283 = vst [vmem:[#allocation2 + $0xf8] sm:$0xff] %v18746_v20  ;;  %284 = vst [vmem:[#allocation2 + $0x100] sm:$0xff] %v18751_v24  ;;  %v18785_v34 = vld [vmem:[%s18692_s23 + $0xb0] sm:$0xff]  ;;  %v18788_v35 = vld [vmem:[%s18692_s23 + $0xb8] sm:$0xff]  ;;  %v570_v62 = vpack.c.bf16 %v18777_v32, %v18774_v31  ;;  %v325_v19 = vadd.s32 176, %v18838_v61  ;;  %vm373_vm3 = vcmp.ge.s32.totalorder %v18859_v10, 1 }
  0x5a   : > { %15420 = vmatpush3.bf16.msra.mxu0 %v18202_v12  ;;  %285 = vst [vmem:[#allocation2 + $0x108] sm:$0xff] %v18754_v25  ;;  %286 = vst [vmem:[#allocation2 + $0x110] sm:$0xff] %v18759_v26  ;;  %v18791_v36 = vld [vmem:[%s18692_s23 + $0xc0] sm:$0xff]  ;;  %v18798_v38 = vld [vmem:[%s18692_s23 + $0xc8] sm:$0xff]  ;;  %v571_v0 = vpack.c.bf16 %v18788_v35, %v18785_v34  ;;  %v18866_v12 = vand.u32 15, %v311_v5  ;;  %v18887_v24 = vand.u32 15, %v317_v9 }
  0x5b   : > { %15421 = vmatprep.subr.bf16.mxu0 %v18203_v21  ;;  %287 = vst [vmem:[#allocation2 + $0x118] sm:$0xff] %v18762_v27  ;;  %288 = vst [vmem:[#allocation2 + $0x120] sm:$0xff] %v18767_v29  ;;  %v18803_v40 = vld [vmem:[%s18692_s23 + $0xd0] sm:$0xff]  ;;  %v18806_v41 = vld [vmem:[%s18692_s23 + $0xd8] sm:$0xff]  ;;  %v18863_v11 = vpack.c.bf16 %v18798_v38, %v18791_v36  ;;  %v18889_v25 = vand.u32 15, %v319_v16  ;;  %v18895_v27 = vand.u32 15, %v321_v17 }
  0x5c   : > { %289 = vst [vmem:[#allocation2 + $0x128] sm:$0xff] %v18770_v30  ;;  %290 = vst [vmem:[#allocation2 + $0x130] sm:$0xff] %v18774_v31  ;;  %v18209_v45 = vld [vmem:[#allocation3 + $0x18] sm:$0xff]   ;;  %v18815_v46 = vld [vmem:[%s18692_s23 + $0xe0] sm:$0xff]  ;;  %v18870_v13 = vpack.c.bf16 %v18806_v41, %v18803_v40  ;;  %vm375_vm4 = vcmp.ge.s32.totalorder %v18866_v12, 1  ;;  %v18905_v31 = vand.u32 15, %v323_v18 }
  0x5d   : > { %291 = vst [vmem:[#allocation2 + $0x138] sm:$0xff] %v18777_v32  ;;  %292 = vst [vmem:[#allocation2 + $0x140] sm:$0xff] %v18785_v34  ;;  %v18818_v47 = vld [vmem:[%s18692_s23 + $0xe8] sm:$0xff]  ;;  %v268_v48 = vld [vmem:[%s18692_s23 + $0xf0] sm:$0xff]  ;;  %v18907_v32 = vand.u32 15, %v325_v19  ;;  %vm377_vm9 = vcmp.ge.s32.totalorder %v18873_v14, 1 }
  0x5e   : > { %15422 = vmatpush3.bf16.msra.mxu0 %v18203_v21  ;;  %293 = vst [vmem:[#allocation2 + $0x148] sm:$0xff] %v18788_v35  ;;  %294 = vst [vmem:[#allocation2 + $0x150] sm:$0xff] %v18791_v36  ;;  %v18210_v49 = vld [vmem:[#allocation3 + $0x20] sm:$0xff]   ;;  %v18211_v52 = vld [vmem:[#allocation3 + $0x28] sm:$0xff]   ;;  %v327_v21 = vadd.s32 192, %v18838_v61  ;;  %v18893_v26 = vpack.c.bf16 %v18818_v47, %v18815_v46  ;;  %vm379_vm10 = vcmp.ge.s32.totalorder %v18875_v15, 1 }
  0x5f   : > { %15423 = vmatprep.subr.bf16.mxu0 %v18204_v22  ;;  %295 = vst [vmem:[#allocation2 + $0x158] sm:$0xff] %v18798_v38  ;;  %296 = vst [vmem:[#allocation2 + $0x160] sm:$0xff] %v18803_v40  ;;  %v18212_v53 = vld [vmem:[#allocation3 + $0x30] sm:$0xff]   ;;  %v18213_v56 = vld [vmem:[#allocation3 + $0x38] sm:$0xff]   ;;  %vm381_vm13 = vcmp.ge.s32.totalorder %v18887_v24, 1  ;;  %vm383_vm14 = vcmp.ge.s32.totalorder %v18889_v25, 1 }
  0x60   : > { %297 = vst [vmem:[#allocation2 + $0x168] sm:$0xff] %v18806_v41  ;;  %298 = vst [vmem:[#allocation2 + $0x170] sm:$0xff] %v18815_v46  ;;  %v18831_v57 = vld [vmem:[#allocation3 + $0x80] sm:$0xff]   ;;  %v18916_v34 = vand.u32 15, %v327_v21  ;;  %v434_v36 = vld [vmem:[#allocation2 + $0x97] sm:$0xff]  ;;  %v304_v1 = vadd.s32 8, %v18838_v61 }
  0x61   : > { %299 = vst [vmem:[#allocation2 + $0x178] sm:$0xff] %v18818_v47  ;;  %300 = vst [vmem:[#allocation2 + $0x180] sm:$0xff] %v268_v48  ;;  %v431_v20 = vld [vmem:[#allocation2 + $0x7f] sm:$0xff]  ;;  %v437_v48 = vld [vmem:[#allocation2 + $0xaf] sm:$0xff]  ;;  %v22260_v8 = vmov 0  ;;  %v22262_v9 = vmov 0 }
  0x62   : > { %15424 = vmatpush3.bf16.msra.mxu0 %v18204_v22  ;;  %22230 = vst [vmem:[#allocation9_spill] sm:$0xff] %v18847_v2  ;;  %22231 = vst [vmem:[#allocation10_spill] sm:$0xff] %v18850_v4  ;;  %v432_v22 = vld [vmem:[#allocation2 + $0x87] sm:$0xff]  ;;  %v435_v38 = vld [vmem:[#allocation2 + $0x9f] sm:$0xff]  ;;  %v306_v21 = vadd.s32 24, %v18838_v61 }
  0x63   : > { %15425 = vmatprep.subr.bf16.mxu0 %v18205_v23  ;;  %22232 = vst [vmem:[#allocation11_spill] sm:$0xff] %v18854_v7  ;;  %22233 = vst [vmem:[#allocation12_spill] sm:$0xff] %v18859_v10  ;;  %v13406_v30 = vpack.c.bf16 %v432_v22, %v431_v20  ;;  %v441_v59 = vld [vmem:[#allocation2 + $0xcf] sm:$0xff]  ;;  %v444_v63 = vld [vmem:[#allocation2 + $0xe7] sm:$0xff] }
  0x64   : > { %22234 = vst [vmem:[#allocation13_spill] sm:$0xff] %v18866_v12  ;;  %22235 = vst [vmem:[#allocation14_spill] sm:$0xff] %v18873_v14  ;;  %v18219_v5 = vld [vmem:[#allocation3 + $0xa8] sm:$0xff]   ;;  %v446_v17 = vld [vmem:[#allocation2 + $0xf7] sm:$0xff] }
  0x65   : > { %22236 = vst [vmem:[#allocation15_spill] sm:$0xff] %v18875_v15  ;;  %22237 = vst [vmem:[#allocation16_spill] sm:$0xff] %v18887_v24  ;;  %v445_v16 = vld [vmem:[#allocation2 + $0xef] sm:$0xff]  ;;  %v447_v18 = vld [vmem:[#allocation2 + $0xff] sm:$0xff] }
  0x66   : > { %15426 = vmatpush3.bf16.msra.mxu0 %v18205_v23  ;;  %v329_v23 = vadd.s32 208, %v18838_v61  ;;  %22238 = vst [vmem:[#allocation17_spill] sm:$0xff] %v18889_v25  ;;  %22239 = vst [vmem:[#allocation18_spill] sm:$0xff] %v18895_v27  ;;  %v448_v19 = vld [vmem:[#allocation2 + $0x107] sm:$0xff]  ;;  %v18220_v20 = vld [vmem:[#allocation3 + $0xb0] sm:$0xff]   ;;  %v19017_v22 = vpack.c.bf16 %v446_v17, %v445_v16  ;;  %v22278_v16 = vmov 0 }
  0x67   : > { %15459 = vmatprep.subr.bf16.mxu0 %v18206_v28  ;;  %vm18901_vm6 = vmpackc.low %vm22080_vm5, %vm367_vm0  ;;  %22242 = vst [vmem:[#allocation19_spill] sm:$0xff] %v18905_v31  ;;  %v457_v17 = vld [vmem:[#allocation2 + $0x14f] sm:$0xff]  ;;  %v1017_v25 = vld [vmem:[#allocation2 + $0xb9] sm:$0xff] }
  0x68   : > { %22243 = vst [vmem:[#allocation20_spill] sm:$0xff] %v18907_v32  ;;  %vm18912_vm7 = vmpackc.low %vm22080_vm5, %vm369_vm1  ;;  %v18918_v35 = vand.u32 15, %v329_v23  ;;  %vm385_vm1 = vcmp.ge.s32.totalorder %v18895_v27, 1  ;;  %v18221_v23 = vld [vmem:[#allocation3 + $0xb8] sm:$0xff]   ;;  %v1019_v24 = vld [vmem:[#allocation2 + $0xc9] sm:$0xff] }
  0x69   : > { %15428 = vmatmul.mubr.bf16.vlgmr.msra.gmra.mrb[0].mxu0 %v560_v33  ;;  %22246 = vst [vmem:[#allocation21_spill] sm:$0xff] %v18916_v34  ;;  %vm18924_vm8 = vmpackc.low %vm22080_vm5, %vm371_vm2  ;;  %vm387_vm2 = vcmp.ge.s32.totalorder %v18905_v31, 1  ;;  %v1015_v31 = vld [vmem:[#allocation2 + $0xa9] sm:$0xff]  ;;  %v18225_v14 = vld [vmem:[#allocation3 + $0xd8] sm:$0xff]  }
  0x6a   : > { %15460 = vmatpush3.bf16.msra.mxu0 %v18206_v28  ;;  %15431 = vmatprep.mubr.bf16.mxu0 %v561_v37  ;;  %v331_v28 = vadd.s32 224, %v18838_v61  ;;  %22247 = vst [vmem:[#allocation22_spill] sm:$0xff] %v18918_v35  ;;  %v433_v37 = vld [vmem:[#allocation2 + $0x8f] sm:$0xff]  ;;  %vm18942_vm11 = vmpackc.low %vm22080_vm5, %vm373_vm3  ;;  %v1021_v10 = vld [vmem:[#allocation2 + $0xd9] sm:$0xff] }
  0x6b   : > { %15461 = vmatprep.subr.bf16.mxu0 %v18207_v39  ;;  %vm18949_vm12 = vmpackc.low %vm22080_vm5, %vm375_vm4  ;;  %v1020_v12 = vld [vmem:[#allocation2 + $0xd1] sm:$0xff]  ;;  %v1022_v7 = vld [vmem:[#allocation2 + $0xe1] sm:$0xff] }
  0x6c   : > { %v18928_v41 = vand.u32 15, %v331_v28  ;;  %vm18971_vm15 = vmpackc.low %vm22080_vm5, %vm377_vm9  ;;  %vm389_vm9 = vcmp.ge.s32.totalorder %v18907_v32, 1  ;;  %v19019_v28 = vpack.c.bf16 %v448_v19, %v447_v18  ;;  %v458_v18 = vld [vmem:[#allocation2 + $0x157] sm:$0xff]  ;;  %v459_v19 = vld [vmem:[#allocation2 + $0x15f] sm:$0xff] }
  0x6d   : > { %vm18978_vm0 = vmpackc.low %vm22080_vm5, %vm379_vm10  ;;  %v1014_v32 = vld [vmem:[#allocation2 + $0xa1] sm:$0xff]  ;;  %v1023_v4 = vld [vmem:[#allocation2 + $0xe9] sm:$0xff] }
  0x6e   : > { %15462 = vmatpush3.bf16.msra.mxu0 %v18207_v39  ;;  %v436_v39 = vld [vmem:[#allocation2 + $0xa7] sm:$0xff]  ;;  %22250 = vst [vmem:[#allocation23_spill] sm:$0xff] %v18928_v41  ;;  %vm18998_vm3 = vmpackc.low %vm22080_vm5, %vm381_vm13  ;;  %vm22277_vm13 = vcmp.ge.s32.totalorder %v18918_v35, 1  ;;  %v1012_v35 = vld [vmem:[#allocation2 + $0x91] sm:$0xff]  ;;  %v19170_v27 = vpack.c.bf16 %v1015_v31, %v1014_v32  ;;  %v22304_v31 = vmov 0  ;;  %v19235_v2 = vpack.c.bf16 %v1023_v4, %v1022_v7 }
  0x6f   : > { %15463 = vmatprep.subr.bf16.mxu0 %v18208_v42  ;;  %v22261_v8 = vsel %vm18998_vm3, 4294967295, %v22260_v8  ;;  %vm19005_vm4 = vmpackc.low %vm22080_vm5, %vm383_vm14  ;;  %v18224_v32 = vld [vmem:[#allocation3 + $0xd0] sm:$0xff]   ;;  %v22329_v7 = vmov 0  ;;  %v18258_v29 = vld [vmem:[#allocation3 + $0x1e0] sm:$0xff]  }
  0x70   : > { %v22263_v9 = vsel %vm19005_vm4, 4294967295, %v22262_v9  ;;  %vm19024_vm10 = vmpackc.low %vm22080_vm5, %vm385_vm1  ;;  %vm22272_vm1 = vcmp.ge.s32.totalorder %v18916_v34, 1  ;;  %v1013_v34 = vld [vmem:[#allocation2 + $0x99] sm:$0xff]  ;;  %22324 = vst [vmem:[#allocation48_spill] sm:$0xff] %v19235_v2  ;;  %v18259_v33 = vld [vmem:[#allocation3 + $0x1e8] sm:$0xff]  }
  0x71   : > { %15432 = vmatmul.mubr.bf16.gmra.mrb[4].mxu0 %v562_v43  ;;  %v18935_v43 = vpack.c.bf16 %v434_v36, %v433_v37  ;;  %vm19032_vm14 = vmpackc.low %vm22080_vm5, %vm387_vm2  ;;  %v22266_v36 = vmov 0  ;;  %v449_v37 = vld [vmem:[#allocation2 + $0x10f] sm:$0xff]  ;;  %v18262_v46 = vld [vmem:[#allocation3 + $0x200] sm:$0xff]  }
  0x72   : > { %15435 = vmatprep.mubr.bf16.mxu0 %v563_v44  ;;  %15464 = vmatpush3.bf16.msra.mxu0 %v18208_v42  ;;  %v333_v42 = vadd.s32 240, %v18838_v61  ;;  %v18215_v44 = vld [vmem:[#allocation3 + $0x88] sm:$0xff]   ;;  %v22267_v36 = vsel %vm19032_vm14, 4294967295, %v22266_v36  ;;  %vm19054_vm2 = vmpackc.low %vm22080_vm5, %vm389_vm9  ;;  %v18260_v40 = vld [vmem:[#allocation3 + $0x1f0] sm:$0xff]  }
  0x73   : > { %15465 = vmatprep.subr.bf16.mxu0 %v18209_v45  ;;  %vm19066_vm9 = vmpackc.low %vm22080_vm5, %vm22272_vm1 }
  0x76   : > { %15466 = vmatpush3.bf16.msra.mxu0 %v18209_v45  ;;  %v18937_v45 = vpack.c.bf16 %v436_v39, %v435_v38  ;;  %v450_v38 = vld [vmem:[#allocation2 + $0x117] sm:$0xff]  ;;  %v451_v39 = vld [vmem:[#allocation2 + $0x11f] sm:$0xff] }
  0x77   : > { %15467 = vmatprep.subr.bf16.mxu0 %v18210_v49 }
  0x79   : > { %15436 = vmatmul.mubr.bf16.gmra.mrb[8].mxu0 %v564_v50  ;;  %v439_v50 = vld [vmem:[#allocation2 + $0xbf] sm:$0xff] }
  0x7a   : > { %15439 = vmatprep.mubr.bf16.mxu0 %v565_v51  ;;  %15468 = vmatpush3.bf16.msra.mxu0 %v18210_v49  ;;  %v438_v49 = vld [vmem:[#allocation2 + $0xb7] sm:$0xff]  ;;  %v440_v51 = vld [vmem:[#allocation2 + $0xc7] sm:$0xff] }
  0x7b   : > { %15469 = vmatprep.subr.bf16.mxu0 %v18211_v52 }
  0x7e   : > { %15470 = vmatpush3.bf16.msra.mxu0 %v18211_v52  ;;  %v18216_v52 = vld [vmem:[#allocation3 + $0x90] sm:$0xff]  }
  0x7f   : > { %15471 = vmatprep.subr.bf16.mxu0 %v18212_v53 }
  0x81   : > { %15440 = vmatmul.mubr.bf16.gmra.mrb[12].mxu0 %v566_v54  ;;  %v18964_v54 = vpack.c.bf16 %v438_v49, %v437_v48  ;;  %v19041_v48 = vld [vmem:[#allocation3 + $0xc0] sm:$0xff]   ;;  %v19047_v49 = vpack.c.bf16 %v450_v38, %v449_v37  ;;  %v310_v37 = vadd.s32 56, %v18838_v61  ;;  %v19105_v38 = vpack.c.bf16 %v458_v18, %v457_v17  ;;  %v1011_v17 = vld [vmem:[#allocation2 + $0x89] sm:$0xff] }
  0x82   : > { %15443 = vmatprep.mubr.bf16.mxu0 %v567_v55  ;;  %15472 = vmatpush3.bf16.msra.mxu0 %v18212_v53  ;;  %v18956_v53 = vand.u32 15, %v333_v42  ;;  %v18217_v55 = vld [vmem:[#allocation3 + $0x98] sm:$0xff]   ;;  %v452_v42 = vld [vmem:[#allocation2 + $0x127] sm:$0xff]  ;;  %v312_v18 = vadd.s32 72, %v18838_v61 }
  0x83   : > { %15473 = vmatprep.subr.bf16.mxu0 %v18213_v56 }
  0x84   : > { %22255 = vst [vmem:[#allocation24_spill] sm:$0xff] %v18956_v53 }
  0x86   : > { %15474 = vmatpush3.bf16.msra.mxu0 %v18213_v56  ;;  %v18966_v56 = vpack.c.bf16 %v440_v51, %v439_v50  ;;  %v19049_v50 = vpack.c.bf16 %v452_v42, %v451_v39  ;;  %v22269_v51 = vmov 0  ;;  %v19110_v42 = vand.u32 15, %v310_v37 }
  0x87   : > { %15507 = vmatprep.subr.bf16.mxu0 %v18831_v57  ;;  %v22270_v51 = vsel %vm19054_vm2, 4294967295, %v22269_v51  ;;  %v22293_v37 = vmov 0 }
  0x88   : > { %22271 = vst [vmem:[#allocation26_spill] sm:$0xff] %v22270_v51  ;;  %22287 = vst [vmem:[#allocation33_spill] sm:$0xff] %v19110_v42 }
  0x89   : > { %15444 = vmatmul.mubr.bf16.gmra.mrb[16].mxu0 %v568_v58  ;;  %v22258_v58 = vmov 0 }
  0x8a   : > { %15447 = vmatprep.mubr.bf16.mxu0 %v569_v60  ;;  %v22259_v58 = vsel %vm18978_vm0, 4294967295, %v22258_v58  ;;  %v442_v60 = vld [vmem:[#allocation2 + $0xd7] sm:$0xff] }
  0x8b   : > { %v18991_v3 = vpack.c.bf16 %v442_v60, %v441_v59  ;;  %v455_v59 = vld [vmem:[#allocation2 + $0x13f] sm:$0xff]  ;;  %v456_v60 = vld [vmem:[#allocation2 + $0x147] sm:$0xff] }
  0x8f   : > { %v22390_v47 = vld [vmem:[#allocation26_spill] sm:$0xff] }
  0x91   : > { %15448 = vmatmul.mubr.bf16.gmra.mrb[20].mxu0 %v570_v62  ;;  %v443_v62 = vld [vmem:[#allocation2 + $0xdf] sm:$0xff] }
  0x92   : > { %15451 = vmatprep.mubr.bf16.mxu0 %v571_v0  ;;  %v18218_v0 = vld [vmem:[#allocation3 + $0xa0] sm:$0xff]   ;;  %v18993_v6 = vpack.c.bf16 %v444_v63, %v443_v62  ;;  %v22273_v62 = vmov 0  ;;  %v19070_v63 = vand.u32 15, %v306_v21  ;;  %v22282_v21 = vmov 0 }
  0x93   : > { %v22274_v62 = vsel %vm19066_vm9, 4294967295, %v22273_v62 }
  0x94   : > { %22275 = vst [vmem:[#allocation27_spill] sm:$0xff] %v22274_v62  ;;  %22276 = vst [vmem:[#allocation28_spill] sm:$0xff] %v19070_v63 }
  0x99   : > { %15452 = vmatmul.mubr.bf16.gmra.mrb[24].mxu0 %v18863_v11 }
  0x9a   : > { %15455 = vmatprep.mubr.bf16.mxu0 %v18870_v13 }
  0xa1   : > { %15456 = vmatmul.mubr.bf16.gmra.mrb[28].mxu0 %v18893_v26 }
  0xa2   : > { %15475 = vmatprep.mubr.msk.bf16.mxu0 %vm18901_vm6, %v13406_v30  ;;  %v22264_v30 = vmov 0 }
  0xa3   : > { %v22265_v30 = vsel %vm19024_vm10, 4294967295, %v22264_v30 }
  0xa9   : > { %15476 = vmatmul.mubr.msk.bf16.vlgmr.msra.gmra.mrb[0].mxu0 %vm18912_vm7, %v18935_v43 }
  0xaa   : > { %15508 = vmatpush3.bf16.msra.mxu0 %v18831_v57  ;;  %15479 = vmatprep.mubr.msk.bf16.mxu0 %vm18924_vm8, %v18937_v45 }
  0xab   : > { %15509 = vmatprep.subr.bf16.mxu0 %v18215_v44 }
  0xae   : > { %15510 = vmatpush3.bf16.msra.mxu0 %v18215_v44  ;;  %v19039_v44 = vand.u32 15, %v304_v1 }
  0xaf   : > { %15511 = vmatprep.subr.bf16.mxu0 %v18216_v52 }
  0xb0   : > { %22268 = vst [vmem:[#allocation25_spill] sm:$0xff] %v19039_v44 }
  0xb1   : > { %15480 = vmatmul.mubr.msk.bf16.gmra.mrb[4].mxu0 %vm18942_vm11, %v18964_v54 }
  0xb2   : > { %15483 = vmatprep.mubr.msk.bf16.mxu0 %vm18949_vm12, %v18966_v56  ;;  %15512 = vmatpush3.bf16.msra.mxu0 %v18216_v52  ;;  %v453_v52 = vld [vmem:[#allocation2 + $0x12f] sm:$0xff] }
  0xb3   : > { %15513 = vmatprep.subr.bf16.mxu0 %v18217_v55 }
  0xb6   : > { %15514 = vmatpush3.bf16.msra.mxu0 %v18217_v55  ;;  %v454_v55 = vld [vmem:[#allocation2 + $0x137] sm:$0xff] }
  0xb7   : > { %15515 = vmatprep.subr.bf16.mxu0 %v18218_v0  ;;  %v19076_v1 = vpack.c.bf16 %v454_v55, %v453_v52  ;;  %v269_v52 = vld [vmem:[%s18692_s23 + $0xf8] sm:$0xff]  ;;  %v461_v55 = vld [vmem:[#allocation2 + $0x16f] sm:$0xff] }
  0xb8   : > { %301 = vst [vmem:[#allocation2 + $0x188] sm:$0xff] %v269_v52 }
  0xb9   : > { %15484 = vmatmul.mubr.msk.bf16.gmra.mrb[8].mxu0 %vm18971_vm15, %v18991_v3 }
  0xba   : > { %15487 = vmatprep.mubr.msk.bf16.mxu0 %vm18978_vm0, %v18993_v6  ;;  %15516 = vmatpush3.bf16.msra.mxu0 %v18218_v0  ;;  %v308_v0 = vadd.s32 40, %v18838_v61 }
  0xbb   : > { %15517 = vmatprep.subr.bf16.mxu0 %v18219_v5 }
  0xbe   : > { %15518 = vmatpush3.bf16.msra.mxu0 %v18219_v5  ;;  %v19078_v5 = vpack.c.bf16 %v456_v60, %v455_v59  ;;  %v462_v59 = vld [vmem:[#allocation2 + $0x177] sm:$0xff]  ;;  %v22289_v60 = vmov 0 }
  0xbf   : > { %15519 = vmatprep.subr.bf16.mxu0 %v18220_v20 }
  0xc1   : > { %15488 = vmatmul.mubr.msk.bf16.gmra.mrb[12].mxu0 %vm18998_vm3, %v19017_v22 }
  0xc2   : > { %15491 = vmatprep.mubr.msk.bf16.mxu0 %vm19005_vm4, %v19019_v28  ;;  %15520 = vmatpush3.bf16.msra.mxu0 %v18220_v20  ;;  %v460_v20 = vld [vmem:[#allocation2 + $0x167] sm:$0xff] }
  0xc3   : > { %15521 = vmatprep.subr.bf16.mxu0 %v18221_v23  ;;  %v19107_v39 = vpack.c.bf16 %v460_v20, %v459_v19  ;;  %v314_v19 = vadd.s32 88, %v18838_v61  ;;  %v19129_v20 = vpack.c.bf16 %v462_v59, %v461_v55  ;;  %v22297_v55 = vmov 0 }
  0xc5   : > { %22286 = vst [vmem:[#allocation32_spill] sm:$0xff] %v19107_v39  ;;  %v19152_v59 = vand.u32 15, %v314_v19  ;;  %v19168_v19 = vpack.c.bf16 %v1013_v34, %v1012_v35  ;;  %v322_v35 = vadd.s32 152, %v18838_v61 }
  0xc6   : > { %15522 = vmatpush3.bf16.msra.mxu0 %v18221_v23  ;;  %v19098_v23 = vand.u32 15, %v308_v0  ;;  %v1010_v0 = vld [vmem:[#allocation2 + $0x81] sm:$0xff] }
  0xc7   : > { %15555 = vmatprep.subr.bf16.mxu0 %v19041_v48  ;;  %v13462_v52 = vpack.c.bf16 %v1011_v17, %v1010_v0  ;;  %22299 = vst [vmem:[#allocation36_spill] sm:$0xff] %v19152_v59  ;;  %v22301_v0 = vmov 0 }
  0xc8   : > { %22285 = vst [vmem:[#allocation31_spill] sm:$0xff] %v19098_v23 }
  0xc9   : > { %15492 = vmatmul.mubr.msk.bf16.gmra.mrb[16].mxu0 %vm19024_vm10, %v19047_v49  ;;  %vm19083_vm10 = vmpackc.low %vm22080_vm5, %vm22277_vm13  ;;  %vm22288_vm13 = vcmp.ge.s32.totalorder %v18956_v53, 1  ;;  %v19138_v53 = vand.u32 15, %v312_v18  ;;  %v318_v18 = vadd.s32 120, %v18838_v61 }
  0xca   : > { %15495 = vmatprep.mubr.msk.bf16.mxu0 %vm19032_vm14, %v19049_v50  ;;  %v22279_v16 = vsel %vm19083_vm10, 4294967295, %v22278_v16  ;;  %vm22281_vm14 = vcmp.ge.s32.totalorder %v18928_v41, 1  ;;  %v316_v41 = vadd.s32 104, %v18838_v61 }
  0xcb   : > { %22280 = vst [vmem:[#allocation29_spill] sm:$0xff] %v22279_v16  ;;  %vm19094_vm4 = vmpackc.low %vm22080_vm5, %vm22281_vm14  ;;  %vm22292_vm14 = vcmp.lt.s32.totalorder %v19039_v44, 15  ;;  %v18223_v44 = vld [vmem:[#allocation3 + $0xc8] sm:$0xff]   ;;  %v19188_v34 = vand.u32 15, %v318_v18 }
  0xcc   : > { %v22283_v21 = vsel %vm19094_vm4, 4294967295, %v22282_v21  ;;  %vm19134_vm1 = vmpackc.low %vm22292_vm14, %vm22080_vm5  ;;  %22295 = vst [vmem:[#allocation35_spill] sm:$0xff] %v19138_v53  ;;  %v19164_v17 = vand.u32 15, %v316_v41  ;;  %v22309_v41 = vmov 0 }
  0xcd   : > { %22284 = vst [vmem:[#allocation30_spill] sm:$0xff] %v22283_v21  ;;  %v22294_v37 = vsel %vm19134_vm1, 4294967295, %v22293_v37  ;;  %22307 = vst [vmem:[#allocation39_spill] sm:$0xff] %v19188_v34 }
  0xce   : > { %22303 = vst [vmem:[#allocation37_spill] sm:$0xff] %v19164_v17 }
  0xd1   : > { %15496 = vmatmul.mubr.msk.bf16.gmra.mrb[20].mxu0 %vm19054_vm2, %v19076_v1 }
  0xd2   : > { %15499 = vmatprep.mubr.msk.bf16.mxu0 %vm19066_vm9, %v19078_v5  ;;  %vm19120_vm9 = vmpackc.low %vm22080_vm5, %vm22288_vm13  ;;  %vm22296_vm13 = vcmp.lt.s32.totalorder %v19070_v63, 15  ;;  %v320_v63 = vadd.s32 136, %v18838_v61  ;;  %v22395_v57 = vld [vmem:[#allocation29_spill] sm:$0xff] }
  0xd3   : > { %v22290_v60 = vsel %vm19120_vm9, 4294967295, %v22289_v60  ;;  %vm19147_vm14 = vmpackc.low %vm22296_vm13, %vm22080_vm5  ;;  %vm410_vm13 = vcmp.lt.s32.totalorder %v19152_v59, 15  ;;  %v19233_v59 = vpack.c.bf16 %v1021_v10, %v1020_v12  ;;  %v330_v12 = vadd.s32 216, %v18838_v61 }
  0xd4   : > { %22291 = vst [vmem:[#allocation34_spill] sm:$0xff] %v22290_v60  ;;  %v22298_v55 = vsel %vm19147_vm14, 4294967295, %v22297_v55 }
  0xd5   : > { %22323 = vst [vmem:[#allocation47_spill] sm:$0xff] %v19233_v59 }
  0xd9   : > { %15500 = vmatmul.mubr.msk.bf16.gmra.mrb[24].mxu0 %vm19083_vm10, %v19105_v38  ;;  %vm22300_vm10 = vcmp.lt.s32.totalorder %v19098_v23, 15  ;;  %v1018_v23 = vld [vmem:[#allocation2 + $0xc1] sm:$0xff] }
  0xda   : > { %15503 = vmatprep.mubr.msk.bf16.mxu0 %vm19094_vm4, %v19107_v39  ;;  %vm406_vm4 = vcmp.lt.s32.totalorder %v19110_v42, 15  ;;  %vm19159_vm2 = vmpackc.low %vm22300_vm10, %vm22080_vm5  ;;  %v324_v42 = vadd.s32 168, %v18838_v61  ;;  %v19203_v18 = vpack.c.bf16 %v1019_v24, %v1018_v23  ;;  %v19217_v24 = vand.u32 15, %v322_v35 }
  0xdb   : > { %v22302_v0 = vsel %vm19159_vm2, 4294967295, %v22301_v0  ;;  %vm19182_vm10 = vmpackc.low %vm406_vm4, %vm22080_vm5  ;;  %v328_v35 = vadd.s32 200, %v18838_v61 }
  0xdc   : > { %v22305_v31 = vsel %vm19182_vm10, 4294967295, %v22304_v31  ;;  %22313 = vst [vmem:[#allocation42_spill] sm:$0xff] %v19203_v18  ;;  %vm19211_vm4 = vmpackc.low %vm410_vm13, %vm22080_vm5  ;;  %v19229_v23 = vand.u32 15, %v324_v42  ;;  %v22325_v42 = vmov 0  ;;  %vm418_vm13 = vcmp.lt.s32.totalorder %v19217_v24, 15 }
  0xdd   : > { %22306 = vst [vmem:[#allocation38_spill] sm:$0xff] %v22305_v31  ;;  %22317 = vst [vmem:[#allocation44_spill] sm:$0xff] %v19217_v24  ;;  %v1027_v31 = vld [vmem:[#allocation2 + $0x109] sm:$0xff]  ;;  %v19261_v10 = vand.u32 15, %v328_v35  ;;  %v18230_v35 = vld [vmem:[#allocation3 + $0x100] sm:$0xff]  }
  0xde   : > { %22322 = vst [vmem:[#allocation46_spill] sm:$0xff] %v19229_v23  ;;  %v1033_v24 = vld [vmem:[#allocation2 + $0x139] sm:$0xff] }
  0xdf   : > { %22332 = vst [vmem:[#allocation51_spill] sm:$0xff] %v19261_v10 }
  0xe1   : > { %15504 = vmatmul.mubr.msk.bf16.gmra.mrb[28].mxu0 %vm19120_vm9, %v19129_v20  ;;  %vm420_vm9 = vcmp.lt.s32.totalorder %v19229_v23, 15  ;;  %v1032_v23 = vld [vmem:[#allocation2 + $0x131] sm:$0xff] }
  0xe2   : > { %15523 = vmatprep.mubr.msk.bf16.mxu0 %vm19134_vm1, %v13462_v52  ;;  %v1016_v52 = vld [vmem:[#allocation2 + $0xb1] sm:$0xff] }
  0xe3   : > { %v19201_v15 = vpack.c.bf16 %v1017_v25, %v1016_v52  ;;  %v22319_v25 = vmov 0  ;;  %v326_v52 = vadd.s32 184, %v18838_v61 }
  0xe5   : > { %v19249_v4 = vand.u32 15, %v326_v52  ;;  %v332_v52 = vadd.s32 232, %v18838_v61 }
  0xe7   : > { %22327 = vst [vmem:[#allocation49_spill] sm:$0xff] %v19249_v4 }
  0xe9   : > { %15524 = vmatmul.mubr.msk.bf16.vlgmr.msra.gmra.mrb[0].mxu0 %vm19147_vm14, %v19168_v19 }
  0xea   : > { %15556 = vmatpush3.bf16.msra.mxu0 %v19041_v48  ;;  %15527 = vmatprep.mubr.msk.bf16.mxu0 %vm19159_vm2, %v19170_v27  ;;  %vm22308_vm2 = vcmp.lt.s32.totalorder %v19138_v53, 15  ;;  %v19198_v48 = vand.u32 15, %v320_v63  ;;  %v22314_v63 = vmov 0  ;;  %v18227_v53 = vld [vmem:[#allocation3 + $0xe8] sm:$0xff]  }
  0xeb   : > { %15557 = vmatprep.subr.bf16.mxu0 %v18223_v44  ;;  %vm19194_vm14 = vmpackc.low %vm22308_vm2, %vm22080_vm5  ;;  %v22315_v63 = vsel %vm19211_vm4, 4294967295, %v22314_v63  ;;  %vm414_vm2 = vcmp.lt.s32.totalorder %v19188_v34, 15 }
  0xec   : > { %v22310_v41 = vsel %vm19194_vm14, 4294967295, %v22309_v41  ;;  %22312 = vst [vmem:[#allocation41_spill] sm:$0xff] %v19198_v48  ;;  %22316 = vst [vmem:[#allocation43_spill] sm:$0xff] %v22315_v63 }
  0xed   : > { %22311 = vst [vmem:[#allocation40_spill] sm:$0xff] %v22310_v41  ;;  %v1026_v41 = vld [vmem:[#allocation2 + $0x101] sm:$0xff] }
  0xee   : > { %15558 = vmatpush3.bf16.msra.mxu0 %v18223_v44  ;;  %v18226_v44 = vld [vmem:[#allocation3 + $0xe0] sm:$0xff]   ;;  %v19267_v63 = vpack.c.bf16 %v1027_v31, %v1026_v41  ;;  %v19293_v31 = vand.u32 15, %v332_v52  ;;  %v334_v41 = vadd.s32 248, %v18838_v61  ;;  %v1036_v52 = vld [vmem:[#allocation2 + $0x151] sm:$0xff]  ;;  %v18275_v61 = vld [vmem:[#allocation3 + $0x2a8] sm:$0xff]  }
  0xef   : > { %15559 = vmatprep.subr.bf16.mxu0 %v18224_v32 }
  0xf0   : > { %22339 = vst [vmem:[#allocation54_spill] sm:$0xff] %v19293_v31 }
  0xf1   : > { %15528 = vmatmul.mubr.msk.bf16.gmra.mrb[4].mxu0 %vm19182_vm10, %v19201_v15  ;;  %vm22318_vm10 = vcmp.lt.s32.totalorder %v19164_v17, 15  ;;  %v1025_v17 = vld [vmem:[#allocation2 + $0xf9] sm:$0xff] }
  0xf2   : > { %15531 = vmatprep.mubr.msk.bf16.mxu0 %vm19194_vm14, %v19203_v18  ;;  %15560 = vmatpush3.bf16.msra.mxu0 %v18224_v32  ;;  %vm19225_vm1 = vmpackc.low %vm22318_vm10, %vm22080_vm5  ;;  %v1024_v32 = vld [vmem:[#allocation2 + $0xf1] sm:$0xff]  ;;  %v1031_v18 = vld [vmem:[#allocation2 + $0x129] sm:$0xff] }
  0xf3   : > { %v22320_v25 = vsel %vm19225_vm1, 4294967295, %v22319_v25  ;;  %15561 = vmatprep.subr.bf16.mxu0 %v18225_v14  ;;  %vm19243_vm10 = vmpackc.low %vm414_vm2, %vm22080_vm5  ;;  %v19265_v34 = vpack.c.bf16 %v1025_v17, %v1024_v32  ;;  %vm422_vm2 = vcmp.lt.s32.totalorder %v19249_v4, 15  ;;  %v19280_v17 = vand.u32 15, %v330_v12  ;;  %v1038_v4 = vld [vmem:[#allocation2 + $0x161] sm:$0xff] }
  0xf4   : > { %22321 = vst [vmem:[#allocation45_spill] sm:$0xff] %v22320_v25  ;;  %v22326_v42 = vsel %vm19243_vm10, 4294967295, %v22325_v42  ;;  %v18229_v25 = vld [vmem:[#allocation3 + $0xf8] sm:$0xff]  }
  0xf5   : > { %22335 = vst [vmem:[#allocation52_spill] sm:$0xff] %v19280_v17 }
  0xf6   : > { %15562 = vmatpush3.bf16.msra.mxu0 %v18225_v14  ;;  %v18228_v14 = vld [vmem:[#allocation3 + $0xf0] sm:$0xff]  }
  0xf7   : > { %15563 = vmatprep.subr.bf16.mxu0 %v18226_v44 }
  0xf9   : > { %15532 = vmatmul.mubr.msk.bf16.gmra.mrb[8].mxu0 %vm19211_vm4, %v19233_v59  ;;  %vm22328_vm4 = vcmp.lt.s32.totalorder %v19198_v48, 15  ;;  %v1028_v48 = vld [vmem:[#allocation2 + $0x111] sm:$0xff]  ;;  %v1030_v59 = vld [vmem:[#allocation2 + $0x121] sm:$0xff] }
  0xfa   : > { %15535 = vmatprep.mubr.msk.bf16.mxu0 %vm19225_vm1, %v19235_v2  ;;  %vm19257_vm14 = vmpackc.low %vm22328_vm4, %vm22080_vm5  ;;  %15564 = vmatpush3.bf16.msra.mxu0 %v18226_v44  ;;  %v1029_v2 = vld [vmem:[#allocation2 + $0x119] sm:$0xff]  ;;  %v22333_v44 = vmov 0  ;;  %v19298_v12 = vpack.c.bf16 %v1031_v18, %v1030_v59  ;;  %v19324_v18 = vpack.c.bf16 %v1033_v24, %v1032_v23  ;;  %v18276_v59 = vld [vmem:[#allocation3 + $0x2b0] sm:$0xff]  }
  0xfb   : > { %v22330_v7 = vsel %vm19257_vm14, 4294967295, %v22329_v7  ;;  %15565 = vmatprep.subr.bf16.mxu0 %v18227_v53  ;;  %vm19275_vm4 = vmpackc.low %vm418_vm13, %vm22080_vm5  ;;  %vm424_vm13 = vcmp.lt.s32.totalorder %v19261_v10, 15  ;;  %v19296_v32 = vpack.c.bf16 %v1029_v2, %v1028_v48  ;;  %v1035_v2 = vld [vmem:[#allocation2 + $0x149] sm:$0xff]  ;;  %v19322_v48 = vand.u32 15, %v334_v41  ;;  %v1037_v10 = vld [vmem:[#allocation2 + $0x159] sm:$0xff] }
  0xfc   : > { %22331 = vst [vmem:[#allocation50_spill] sm:$0xff] %v22330_v7  ;;  %v22334_v44 = vsel %vm19275_vm4, 4294967295, %v22333_v44  ;;  %vm19288_vm1 = vmpackc.low %vm420_vm9, %vm22080_vm5  ;;  %v1034_v7 = vld [vmem:[#allocation2 + $0x141] sm:$0xff]  ;;  %v19345_v24 = vpack.c.bf16 %v1037_v10, %v1036_v52  ;;  %v18232_v10 = vld [vmem:[#allocation3 + $0x110] sm:$0xff]  }
  0xfd   : > { %vm19306_vm9 = vmpackc.low %vm422_vm2, %vm22080_vm5  ;;  %22344 = vst [vmem:[#allocation55_spill] sm:$0xff] %v19322_v48  ;;  %v18236_v52 = vld [vmem:[#allocation3 + $0x130] sm:$0xff]   ;;  %v18282_v41 = vld [vmem:[#allocation3 + $0x260] sm:$0xff]  }
  0xfe   : > { %15566 = vmatpush3.bf16.msra.mxu0 %v18227_v53  ;;  %v22336_v53 = vmov 0 }
  0xff   : > { %15567 = vmatprep.subr.bf16.mxu0 %v18228_v14  ;;  %v22337_v53 = vsel %vm19288_vm1, 4294967295, %v22336_v53 }
 0x100   : > { %22338 = vst [vmem:[#allocation53_spill] sm:$0xff] %v22337_v53  ;;  %v1039_v53 = vld [vmem:[#allocation2 + $0x169] sm:$0xff] }
 0x101   : > { %15536 = vmatmul.mubr.msk.bf16.gmra.mrb[12].mxu0 %vm19243_vm10, %v19265_v34  ;;  %vm428_vm10 = vcmp.lt.s32.totalorder %v19293_v31, 15  ;;  %v19347_v23 = vpack.c.bf16 %v1039_v53, %v1038_v4  ;;  %v18231_v4 = vld [vmem:[#allocation3 + $0x108] sm:$0xff]   ;;  %v18233_v53 = vld [vmem:[#allocation3 + $0x118] sm:$0xff]  }
 0x102   : > { %15539 = vmatprep.mubr.msk.bf16.mxu0 %vm19257_vm14, %v19267_v63  ;;  %15568 = vmatpush3.bf16.msra.mxu0 %v18228_v14  ;;  %vm19316_vm14 = vmpackc.low %vm424_vm13, %vm22080_vm5  ;;  %v18277_v31 = vld [vmem:[#allocation3 + $0x2b8] sm:$0xff]  }
 0x103   : > { %15569 = vmatprep.subr.bf16.mxu0 %v18229_v25  ;;  %vm19337_vm13 = vmpackc.low %vm428_vm10, %vm22080_vm5  ;;  %v18281_v14 = vld [vmem:[#allocation3 + $0x258] sm:$0xff]  }
 0x106   : > { %15570 = vmatpush3.bf16.msra.mxu0 %v18229_v25  ;;  %v19326_v25 = vpack.c.bf16 %v1035_v2, %v1034_v7  ;;  %v1040_v7 = vld [vmem:[#allocation2 + $0x171] sm:$0xff]  ;;  %v1041_v2 = vld [vmem:[#allocation2 + $0x179] sm:$0xff] }
 0x107   : > { %15603 = vmatprep.subr.bf16.mxu0 %v18230_v35 }
 0x109   : > { %15540 = vmatmul.mubr.msk.bf16.gmra.mrb[16].mxu0 %vm19275_vm4, %v19296_v32  ;;  %vm426_vm4 = vcmp.lt.s32.totalorder %v19280_v17, 15  ;;  %v1689_v17 = vld [vmem:[#allocation2 + $0xa8] sm:$0xff] }
 0x10a   : > { %15543 = vmatprep.mubr.msk.bf16.mxu0 %vm19288_vm1, %v19298_v12  ;;  %vm19329_vm2 = vmpackc.low %vm426_vm4, %vm22080_vm5  ;;  %vm430_vm1 = vcmp.lt.s32.totalorder %v19322_v48, 15  ;;  %v19360_v48 = vpack.c.bf16 %v1041_v2, %v1040_v7  ;;  %v18237_v7 = vld [vmem:[#allocation3 + $0x138] sm:$0xff]   ;;  %v18238_v2 = vld [vmem:[#allocation3 + $0x140] sm:$0xff]   ;;  %vm22352_vm4 = vnez %v22265_v30 }
 0x10b   : > { %vm19353_vm10 = vmpackc.low %vm430_vm1, %vm22080_vm5  ;;  %vm22351_vm1 = vnez %v22263_v9  ;;  %vm22353_vm5 = vnez %v22267_v36  ;;  %v18263_v36 = vld [vmem:[#allocation3 + $0x208] sm:$0xff]  }
 0x111   : > { %15544 = vmatmul.mubr.msk.bf16.gmra.mrb[20].mxu0 %vm19306_vm9, %v19324_v18 }
 0x112   : > { %15547 = vmatprep.mubr.msk.bf16.mxu0 %vm19316_vm14, %v19326_v25 }
 0x119   : > { %15548 = vmatmul.mubr.msk.bf16.gmra.mrb[24].mxu0 %vm19329_vm2, %v19345_v24 }
 0x11a   : > { %15551 = vmatprep.mubr.msk.bf16.mxu0 %vm19337_vm13, %v19347_v23 }
 0x121   : > { %15552 = vmatmul.mubr.msk.bf16.gmra.mrb[28].mxu0 %vm19353_vm10, %v19360_v48 }
 0x122   : > { %15571 = vmatprep.mubr.msk.bf16.mxu0 %vm18901_vm6, %v18935_v43  ;;  %v18234_v43 = vld [vmem:[#allocation3 + $0x120] sm:$0xff]  }
 0x129   : > { %15572 = vmatmul.mubr.msk.bf16.vlgmr.msra.gmra.mrb[0].mxu0 %vm18912_vm7, %v18937_v45 }
 0x12a   : > { %15604 = vmatpush3.bf16.msra.mxu0 %v18230_v35  ;;  %15575 = vmatprep.mubr.msk.bf16.mxu0 %vm18924_vm8, %v18964_v54  ;;  %v18235_v35 = vld [vmem:[#allocation3 + $0x128] sm:$0xff]  }
 0x12b   : > { %15605 = vmatprep.subr.bf16.mxu0 %v18231_v4 }
 0x12e   : > { %15606 = vmatpush3.bf16.msra.mxu0 %v18231_v4  ;;  %v1378_v4 = vld [vmem:[#allocation2 + $0x17f] sm:$0xff] }
 0x12f   : > { %15607 = vmatprep.subr.bf16.mxu0 %v18232_v10 }
 0x131   : > { %15576 = vmatmul.mubr.msk.bf16.gmra.mrb[4].mxu0 %vm18942_vm11, %v18966_v56 }
 0x132   : > { %15579 = vmatprep.mubr.msk.bf16.mxu0 %vm18949_vm12, %v18991_v3  ;;  %15608 = vmatpush3.bf16.msra.mxu0 %v18232_v10  ;;  %v1379_v10 = vld [vmem:[#allocation2 + $0x187] sm:$0xff] }
 0x133   : > { %15609 = vmatprep.subr.bf16.mxu0 %v18233_v53 }
 0x136   : > { %15610 = vmatpush3.bf16.msra.mxu0 %v18233_v53  ;;  %v1686_v53 = vld [vmem:[#allocation2 + $0x90] sm:$0xff] }
 0x137   : > { %15611 = vmatprep.subr.bf16.mxu0 %v18234_v43 }
 0x139   : > { %15580 = vmatmul.mubr.msk.bf16.gmra.mrb[8].mxu0 %vm18971_vm15, %v18993_v6 }
 0x13a   : > { %15583 = vmatprep.mubr.msk.bf16.mxu0 %vm18978_vm0, %v19017_v22  ;;  %15612 = vmatpush3.bf16.msra.mxu0 %v18234_v43  ;;  %vm22355_vm0 = vnez %v22274_v62  ;;  %v1687_v43 = vld [vmem:[#allocation2 + $0x98] sm:$0xff] }
 0x13b   : > { %15613 = vmatprep.subr.bf16.mxu0 %v18235_v35  ;;  %v1691_v62 = vld [vmem:[#allocation2 + $0xb8] sm:$0xff] }
 0x13e   : > { %15614 = vmatpush3.bf16.msra.mxu0 %v18235_v35  ;;  %v19410_v35 = vpack.c.bf16 %v1379_v10, %v1378_v4  ;;  %v1692_v4 = vld [vmem:[#allocation2 + $0xc0] sm:$0xff]  ;;  %v1693_v10 = vld [vmem:[#allocation2 + $0xc8] sm:$0xff] }
 0x13f   : > { %15615 = vmatprep.subr.bf16.mxu0 %v18236_v52 }
 0x140   : > { %22358 = vst [vmem:[#allocation56_spill] sm:$0xff] %v19410_v35 }
 0x141   : > { %15584 = vmatmul.mubr.msk.bf16.gmra.mrb[12].mxu0 %vm18998_vm3, %v19019_v28  ;;  %vm22354_vm3 = vnez %v22270_v51 }
 0x142   : > { %15587 = vmatprep.mubr.msk.bf16.mxu0 %vm22351_vm1, %v19047_v49  ;;  %15616 = vmatpush3.bf16.msra.mxu0 %v18236_v52  ;;  %vm22356_vm1 = vnez %v22279_v16  ;;  %v1718_v52 = vpack.c.bf16 %v1687_v43, %v1686_v53  ;;  %v1690_v16 = vld [vmem:[#allocation2 + $0xb0] sm:$0xff]  ;;  %v1695_v43 = vld [vmem:[#allocation2 + $0xd8] sm:$0xff] }
 0x143   : > { %15617 = vmatprep.subr.bf16.mxu0 %v18237_v7  ;;  %v19417_v51 = vpack.c.bf16 %v1691_v62, %v1690_v16  ;;  %v1694_v53 = vld [vmem:[#allocation2 + $0xd0] sm:$0xff]  ;;  %v18241_v62 = vld [vmem:[#allocation3 + $0x158] sm:$0xff]   ;;  %v1696_v16 = vld [vmem:[#allocation2 + $0xe0] sm:$0xff] }
 0x145   : > { %22361 = vst [vmem:[#allocation58_spill] sm:$0xff] %v19417_v51 }
 0x146   : > { %15618 = vmatpush3.bf16.msra.mxu0 %v18237_v7  ;;  %v1688_v7 = vld [vmem:[#allocation2 + $0xa0] sm:$0xff] }
 0x147   : > { %15651 = vmatprep.subr.bf16.mxu0 %v18238_v2 }
 0x149   : > { %15588 = vmatmul.mubr.msk.bf16.gmra.mrb[16].mxu0 %vm22352_vm4, %v19049_v50  ;;  %vm22357_vm4 = vnez %v22283_v21  ;;  %v18239_v21 = vld [vmem:[#allocation3 + $0x148] sm:$0xff]  }
 0x14a   : > { %15591 = vmatprep.mubr.msk.bf16.mxu0 %vm22353_vm5, %v19076_v1 }
 0x151   : > { %15592 = vmatmul.mubr.msk.bf16.gmra.mrb[20].mxu0 %vm22354_vm3, %v19078_v5  ;;  %vm22359_vm3 = vnez %v22290_v60  ;;  %v19421_v60 = vpack.c.bf16 %v1693_v10, %v1692_v4  ;;  %v1700_v10 = vld [vmem:[#allocation2 + $0x100] sm:$0xff] }
 0x152   : > { %15595 = vmatprep.mubr.msk.bf16.mxu0 %vm22355_vm0, %v19105_v38 }
 0x153   : > { %22362 = vst [vmem:[#allocation59_spill] sm:$0xff] %v19421_v60 }
 0x159   : > { %15596 = vmatmul.mubr.msk.bf16.gmra.mrb[24].mxu0 %vm22356_vm1, %v19107_v39  ;;  %v19415_v39 = vpack.c.bf16 %v1689_v17, %v1688_v7  ;;  %v1697_v17 = vld [vmem:[#allocation2 + $0xe8] sm:$0xff]  ;;  %v1699_v7 = vld [vmem:[#allocation2 + $0xf8] sm:$0xff]  ;;  %vm22368_vm1 = vnez %v22302_v0 }
 0x15a   : > { %15599 = vmatprep.mubr.msk.bf16.mxu0 %vm22357_vm4, %v19129_v20  ;;  %vm22367_vm4 = vnez %v22298_v55 }
 0x15b   : > { %22360 = vst [vmem:[#allocation57_spill] sm:$0xff] %v19415_v39 }
 0x161   : > { %15600 = vmatmul.mubr.msk.bf16.gmra.mrb[28].mxu0 %vm22359_vm3, %v19410_v35  ;;  %v19423_v35 = vpack.c.bf16 %v1695_v43, %v1694_v53  ;;  %v1701_v53 = vld [vmem:[#allocation2 + $0x108] sm:$0xff]  ;;  %v1702_v43 = vld [vmem:[#allocation2 + $0x110] sm:$0xff]  ;;  %vm22366_vm3 = vnez %v22294_v37 }
 0x162   : > { %15619 = vmatprep.mubr.bf16.mxu0 %v1718_v52  ;;  %v18240_v52 = vld [vmem:[#allocation3 + $0x150] sm:$0xff]  }
 0x163   : > { %22363 = vst [vmem:[#allocation60_spill] sm:$0xff] %v19423_v35 }
 0x169   : > { %15620 = vmatmul.mubr.bf16.vlgmr.msra.gmra.mrb[0].mxu0 %v19415_v39  ;;  %v19427_v39 = vpack.c.bf16 %v1697_v17, %v1696_v16  ;;  %v1704_v17 = vld [vmem:[#allocation2 + $0x120] sm:$0xff] }
 0x16a   : > { %15652 = vmatpush3.bf16.msra.mxu0 %v18238_v2  ;;  %15623 = vmatprep.mubr.bf16.mxu0 %v19417_v51  ;;  %v1698_v2 = vld [vmem:[#allocation2 + $0xf0] sm:$0xff]  ;;  %v18242_v51 = vld [vmem:[#allocation3 + $0x160] sm:$0xff]  }
 0x16b   : > { %15653 = vmatprep.subr.bf16.mxu0 %v18239_v21  ;;  %22364 = vst [vmem:[#allocation61_spill] sm:$0xff] %v19427_v39  ;;  %v19429_v4 = vpack.c.bf16 %v1699_v7, %v1698_v2  ;;  %v1705_v2 = vld [vmem:[#allocation2 + $0x128] sm:$0xff]  ;;  %v1706_v7 = vld [vmem:[#allocation2 + $0x130] sm:$0xff] }
 0x16d   : > { %22365 = vst [vmem:[#allocation62_spill] sm:$0xff] %v19429_v4 }
 0x16e   : > { %15654 = vmatpush3.bf16.msra.mxu0 %v18239_v21  ;;  %v18243_v21 = vld [vmem:[#allocation3 + $0x168] sm:$0xff]  }
 0x16f   : > { %15655 = vmatprep.subr.bf16.mxu0 %v18240_v52 }
 0x171   : > { %15624 = vmatmul.mubr.bf16.gmra.mrb[4].mxu0 %v19421_v60  ;;  %v19433_v60 = vpack.c.bf16 %v1701_v53, %v1700_v10  ;;  %v1709_v53 = vld [vmem:[#allocation2 + $0x148] sm:$0xff] }
 0x172   : > { %15627 = vmatprep.mubr.bf16.mxu0 %v19423_v35  ;;  %15656 = vmatpush3.bf16.msra.mxu0 %v18240_v52  ;;  %v1703_v52 = vld [vmem:[#allocation2 + $0x118] sm:$0xff]  ;;  %v18244_v35 = vld [vmem:[#allocation3 + $0x170] sm:$0xff]  }
 0x173   : > { %15657 = vmatprep.subr.bf16.mxu0 %v18241_v62  ;;  %v19435_v16 = vpack.c.bf16 %v1703_v52, %v1702_v43  ;;  %v19451_v52 = vld [vmem:[#allocation2 + $0x188] sm:$0xff] }
 0x176   : > { %15658 = vmatpush3.bf16.msra.mxu0 %v18241_v62  ;;  %v18245_v62 = vld [vmem:[#allocation3 + $0x178] sm:$0xff]  }
 0x177   : > { %15659 = vmatprep.subr.bf16.mxu0 %v18242_v51 }
 0x179   : > { %15628 = vmatmul.mubr.bf16.gmra.mrb[8].mxu0 %v19427_v39  ;;  %v19439_v39 = vpack.c.bf16 %v1705_v2, %v1704_v17  ;;  %v18247_v17 = vld [vmem:[#allocation3 + $0x188] sm:$0xff]  }
 0x17a   : > { %15631 = vmatprep.mubr.bf16.mxu0 %v19429_v4  ;;  %15660 = vmatpush3.bf16.msra.mxu0 %v18242_v51  ;;  %v1707_v51 = vld [vmem:[#allocation2 + $0x138] sm:$0xff]  ;;  %v18246_v4 = vld [vmem:[#allocation3 + $0x180] sm:$0xff]   ;;  %v22370_v2 = vld [vmem:[#allocation38_spill] sm:$0xff] }
 0x17b   : > { %15661 = vmatprep.subr.bf16.mxu0 %v18243_v21  ;;  %v19441_v10 = vpack.c.bf16 %v1707_v51, %v1706_v7  ;;  %vm22371_vm0 = vnez %v22370_v2  ;;  %v22373_v7 = vld [vmem:[#allocation40_spill] sm:$0xff]  ;;  %v22376_v51 = vld [vmem:[#allocation43_spill] sm:$0xff] }
 0x17e   : > { %15662 = vmatpush3.bf16.msra.mxu0 %v18243_v21  ;;  %v1708_v21 = vld [vmem:[#allocation2 + $0x140] sm:$0xff] }
 0x17f   : > { %15663 = vmatprep.subr.bf16.mxu0 %v18244_v35  ;;  %v19445_v43 = vpack.c.bf16 %v1709_v53, %v1708_v21  ;;  %v22378_v21 = vld [vmem:[#allocation45_spill] sm:$0xff]  ;;  %v18252_v53 = vld [vmem:[#allocation3 + $0x1b0] sm:$0xff]  }
 0x181   : > { %15632 = vmatmul.mubr.bf16.gmra.mrb[12].mxu0 %v19433_v60 }
 0x182   : > { %15635 = vmatprep.mubr.bf16.mxu0 %v19435_v16  ;;  %15664 = vmatpush3.bf16.msra.mxu0 %v18244_v35  ;;  %v18486_v35 = vld [vmem:[#allocation2 + $0x180] sm:$0xff] }
 0x183   : > { %15665 = vmatprep.subr.bf16.mxu0 %v18245_v62 }
 0x186   : > { %15666 = vmatpush3.bf16.msra.mxu0 %v18245_v62  ;;  %v1733_v62 = vpack.c.bf16 %v19451_v52, %v18486_v35  ;;  %v18253_v35 = vld [vmem:[#allocation3 + $0x1b8] sm:$0xff]  }
 0x187   : > { %15699 = vmatprep.subr.bf16.mxu0 %v18246_v4 }
 0x189   : > { %15636 = vmatmul.mubr.bf16.gmra.mrb[16].mxu0 %v19439_v39 }
 0x18a   : > { %15639 = vmatprep.mubr.bf16.mxu0 %v19441_v10 }
 0x191   : > { %15640 = vmatmul.mubr.bf16.gmra.mrb[20].mxu0 %v19445_v43 }
 0x192   : > { %15643 = vmatprep.mubr.bf16.mxu0 %v18863_v11  ;;  %v18248_v11 = vld [vmem:[#allocation3 + $0x190] sm:$0xff]  }
 0x199   : > { %15644 = vmatmul.mubr.bf16.gmra.mrb[24].mxu0 %v18870_v13  ;;  %v18249_v13 = vld [vmem:[#allocation3 + $0x198] sm:$0xff]  }
 0x19a   : > { %15647 = vmatprep.mubr.bf16.mxu0 %v18893_v26  ;;  %v22369_v26 = vld [vmem:[#allocation42_spill] sm:$0xff] }
 0x1a1   : > { %15648 = vmatmul.mubr.bf16.gmra.mrb[28].mxu0 %v1733_v62  ;;  %v22381_v62 = vld [vmem:[#allocation50_spill] sm:$0xff] }
 0x1a2   : > { %15667 = vmatprep.mubr.msk.bf16.mxu0 %vm22366_vm3, %v19168_v19  ;;  %v22372_v19 = vld [vmem:[#allocation47_spill] sm:$0xff]  ;;  %vm22374_vm3 = vnez %v22373_v7 }
 0x1a9   : > { %15668 = vmatmul.mubr.msk.bf16.vlgmr.msra.gmra.mrb[0].mxu0 %vm22367_vm4, %v19170_v27  ;;  %v18250_v27 = vld [vmem:[#allocation3 + $0x1a0] sm:$0xff]   ;;  %vm22379_vm4 = vnez %v22378_v21 }
 0x1aa   : > { %15700 = vmatpush3.bf16.msra.mxu0 %v18246_v4  ;;  %15671 = vmatprep.mubr.msk.bf16.mxu0 %vm22368_vm1, %v19201_v15  ;;  %v18251_v4 = vld [vmem:[#allocation3 + $0x1a8] sm:$0xff]   ;;  %v22375_v15 = vld [vmem:[#allocation48_spill] sm:$0xff]  ;;  %vm22377_vm1 = vnez %v22376_v51 }
 0x1ab   : > { %15701 = vmatprep.subr.bf16.mxu0 %v18247_v17 }
 0x1ae   : > { %15702 = vmatpush3.bf16.msra.mxu0 %v18247_v17  ;;  %v18254_v17 = vld [vmem:[#allocation3 + $0x1c0] sm:$0xff]  }
 0x1af   : > { %15703 = vmatprep.subr.bf16.mxu0 %v18248_v11 }
 0x1b1   : > { %15672 = vmatmul.mubr.msk.bf16.gmra.mrb[4].mxu0 %vm22371_vm0, %v22369_v26  ;;  %vm22382_vm0 = vnez %v22381_v62  ;;  %v19499_v26 = vld [vmem:[#allocation2] sm:$0xff] }
 0x1b2   : > { %15675 = vmatprep.mubr.msk.bf16.mxu0 %vm22374_vm3, %v22372_v19  ;;  %15704 = vmatpush3.bf16.msra.mxu0 %v18248_v11  ;;  %vm22380_vm3 = vnez %v22326_v42  ;;  %v2022_v11 = vld [vmem:[#allocation2 + $0x181] sm:$0xff]  ;;  %v19503_v19 = vpack.c.bf16 %v19499_v26, %v19499_v26 }
 0x1b3   : > { %15705 = vmatprep.subr.bf16.mxu0 %v18249_v13  ;;  %v18271_v42 = vld [vmem:[#allocation3 + $0x288] sm:$0xff]  }
 0x1b4   : > { %15859 = vmatprep.mubr.bf16.mxu1 %v19503_v19 }
 0x1b6   : > { %15706 = vmatpush3.bf16.msra.mxu0 %v18249_v13  ;;  %v2023_v13 = vld [vmem:[#allocation2 + $0x189] sm:$0xff] }
 0x1b7   : > { %15707 = vmatprep.subr.bf16.mxu0 %v18250_v27 }
 0x1b9   : > { %15676 = vmatmul.mubr.msk.bf16.gmra.mrb[8].mxu0 %vm22377_vm1, %v22375_v15  ;;  %v18256_v15 = vld [vmem:[#allocation3 + $0x1d0] sm:$0xff]  }
 0x1ba   : > { %15679 = vmatprep.mubr.msk.bf16.mxu0 %vm22379_vm4, %v19265_v34  ;;  %15708 = vmatpush3.bf16.msra.mxu0 %v18250_v27  ;;  %vm22383_vm4 = vnez %v22334_v44  ;;  %v22384_v34 = vld [vmem:[#allocation53_spill] sm:$0xff]  ;;  %v19506_v27 = vpack.c.bf16 %v2023_v13, %v2022_v11  ;;  %v22407_v11 = vld [vmem:[#allocation62_spill] sm:$0xff] }
 0x1bb   : > { %15709 = vmatprep.subr.bf16.mxu0 %v18251_v4  ;;  %vm22385_vm1 = vnez %v22384_v34  ;;  %v18268_v13 = vld [vmem:[#allocation3 + $0x230] sm:$0xff]  }
 0x1bc   : > { %v18272_v44 = vld [vmem:[#allocation3 + $0x290] sm:$0xff]  }
 0x1be   : > { %15710 = vmatpush3.bf16.msra.mxu0 %v18251_v4  ;;  %v18255_v4 = vld [vmem:[#allocation3 + $0x1c8] sm:$0xff]  }
 0x1bf   : > { %15711 = vmatprep.subr.bf16.mxu0 %v18252_v53 }
 0x1c1   : > { %15680 = vmatmul.mubr.msk.bf16.gmra.mrb[12].mxu0 %vm22380_vm3, %v19267_v63 }
 0x1c2   : > { %15683 = vmatprep.mubr.msk.bf16.mxu0 %vm22382_vm0, %v19296_v32  ;;  %15712 = vmatpush3.bf16.msra.mxu0 %v18252_v53  ;;  %v18257_v53 = vld [vmem:[#allocation3 + $0x1d8] sm:$0xff]  }
 0x1c3   : > { %15713 = vmatprep.subr.bf16.mxu0 %v18253_v35 }
 0x1c6   : > { %15714 = vmatpush3.bf16.msra.mxu0 %v18253_v35  ;;  %v18266_v35 = vld [vmem:[#allocation3 + $0x220] sm:$0xff]  }
 0x1c7   : > { %15747 = vmatprep.subr.bf16.mxu0 %v18254_v17 }
 0x1c9   : > { %15684 = vmatmul.mubr.msk.bf16.gmra.mrb[16].mxu0 %vm22383_vm4, %v19298_v12 }
 0x1ca   : > { %15687 = vmatprep.mubr.msk.bf16.mxu0 %vm22385_vm1, %v19324_v18 }
 0x1d1   : > { %15688 = vmatmul.mubr.msk.bf16.gmra.mrb[20].mxu0 %vm19306_vm9, %v19326_v25 }
 0x1d2   : > { %15691 = vmatprep.mubr.msk.bf16.mxu0 %vm19316_vm14, %v19345_v24 }
 0x1d9   : > { %15692 = vmatmul.mubr.msk.bf16.gmra.mrb[24].mxu0 %vm19329_vm2, %v19347_v23 }
 0x1da   : > { %15695 = vmatprep.mubr.msk.bf16.mxu0 %vm19337_vm13, %v19360_v48 }
 0x1e1   : > { %15696 = vmatmul.mubr.msk.bf16.gmra.mrb[28].mxu0 %vm19353_vm10, %v19506_v27 }
 0x1e2   : > { %15715 = vmatprep.mubr.msk.bf16.mxu0 %vm18901_vm6, %v18937_v45  ;;  %vm22386_vm6 = vnez %v22259_v58  ;;  %v18261_v45 = vld [vmem:[#allocation3 + $0x1f8] sm:$0xff]  }
 0x1e3   : > { %v22397_v58 = vld [vmem:[#allocation56_spill] sm:$0xff] }
 0x1e9   : > { %15716 = vmatmul.mubr.msk.bf16.vlgmr.msra.gmra.mrb[0].mxu0 %vm18912_vm7, %v18964_v54  ;;  %vm22387_vm7 = vnez %v22261_v8  ;;  %v22392_v54 = vld [vmem:[#allocation32_spill] sm:$0xff] }
 0x1ea   : > { %15748 = vmatpush3.bf16.msra.mxu0 %v18254_v17  ;;  %15719 = vmatprep.mubr.msk.bf16.mxu0 %vm18924_vm8, %v18966_v56  ;;  %vm22388_vm8 = vnez %v22263_v9  ;;  %v22393_v56 = vld [vmem:[#allocation27_spill] sm:$0xff]  ;;  %v18267_v17 = vld [vmem:[#allocation3 + $0x228] sm:$0xff]  }
 0x1eb   : > { %15749 = vmatprep.subr.bf16.mxu0 %v18255_v4  ;;  %v2361_v8 = vld [vmem:[#allocation2 + $0x197] sm:$0xff] }
 0x1ee   : > { %15750 = vmatpush3.bf16.msra.mxu0 %v18255_v4  ;;  %v18269_v4 = vld [vmem:[#allocation3 + $0x238] sm:$0xff]  }
 0x1ef   : > { %15751 = vmatprep.subr.bf16.mxu0 %v18256_v15 }
 0x1f1   : > { %15720 = vmatmul.mubr.msk.bf16.gmra.mrb[4].mxu0 %vm18942_vm11, %v18991_v3  ;;  %vm22389_vm11 = vnez %v22265_v30  ;;  %v22398_v3 = vld [vmem:[#allocation30_spill] sm:$0xff]  ;;  %v22402_v30 = vld [vmem:[#allocation57_spill] sm:$0xff] }
 0x1f2   : > { %15723 = vmatprep.mubr.msk.bf16.mxu0 %vm18949_vm12, %v18993_v6  ;;  %15752 = vmatpush3.bf16.msra.mxu0 %v18256_v15  ;;  %vm22391_vm12 = vnez %v22390_v47  ;;  %v2360_v6 = vld [vmem:[#allocation2 + $0x18f] sm:$0xff] }
 0x1f3   : > { %15753 = vmatprep.subr.bf16.mxu0 %v18257_v53  ;;  %v13683_v9 = vpack.c.bf16 %v2361_v8, %v2360_v6  ;;  %v2690_v15 = vld [vmem:[#allocation2 + $0x150] sm:$0xff] }
 0x1f4   : > { %v18494_v6 = vld [vmem:[#allocation2 + $0xc9] sm:$0xff] }
 0x1f6   : > { %15754 = vmatpush3.bf16.msra.mxu0 %v18257_v53  ;;  %v2691_v53 = vld [vmem:[#allocation2 + $0x158] sm:$0xff] }
 0x1f7   : > { %15755 = vmatprep.subr.bf16.mxu0 %v18258_v29 }
 0x1f9   : > { %15724 = vmatmul.mubr.msk.bf16.gmra.mrb[8].mxu0 %vm18971_vm15, %v19017_v22  ;;  %vm22394_vm15 = vnez %v22393_v56  ;;  %v22400_v22 = vld [vmem:[#allocation34_spill] sm:$0xff] }
 0x1fa   : > { %15727 = vmatprep.mubr.msk.bf16.mxu0 %vm22386_vm6, %v19019_v28  ;;  %15756 = vmatpush3.bf16.msra.mxu0 %v18258_v29  ;;  %vm22396_vm6 = vnez %v22395_v57  ;;  %v18270_v28 = vld [vmem:[#allocation3 + $0x280] sm:$0xff]   ;;  %v2693_v29 = vld [vmem:[#allocation2 + $0x168] sm:$0xff] }
 0x1fb   : > { %15757 = vmatprep.subr.bf16.mxu0 %v18259_v33  ;;  %15843 = vmatprep.subr.bf16.mxu1 %v18270_v28  ;;  %v18492_v57 = vld [vmem:[#allocation2 + $0xb9] sm:$0xff] }
 0x1fc   : > { %15844 = vmatpush3.bf16.msra.mxu1 %v18270_v28  ;;  %v18497_v28 = vld [vmem:[#allocation2 + $0xe1] sm:$0xff] }
 0x1fd   : > { %15845 = vmatprep.subr.bf16.mxu1 %v18271_v42 }
 0x1fe   : > { %15758 = vmatpush3.bf16.msra.mxu0 %v18259_v33  ;;  %v2711_v33 = vpack.c.bf16 %v2691_v53, %v2690_v15 }
 0x1ff   : > { %15759 = vmatprep.subr.bf16.mxu0 %v18260_v40 }
 0x200   : > { %15846 = vmatpush3.bf16.msra.mxu1 %v18271_v42 }
 0x201   : > { %15728 = vmatmul.mubr.msk.bf16.gmra.mrb[12].mxu0 %vm22387_vm7, %v19047_v49  ;;  %vm22399_vm7 = vnez %v22398_v3  ;;  %v22403_v49 = vld [vmem:[#allocation58_spill] sm:$0xff]  ;;  %v18493_v3 = vld [vmem:[#allocation2 + $0xc1] sm:$0xff]  ;;  %15847 = vmatprep.subr.bf16.mxu1 %v18272_v44 }
 0x202   : > { %15731 = vmatprep.mubr.msk.bf16.mxu0 %vm22388_vm8, %v19049_v50  ;;  %15760 = vmatpush3.bf16.msra.mxu0 %v18260_v40  ;;  %v22404_v50 = vld [vmem:[#allocation59_spill] sm:$0xff]  ;;  %vm22408_vm8 = vnez %v22294_v37  ;;  %v13708_v8 = vpack.c.bf16 %v18494_v6, %v18493_v3 }
 0x203   : > { %15761 = vmatprep.subr.bf16.mxu0 %v18261_v45  ;;  %v18499_v37 = vld [vmem:[#allocation2 + $0xf1] sm:$0xff] }
 0x204   : > { %15848 = vmatpush3.bf16.msra.mxu1 %v18272_v44 }
 0x206   : > { %15762 = vmatpush3.bf16.msra.mxu0 %v18261_v45  ;;  %v2694_v45 = vld [vmem:[#allocation2 + $0x170] sm:$0xff] }
 0x207   : > { %15795 = vmatprep.subr.bf16.mxu0 %v18262_v46 }
 0x209   : > { %15732 = vmatmul.mubr.msk.bf16.gmra.mrb[16].mxu0 %vm22389_vm11, %v19076_v1  ;;  %v18264_v1 = vld [vmem:[#allocation3 + $0x210] sm:$0xff]   ;;  %vm22409_vm11 = vnez %v22298_v55 }
 0x20a   : > { %15735 = vmatprep.mubr.msk.bf16.mxu0 %vm22353_vm5, %v19078_v5  ;;  %vm22401_vm5 = vnez %v22400_v22  ;;  %v18265_v5 = vld [vmem:[#allocation3 + $0x218] sm:$0xff]  }
 0x20b   : > { %v19610_v55 = vld [vmem:[#allocation2 + $0x191] sm:$0xff] }
 0x211   : > { %15736 = vmatmul.mubr.msk.bf16.gmra.mrb[20].mxu0 %vm22391_vm12, %v19105_v38  ;;  %v22405_v38 = vld [vmem:[#allocation60_spill] sm:$0xff]  ;;  %vm22410_vm12 = vnez %v22302_v0 }
 0x212   : > { %15739 = vmatprep.mubr.msk.bf16.mxu0 %vm22394_vm15, %v22392_v54  ;;  %v18489_v54 = vld [vmem:[#allocation2 + $0xa1] sm:$0xff]  ;;  %vm22411_vm15 = vnez %v22370_v2  ;;  %v19612_v0 = vld [vmem:[#allocation2 + $0x199] sm:$0xff] }
 0x213   : > { %v18285_v2 = vld [vmem:[#allocation3 + $0x278] sm:$0xff]  }
 0x219   : > { %15740 = vmatmul.mubr.msk.bf16.gmra.mrb[24].mxu0 %vm22396_vm6, %v19129_v20  ;;  %v22406_v20 = vld [vmem:[#allocation61_spill] sm:$0xff]  ;;  %vm22412_vm6 = vnez %v22373_v7 }
 0x21a   : > { %15743 = vmatprep.mubr.msk.bf16.mxu0 %vm22399_vm7, %v22397_v58  ;;  %vm22413_vm7 = vnez %v22376_v51  ;;  %v19619_v7 = vld [vmem:[#allocation3 + $0x2c0] sm:$0xff]  }
 0x21b   : > { %v19622_v51 = vld [vmem:[#allocation5] ss:$0 sm:$0xff] }
 0x221   : > { %15744 = vmatmul.mubr.msk.bf16.gmra.mrb[28].mxu0 %vm22401_vm5, %v13683_v9  ;;  %v18496_v9 = vld [vmem:[#allocation2 + $0xd9] sm:$0xff]  ;;  %vm22414_vm5 = vnez %v22378_v21 }
 0x222   : > { %15763 = vmatprep.mubr.bf16.mxu0 %v22402_v30  ;;  %v18498_v30 = vld [vmem:[#allocation2 + $0xe9] sm:$0xff] }
 0x229   : > { %15764 = vmatmul.mubr.bf16.vlgmr.msra.gmra.mrb[0].mxu0 %v22403_v49  ;;  %v18500_v49 = vld [vmem:[#allocation2 + $0xf9] sm:$0xff] }
 0x22a   : > { %15796 = vmatpush3.bf16.msra.mxu0 %v18262_v46  ;;  %15767 = vmatprep.mubr.bf16.mxu0 %v22404_v50  ;;  %v2695_v46 = vld [vmem:[#allocation2 + $0x178] sm:$0xff]  ;;  %v13717_v50 = vpack.c.bf16 %v18500_v49, %v18499_v37 }
 0x22b   : > { %15797 = vmatprep.subr.bf16.mxu0 %v18263_v36  ;;  %v2713_v47 = vpack.c.bf16 %v2695_v46, %v2694_v45 }
 0x22e   : > { %15798 = vmatpush3.bf16.msra.mxu0 %v18263_v36  ;;  %v13714_v36 = vpack.c.bf16 %v18498_v30, %v18497_v28 }
 0x22f   : > { %15799 = vmatprep.subr.bf16.mxu0 %v18264_v1 }
 0x231   : > { %15768 = vmatmul.mubr.bf16.gmra.mrb[4].mxu0 %v22405_v38 }
 0x232   : > { %15771 = vmatprep.mubr.bf16.mxu0 %v22406_v20  ;;  %15800 = vmatpush3.bf16.msra.mxu0 %v18264_v1 }
 0x233   : > { %15801 = vmatprep.subr.bf16.mxu0 %v18265_v5 }
 0x236   : > { %15802 = vmatpush3.bf16.msra.mxu0 %v18265_v5 }
 0x237   : > { %15803 = vmatprep.subr.bf16.mxu0 %v18266_v35 }
 0x239   : > { %15772 = vmatmul.mubr.bf16.gmra.mrb[8].mxu0 %v22407_v11 }
 0x23a   : > { %15775 = vmatprep.mubr.bf16.mxu0 %v19433_v60  ;;  %15804 = vmatpush3.bf16.msra.mxu0 %v18266_v35  ;;  %v2692_v60 = vld [vmem:[#allocation2 + $0x160] sm:$0xff] }
 0x23b   : > { %15805 = vmatprep.subr.bf16.mxu0 %v18267_v17  ;;  %v2712_v40 = vpack.c.bf16 %v2693_v29, %v2692_v60 }
 0x23e   : > { %15806 = vmatpush3.bf16.msra.mxu0 %v18267_v17 }
 0x23f   : > { %15807 = vmatprep.subr.bf16.mxu0 %v18268_v13 }
 0x241   : > { %15776 = vmatmul.mubr.bf16.gmra.mrb[12].mxu0 %v19435_v16  ;;  %v2696_v16 = vld [vmem:[#allocation2 + $0x180] sm:$0xff] }
 0x242   : > { %15779 = vmatprep.mubr.bf16.mxu0 %v19439_v39  ;;  %15808 = vmatpush3.bf16.msra.mxu0 %v18268_v13  ;;  %v2714_v39 = vpack.c.bf16 %v19451_v52, %v2696_v16  ;;  %v18495_v52 = vld [vmem:[#allocation2 + $0xd1] sm:$0xff] }
 0x243   : > { %15809 = vmatprep.subr.bf16.mxu0 %v18269_v4  ;;  %v13711_v22 = vpack.c.bf16 %v18496_v9, %v18495_v52 }
 0x246   : > { %15810 = vmatpush3.bf16.msra.mxu0 %v18269_v4 }
 0x249   : > { %15780 = vmatmul.mubr.bf16.gmra.mrb[16].mxu0 %v19441_v10  ;;  %v18490_v10 = vld [vmem:[#allocation2 + $0xa9] sm:$0xff] }
 0x24a   : > { %15783 = vmatprep.mubr.bf16.mxu0 %v19445_v43  ;;  %v13702_v56 = vpack.c.bf16 %v18490_v10, %v18489_v54  ;;  %v18491_v43 = vld [vmem:[#allocation2 + $0xb1] sm:$0xff] }
 0x24b   : > { %v13705_v58 = vpack.c.bf16 %v18492_v57, %v18491_v43 }
 0x251   : > { %15784 = vmatmul.mubr.bf16.gmra.mrb[20].mxu0 %v2711_v33 }
 0x252   : > { %15787 = vmatprep.mubr.bf16.mxu0 %v2712_v40 }
 0x259   : > { %15788 = vmatmul.mubr.bf16.gmra.mrb[24].mxu0 %v2713_v47 }
 0x25a   : > { %15791 = vmatprep.mubr.bf16.mxu0 %v2714_v39 }
 0x261   : > { %15792 = vmatmul.mubr.bf16.gmra.mrb[28].mxu0 %v19503_v19 }
 0x262   : > { %15811 = vmatprep.mubr.msk.bf16.mxu0 %vm22408_vm8, %v13702_v56 }
 0x269   : > { %15812 = vmatmul.mubr.msk.bf16.vlgmr.msra.gmra.mrb[0].mxu0 %vm22409_vm11, %v13705_v58 }
 0x26a   : > { %15815 = vmatprep.mubr.msk.bf16.mxu0 %vm22410_vm12, %v13708_v8 }
 0x271   : > { %15816 = vmatmul.mubr.msk.bf16.gmra.mrb[4].mxu0 %vm22411_vm15, %v13711_v22 }
 0x272   : > { %15819 = vmatprep.mubr.msk.bf16.mxu0 %vm22412_vm6, %v13714_v36 }
 0x279   : > { %15820 = vmatmul.mubr.msk.bf16.gmra.mrb[8].mxu0 %vm22413_vm7, %v13717_v50 }
 0x27a   : > { %15823 = vmatprep.mubr.msk.bf16.mxu0 %vm22414_vm5, %v19267_v63  ;;  %v13747_v63 = vpack.c.bf16 %v19612_v0, %v19610_v55 }
 0x281   : > { %15824 = vmatmul.mubr.msk.bf16.gmra.mrb[12].mxu0 %vm22380_vm3, %v19296_v32  ;;  %v18273_v32 = vld [vmem:[#allocation3 + $0x298] sm:$0xff]   ;;  %vm22416_vm3 = vmmov 1  }
 0x282   : > { %15827 = vmatprep.mubr.msk.bf16.mxu0 %vm22382_vm0, %v19298_v12  ;;  %15849 = vmatprep.subr.bf16.mxu1 %v18273_v32  ;;  %v18274_v12 = vld [vmem:[#allocation3 + $0x2a0] sm:$0xff]  }
 0x283   : > { %15850 = vmatpush3.bf16.msra.mxu1 %v18273_v32 }
 0x284   : > { %15851 = vmatprep.subr.bf16.mxu1 %v18274_v12 }
 0x287   : > { %15852 = vmatpush3.bf16.msra.mxu1 %v18274_v12 }
 0x288   : > { %15853 = vmatprep.subr.bf16.mxu1 %v18275_v61 }
 0x289   : > { %15828 = vmatmul.mubr.msk.bf16.gmra.mrb[16].mxu0 %vm22383_vm4, %v19324_v18  ;;  %v18279_v18 = vld [vmem:[#allocation3 + $0x248] sm:$0xff]  }
 0x28a   : > { %15831 = vmatprep.mubr.msk.bf16.mxu0 %vm22385_vm1, %v19326_v25  ;;  %v18280_v25 = vld [vmem:[#allocation3 + $0x250] sm:$0xff]  }
 0x28b   : > { %15854 = vmatpush3.bf16.msra.mxu1 %v18275_v61 }
 0x28c   : > { %15855 = vmatprep.subr.bf16.mxu1 %v18276_v59 }
 0x28f   : > { %15856 = vmatpush3.bf16.msra.mxu1 %v18276_v59 }
 0x290   : > { %15857 = vmatprep.subr.bf16.mxu1 %v18277_v31 }
 0x291   : > { %15832 = vmatmul.mubr.msk.bf16.gmra.mrb[20].mxu0 %vm19306_vm9, %v19345_v24  ;;  %v18283_v24 = vld [vmem:[#allocation3 + $0x268] sm:$0xff]  }
 0x292   : > { %15835 = vmatprep.mubr.msk.bf16.mxu0 %vm19316_vm14, %v19347_v23  ;;  %v18284_v23 = vld [vmem:[#allocation3 + $0x270] sm:$0xff]  }
 0x293   : > { %15858 = vmatpush3.bf16.msra.mxu1 %v18277_v31 }
 0x296   : > { %15860 = vmatmul.mubr.bf16.vlgmr.msra.gmra.mrb[0].mxu1 %v19503_v19 }
 0x299   : > { %15836 = vmatmul.mubr.msk.bf16.gmra.mrb[24].mxu0 %vm19329_vm2, %v19360_v48  ;;  %v18278_v48 = vld [vmem:[#allocation3 + $0x240] sm:$0xff]  }
 0x29a   : > { %15839 = vmatprep.mubr.msk.bf16.mxu0 %vm19337_vm13, %v19506_v27  ;;  %15891 = vmatprep.subr.bf16.mxu1 %v18278_v48 }
 0x29b   : > { %15892 = vmatpush3.bf16.msra.mxu1 %v18278_v48 }
 0x29c   : > { %15893 = vmatprep.subr.bf16.mxu1 %v18279_v18 }
 0x29f   : > { %15894 = vmatpush3.bf16.msra.mxu1 %v18279_v18 }
 0x2a0   : > { %15895 = vmatprep.subr.bf16.mxu1 %v18280_v25 }
 0x2a1   : > { %15840 = vmatmul.mubr.msk.bf16.gmra.mrb[28].mxu0 %vm19353_vm10, %v13747_v63 }
 0x2a3   : > { %15896 = vmatpush3.bf16.msra.mxu1 %v18280_v25 }
 0x2a4   : > { %15897 = vmatprep.subr.bf16.mxu1 %v18281_v14 }
 0x2a7   : > { %15898 = vmatpush3.bf16.msra.mxu1 %v18281_v14 }
 0x2a8   : > { %15899 = vmatprep.subr.bf16.mxu1 %v18282_v41 }
 0x2ab   : > { %15900 = vmatpush3.bf16.msra.mxu1 %v18282_v41 }
 0x2ac   : > { %15901 = vmatprep.subr.bf16.mxu1 %v18283_v24 }
 0x2af   : > { %15902 = vmatpush3.bf16.msra.mxu1 %v18283_v24 }
 0x2b0   : > { %15903 = vmatprep.subr.bf16.mxu1 %v18284_v23 }
 0x2b3   : > { %15904 = vmatpush3.bf16.msra.mxu1 %v18284_v23 }
 0x2b4   : > { %15905 = vmatprep.subr.bf16.mxu1 %v18285_v2 }
 0x2b7   : > { %15906 = vmatpush3.bf16.msra.mxu1 %v18285_v2 }
 0x2b8   : > { %15939 = vmatprep.subr.bf16.mxu1 %v19619_v7 }
 0x33c   : > { %v15813_v21 = vpop.f32.mrb[0].mxu0 }
 0x33d   : > { %v3321_v62 = vadd.f32 %v15813_v21, %v19622_v51  ;;  %v3153_v34 = vpop.f32.mrb[1].mxu0 }
 0x33e   : > { %v3319_v19 = vadd.f32 %v19622_v51, %v3153_v34  ;;  %v15814_v27 = vpop.f32.mrb[2].mxu0 }
 0x33f   : > { %v3353_v1 = vmax.f32 %v3321_v62, 0.0  ;;  %v3322_v5 = vadd.f32 %v15814_v27, %v19622_v51  ;;  %v3156_v38 = vpop.f32.mrb[3].mxu0 }
 0x340   : > { %v3351_v20 = vmax.f32 %v3319_v19, 0.0  ;;  %v3320_v35 = vadd.f32 %v19622_v51, %v3156_v38 }
 0x341   : > { %3385 = vst [vmem:[#allocation2 + $0xa0] sm:$0xff] %v3353_v1  ;;  %v3354_v17 = vmax.f32 %v3322_v5, 0.0 }
 0x342   : > { %3383 = vst [vmem:[#allocation2 + $0x90] sm:$0xff] %v3351_v20  ;;  %v3352_v11 = vmax.f32 %v3320_v35, 0.0 }
 0x343   : > { %3386 = vst [vmem:[#allocation2 + $0xa8] sm:$0xff] %v3354_v17 }
 0x344   : > { %3384 = vst [vmem:[#allocation2 + $0x98] sm:$0xff] %v3352_v11  ;;  %v15817_v13 = vpop.f32.mrb[4].mxu0 }
 0x345   : > { %v3325_v4 = vadd.f32 %v15817_v13, %v19622_v51  ;;  %v3169_v15 = vpop.f32.mrb[5].mxu0 }
 0x346   : > { %v3323_v53 = vadd.f32 %v19622_v51, %v3169_v15  ;;  %v15818_v60 = vpop.f32.mrb[6].mxu0 }
 0x347   : > { %v3357_v29 = vmax.f32 %v3325_v4, 0.0  ;;  %v19631_v33 = vadd.f32 %v15818_v60, %v19622_v51  ;;  %v3172_v40 = vpop.f32.mrb[7].mxu0 }
 0x348   : > { %v3355_v45 = vmax.f32 %v3323_v53, 0.0  ;;  %v3324_v46 = vadd.f32 %v19622_v51, %v3172_v40 }
 0x349   : > { %3389 = vst [vmem:[#allocation2 + $0xc0] sm:$0xff] %v3357_v29  ;;  %v3358_v16 = vmax.f32 %v19631_v33, 0.0 }
 0x34a   : > { %3387 = vst [vmem:[#allocation2 + $0xb0] sm:$0xff] %v3355_v45  ;;  %v3356_v47 = vmax.f32 %v3324_v46, 0.0  ;;  %v3417_v39 = vld [vmem:[#allocation2 + $0xa1] sm:$0xff] }
 0x34b   : > { %3390 = vst [vmem:[#allocation2 + $0xc8] sm:$0xff] %v3358_v16  ;;  %v3415_v54 = vld [vmem:[#allocation2 + $0x91] sm:$0xff]  ;;  %v3513_v10 = vmax.f32 %v3353_v1, %v3417_v39  ;;  %v3416_v52 = vld [vmem:[#allocation2 + $0x99] sm:$0xff] }
 0x34c   : > { %3388 = vst [vmem:[#allocation2 + $0xb8] sm:$0xff] %v3356_v47  ;;  %v15821_v56 = vpop.f32.mrb[8].mxu0  ;;  %v3481_v43 = vmax.f32 %v3351_v20, %v3415_v54  ;;  %v3482_v50 = vmax.f32 %v3352_v11, %v3416_v52 }
 0x34d   : > { %v3329_v57 = vadd.f32 %v15821_v56, %v19622_v51  ;;  %v3185_v58 = vpop.f32.mrb[9].mxu0 }
 0x34e   : > { %v19637_v3 = vadd.f32 %v19622_v51, %v3185_v58  ;;  %v15822_v6 = vpop.f32.mrb[10].mxu0  ;;  %v3545_v8 = vmax.f32 %v3481_v43, %v3513_v10 }
 0x34f   : > { %v3361_v9 = vmax.f32 %v3329_v57, 0.0  ;;  %v19640_v22 = vadd.f32 %v15822_v6, %v19622_v51  ;;  %v3188_v28 = vpop.f32.mrb[11].mxu0 }
 0x350   : > { %v3359_v30 = vmax.f32 %v19637_v3, 0.0  ;;  %v3328_v36 = vadd.f32 %v19622_v51, %v3188_v28  ;;  %3577 = vst [vmem:[#allocation2 + $0x90] sm:$0xff] %v3545_v8 }
 0x351   : > { %v3418_v37 = vld [vmem:[#allocation2 + $0xa9] sm:$0xff]  ;;  %3393 = vst [vmem:[#allocation2 + $0xe0] sm:$0xff] %v3361_v9  ;;  %v3362_v49 = vmax.f32 %v19640_v22, 0.0 }
 0x352   : > { %v3421_v63 = vld [vmem:[#allocation2 + $0xc1] sm:$0xff]  ;;  %v3484_v42 = vmax.f32 %v3354_v17, %v3418_v37  ;;  %3391 = vst [vmem:[#allocation2 + $0xd0] sm:$0xff] %v3359_v30  ;;  %v3360_v44 = vmax.f32 %v3328_v36, 0.0 }
 0x353   : > { %v3419_v32 = vld [vmem:[#allocation2 + $0xb1] sm:$0xff]  ;;  %v3420_v12 = vld [vmem:[#allocation2 + $0xb9] sm:$0xff]  ;;  %3394 = vst [vmem:[#allocation2 + $0xe8] sm:$0xff] %v3362_v49  ;;  %v3517_v61 = vmax.f32 %v3357_v29, %v3421_v63 }
 0x354   : > { %v3486_v59 = vmax.f32 %v3356_v47, %v3420_v12  ;;  %3392 = vst [vmem:[#allocation2 + $0xd8] sm:$0xff] %v3360_v44  ;;  %v15825_v31 = vpop.f32.mrb[12].mxu0  ;;  %v3546_v48 = vmax.f32 %v3482_v50, %v3484_v42  ;;  %v3515_v18 = vmax.f32 %v3355_v45, %v3419_v32 }
 0x355   : > { %v19648_v25 = vadd.f32 %v15825_v31, %v19622_v51  ;;  %v3201_v14 = vpop.f32.mrb[13].mxu0 }
 0x356   : > { %v3548_v41 = vmax.f32 %v3484_v42, %v3486_v59  ;;  %v19651_v24 = vadd.f32 %v19622_v51, %v3201_v14  ;;  %v15826_v23 = vpop.f32.mrb[14].mxu0  ;;  %3578 = vst [vmem:[#allocation2 + $0x98] sm:$0xff] %v3546_v48  ;;  %v3804_v2 = vpack.c.bf16 %v3546_v48, %v3545_v8  ;;  %v3547_v21 = vmax.f32 %v3513_v10, %v3515_v18 }
 0x357   : > { %v3365_v62 = vmax.f32 %v19648_v25, 0.0  ;;  %v19655_v34 = vadd.f32 %v15826_v23, %v19622_v51  ;;  %v3204_v19 = vpop.f32.mrb[15].mxu0  ;;  %v3549_v27 = vmax.f32 %v3515_v18, %v3517_v61 }
 0x358   : > { %v3363_v1 = vmax.f32 %v19651_v24, 0.0  ;;  %v3332_v5 = vadd.f32 %v19622_v51, %v3204_v19  ;;  %15863 = vmatprep.mubr.bf16.mxu1 %v3804_v2  ;;  %3580 = vst [vmem:[#allocation2 + $0xa8] sm:$0xff] %v3548_v41  ;;  %3579 = vst [vmem:[#allocation2 + $0xa0] sm:$0xff] %v3547_v21  ;;  %v3805_v38 = vpack.c.bf16 %v3548_v41, %v3547_v21 }
 0x359   : > { %v3422_v20 = vld [vmem:[#allocation2 + $0xc9] sm:$0xff]  ;;  %3397 = vst [vmem:[#allocation2 + $0x100] sm:$0xff] %v3365_v62  ;;  %v3366_v35 = vmax.f32 %v19655_v34, 0.0  ;;  %3581 = vst [vmem:[#allocation2 + $0xb0] sm:$0xff] %v3549_v27 }
 0x35a   : > { %v3425_v17 = vld [vmem:[#allocation2 + $0xe1] sm:$0xff]  ;;  %v3488_v11 = vmax.f32 %v3358_v16, %v3422_v20  ;;  %3395 = vst [vmem:[#allocation2 + $0xf0] sm:$0xff] %v3363_v1  ;;  %v3364_v13 = vmax.f32 %v3332_v5, 0.0  ;;  %15864 = vmatmul.mubr.bf16.gmra.mrb[4].mxu1 %v3805_v38 }
 0x35b   : > { %v3423_v4 = vld [vmem:[#allocation2 + $0xd1] sm:$0xff]  ;;  %v3424_v15 = vld [vmem:[#allocation2 + $0xd9] sm:$0xff]  ;;  %3398 = vst [vmem:[#allocation2 + $0x108] sm:$0xff] %v3366_v35  ;;  %v3521_v53 = vmax.f32 %v3361_v9, %v3425_v17 }
 0x35c   : > { %v3490_v60 = vmax.f32 %v3360_v44, %v3424_v15  ;;  %3396 = vst [vmem:[#allocation2 + $0xf8] sm:$0xff] %v3364_v13  ;;  %v15829_v29 = vpop.f32.mrb[16].mxu0  ;;  %v3550_v33 = vmax.f32 %v3486_v59, %v3488_v11  ;;  %v3519_v40 = vmax.f32 %v3359_v30, %v3423_v4 }
 0x35d   : > { %v19663_v45 = vadd.f32 %v15829_v29, %v19622_v51  ;;  %v3217_v46 = vpop.f32.mrb[17].mxu0 }
 0x35e   : > { %v3552_v47 = vmax.f32 %v3488_v11, %v3490_v60  ;;  %v19666_v16 = vadd.f32 %v19622_v51, %v3217_v46  ;;  %v15830_v39 = vpop.f32.mrb[18].mxu0  ;;  %3582 = vst [vmem:[#allocation2 + $0xb8] sm:$0xff] %v3550_v33  ;;  %v3806_v54 = vpack.c.bf16 %v3550_v33, %v3549_v27  ;;  %v3551_v10 = vmax.f32 %v3517_v61, %v3519_v40 }
 0x35f   : > { %v3369_v56 = vmax.f32 %v19663_v45, 0.0  ;;  %v19670_v43 = vadd.f32 %v15830_v39, %v19622_v51  ;;  %v3220_v57 = vpop.f32.mrb[19].mxu0  ;;  %v3553_v58 = vmax.f32 %v3519_v40, %v3521_v53 }
 0x360   : > { %3584 = vst [vmem:[#allocation2 + $0xc8] sm:$0xff] %v3552_v47  ;;  %v3367_v3 = vmax.f32 %v19666_v16, 0.0  ;;  %v3336_v6 = vadd.f32 %v19622_v51, %v3220_v57  ;;  %15867 = vmatprep.mubr.bf16.mxu1 %v3806_v54  ;;  %3583 = vst [vmem:[#allocation2 + $0xc0] sm:$0xff] %v3551_v10  ;;  %v3807_v8 = vpack.c.bf16 %v3552_v47, %v3551_v10 }
 0x361   : > { %v3426_v52 = vld [vmem:[#allocation2 + $0xe9] sm:$0xff]  ;;  %3401 = vst [vmem:[#allocation2 + $0x120] sm:$0xff] %v3369_v56  ;;  %v3370_v9 = vmax.f32 %v19670_v43, 0.0  ;;  %3585 = vst [vmem:[#allocation2 + $0xd0] sm:$0xff] %v3553_v58 }
 0x362   : > { %v3429_v28 = vld [vmem:[#allocation2 + $0x101] sm:$0xff]  ;;  %v3492_v30 = vmax.f32 %v3362_v49, %v3426_v52  ;;  %3399 = vst [vmem:[#allocation2 + $0x110] sm:$0xff] %v3367_v3  ;;  %v3368_v36 = vmax.f32 %v3336_v6, 0.0  ;;  %15868 = vmatmul.mubr.bf16.gmra.mrb[8].mxu1 %v3807_v8 }
 0x363   : > { %v3427_v37 = vld [vmem:[#allocation2 + $0xf1] sm:$0xff]  ;;  %v3428_v50 = vld [vmem:[#allocation2 + $0xf9] sm:$0xff]  ;;  %3402 = vst [vmem:[#allocation2 + $0x128] sm:$0xff] %v3370_v9  ;;  %v3525_v63 = vmax.f32 %v3365_v62, %v3429_v28 }
 0x364   : > { %v3494_v42 = vmax.f32 %v3364_v13, %v3428_v50  ;;  %3400 = vst [vmem:[#allocation2 + $0x118] sm:$0xff] %v3368_v36  ;;  %v15833_v44 = vpop.f32.mrb[20].mxu0  ;;  %v3554_v32 = vmax.f32 %v3490_v60, %v3492_v30  ;;  %v3523_v12 = vmax.f32 %v3363_v1, %v3427_v37 }
 0x365   : > { %v19680_v61 = vadd.f32 %v15833_v44, %v19622_v51  ;;  %v3233_v59 = vpop.f32.mrb[21].mxu0 }
 0x366   : > { %v3556_v22 = vmax.f32 %v3492_v30, %v3494_v42  ;;  %v19683_v49 = vadd.f32 %v19622_v51, %v3233_v59  ;;  %v15834_v31 = vpop.f32.mrb[22].mxu0  ;;  %3586 = vst [vmem:[#allocation2 + $0xd8] sm:$0xff] %v3554_v32  ;;  %v3808_v48 = vpack.c.bf16 %v3554_v32, %v3553_v58  ;;  %v3555_v18 = vmax.f32 %v3521_v53, %v3523_v12 }
 0x367   : > { %v3373_v25 = vmax.f32 %v19680_v61, 0.0  ;;  %v19687_v14 = vadd.f32 %v15834_v31, %v19622_v51  ;;  %v3236_v41 = vpop.f32.mrb[23].mxu0  ;;  %v3557_v24 = vmax.f32 %v3523_v12, %v3525_v63 }
 0x368   : > { %3588 = vst [vmem:[#allocation2 + $0xe8] sm:$0xff] %v3556_v22  ;;  %v3371_v23 = vmax.f32 %v19683_v49, 0.0  ;;  %v3340_v2 = vadd.f32 %v19622_v51, %v3236_v41  ;;  %15871 = vmatprep.mubr.bf16.mxu1 %v3808_v48  ;;  %3587 = vst [vmem:[#allocation2 + $0xe0] sm:$0xff] %v3555_v18  ;;  %v3809_v21 = vpack.c.bf16 %v3556_v22, %v3555_v18 }
 0x369   : > { %v3430_v62 = vld [vmem:[#allocation2 + $0x109] sm:$0xff]  ;;  %3405 = vst [vmem:[#allocation2 + $0x140] sm:$0xff] %v3373_v25  ;;  %v3374_v19 = vmax.f32 %v19687_v14, 0.0  ;;  %3589 = vst [vmem:[#allocation2 + $0xf0] sm:$0xff] %v3557_v24 }
 0x36a   : > { %v3433_v27 = vld [vmem:[#allocation2 + $0x121] sm:$0xff]  ;;  %v3496_v1 = vmax.f32 %v3366_v35, %v3430_v62  ;;  %3403 = vst [vmem:[#allocation2 + $0x130] sm:$0xff] %v3371_v23  ;;  %v3372_v5 = vmax.f32 %v3340_v2, 0.0  ;;  %15872 = vmatmul.mubr.bf16.gmra.mrb[12].mxu1 %v3809_v21 }
 0x36b   : > { %v3431_v38 = vld [vmem:[#allocation2 + $0x111] sm:$0xff]  ;;  %v3432_v20 = vld [vmem:[#allocation2 + $0x119] sm:$0xff]  ;;  %3406 = vst [vmem:[#allocation2 + $0x148] sm:$0xff] %v3374_v19  ;;  %v3529_v17 = vmax.f32 %v3369_v56, %v3433_v27 }
 0x36c   : > { %v3498_v11 = vmax.f32 %v3368_v36, %v3432_v20  ;;  %3404 = vst [vmem:[#allocation2 + $0x138] sm:$0xff] %v3372_v5  ;;  %v15837_v13 = vpop.f32.mrb[24].mxu0  ;;  %v3558_v4 = vmax.f32 %v3494_v42, %v3496_v1  ;;  %v3527_v15 = vmax.f32 %v3367_v3, %v3431_v38 }
 0x36d   : > { %v19697_v53 = vadd.f32 %v15837_v13, %v19622_v51  ;;  %v3249_v60 = vpop.f32.mrb[25].mxu0  ;;  %v3543_v13 = vmax.f32 %v19499_v26, %v19610_v55  ;;  %v3673_v55 = vld [vmem:[#allocation2 + $0x6e] sm:$0xff] }
 0x36e   : > { %v3560_v34 = vmax.f32 %v3496_v1, %v3498_v11  ;;  %v19700_v35 = vadd.f32 %v19622_v51, %v3249_v60  ;;  %v15838_v29 = vpop.f32.mrb[26].mxu0  ;;  %3590 = vst [vmem:[#allocation2 + $0xf8] sm:$0xff] %v3558_v4  ;;  %v19702_v33 = vpack.c.bf16 %v3558_v4, %v3557_v24  ;;  %v19704_v40 = vmax.f32 %v3525_v63, %v3527_v15 }
 0x36f   : > { %v3377_v45 = vmax.f32 %v19697_v53, 0.0  ;;  %v19708_v46 = vadd.f32 %v15838_v29, %v19622_v51  ;;  %v3252_v47 = vpop.f32.mrb[27].mxu0  ;;  %v3561_v16 = vmax.f32 %v3527_v15, %v3529_v17  ;;  %v3544_v4 = vmax.f32 %v19499_v26, %v19612_v0 }
 0x370   : > { %3592 = vst [vmem:[#allocation2 + $0x108] sm:$0xff] %v3560_v34  ;;  %v3375_v39 = vmax.f32 %v19700_v35, 0.0  ;;  %v3344_v54 = vadd.f32 %v19622_v51, %v3252_v47  ;;  %15875 = vmatprep.mubr.bf16.mxu1 %v19702_v33  ;;  %3591 = vst [vmem:[#allocation2 + $0x100] sm:$0xff] %v19704_v40  ;;  %v3811_v10 = vpack.c.bf16 %v3560_v34, %v19704_v40 }
 0x371   : > { %v3434_v56 = vld [vmem:[#allocation2 + $0x129] sm:$0xff]  ;;  %3409 = vst [vmem:[#allocation2 + $0x160] sm:$0xff] %v3377_v45  ;;  %v3378_v57 = vmax.f32 %v19708_v46, 0.0  ;;  %3593 = vst [vmem:[#allocation2 + $0x110] sm:$0xff] %v3561_v16 }
 0x372   : > { %v3437_v58 = vld [vmem:[#allocation2 + $0x141] sm:$0xff]  ;;  %v3500_v3 = vmax.f32 %v3370_v9, %v3434_v56  ;;  %3407 = vst [vmem:[#allocation2 + $0x150] sm:$0xff] %v3375_v39  ;;  %v3376_v6 = vmax.f32 %v3344_v54, 0.0  ;;  %15876 = vmatmul.mubr.bf16.gmra.mrb[16].mxu1 %v3811_v10 }
 0x373   : > { %v3435_v8 = vld [vmem:[#allocation2 + $0x131] sm:$0xff]  ;;  %v3436_v52 = vld [vmem:[#allocation2 + $0x139] sm:$0xff]  ;;  %3410 = vst [vmem:[#allocation2 + $0x168] sm:$0xff] %v3378_v57  ;;  %v3533_v28 = vmax.f32 %v3373_v25, %v3437_v58  ;;  %v22415_v56 = vld [vmem:[#allocation9_spill] sm:$0xff] }
 0x374   : > { %v3502_v30 = vmax.f32 %v3372_v5, %v3436_v52  ;;  %3408 = vst [vmem:[#allocation2 + $0x158] sm:$0xff] %v3376_v6  ;;  %v15841_v36 = vpop.f32.mrb[28].mxu0  ;;  %v3562_v37 = vmax.f32 %v3498_v11, %v3500_v3  ;;  %v3531_v50 = vmax.f32 %v3371_v23, %v3435_v8  ;;  %vm3609_vm0 = vcmp.ge.s32.totalorder %v22415_v56, 2  ;;  %v3674_v58 = vld [vmem:[#allocation2 + $0x76] sm:$0xff] }
 0x375   : > { %v3349_v63 = vadd.f32 %v15841_v36, %v19622_v51  ;;  %v3265_v42 = vpop.f32.mrb[29].mxu0  ;;  %vm19757_vm14 = vmpackc.low %vm22416_vm3, %vm3609_vm0  ;;  %v22419_v36 = vld [vmem:[#allocation10_spill] sm:$0xff]  ;;  %v5582_v52 = vld [vmem:[#allocation2 + $0xf6] sm:$0xff] }
 0x376   : > { %v3564_v44 = vmax.f32 %v3500_v3, %v3502_v30  ;;  %v3347_v43 = vadd.f32 %v19622_v51, %v3265_v42  ;;  %v15842_v9 = vpop.f32.mrb[30].mxu0  ;;  %3594 = vst [vmem:[#allocation2 + $0x118] sm:$0xff] %v3562_v37  ;;  %v19722_v32 = vpack.c.bf16 %v3562_v37, %v3561_v16  ;;  %v19724_v12 = vmax.f32 %v3529_v17, %v3531_v50  ;;  %v22420_v37 = vld [vmem:[#allocation11_spill] sm:$0xff]  ;;  %v18330_v42 = vld [vmem:[#allocation3 + $0x420] sm:$0xff]  }
 0x377   : > { %v3381_v61 = vmax.f32 %v3349_v63, 0.0  ;;  %v3350_v59 = vadd.f32 %v15842_v9, %v19622_v51  ;;  %v3268_v22 = vpop.f32.mrb[31].mxu0  ;;  %v3565_v49 = vmax.f32 %v3531_v50, %v3533_v28  ;;  %vm3611_vm9 = vcmp.ge.s32.totalorder %v22419_v36, 2  ;;  %v3678_v63 = vld [vmem:[#allocation2 + $0x96] sm:$0xff]  ;;  %v18287_v9 = vld [vmem:[#allocation3 + $0x2c8] sm:$0xff]  }
 0x378   : > { %3596 = vst [vmem:[#allocation2 + $0x128] sm:$0xff] %v3564_v44  ;;  %v3379_v31 = vmax.f32 %v3347_v43, 0.0  ;;  %v3348_v48 = vadd.f32 %v19622_v51, %v3268_v22  ;;  %15879 = vmatprep.mubr.bf16.mxu1 %v19722_v32  ;;  %3595 = vst [vmem:[#allocation2 + $0x120] sm:$0xff] %v19724_v12  ;;  %v3813_v18 = vpack.c.bf16 %v3564_v44, %v19724_v12  ;;  %vm3613_vm2 = vcmp.ge.s32.totalorder %v22420_v37, 2  ;;  %v3677_v44 = vld [vmem:[#allocation2 + $0x8e] sm:$0xff]  ;;  %v5583_v43 = vld [vmem:[#allocation2 + $0xfe] sm:$0xff] }
 0x379   : > { %v3438_v25 = vld [vmem:[#allocation2 + $0x149] sm:$0xff]  ;;  %3413 = vst [vmem:[#allocation2 + $0x180] sm:$0xff] %v3381_v61  ;;  %v3382_v41 = vmax.f32 %v3350_v59, 0.0  ;;  %3597 = vst [vmem:[#allocation2 + $0x130] sm:$0xff] %v3565_v49  ;;  %v22425_v59 = vld [vmem:[#allocation12_spill] sm:$0xff] }
 0x37a   : > { %v3441_v24 = vld [vmem:[#allocation2 + $0x161] sm:$0xff]  ;;  %v3504_v23 = vmax.f32 %v3374_v19, %v3438_v25  ;;  %3411 = vst [vmem:[#allocation2 + $0x170] sm:$0xff] %v3379_v31  ;;  %v3380_v2 = vmax.f32 %v3348_v48, 0.0  ;;  %15880 = vmatmul.mubr.bf16.gmra.mrb[20].mxu1 %v3813_v18  ;;  %vm19766_vm13 = vmpackc.low %vm22416_vm3, %vm3611_vm9  ;;  %vm3615_vm1 = vcmp.ge.s32.totalorder %v22425_v59, 2  ;;  %v18288_v22 = vld [vmem:[#allocation3 + $0x2d0] sm:$0xff]  }
 0x37b   : > { %v3439_v21 = vld [vmem:[#allocation2 + $0x151] sm:$0xff]  ;;  %v3440_v62 = vld [vmem:[#allocation2 + $0x159] sm:$0xff]  ;;  %3414 = vst [vmem:[#allocation2 + $0x188] sm:$0xff] %v3382_v41  ;;  %v3537_v51 = vmax.f32 %v3377_v45, %v3441_v24  ;;  %vm19771_vm10 = vmpackc.low %vm22416_vm3, %vm3613_vm2 }
 0x37c   : > { %v3506_v27 = vmax.f32 %v3376_v6, %v3440_v62  ;;  %3412 = vst [vmem:[#allocation2 + $0x178] sm:$0xff] %v3380_v2  ;;  %v3566_v1 = vmax.f32 %v3502_v30, %v3504_v23  ;;  %v3535_v5 = vmax.f32 %v3375_v39, %v3439_v21  ;;  %v13767_v6 = vpack.c.bf16 %v3674_v58, %v3673_v55  ;;  %v3676_v30 = vld [vmem:[#allocation2 + $0x86] sm:$0xff]  ;;  %v3682_v18 = vld [vmem:[#allocation2 + $0xb6] sm:$0xff]  ;;  %vm19786_vm8 = vmpackc.low %vm22416_vm3, %vm3615_vm1 }
 0x37d   : > { %v22426_v48 = vld [vmem:[#allocation13_spill] sm:$0xff]  ;;  %v3681_v24 = vld [vmem:[#allocation2 + $0xae] sm:$0xff] }
 0x37e   : > { %v3568_v38 = vmax.f32 %v3504_v23, %v3506_v27  ;;  %3598 = vst [vmem:[#allocation2 + $0x138] sm:$0xff] %v3566_v1  ;;  %v19733_v20 = vpack.c.bf16 %v3566_v1, %v3565_v49  ;;  %v19735_v17 = vmax.f32 %v3533_v28, %v3535_v5  ;;  %v3569_v11 = vmax.f32 %v3535_v5, %v3537_v51  ;;  %v3675_v28 = vld [vmem:[#allocation2 + $0x7e] sm:$0xff]  ;;  %v22431_v21 = vld [vmem:[#allocation14_spill] sm:$0xff]  ;;  %v22432_v1 = vld [vmem:[#allocation15_spill] sm:$0xff] }
 0x37f   : > { %v13770_v50 = vpack.c.bf16 %v3676_v30, %v3675_v28  ;;  %v3679_v49 = vld [vmem:[#allocation2 + $0x9e] sm:$0xff]  ;;  %vm3617_vm4 = vcmp.ge.s32.totalorder %v22426_v48, 2  ;;  %vm3619_vm12 = vcmp.ge.s32.totalorder %v22431_v21, 2  ;;  %vm3621_vm15 = vcmp.ge.s32.totalorder %v22432_v1, 2  ;;  %v3686_v5 = vld [vmem:[#allocation2 + $0xd6] sm:$0xff]  ;;  %v22443_v55 = vld [vmem:[#allocation18_spill] sm:$0xff] }
 0x380   : > { %3600 = vst [vmem:[#allocation2 + $0x148] sm:$0xff] %v3568_v38  ;;  %15883 = vmatprep.mubr.bf16.mxu1 %v19733_v20  ;;  %3599 = vst [vmem:[#allocation2 + $0x140] sm:$0xff] %v19735_v17  ;;  %v3815_v14 = vpack.c.bf16 %v3568_v38, %v19735_v17  ;;  %v18289_v23 = vld [vmem:[#allocation3 + $0x2d8] sm:$0xff]   ;;  %v18290_v62 = vld [vmem:[#allocation3 + $0x2e0] sm:$0xff]   ;;  %vm3627_vm1 = vcmp.ge.s32.totalorder %v22443_v55, 2 }
 0x381   : > { %3601 = vst [vmem:[#allocation2 + $0x150] sm:$0xff] %v3569_v11  ;;  %v3442_v19 = vld [vmem:[#allocation2 + $0x169] sm:$0xff]  ;;  %vm19793_vm11 = vmpackc.low %vm22416_vm3, %vm3617_vm4  ;;  %v19850_v58 = vld [vmem:[#allocation3 + $0x300] sm:$0xff]  }
 0x382   : > { %v3445_v15 = vld [vmem:[#allocation2 + $0x181] sm:$0xff]  ;;  %v3446_v53 = vld [vmem:[#allocation2 + $0x189] sm:$0xff]  ;;  %v3508_v60 = vmax.f32 %v3378_v57, %v3442_v19  ;;  %15884 = vmatmul.mubr.bf16.gmra.mrb[24].mxu1 %v3815_v14  ;;  %vm19808_vm6 = vmpackc.low %vm22416_vm3, %vm3619_vm12 }
 0x383   : > { %v3511_v34 = vmax.f32 %v3381_v61, %v3445_v15  ;;  %v3512_v35 = vmax.f32 %v3382_v41, %v3446_v53  ;;  %v3443_v29 = vld [vmem:[#allocation2 + $0x171] sm:$0xff]  ;;  %v3444_v45 = vld [vmem:[#allocation2 + $0x179] sm:$0xff]  ;;  %v19775_v61 = vpack.c.bf16 %v3678_v63, %v3677_v44  ;;  %vm19815_vm7 = vmpackc.low %vm22416_vm3, %vm3621_vm15 }
 0x384   : > { %v3509_v47 = vmax.f32 %v3379_v31, %v3443_v29  ;;  %v3510_v16 = vmax.f32 %v3380_v2, %v3444_v45  ;;  %v3570_v39 = vmax.f32 %v3506_v27, %v3508_v60  ;;  %v3680_v31 = vld [vmem:[#allocation2 + $0xa6] sm:$0xff]  ;;  %v19797_v2 = vpack.c.bf16 %v3682_v18, %v3681_v24  ;;  %v3685_v14 = vld [vmem:[#allocation2 + $0xce] sm:$0xff]  ;;  %v22437_v15 = vld [vmem:[#allocation16_spill] sm:$0xff] }
 0x385   : > { %v3575_v54 = vmax.f32 %v3511_v34, %v3543_v13  ;;  %v3576_v10 = vmax.f32 %v3512_v35, %v3544_v4  ;;  %v19790_v41 = vpack.c.bf16 %v3680_v31, %v3679_v49  ;;  %v3684_v27 = vld [vmem:[#allocation2 + $0xc6] sm:$0xff]  ;;  %v19819_v4 = vpack.c.bf16 %v3686_v5, %v3685_v14  ;;  %v18292_v53 = vld [vmem:[#allocation3 + $0x2f0] sm:$0xff]   ;;  %vm19854_vm12 = vmpackc.low %vm22416_vm3, %vm3627_vm1 }
 0x386   : > { %v3572_v26 = vmax.f32 %v3508_v60, %v3510_v16  ;;  %v3573_v0 = vmax.f32 %v3509_v47, %v3511_v34  ;;  %v3574_v3 = vmax.f32 %v3510_v16, %v3512_v35  ;;  %3602 = vst [vmem:[#allocation2 + $0x158] sm:$0xff] %v3570_v39  ;;  %v19747_v46 = vpack.c.bf16 %v3570_v39, %v3569_v11  ;;  %v18291_v13 = vld [vmem:[#allocation3 + $0x2e8] sm:$0xff]   ;;  %v3687_v60 = vld [vmem:[#allocation2 + $0xde] sm:$0xff]  ;;  %v3690_v29 = vld [vmem:[#allocation2 + $0xf6] sm:$0xff] }
 0x387   : > { %3608 = vst [vmem:[#allocation2 + $0x188] sm:$0xff] %v3576_v10  ;;  %3607 = vst [vmem:[#allocation2 + $0x180] sm:$0xff] %v3575_v54  ;;  %v19749_v57 = vmax.f32 %v3537_v51, %v3509_v47  ;;  %v3683_v51 = vld [vmem:[#allocation2 + $0xbe] sm:$0xff]  ;;  %vm3623_vm5 = vcmp.ge.s32.totalorder %v22437_v15, 2  ;;  %v3688_v34 = vld [vmem:[#allocation2 + $0xe6] sm:$0xff]  ;;  %v22439_v45 = vmov 0 }
 0x388   : > { %3604 = vst [vmem:[#allocation2 + $0x168] sm:$0xff] %v3572_v26  ;;  %3605 = vst [vmem:[#allocation2 + $0x170] sm:$0xff] %v3573_v0  ;;  %15887 = vmatprep.mubr.bf16.mxu1 %v19747_v46  ;;  %v19812_v11 = vpack.c.bf16 %v3684_v27, %v3683_v51  ;;  %v22438_v35 = vld [vmem:[#allocation17_spill] sm:$0xff]  ;;  %v19834_v47 = vpack.c.bf16 %v3688_v34, %v3687_v60  ;;  %v3689_v16 = vld [vmem:[#allocation2 + $0xee] sm:$0xff]  ;;  %v22441_v39 = vmov 0  ;;  %v22451_v18 = vmov 0 }
 0x389   : > { %3606 = vst [vmem:[#allocation2 + $0x178] sm:$0xff] %v3574_v3  ;;  %3603 = vst [vmem:[#allocation2 + $0x160] sm:$0xff] %v19749_v57  ;;  %v3817_v8 = vpack.c.bf16 %v3572_v26, %v19749_v57  ;;  %vm3625_vm0 = vcmp.ge.s32.totalorder %v22438_v35, 2  ;;  %v18293_v54 = vld [vmem:[#allocation3 + $0x2f8] sm:$0xff]   ;;  %v19841_v10 = vpack.c.bf16 %v3690_v29, %v3689_v16  ;;  %v3692_v0 = vld [vmem:[#allocation2 + $0x106] sm:$0xff]  ;;  %v22457_v60 = vmov 0 }
 0x38a   : > { %vm19830_vm9 = vmpackc.low %vm22416_vm3, %vm3623_vm5  ;;  %v3691_v26 = vld [vmem:[#allocation2 + $0xfe] sm:$0xff]  ;;  %v22444_v3 = vld [vmem:[#allocation19_spill] sm:$0xff]  ;;  %v22459_v16 = vmov 0 }
 0x38b   : > { %15888 = vmatmul.mubr.bf16.gmra.mrb[28].mxu1 %v3817_v8  ;;  %v22440_v45 = vsel %vm19830_vm9, 4294967295, %v22439_v45  ;;  %vm19837_vm2 = vmpackc.low %vm22416_vm3, %vm3625_vm0  ;;  %vm3629_vm4 = vcmp.ge.s32.totalorder %v22444_v3, 2  ;;  %v22445_v8 = vmov 0  ;;  %v19858_v28 = vpack.c.bf16 %v3692_v0, %v3691_v26  ;;  %v3693_v30 = vld [vmem:[#allocation2 + $0x10e] sm:$0xff]  ;;  %v22449_v44 = vld [vmem:[#allocation20_spill] sm:$0xff] }
 0x38c   : > { %15907 = vmatprep.mubr.msk.bf16.mxu1 %vm19757_vm14, %v13767_v6  ;;  %v22442_v39 = vsel %vm19837_vm2, 4294967295, %v22441_v39  ;;  %v3694_v6 = vld [vmem:[#allocation2 + $0x116] sm:$0xff]  ;;  %v22446_v8 = vsel %vm19854_vm12, 4294967295, %v22445_v8  ;;  %vm19861_vm15 = vmpackc.low %vm22416_vm3, %vm3629_vm4  ;;  %vm3631_vm5 = vcmp.ge.s32.totalorder %v22449_v44, 2  ;;  %v22450_v49 = vld [vmem:[#allocation21_spill] sm:$0xff] }
 0x38d   : > { %v19866_v63 = vpack.c.bf16 %v3694_v6, %v3693_v30  ;;  %vm3633_vm0 = vcmp.ge.s32.totalorder %v22450_v49, 2  ;;  %v3698_v31 = vld [vmem:[#allocation2 + $0x136] sm:$0xff]  ;;  %vm19877_vm1 = vmpackc.low %vm22416_vm3, %vm3631_vm5  ;;  %v22455_v27 = vld [vmem:[#allocation22_spill] sm:$0xff] }
 0x38e   : > { %v22452_v18 = vsel %vm19877_vm1, 4294967295, %v22451_v18  ;;  %vm19884_vm4 = vmpackc.low %vm22416_vm3, %vm3633_vm0  ;;  %vm3635_vm5 = vcmp.ge.s32.totalorder %v22455_v27, 2  ;;  %v3699_v5 = vld [vmem:[#allocation2 + $0x13e] sm:$0xff]  ;;  %v3700_v14 = vld [vmem:[#allocation2 + $0x146] sm:$0xff] }
 0x38f   : > { %vm19899_vm0 = vmpackc.low %vm22416_vm3, %vm3635_vm5  ;;  %v19903_v34 = vpack.c.bf16 %v3700_v14, %v3699_v5  ;;  %v3701_v29 = vld [vmem:[#allocation2 + $0x14e] sm:$0xff]  ;;  %v22461_v26 = vld [vmem:[#allocation24_spill] sm:$0xff]  ;;  %v22465_v14 = vmov 0 }
 0x390   : > { %v22458_v60 = vsel %vm19899_vm0, 4294967295, %v22457_v60  ;;  %vm3639_vm5 = vcmp.ge.s32.totalorder %v22461_v26, 2  ;;  %v4253_v0 = vld [vmem:[#allocation2 + $0x72] sm:$0xff]  ;;  %v4254_v6 = vld [vmem:[#allocation2 + $0x7a] sm:$0xff]  ;;  %v22480_v55 = vld [vmem:[#allocation37_spill] sm:$0xff] }
 0x391   : > { %v3703_v30 = vld [vmem:[#allocation2 + $0x15e] sm:$0xff]  ;;  %v22468_v26 = vld [vmem:[#allocation31_spill] sm:$0xff]  ;;  %v22495_v36 = vld [vmem:[#allocation46_spill] sm:$0xff] }
 0x392   : > { %v22474_v49 = vld [vmem:[#allocation35_spill] sm:$0xff]  ;;  %v22487_v21 = vld [vmem:[#allocation41_spill] sm:$0xff] }
 0x393   : > { %15908 = vmatmul.mubr.msk.bf16.vlgmr.msra.gmra.mrb[0].mxu1 %vm19766_vm13, %v13770_v50  ;;  %v22447_v50 = vmov 0  ;;  %v4262_v44 = vld [vmem:[#allocation2 + $0xba] sm:$0xff]  ;;  %v4265_v15 = vld [vmem:[#allocation2 + $0xd2] sm:$0xff] }
 0x394   : > { %15911 = vmatprep.mubr.msk.bf16.mxu1 %vm19771_vm10, %v19775_v61  ;;  %15940 = vmatpush3.bf16.msra.mxu1 %v19619_v7  ;;  %v22448_v50 = vsel %vm19861_vm15, 4294967295, %v22447_v50  ;;  %v4266_v35 = vld [vmem:[#allocation2 + $0xda] sm:$0xff]  ;;  %v4269_v59 = vld [vmem:[#allocation2 + $0xf2] sm:$0xff] }
 0x395   : > { %15941 = vmatprep.subr.bf16.mxu1 %v18287_v9  ;;  %v19993_v1 = vpack.c.bf16 %v4266_v35, %v4265_v15  ;;  %v4270_v48 = vld [vmem:[#allocation2 + $0xfa] sm:$0xff]  ;;  %v22488_v15 = vmov 0  ;;  %v18332_v25 = vld [vmem:[#allocation3 + $0x430] sm:$0xff]  }
 0x396   : > { %v20015_v37 = vpack.c.bf16 %v4270_v48, %v4269_v59  ;;  %v4274_v56 = vld [vmem:[#allocation2 + $0x11a] sm:$0xff]  ;;  %v22496_v59 = vmov 0 }
 0x397   : > { %v5587_v7 = vld [vmem:[#allocation2 + $0x11e] sm:$0xff] }
 0x398   : > { %15942 = vmatpush3.bf16.msra.mxu1 %v18287_v9  ;;  %v3695_v9 = vld [vmem:[#allocation2 + $0x11e] sm:$0xff] }
 0x399   : > { %15943 = vmatprep.subr.bf16.mxu1 %v18288_v22  ;;  %v18334_v38 = vld [vmem:[#allocation3 + $0x440] sm:$0xff]  }
 0x39a   : > { %v5591_v19 = vld [vmem:[#allocation2 + $0x13e] sm:$0xff] }
 0x39b   : > { %15912 = vmatmul.mubr.msk.bf16.gmra.mrb[4].mxu1 %vm19786_vm8, %v19790_v41 }
 0x39c   : > { %15915 = vmatprep.mubr.msk.bf16.mxu1 %vm19793_vm11, %v19797_v2  ;;  %15944 = vmatpush3.bf16.msra.mxu1 %v18288_v22  ;;  %v3696_v22 = vld [vmem:[#allocation2 + $0x126] sm:$0xff] }
 0x39d   : > { %15945 = vmatprep.subr.bf16.mxu1 %v18289_v23  ;;  %v19881_v24 = vpack.c.bf16 %v3696_v22, %v3695_v9  ;;  %v3704_v9 = vld [vmem:[#allocation2 + $0x166] sm:$0xff] }
 0x39e   : > { %v22462_v22 = vld [vmem:[#allocation25_spill] sm:$0xff]  ;;  %v19925_v5 = vpack.c.bf16 %v3704_v9, %v3703_v30  ;;  %v4257_v9 = vld [vmem:[#allocation2 + $0x92] sm:$0xff] }
 0x3a0   : > { %15946 = vmatpush3.bf16.msra.mxu1 %v18289_v23  ;;  %v3697_v23 = vld [vmem:[#allocation2 + $0x12e] sm:$0xff] }
 0x3a1   : > { %15947 = vmatprep.subr.bf16.mxu1 %v18290_v62  ;;  %v19888_v51 = vpack.c.bf16 %v3698_v31, %v3697_v23  ;;  %v22463_v31 = vmov 0  ;;  %v13823_v23 = vpack.c.bf16 %v4254_v6, %v4253_v0  ;;  %v4258_v0 = vld [vmem:[#allocation2 + $0x9a] sm:$0xff]  ;;  %v22469_v6 = vmov 0 }
 0x3a2   : > { %v19949_v27 = vpack.c.bf16 %v4258_v0, %v4257_v9  ;;  %v22475_v0 = vmov 0  ;;  %v4261_v9 = vld [vmem:[#allocation2 + $0xb2] sm:$0xff] }
 0x3a3   : > { %15916 = vmatmul.mubr.msk.bf16.gmra.mrb[8].mxu1 %vm19808_vm6, %v19812_v11  ;;  %v19971_v3 = vpack.c.bf16 %v4262_v44, %v4261_v9  ;;  %v22481_v44 = vmov 0 }
 0x3a4   : > { %15919 = vmatprep.mubr.msk.bf16.mxu1 %vm19815_vm7, %v19819_v4  ;;  %15948 = vmatpush3.bf16.msra.mxu1 %v18290_v62  ;;  %v22453_v62 = vmov 0 }
 0x3a5   : > { %15949 = vmatprep.subr.bf16.mxu1 %v18291_v13  ;;  %v22454_v62 = vsel %vm19884_vm4, 4294967295, %v22453_v62 }
 0x3a8   : > { %15950 = vmatpush3.bf16.msra.mxu1 %v18291_v13  ;;  %v22456_v13 = vld [vmem:[#allocation23_spill] sm:$0xff] }
 0x3a9   : > { %15951 = vmatprep.subr.bf16.mxu1 %v18292_v53 }
 0x3ab   : > { %15920 = vmatmul.mubr.msk.bf16.gmra.mrb[12].mxu1 %vm19830_vm9, %v19834_v47 }
 0x3ac   : > { %15923 = vmatprep.mubr.msk.bf16.mxu1 %vm19837_vm2, %v19841_v10  ;;  %15952 = vmatpush3.bf16.msra.mxu1 %v18292_v53  ;;  %v3702_v53 = vld [vmem:[#allocation2 + $0x156] sm:$0xff] }
 0x3ad   : > { %15953 = vmatprep.subr.bf16.mxu1 %v18293_v54 }
 0x3b0   : > { %15954 = vmatpush3.bf16.msra.mxu1 %v18293_v54  ;;  %v19910_v54 = vpack.c.bf16 %v3702_v53, %v3701_v29  ;;  %v22467_v53 = vld [vmem:[#allocation28_spill] sm:$0xff] }
 0x3b1   : > { %15987 = vmatprep.subr.bf16.mxu1 %v19850_v58  ;;  %v4255_v29 = vld [vmem:[#allocation2 + $0x82] sm:$0xff] }
 0x3b3   : > { %15924 = vmatmul.mubr.msk.bf16.gmra.mrb[16].mxu1 %vm19854_vm12, %v19858_v28 }
 0x3b4   : > { %15927 = vmatprep.mubr.msk.bf16.mxu1 %vm19861_vm15, %v19866_v63  ;;  %vm3637_vm15 = vcmp.ge.s32.totalorder %v22456_v13, 2  ;;  %v22471_v13 = vmov 0 }
 0x3bb   : > { %15928 = vmatmul.mubr.msk.bf16.gmra.mrb[20].mxu1 %vm19877_vm1, %v19881_v24  ;;  %vm19906_vm1 = vmpackc.low %vm22416_vm3, %vm3637_vm15  ;;  %vm3642_vm15 = vcmp.lt.s32.totalorder %v22462_v22, 14  ;;  %v4256_v22 = vld [vmem:[#allocation2 + $0x8a] sm:$0xff] }
 0x3bc   : > { %15931 = vmatprep.mubr.msk.bf16.mxu1 %vm19884_vm4, %v19888_v51  ;;  %v22460_v16 = vsel %vm19906_vm1, 4294967295, %v22459_v16  ;;  %vm19921_vm4 = vmpackc.low %vm22416_vm3, %vm3639_vm5  ;;  %vm3644_vm5 = vcmp.lt.s32.totalorder %v22467_v53, 14  ;;  %v13826_v30 = vpack.c.bf16 %v4256_v22, %v4255_v29  ;;  %v18296_v22 = vld [vmem:[#allocation3 + $0x310] sm:$0xff]   ;;  %v4259_v29 = vld [vmem:[#allocation2 + $0xa2] sm:$0xff] }
 0x3bd   : > { %v22464_v31 = vsel %vm19921_vm4, 4294967295, %v22463_v31  ;;  %vm19940_vm12 = vmpackc.low %vm3644_vm5, %vm22416_vm3  ;;  %v4260_v53 = vld [vmem:[#allocation2 + $0xaa] sm:$0xff] }
 0x3be   : > { %v22470_v6 = vsel %vm19940_vm12, 4294967295, %v22469_v6 }
 0x3c3   : > { %15932 = vmatmul.mubr.msk.bf16.gmra.mrb[24].mxu1 %vm19899_vm0, %v19903_v34  ;;  %vm19928_vm0 = vmpackc.low %vm3642_vm15, %vm22416_vm3 }
 0x3c4   : > { %15935 = vmatprep.mubr.msk.bf16.mxu1 %vm19906_vm1, %v19910_v54  ;;  %v22466_v14 = vsel %vm19928_vm0, 4294967295, %v22465_v14  ;;  %vm3646_vm1 = vcmp.lt.s32.totalorder %v22468_v26, 14  ;;  %v22473_v26 = vld [vmem:[#allocation33_spill] sm:$0xff] }
 0x3c5   : > { %vm19945_vm15 = vmpackc.low %vm3646_vm1, %vm22416_vm3  ;;  %vm3648_vm5 = vcmp.lt.s32.totalorder %v22473_v26, 14  ;;  %vm3650_vm1 = vcmp.lt.s32.totalorder %v22474_v49, 14  ;;  %v18297_v26 = vld [vmem:[#allocation3 + $0x318] sm:$0xff]   ;;  %v4264_v49 = vld [vmem:[#allocation2 + $0xca] sm:$0xff] }
 0x3c6   : > { %v22472_v13 = vsel %vm19945_vm15, 4294967295, %v22471_v13 }
 0x3cb   : > { %15936 = vmatmul.mubr.msk.bf16.gmra.mrb[28].mxu1 %vm19921_vm4, %v19925_v5 }
 0x3cc   : > { %15955 = vmatprep.mubr.msk.bf16.mxu1 %vm19928_vm0, %v13823_v23  ;;  %v18295_v23 = vld [vmem:[#allocation3 + $0x308] sm:$0xff]   ;;  %vm19960_vm0 = vmpackc.low %vm3648_vm5, %vm22416_vm3 }
 0x3cd   : > { %v22476_v0 = vsel %vm19960_vm0, 4294967295, %v22475_v0 }
 0x3d3   : > { %15956 = vmatmul.mubr.msk.bf16.vlgmr.msra.gmra.mrb[0].mxu1 %vm19940_vm12, %v13826_v30  ;;  %v19964_v30 = vpack.c.bf16 %v4260_v53, %v4259_v29  ;;  %v22479_v53 = vld [vmem:[#allocation36_spill] sm:$0xff] }
 0x3d4   : > { %15959 = vmatprep.mubr.msk.bf16.mxu1 %vm19945_vm15, %v19949_v27  ;;  %15988 = vmatpush3.bf16.msra.mxu1 %v19850_v58  ;;  %vm19967_vm15 = vmpackc.low %vm3650_vm1, %vm22416_vm3  ;;  %v22477_v58 = vmov 0  ;;  %vm3652_vm5 = vcmp.lt.s32.totalorder %v22479_v53, 14  ;;  %v4263_v29 = vld [vmem:[#allocation2 + $0xc2] sm:$0xff]  ;;  %vm3654_vm1 = vcmp.lt.s32.totalorder %v22480_v55, 14  ;;  %v4268_v55 = vld [vmem:[#allocation2 + $0xea] sm:$0xff] }
 0x3d5   : > { %15989 = vmatprep.subr.bf16.mxu1 %v18295_v23  ;;  %v22478_v58 = vsel %vm19967_vm15, 4294967295, %v22477_v58  ;;  %vm19982_vm12 = vmpackc.low %vm3652_vm5, %vm22416_vm3  ;;  %v19986_v9 = vpack.c.bf16 %v4264_v49, %v4263_v29  ;;  %v18299_v53 = vld [vmem:[#allocation3 + $0x328] sm:$0xff]   ;;  %v22486_v49 = vld [vmem:[#allocation39_spill] sm:$0xff] }
 0x3d6   : > { %v22482_v44 = vsel %vm19982_vm12, 4294967295, %v22481_v44  ;;  %vm3656_vm5 = vcmp.lt.s32.totalorder %v22486_v49, 14  ;;  %v4267_v29 = vld [vmem:[#allocation2 + $0xe2] sm:$0xff]  ;;  %v18301_v49 = vld [vmem:[#allocation3 + $0x338] sm:$0xff]  }
 0x3d7   : > { %v20008_v35 = vpack.c.bf16 %v4268_v55, %v4267_v29  ;;  %v22494_v55 = vld [vmem:[#allocation44_spill] sm:$0xff] }
 0x3d8   : > { %15990 = vmatpush3.bf16.msra.mxu1 %v18295_v23  ;;  %v18298_v23 = vld [vmem:[#allocation3 + $0x320] sm:$0xff]  }
 0x3d9   : > { %15991 = vmatprep.subr.bf16.mxu1 %v18296_v22  ;;  %v4271_v29 = vld [vmem:[#allocation2 + $0x102] sm:$0xff] }
 0x3db   : > { %15960 = vmatmul.mubr.msk.bf16.gmra.mrb[4].mxu1 %vm19960_vm0, %v19964_v30  ;;  %vm20004_vm0 = vmpackc.low %vm3656_vm5, %vm22416_vm3  ;;  %vm3660_vm5 = vcmp.lt.s32.totalorder %v22494_v55, 14 }
 0x3dc   : > { %15963 = vmatprep.mubr.msk.bf16.mxu1 %vm19967_vm15, %v19971_v3  ;;  %15992 = vmatpush3.bf16.msra.mxu1 %v18296_v22  ;;  %vm19989_vm15 = vmpackc.low %vm3654_vm1, %vm22416_vm3  ;;  %v22483_v22 = vmov 0  ;;  %vm3658_vm1 = vcmp.lt.s32.totalorder %v22487_v21, 14  ;;  %v22489_v15 = vsel %vm20004_vm0, 4294967295, %v22488_v15  ;;  %v4272_v21 = vld [vmem:[#allocation2 + $0x10a] sm:$0xff] }
 0x3dd   : > { %15993 = vmatprep.subr.bf16.mxu1 %v18297_v26  ;;  %v22484_v22 = vsel %vm19989_vm15, 4294967295, %v22483_v22  ;;  %22490 = vst [vmem:[#allocation38_spill] sm:$0xff] %v22489_v15  ;;  %v20030_v48 = vpack.c.bf16 %v4272_v21, %v4271_v29  ;;  %v4275_v21 = vld [vmem:[#allocation2 + $0x122] sm:$0xff]  ;;  %v4276_v29 = vld [vmem:[#allocation2 + $0x12a] sm:$0xff]  ;;  %v4278_v15 = vld [vmem:[#allocation2 + $0x13a] sm:$0xff] }
 0x3de   : > { %22485 = vst [vmem:[#allocation42_spill] sm:$0xff] %v22484_v22  ;;  %v22506_v22 = vmov 0 }
 0x3df   : > { %22499 = vst [vmem:[#allocation48_spill] sm:$0xff] %v20030_v48 }
 0x3e0   : > { %15994 = vmatpush3.bf16.msra.mxu1 %v18297_v26  ;;  %v18300_v26 = vld [vmem:[#allocation3 + $0x330] sm:$0xff]  }
 0x3e1   : > { %15995 = vmatprep.subr.bf16.mxu1 %v18298_v23 }
 0x3e3   : > { %15964 = vmatmul.mubr.msk.bf16.gmra.mrb[8].mxu1 %vm19982_vm12, %v19986_v9  ;;  %vm20026_vm12 = vmpackc.low %vm3660_vm5, %vm22416_vm3 }
 0x3e4   : > { %15967 = vmatprep.mubr.msk.bf16.mxu1 %vm19989_vm15, %v19993_v1  ;;  %15996 = vmatpush3.bf16.msra.mxu1 %v18298_v23  ;;  %vm20011_vm15 = vmpackc.low %vm3658_vm1, %vm22416_vm3  ;;  %v22491_v23 = vmov 0  ;;  %vm3662_vm1 = vcmp.lt.s32.totalorder %v22495_v36, 14  ;;  %v22497_v59 = vsel %vm20026_vm12, 4294967295, %v22496_v59  ;;  %v22505_v36 = vld [vmem:[#allocation51_spill] sm:$0xff] }
 0x3e5   : > { %15997 = vmatprep.subr.bf16.mxu1 %v18299_v53  ;;  %v22492_v23 = vsel %vm20011_vm15, 4294967295, %v22491_v23  ;;  %22498 = vst [vmem:[#allocation40_spill] sm:$0xff] %v22497_v59  ;;  %v22509_v59 = vmov 0 }
 0x3e6   : > { %22493 = vst [vmem:[#allocation47_spill] sm:$0xff] %v22492_v23  ;;  %v4273_v23 = vld [vmem:[#allocation2 + $0x112] sm:$0xff] }
 0x3e7   : > { %v20037_v55 = vpack.c.bf16 %v4274_v56, %v4273_v23  ;;  %v20052_v56 = vpack.c.bf16 %v4276_v29, %v4275_v21  ;;  %v4277_v23 = vld [vmem:[#allocation2 + $0x132] sm:$0xff]  ;;  %v4279_v21 = vld [vmem:[#allocation2 + $0x142] sm:$0xff]  ;;  %v4280_v29 = vld [vmem:[#allocation2 + $0x14a] sm:$0xff] }
 0x3e8   : > { %15998 = vmatpush3.bf16.msra.mxu1 %v18299_v53  ;;  %v18302_v53 = vld [vmem:[#allocation3 + $0x340] sm:$0xff]  }
 0x3e9   : > { %15999 = vmatprep.subr.bf16.mxu1 %v18300_v26  ;;  %22503 = vst [vmem:[#allocation45_spill] sm:$0xff] %v20037_v55 }
 0x3eb   : > { %15968 = vmatmul.mubr.msk.bf16.gmra.mrb[12].mxu1 %vm20004_vm0, %v20008_v35 }
 0x3ec   : > { %15971 = vmatprep.mubr.msk.bf16.mxu1 %vm20011_vm15, %v20015_v37  ;;  %16000 = vmatpush3.bf16.msra.mxu1 %v18300_v26  ;;  %vm20033_vm15 = vmpackc.low %vm3662_vm1, %vm22416_vm3  ;;  %v22500_v26 = vmov 0  ;;  %vm3666_vm1 = vcmp.lt.s32.totalorder %v22505_v36, 14  ;;  %v22513_v36 = vld [vmem:[#allocation52_spill] sm:$0xff] }
 0x3ed   : > { %16001 = vmatprep.subr.bf16.mxu1 %v18301_v49  ;;  %v22501_v26 = vsel %vm20033_vm15, 4294967295, %v22500_v26 }
 0x3ee   : > { %22502 = vst [vmem:[#allocation43_spill] sm:$0xff] %v22501_v26  ;;  %v20059_v26 = vpack.c.bf16 %v4278_v15, %v4277_v23  ;;  %v20074_v15 = vpack.c.bf16 %v4280_v29, %v4279_v21  ;;  %v4281_v23 = vld [vmem:[#allocation2 + $0x152] sm:$0xff]  ;;  %v4283_v21 = vld [vmem:[#allocation2 + $0x162] sm:$0xff]  ;;  %v4284_v29 = vld [vmem:[#allocation2 + $0x16a] sm:$0xff] }
 0x3f0   : > { %16002 = vmatpush3.bf16.msra.mxu1 %v18301_v49  ;;  %v22504_v49 = vld [vmem:[#allocation49_spill] sm:$0xff]  ;;  %22512 = vst [vmem:[#allocation26_spill] sm:$0xff] %v20059_v26 }
 0x3f1   : > { %16035 = vmatprep.subr.bf16.mxu1 %v18302_v53  ;;  %vm3664_vm5 = vcmp.lt.s32.totalorder %v22504_v49, 14  ;;  %v22514_v49 = vld [vmem:[#allocation54_spill] sm:$0xff] }
 0x3f2   : > { %vm20048_vm0 = vmpackc.low %vm3664_vm5, %vm22416_vm3  ;;  %vm3668_vm5 = vcmp.lt.s32.totalorder %v22513_v36, 14  ;;  %v18351_v36 = vld [vmem:[#allocation3 + $0x488] sm:$0xff]  }
 0x3f3   : > { %15972 = vmatmul.mubr.msk.bf16.gmra.mrb[16].mxu1 %vm20026_vm12, %v20030_v48  ;;  %v22507_v22 = vsel %vm20048_vm0, 4294967295, %v22506_v22  ;;  %vm20055_vm12 = vmpackc.low %vm3666_vm1, %vm22416_vm3  ;;  %v18349_v48 = vld [vmem:[#allocation3 + $0x4f8] sm:$0xff]  }
 0x3f4   : > { %15975 = vmatprep.mubr.msk.bf16.mxu1 %vm20033_vm15, %v20037_v55  ;;  %22508 = vst [vmem:[#allocation50_spill] sm:$0xff] %v22507_v22  ;;  %v22510_v59 = vsel %vm20055_vm12, 4294967295, %v22509_v59  ;;  %vm3670_vm15 = vcmp.lt.s32.totalorder %v22514_v49, 14  ;;  %v4282_v55 = vld [vmem:[#allocation2 + $0x15a] sm:$0xff]  ;;  %vm20070_vm1 = vmpackc.low %vm3668_vm5, %vm22416_vm3 }
 0x3f5   : > { %22511 = vst [vmem:[#allocation53_spill] sm:$0xff] %v22510_v59  ;;  %v20081_v59 = vpack.c.bf16 %v4282_v55, %v4281_v23  ;;  %v22519_v49 = vld [vmem:[#allocation55_spill] sm:$0xff]  ;;  %v18303_v55 = vld [vmem:[#allocation3 + $0x348] sm:$0xff]   ;;  %v18350_v22 = vld [vmem:[#allocation3 + $0x480] sm:$0xff]  }
 0x3f6   : > { %vm3672_vm5 = vcmp.lt.s32.totalorder %v22519_v49, 14  ;;  %v18304_v23 = vld [vmem:[#allocation3 + $0x350] sm:$0xff]  }
 0x3fb   : > { %15976 = vmatmul.mubr.msk.bf16.gmra.mrb[20].mxu1 %vm20048_vm0, %v20052_v56  ;;  %vm20077_vm0 = vmpackc.low %vm3670_vm15, %vm22416_vm3  ;;  %vm22522_vm15 = vnez %v22446_v8 }
 0x3fc   : > { %15979 = vmatprep.mubr.msk.bf16.mxu1 %vm20055_vm12, %v20059_v26  ;;  %vm20091_vm12 = vmpackc.low %vm3672_vm5, %vm22416_vm3  ;;  %v20095_v26 = vpack.c.bf16 %v4284_v29, %v4283_v21  ;;  %v18305_v21 = vld [vmem:[#allocation3 + $0x358] sm:$0xff]   ;;  %vm22523_vm5 = vnez %v22448_v50  ;;  %vm22524_vm3 = vnez %v22452_v18  ;;  %v5604_v50 = vld [vmem:[#allocation2 + $0x1a6] sm:$0xff] }
 0x3fd   : > { %v18342_v18 = vld [vmem:[#allocation3 + $0x4c0] sm:$0xff]  }
 0x3fe   : > { %16275 = vmatprep.subr.bf16.mxu0 %v18342_v18 }
 0x3ff   : > { %16276 = vmatpush3.bf16.msra.mxu0 %v18342_v18  ;;  %v6226_v18 = vld [vmem:[#allocation2 + $0xfa] sm:$0xff] }
 0x403   : > { %15980 = vmatmul.mubr.msk.bf16.gmra.mrb[24].mxu1 %vm20070_vm1, %v20074_v15 }
 0x404   : > { %15983 = vmatprep.mubr.msk.bf16.mxu1 %vm20077_vm0, %v20081_v59 }
 0x40b   : > { %15984 = vmatmul.mubr.msk.bf16.gmra.mrb[28].mxu1 %vm20091_vm12, %v20095_v26 }
 0x40c   : > { %16003 = vmatprep.mubr.msk.bf16.mxu1 %vm19757_vm14, %v19775_v61  ;;  %v18306_v61 = vld [vmem:[#allocation3 + $0x360] sm:$0xff]  }
 0x413   : > { %16004 = vmatmul.mubr.msk.bf16.vlgmr.msra.gmra.mrb[0].mxu1 %vm19766_vm13, %v19790_v41  ;;  %v18307_v41 = vld [vmem:[#allocation3 + $0x368] sm:$0xff]  }
 0x414   : > { %16007 = vmatprep.mubr.msk.bf16.mxu1 %vm19771_vm10, %v19797_v2  ;;  %16036 = vmatpush3.bf16.msra.mxu1 %v18302_v53  ;;  %v18308_v2 = vld [vmem:[#allocation3 + $0x370] sm:$0xff]  }
 0x415   : > { %16037 = vmatprep.subr.bf16.mxu1 %v18303_v55  ;;  %v4929_v53 = vld [vmem:[#allocation2 + $0x90] sm:$0xff] }
 0x418   : > { %16038 = vmatpush3.bf16.msra.mxu1 %v18303_v55  ;;  %v4932_v55 = vld [vmem:[#allocation2 + $0xa8] sm:$0xff] }
 0x419   : > { %16039 = vmatprep.subr.bf16.mxu1 %v18304_v23 }
 0x41b   : > { %16008 = vmatmul.mubr.msk.bf16.gmra.mrb[4].mxu1 %vm19786_vm8, %v19812_v11  ;;  %v18309_v11 = vld [vmem:[#allocation3 + $0x378] sm:$0xff]  }
 0x41c   : > { %16011 = vmatprep.mubr.msk.bf16.mxu1 %vm19793_vm11, %v19819_v4  ;;  %16040 = vmatpush3.bf16.msra.mxu1 %v18304_v23  ;;  %v18310_v4 = vld [vmem:[#allocation3 + $0x380] sm:$0xff]   ;;  %v4934_v23 = vld [vmem:[#allocation2 + $0xb8] sm:$0xff] }
 0x41d   : > { %16041 = vmatprep.subr.bf16.mxu1 %v18305_v21 }
 0x420   : > { %16042 = vmatpush3.bf16.msra.mxu1 %v18305_v21  ;;  %v4933_v21 = vld [vmem:[#allocation2 + $0xb0] sm:$0xff] }
 0x421   : > { %16043 = vmatprep.subr.bf16.mxu1 %v18306_v61 }
 0x423   : > { %16012 = vmatmul.mubr.msk.bf16.gmra.mrb[8].mxu1 %vm19808_vm6, %v19834_v47  ;;  %v4619_v47 = vld [vmem:[#allocation2 + $0x16e] sm:$0xff] }
 0x424   : > { %16015 = vmatprep.mubr.msk.bf16.mxu1 %vm19815_vm7, %v19841_v10  ;;  %16044 = vmatpush3.bf16.msra.mxu1 %v18306_v61  ;;  %v4620_v10 = vld [vmem:[#allocation2 + $0x176] sm:$0xff]  ;;  %v18311_v61 = vld [vmem:[#allocation3 + $0x388] sm:$0xff]  }
 0x425   : > { %16045 = vmatprep.subr.bf16.mxu1 %v18307_v41 }
 0x428   : > { %16046 = vmatpush3.bf16.msra.mxu1 %v18307_v41  ;;  %v20152_v41 = vpack.c.bf16 %v4934_v23, %v4933_v21  ;;  %v18315_v23 = vld [vmem:[#allocation3 + $0x3a8] sm:$0xff]  }
 0x429   : > { %16047 = vmatprep.subr.bf16.mxu1 %v18308_v2  ;;  %v20165_v21 = vld [vmem:[#allocation2 + $0x108] sm:$0xff] }
 0x42b   : > { %16016 = vmatmul.mubr.msk.bf16.gmra.mrb[12].mxu1 %vm19830_vm9, %v19858_v28  ;;  %v20139_v28 = vpack.c.bf16 %v4620_v10, %v4619_v47  ;;  %vm22526_vm9 = vnez %v22458_v60  ;;  %v4936_v47 = vld [vmem:[#allocation2 + $0xc8] sm:$0xff]  ;;  %v4938_v10 = vld [vmem:[#allocation2 + $0xd8] sm:$0xff] }
 0x42c   : > { %16019 = vmatprep.mubr.msk.bf16.mxu1 %vm19837_vm2, %v19866_v63  ;;  %16048 = vmatpush3.bf16.msra.mxu1 %v18308_v2  ;;  %vm22525_vm2 = vnez %v22454_v62  ;;  %v4621_v63 = vld [vmem:[#allocation2 + $0x17e] sm:$0xff]  ;;  %v18312_v2 = vld [vmem:[#allocation3 + $0x390] sm:$0xff]  }
 0x42d   : > { %16049 = vmatprep.subr.bf16.mxu1 %v18309_v11 }
 0x430   : > { %16050 = vmatpush3.bf16.msra.mxu1 %v18309_v11  ;;  %v4935_v11 = vld [vmem:[#allocation2 + $0xc0] sm:$0xff] }
 0x431   : > { %16083 = vmatprep.subr.bf16.mxu1 %v18310_v4 }
 0x433   : > { %16020 = vmatmul.mubr.msk.bf16.gmra.mrb[16].mxu1 %vm22522_vm15, %v19881_v24  ;;  %vm22527_vm15 = vnez %v22460_v16  ;;  %v4622_v24 = vld [vmem:[#allocation2 + $0x186] sm:$0xff] }
 0x434   : > { %16023 = vmatprep.mubr.msk.bf16.mxu1 %vm22523_vm5, %v19888_v51  ;;  %v4930_v51 = vld [vmem:[#allocation2 + $0x98] sm:$0xff] }
 0x435   : > { %v4961_v29 = vpack.c.bf16 %v4930_v51, %v4929_v53  ;;  %v18313_v51 = vld [vmem:[#allocation3 + $0x398] sm:$0xff]  }
 0x43b   : > { %16024 = vmatmul.mubr.msk.bf16.gmra.mrb[20].mxu1 %vm22524_vm3, %v19903_v34  ;;  %v20147_v34 = vpack.c.bf16 %v4622_v24, %v4621_v63  ;;  %v20155_v63 = vpack.c.bf16 %v4936_v47, %v4935_v11  ;;  %v4937_v24 = vld [vmem:[#allocation2 + $0xd0] sm:$0xff]  ;;  %v18318_v11 = vld [vmem:[#allocation3 + $0x3c0] sm:$0xff]   ;;  %v20170_v47 = vld [vmem:[#allocation2 + $0x128] sm:$0xff] }
 0x43c   : > { %16027 = vmatprep.mubr.msk.bf16.mxu1 %vm22525_vm2, %v19910_v54  ;;  %v4931_v54 = vld [vmem:[#allocation2 + $0xa0] sm:$0xff]  ;;  %v20157_v53 = vpack.c.bf16 %v4938_v10, %v4937_v24  ;;  %v20175_v10 = vld [vmem:[#allocation2 + $0x148] sm:$0xff]  ;;  %v4957_v24 = vld [vmem:[#allocation2 + $0x170] sm:$0xff]  ;;  %vm22531_vm2 = vnez %v22476_v0 }
 0x443   : > { %16028 = vmatmul.mubr.msk.bf16.gmra.mrb[24].mxu1 %vm22526_vm9, %v19925_v5  ;;  %v4962_v5 = vpack.c.bf16 %v4932_v55, %v4931_v54  ;;  %v4940_v54 = vld [vmem:[#allocation2 + $0xe8] sm:$0xff]  ;;  %vm22530_vm9 = vnez %v22472_v13 }
 0x444   : > { %16031 = vmatprep.mubr.msk.bf16.mxu1 %vm22527_vm15, %v20139_v28  ;;  %vm22529_vm15 = vnez %v22470_v6 }
 0x44b   : > { %16032 = vmatmul.mubr.msk.bf16.gmra.mrb[28].mxu1 %vm19921_vm4, %v20147_v34  ;;  %vm22528_vm4 = vnez %v22466_v14 }
 0x44c   : > { %16051 = vmatprep.mubr.bf16.mxu1 %v4961_v29  ;;  %v4939_v29 = vld [vmem:[#allocation2 + $0xe0] sm:$0xff] }
 0x44d   : > { %v20161_v55 = vpack.c.bf16 %v4940_v54, %v4939_v29  ;;  %v4960_v29 = vld [vmem:[#allocation2 + $0x188] sm:$0xff] }
 0x453   : > { %16052 = vmatmul.mubr.bf16.vlgmr.msra.gmra.mrb[0].mxu1 %v4962_v5  ;;  %v18316_v5 = vld [vmem:[#allocation3 + $0x3b0] sm:$0xff]  }
 0x454   : > { %16055 = vmatprep.mubr.bf16.mxu1 %v20152_v41  ;;  %16084 = vmatpush3.bf16.msra.mxu1 %v18310_v4  ;;  %v18314_v4 = vld [vmem:[#allocation3 + $0x3a0] sm:$0xff]  }
 0x455   : > { %16085 = vmatprep.subr.bf16.mxu1 %v18311_v61 }
 0x458   : > { %16086 = vmatpush3.bf16.msra.mxu1 %v18311_v61  ;;  %v4968_v61 = vpack.c.bf16 %v20165_v21, %v19704_v40  ;;  %v4972_v40 = vpack.c.bf16 %v20175_v10, %v19735_v17  ;;  %v18319_v17 = vld [vmem:[#allocation3 + $0x3c8] sm:$0xff]  }
 0x459   : > { %16087 = vmatprep.subr.bf16.mxu1 %v18312_v2 }
 0x45b   : > { %16056 = vmatmul.mubr.bf16.gmra.mrb[4].mxu1 %v20155_v63 }
 0x45c   : > { %16059 = vmatprep.mubr.bf16.mxu1 %v20157_v53  ;;  %16088 = vmatpush3.bf16.msra.mxu1 %v18312_v2  ;;  %v18317_v2 = vld [vmem:[#allocation3 + $0x3b8] sm:$0xff]  }
 0x45d   : > { %16089 = vmatprep.subr.bf16.mxu1 %v18313_v51 }
 0x460   : > { %16090 = vmatpush3.bf16.msra.mxu1 %v18313_v51  ;;  %v4958_v51 = vld [vmem:[#allocation2 + $0x178] sm:$0xff] }
 0x461   : > { %16091 = vmatprep.subr.bf16.mxu1 %v18314_v4 }
 0x463   : > { %16060 = vmatmul.mubr.bf16.gmra.mrb[8].mxu1 %v20161_v55 }
 0x464   : > { %16063 = vmatprep.mubr.bf16.mxu1 %v19702_v33  ;;  %16092 = vmatpush3.bf16.msra.mxu1 %v18314_v4  ;;  %v4970_v33 = vpack.c.bf16 %v20170_v47, %v19724_v12  ;;  %v20184_v12 = vpack.c.bf16 %v4958_v51, %v4957_v24  ;;  %v22549_v24 = vld [vmem:[#allocation53_spill] sm:$0xff]  ;;  %v5263_v51 = vld [vmem:[#allocation2 + $0x172] sm:$0xff] }
 0x465   : > { %16093 = vmatprep.subr.bf16.mxu1 %v18315_v23 }
 0x468   : > { %16094 = vmatpush3.bf16.msra.mxu1 %v18315_v23  ;;  %v22536_v23 = vld [vmem:[#allocation48_spill] sm:$0xff] }
 0x469   : > { %16095 = vmatprep.subr.bf16.mxu1 %v18316_v5 }
 0x46b   : > { %16064 = vmatmul.mubr.bf16.gmra.mrb[12].mxu1 %v4968_v61  ;;  %v22539_v61 = vld [vmem:[#allocation45_spill] sm:$0xff] }
 0x46c   : > { %16067 = vmatprep.mubr.bf16.mxu1 %v19722_v32  ;;  %16096 = vmatpush3.bf16.msra.mxu1 %v18316_v5  ;;  %v20180_v32 = vld [vmem:[#allocation2 + $0x168] sm:$0xff] }
 0x46d   : > { %16097 = vmatprep.subr.bf16.mxu1 %v18317_v2  ;;  %v4974_v4 = vpack.c.bf16 %v20180_v32, %v19749_v57  ;;  %v18321_v57 = vld [vmem:[#allocation3 + $0x3d8] sm:$0xff]   ;;  %v22537_v5 = vld [vmem:[#allocation38_spill] sm:$0xff] }
 0x470   : > { %16098 = vmatpush3.bf16.msra.mxu1 %v18317_v2  ;;  %v22540_v2 = vld [vmem:[#allocation47_spill] sm:$0xff] }
 0x471   : > { %16131 = vmatprep.subr.bf16.mxu1 %v18318_v11 }
 0x473   : > { %16068 = vmatmul.mubr.bf16.gmra.mrb[16].mxu1 %v4970_v33  ;;  %v22545_v33 = vld [vmem:[#allocation43_spill] sm:$0xff] }
 0x474   : > { %16071 = vmatprep.mubr.bf16.mxu1 %v19733_v20  ;;  %v4959_v20 = vld [vmem:[#allocation2 + $0x180] sm:$0xff] }
 0x475   : > { %v20187_v54 = vpack.c.bf16 %v4960_v29, %v4959_v20 }
 0x47b   : > { %16072 = vmatmul.mubr.bf16.gmra.mrb[20].mxu1 %v4972_v40  ;;  %v22547_v40 = vld [vmem:[#allocation50_spill] sm:$0xff] }
 0x47c   : > { %16075 = vmatprep.mubr.bf16.mxu1 %v19747_v46  ;;  %v18320_v46 = vld [vmem:[#allocation3 + $0x3d0] sm:$0xff]  }
 0x483   : > { %16076 = vmatmul.mubr.bf16.gmra.mrb[24].mxu1 %v4974_v4  ;;  %v5264_v4 = vld [vmem:[#allocation2 + $0x17a] sm:$0xff] }
 0x484   : > { %16079 = vmatprep.mubr.bf16.mxu1 %v20184_v12  ;;  %v20229_v20 = vpack.c.bf16 %v5264_v4, %v5263_v51  ;;  %v18328_v51 = vld [vmem:[#allocation3 + $0x410] sm:$0xff]   ;;  %v5579_v4 = vld [vmem:[#allocation2 + $0xde] sm:$0xff] }
 0x48b   : > { %16080 = vmatmul.mubr.bf16.gmra.mrb[28].mxu1 %v20187_v54 }
 0x48c   : > { %16099 = vmatprep.mubr.msk.bf16.mxu1 %vm22528_vm4, %v19949_v27  ;;  %vm22532_vm4 = vnez %v22478_v58  ;;  %v18322_v27 = vld [vmem:[#allocation3 + $0x3e0] sm:$0xff]  }
 0x493   : > { %16100 = vmatmul.mubr.msk.bf16.vlgmr.msra.gmra.mrb[0].mxu1 %vm22529_vm15, %v19964_v30  ;;  %v22534_v30 = vld [vmem:[#allocation42_spill] sm:$0xff] }
 0x494   : > { %16103 = vmatprep.mubr.msk.bf16.mxu1 %vm22530_vm9, %v19971_v3  ;;  %16132 = vmatpush3.bf16.msra.mxu1 %v18318_v11  ;;  %v18323_v3 = vld [vmem:[#allocation3 + $0x3e8] sm:$0xff]   ;;  %vm22533_vm9 = vnez %v22482_v44  ;;  %vm22535_vm15 = vnez %v22534_v30 }
 0x495   : > { %16133 = vmatprep.subr.bf16.mxu1 %v18319_v17  ;;  %v22544_v11 = vld [vmem:[#allocation26_spill] sm:$0xff] }
 0x498   : > { %16134 = vmatpush3.bf16.msra.mxu1 %v18319_v17  ;;  %v5574_v17 = vld [vmem:[#allocation2 + $0xb6] sm:$0xff] }
 0x499   : > { %16135 = vmatprep.subr.bf16.mxu1 %v18320_v46 }
 0x49b   : > { %16104 = vmatmul.mubr.msk.bf16.gmra.mrb[4].mxu1 %vm22531_vm2, %v19986_v9  ;;  %v18324_v9 = vld [vmem:[#allocation3 + $0x3f0] sm:$0xff]   ;;  %vm22541_vm2 = vnez %v22540_v2 }
 0x49c   : > { %16107 = vmatprep.mubr.msk.bf16.mxu1 %vm22532_vm4, %v19993_v1  ;;  %16136 = vmatpush3.bf16.msra.mxu1 %v18320_v46  ;;  %v18325_v1 = vld [vmem:[#allocation3 + $0x3f8] sm:$0xff]   ;;  %vm22538_vm4 = vnez %v22537_v5 }
 0x49d   : > { %16137 = vmatprep.subr.bf16.mxu1 %v18321_v57 }
 0x4a0   : > { %16138 = vmatpush3.bf16.msra.mxu1 %v18321_v57  ;;  %v5573_v57 = vld [vmem:[#allocation2 + $0xae] sm:$0xff] }
 0x4a1   : > { %16139 = vmatprep.subr.bf16.mxu1 %v18322_v27 }
 0x4a3   : > { %16108 = vmatmul.mubr.msk.bf16.gmra.mrb[8].mxu1 %vm22533_vm9, %v20008_v35  ;;  %v18326_v35 = vld [vmem:[#allocation3 + $0x400] sm:$0xff]   ;;  %vm22546_vm9 = vnez %v22545_v33 }
 0x4a4   : > { %16111 = vmatprep.mubr.msk.bf16.mxu1 %vm22535_vm15, %v20015_v37  ;;  %16140 = vmatpush3.bf16.msra.mxu1 %v18322_v27  ;;  %v22542_v37 = vld [vmem:[#allocation40_spill] sm:$0xff]  ;;  %v13999_v27 = vpack.c.bf16 %v5574_v17, %v5573_v57  ;;  %v5581_v17 = vld [vmem:[#allocation2 + $0xee] sm:$0xff] }
 0x4a5   : > { %16141 = vmatprep.subr.bf16.mxu1 %v18323_v3  ;;  %vm22543_vm15 = vnez %v22542_v37  ;;  %v18329_v57 = vld [vmem:[#allocation3 + $0x418] sm:$0xff]   ;;  %v20331_v33 = vld [vmem:[#allocation2 + $0x1a2] sm:$0xff] }
 0x4a8   : > { %16142 = vmatpush3.bf16.msra.mxu1 %v18323_v3  ;;  %v5576_v3 = vld [vmem:[#allocation2 + $0xc6] sm:$0xff] }
 0x4a9   : > { %16143 = vmatprep.subr.bf16.mxu1 %v18324_v9 }
 0x4ab   : > { %16112 = vmatmul.mubr.msk.bf16.gmra.mrb[12].mxu1 %vm22538_vm4, %v22536_v23  ;;  %vm22548_vm4 = vnez %v22547_v40  ;;  %v5577_v23 = vld [vmem:[#allocation2 + $0xce] sm:$0xff] }
 0x4ac   : > { %16115 = vmatprep.mubr.msk.bf16.mxu1 %vm22541_vm2, %v22539_v61  ;;  %16144 = vmatpush3.bf16.msra.mxu1 %v18324_v9  ;;  %vm22550_vm2 = vnez %v22549_v24  ;;  %v5578_v9 = vld [vmem:[#allocation2 + $0xd6] sm:$0xff]  ;;  %v18327_v61 = vld [vmem:[#allocation3 + $0x408] sm:$0xff]  }
 0x4ad   : > { %16145 = vmatprep.subr.bf16.mxu1 %v18325_v1  ;;  %v20335_v40 = vld [vmem:[#allocation2 + $0x1aa] sm:$0xff] }
 0x4ae   : > { %v14108_v24 = vpack.c.bf16 %v20335_v40, %v20331_v33 }
 0x4b0   : > { %16146 = vmatpush3.bf16.msra.mxu1 %v18325_v1 }
 0x4b1   : > { %16179 = vmatprep.subr.bf16.mxu1 %v18326_v35 }
 0x4b3   : > { %16116 = vmatmul.mubr.msk.bf16.gmra.mrb[16].mxu1 %vm22543_vm15, %v20052_v56  ;;  %v20234_v56 = vld [vmem:[#allocation2] sm:$0xff] }
 0x4b4   : > { %16119 = vmatprep.mubr.msk.bf16.mxu1 %vm22546_vm9, %v22544_v11  ;;  %v20238_v29 = vpack.c.bf16 %v20234_v56, %v20234_v56  ;;  %v14005_v11 = vpack.c.bf16 %v5578_v9, %v5577_v23  ;;  %v5585_v9 = vld [vmem:[#allocation2 + $0x10e] sm:$0xff] }
 0x4b6   : > { %16291 = vmatprep.mubr.bf16.mxu0 %v20238_v29 }
 0x4bb   : > { %16120 = vmatmul.mubr.msk.bf16.gmra.mrb[20].mxu1 %vm22548_vm4, %v20074_v15  ;;  %v5266_v15 = vld [vmem:[#allocation2 + $0x18a] sm:$0xff] }
 0x4bc   : > { %16123 = vmatprep.mubr.msk.bf16.mxu1 %vm22550_vm2, %v20081_v59  ;;  %v5265_v59 = vld [vmem:[#allocation2 + $0x182] sm:$0xff] }
 0x4bd   : > { %v20244_v46 = vpack.c.bf16 %v5266_v15, %v5265_v59  ;;  %v5580_v59 = vld [vmem:[#allocation2 + $0xe6] sm:$0xff] }
 0x4be   : > { %v14008_v15 = vpack.c.bf16 %v5580_v59, %v5579_v4  ;;  %v5589_v4 = vld [vmem:[#allocation2 + $0x12e] sm:$0xff]  ;;  %v18333_v59 = vld [vmem:[#allocation3 + $0x438] sm:$0xff]  }
 0x4c3   : > { %16124 = vmatmul.mubr.msk.bf16.gmra.mrb[24].mxu1 %vm20070_vm1, %v20095_v26  ;;  %v5575_v26 = vld [vmem:[#allocation2 + $0xbe] sm:$0xff] }
 0x4c4   : > { %16127 = vmatprep.mubr.msk.bf16.mxu1 %vm20077_vm0, %v20229_v20  ;;  %v14002_v1 = vpack.c.bf16 %v5576_v3, %v5575_v26  ;;  %v5586_v26 = vld [vmem:[#allocation2 + $0x116] sm:$0xff] }
 0x4c5   : > { %v14017_v23 = vpack.c.bf16 %v5586_v26, %v5585_v9  ;;  %v5602_v26 = vld [vmem:[#allocation2 + $0x196] sm:$0xff] }
 0x4cb   : > { %16128 = vmatmul.mubr.msk.bf16.gmra.mrb[28].mxu1 %vm20091_vm12, %v20244_v46 }
 0x4cc   : > { %16147 = vmatprep.mubr.msk.bf16.mxu1 %vm19757_vm14, %v13999_v27  ;;  %v14011_v27 = vpack.c.bf16 %v5582_v52, %v5581_v17  ;;  %vm22551_vm14 = vnez %v22440_v45  ;;  %v5594_v17 = vld [vmem:[#allocation2 + $0x156] sm:$0xff]  ;;  %v5595_v45 = vld [vmem:[#allocation2 + $0x15e] sm:$0xff] }
 0x4d3   : > { %16148 = vmatmul.mubr.msk.bf16.vlgmr.msra.gmra.mrb[0].mxu1 %vm19766_vm13, %v14002_v1  ;;  %v18331_v1 = vld [vmem:[#allocation3 + $0x428] sm:$0xff]   ;;  %vm22552_vm13 = vnez %v22442_v39 }
 0x4d4   : > { %16151 = vmatprep.mubr.msk.bf16.mxu1 %vm19771_vm10, %v14005_v11  ;;  %16180 = vmatpush3.bf16.msra.mxu1 %v18326_v35  ;;  %v5584_v35 = vld [vmem:[#allocation2 + $0x106] sm:$0xff]  ;;  %v5590_v11 = vld [vmem:[#allocation2 + $0x136] sm:$0xff]  ;;  %vm22553_vm10 = vnez %v22446_v8  ;;  %v5603_v8 = vld [vmem:[#allocation2 + $0x19e] sm:$0xff] }
 0x4d5   : > { %16181 = vmatprep.subr.bf16.mxu1 %v18327_v61  ;;  %v14014_v3 = vpack.c.bf16 %v5584_v35, %v5583_v43  ;;  %v14023_v52 = vpack.c.bf16 %v5590_v11, %v5589_v4  ;;  %v5596_v39 = vld [vmem:[#allocation2 + $0x166] sm:$0xff]  ;;  %v5601_v35 = vld [vmem:[#allocation2 + $0x18e] sm:$0xff]  ;;  %v14044_v9 = vpack.c.bf16 %v5604_v50, %v5603_v8  ;;  %v6222_v8 = vld [vmem:[#allocation2 + $0xda] sm:$0xff] }
 0x4d6   : > { %v14032_v43 = vpack.c.bf16 %v5596_v39, %v5595_v45  ;;  %v5923_v11 = vld [vmem:[#allocation2 + $0x110] sm:$0xff]  ;;  %v5933_v39 = vld [vmem:[#allocation2 + $0x160] sm:$0xff] }
 0x4d8   : > { %16182 = vmatpush3.bf16.msra.mxu1 %v18327_v61  ;;  %v5588_v61 = vld [vmem:[#allocation2 + $0x126] sm:$0xff] }
 0x4d9   : > { %16183 = vmatprep.subr.bf16.mxu1 %v18328_v51 }
 0x4db   : > { %16152 = vmatmul.mubr.msk.bf16.gmra.mrb[4].mxu1 %vm19786_vm8, %v14008_v15  ;;  %v5592_v15 = vld [vmem:[#allocation2 + $0x146] sm:$0xff]  ;;  %vm22554_vm8 = vnez %v22454_v62  ;;  %v18344_v62 = vld [vmem:[#allocation3 + $0x4d0] sm:$0xff]  }
 0x4dc   : > { %16155 = vmatprep.mubr.msk.bf16.mxu1 %vm19793_vm11, %v14011_v27  ;;  %16184 = vmatpush3.bf16.msra.mxu1 %v18328_v51  ;;  %v14020_v51 = vpack.c.bf16 %v5588_v61, %v5587_v7  ;;  %v5593_v27 = vld [vmem:[#allocation2 + $0x14e] sm:$0xff]  ;;  %vm22555_vm11 = vnez %v22458_v60  ;;  %v18345_v60 = vld [vmem:[#allocation3 + $0x4d8] sm:$0xff]  }
 0x4dd   : > { %16185 = vmatprep.subr.bf16.mxu1 %v18329_v57  ;;  %v5924_v7 = vld [vmem:[#allocation2 + $0x118] sm:$0xff] }
 0x4de   : > { %v5949_v4 = vpack.c.bf16 %v5924_v7, %v5923_v11  ;;  %v6238_v7 = vld [vmem:[#allocation2 + $0x15a] sm:$0xff] }
 0x4e0   : > { %16186 = vmatpush3.bf16.msra.mxu1 %v18329_v57  ;;  %v14026_v57 = vpack.c.bf16 %v5592_v15, %v5591_v19  ;;  %v5927_v19 = vld [vmem:[#allocation2 + $0x130] sm:$0xff]  ;;  %v18341_v15 = vld [vmem:[#allocation3 + $0x478] sm:$0xff]  }
 0x4e1   : > { %16187 = vmatprep.subr.bf16.mxu1 %v18330_v42 }
 0x4e3   : > { %16156 = vmatmul.mubr.msk.bf16.gmra.mrb[8].mxu1 %vm19808_vm6, %v14014_v3  ;;  %v14041_v3 = vpack.c.bf16 %v5602_v26, %v5601_v35  ;;  %vm22556_vm6 = vnez %v22460_v16  ;;  %v18336_v16 = vld [vmem:[#allocation3 + $0x450] sm:$0xff]  }
 0x4e4   : > { %16159 = vmatprep.mubr.msk.bf16.mxu1 %vm19815_vm7, %v14017_v23  ;;  %16188 = vmatpush3.bf16.msra.mxu1 %v18330_v42  ;;  %v14029_v42 = vpack.c.bf16 %v5594_v17, %v5593_v27  ;;  %vm22557_vm7 = vnez %v22464_v31  ;;  %v5920_v31 = vld [vmem:[#allocation2 + $0xf8] sm:$0xff] }
 0x4e5   : > { %16189 = vmatprep.subr.bf16.mxu1 %v18331_v1  ;;  %v18337_v23 = vld [vmem:[#allocation3 + $0x458] sm:$0xff]  }
 0x4e6   : > { %v6217_v35 = vld [vmem:[#allocation2 + $0xb2] sm:$0xff] }
 0x4e8   : > { %16190 = vmatpush3.bf16.msra.mxu1 %v18331_v1  ;;  %v18343_v1 = vld [vmem:[#allocation3 + $0x4c8] sm:$0xff]  }
 0x4e9   : > { %16191 = vmatprep.subr.bf16.mxu1 %v18332_v25  ;;  %16277 = vmatprep.subr.bf16.mxu0 %v18343_v1 }
 0x4ea   : > { %16278 = vmatpush3.bf16.msra.mxu0 %v18343_v1 }
 0x4eb   : > { %16160 = vmatmul.mubr.msk.bf16.gmra.mrb[12].mxu1 %vm22551_vm14, %v14020_v51  ;;  %16279 = vmatprep.subr.bf16.mxu0 %v18344_v62  ;;  %v18339_v51 = vld [vmem:[#allocation3 + $0x468] sm:$0xff]   ;;  %vm22560_vm14 = vnez %v22472_v13 }
 0x4ec   : > { %16163 = vmatprep.mubr.msk.bf16.mxu1 %vm22552_vm13, %v14023_v52  ;;  %16192 = vmatpush3.bf16.msra.mxu1 %v18332_v25  ;;  %v5928_v52 = vld [vmem:[#allocation2 + $0x138] sm:$0xff]  ;;  %vm22561_vm13 = vnez %v22476_v0  ;;  %v6231_v13 = vld [vmem:[#allocation2 + $0x122] sm:$0xff] }
 0x4ed   : > { %16193 = vmatprep.subr.bf16.mxu1 %v18333_v59  ;;  %v5951_v17 = vpack.c.bf16 %v5928_v52, %v5927_v19  ;;  %v18354_v52 = vld [vmem:[#allocation3 + $0x4a0] sm:$0xff]   ;;  %v18356_v19 = vld [vmem:[#allocation3 + $0x4b0] sm:$0xff]  }
 0x4ee   : > { %16280 = vmatpush3.bf16.msra.mxu0 %v18344_v62  ;;  %v6225_v62 = vld [vmem:[#allocation2 + $0xf2] sm:$0xff] }
 0x4ef   : > { %16281 = vmatprep.subr.bf16.mxu0 %v18345_v60 }
 0x4f0   : > { %16194 = vmatpush3.bf16.msra.mxu1 %v18333_v59  ;;  %v5925_v59 = vld [vmem:[#allocation2 + $0x120] sm:$0xff] }
 0x4f1   : > { %16227 = vmatprep.subr.bf16.mxu1 %v18334_v38 }
 0x4f2   : > { %16282 = vmatpush3.bf16.msra.mxu0 %v18345_v60  ;;  %v6228_v60 = vld [vmem:[#allocation2 + $0x10a] sm:$0xff] }
 0x4f3   : > { %16164 = vmatmul.mubr.msk.bf16.gmra.mrb[16].mxu1 %vm22553_vm10, %v14026_v57  ;;  %v5932_v57 = vld [vmem:[#allocation2 + $0x158] sm:$0xff]  ;;  %vm22562_vm10 = vnez %v22478_v58  ;;  %v6235_v58 = vld [vmem:[#allocation2 + $0x142] sm:$0xff] }
 0x4f4   : > { %16167 = vmatprep.mubr.msk.bf16.mxu1 %vm22523_vm5, %v14029_v42  ;;  %v5931_v42 = vld [vmem:[#allocation2 + $0x150] sm:$0xff]  ;;  %vm22559_vm5 = vnez %v22470_v6 }
 0x4f5   : > { %v5953_v45 = vpack.c.bf16 %v5932_v57, %v5931_v42 }
 0x4fb   : > { %16168 = vmatmul.mubr.msk.bf16.gmra.mrb[20].mxu1 %vm22524_vm3, %v14032_v43  ;;  %v6218_v43 = vld [vmem:[#allocation2 + $0xba] sm:$0xff]  ;;  %vm22558_vm3 = vnez %v22466_v14  ;;  %v6227_v14 = vld [vmem:[#allocation2 + $0x102] sm:$0xff] }
 0x4fc   : > { %16171 = vmatprep.mubr.msk.bf16.mxu1 %vm22554_vm8, %v20139_v28  ;;  %v18335_v28 = vld [vmem:[#allocation3 + $0x448] sm:$0xff]   ;;  %v14063_v26 = vpack.c.bf16 %v6218_v43, %v6217_v35  ;;  %v14078_v6 = vpack.c.bf16 %v6228_v60, %v6227_v14  ;;  %vm22563_vm8 = vnez %v22482_v44 }
 0x503   : > { %16172 = vmatmul.mubr.msk.bf16.gmra.mrb[24].mxu1 %vm22555_vm11, %v20147_v34  ;;  %v18346_v34 = vld [vmem:[#allocation3 + $0x4e0] sm:$0xff]   ;;  %vm22564_vm11 = vnez %v22534_v30 }
 0x504   : > { %16175 = vmatprep.mubr.msk.bf16.mxu1 %vm22556_vm6, %v14041_v3  ;;  %16283 = vmatprep.subr.bf16.mxu0 %v18346_v34  ;;  %v6220_v3 = vld [vmem:[#allocation2 + $0xca] sm:$0xff]  ;;  %vm22565_vm6 = vnez %v22537_v5  ;;  %v6239_v30 = vld [vmem:[#allocation2 + $0x162] sm:$0xff]  ;;  %v20322_v5 = vld [vmem:[#allocation2 + $0x192] sm:$0xff] }
 0x505   : > { %16284 = vmatpush3.bf16.msra.mxu0 %v18346_v34 }
 0x50b   : > { %16176 = vmatmul.mubr.msk.bf16.gmra.mrb[28].mxu1 %vm22557_vm7, %v14044_v9  ;;  %vm22566_vm7 = vnez %v22540_v2  ;;  %v20324_v2 = vld [vmem:[#allocation2 + $0x19a] sm:$0xff] }
 0x50c   : > { %16195 = vmatprep.mubr.bf16.mxu1 %v20152_v41  ;;  %v5919_v41 = vld [vmem:[#allocation2 + $0xf0] sm:$0xff]  ;;  %v14105_v37 = vpack.c.bf16 %v20324_v2, %v20322_v5 }
 0x50d   : > { %v5947_v25 = vpack.c.bf16 %v5920_v31, %v5919_v41  ;;  %v6229_v31 = vld [vmem:[#allocation2 + $0x112] sm:$0xff]  ;;  %v6232_v41 = vld [vmem:[#allocation2 + $0x12a] sm:$0xff] }
 0x50e   : > { %v14084_v0 = vpack.c.bf16 %v6232_v41, %v6231_v13 }
 0x513   : > { %16196 = vmatmul.mubr.bf16.vlgmr.msra.gmra.mrb[0].mxu1 %v20155_v63  ;;  %v18338_v63 = vld [vmem:[#allocation3 + $0x460] sm:$0xff]  }
 0x514   : > { %16199 = vmatprep.mubr.bf16.mxu1 %v20157_v53  ;;  %16228 = vmatpush3.bf16.msra.mxu1 %v18334_v38  ;;  %v5921_v53 = vld [vmem:[#allocation2 + $0x100] sm:$0xff]  ;;  %v5950_v38 = vpack.c.bf16 %v20170_v47, %v5925_v59  ;;  %v5954_v47 = vpack.c.bf16 %v20180_v32, %v5933_v39  ;;  %v6221_v32 = vld [vmem:[#allocation2 + $0xd2] sm:$0xff] }
 0x515   : > { %16229 = vmatprep.subr.bf16.mxu1 %v18335_v28  ;;  %v5948_v61 = vpack.c.bf16 %v20165_v21, %v5921_v53  ;;  %v5929_v21 = vld [vmem:[#allocation2 + $0x140] sm:$0xff]  ;;  %v14069_v9 = vpack.c.bf16 %v6222_v8, %v6221_v32  ;;  %v6236_v53 = vld [vmem:[#allocation2 + $0x14a] sm:$0xff]  ;;  %v18353_v59 = vld [vmem:[#allocation3 + $0x498] sm:$0xff]  }
 0x516   : > { %v5952_v27 = vpack.c.bf16 %v20175_v10, %v5929_v21  ;;  %v6219_v10 = vld [vmem:[#allocation2 + $0xc2] sm:$0xff]  ;;  %v14090_v44 = vpack.c.bf16 %v6236_v53, %v6235_v58 }
 0x517   : > { %v14066_v50 = vpack.c.bf16 %v6220_v3, %v6219_v10 }
 0x518   : > { %16230 = vmatpush3.bf16.msra.mxu1 %v18335_v28  ;;  %v14075_v28 = vpack.c.bf16 %v6226_v18, %v6225_v62 }
 0x519   : > { %16231 = vmatprep.subr.bf16.mxu1 %v18336_v16 }
 0x51b   : > { %16200 = vmatmul.mubr.bf16.gmra.mrb[4].mxu1 %v20161_v55  ;;  %v18340_v55 = vld [vmem:[#allocation3 + $0x470] sm:$0xff]  }
 0x51c   : > { %16203 = vmatprep.mubr.bf16.mxu1 %v5947_v25  ;;  %16232 = vmatpush3.bf16.msra.mxu1 %v18336_v16  ;;  %v6230_v16 = vld [vmem:[#allocation2 + $0x11a] sm:$0xff]  ;;  %v6233_v25 = vld [vmem:[#allocation2 + $0x132] sm:$0xff] }
 0x51d   : > { %16233 = vmatprep.subr.bf16.mxu1 %v18337_v23  ;;  %v14081_v34 = vpack.c.bf16 %v6230_v16, %v6229_v31 }
 0x520   : > { %16234 = vmatpush3.bf16.msra.mxu1 %v18337_v23  ;;  %v6234_v23 = vld [vmem:[#allocation2 + $0x13a] sm:$0xff] }
 0x521   : > { %16235 = vmatprep.subr.bf16.mxu1 %v18338_v63 }
 0x523   : > { %16204 = vmatmul.mubr.bf16.gmra.mrb[8].mxu1 %v5948_v61  ;;  %v6237_v61 = vld [vmem:[#allocation2 + $0x152] sm:$0xff] }
 0x524   : > { %16207 = vmatprep.mubr.bf16.mxu1 %v5949_v4  ;;  %16236 = vmatpush3.bf16.msra.mxu1 %v18338_v63  ;;  %v14087_v63 = vpack.c.bf16 %v6234_v23, %v6233_v25  ;;  %v14093_v11 = vpack.c.bf16 %v6238_v7, %v6237_v61 }
 0x525   : > { %16237 = vmatprep.subr.bf16.mxu1 %v18339_v51 }
 0x528   : > { %16238 = vmatpush3.bf16.msra.mxu1 %v18339_v51  ;;  %v6240_v51 = vld [vmem:[#allocation2 + $0x16a] sm:$0xff] }
 0x529   : > { %16239 = vmatprep.subr.bf16.mxu1 %v18340_v55  ;;  %v14096_v4 = vpack.c.bf16 %v6240_v51, %v6239_v30 }
 0x52b   : > { %16208 = vmatmul.mubr.bf16.gmra.mrb[12].mxu1 %v5950_v38  ;;  %v18355_v38 = vld [vmem:[#allocation3 + $0x4a8] sm:$0xff]  }
 0x52c   : > { %16211 = vmatprep.mubr.bf16.mxu1 %v5951_v17  ;;  %16240 = vmatpush3.bf16.msra.mxu1 %v18340_v55  ;;  %v18348_v55 = vld [vmem:[#allocation3 + $0x4f0] sm:$0xff]   ;;  %v20347_v17 = vld [vmem:[#allocation5 + $0x1] ss:$0 sm:$0xff] }
 0x52d   : > { %16241 = vmatprep.subr.bf16.mxu1 %v18341_v15 }
 0x530   : > { %16242 = vmatpush3.bf16.msra.mxu1 %v18341_v15  ;;  %v18357_v15 = vld [vmem:[#allocation3 + $0x4b8] sm:$0xff]  }
 0x533   : > { %16212 = vmatmul.mubr.bf16.gmra.mrb[16].mxu1 %v5952_v27 }
 0x534   : > { %16215 = vmatprep.mubr.bf16.mxu1 %v5953_v45 }
 0x53b   : > { %16216 = vmatmul.mubr.bf16.gmra.mrb[20].mxu1 %v5954_v47 }
 0x53c   : > { %16219 = vmatprep.mubr.bf16.mxu1 %v20184_v12  ;;  %v6223_v12 = vld [vmem:[#allocation2 + $0xe2] sm:$0xff] }
 0x543   : > { %16220 = vmatmul.mubr.bf16.gmra.mrb[24].mxu1 %v20187_v54  ;;  %v6224_v54 = vld [vmem:[#allocation2 + $0xea] sm:$0xff] }
 0x544   : > { %16223 = vmatprep.mubr.bf16.mxu1 %v20238_v29  ;;  %v14072_v1 = vpack.c.bf16 %v6224_v54, %v6223_v12 }
 0x54b   : > { %16224 = vmatmul.mubr.bf16.gmra.mrb[28].mxu1 %v20238_v29 }
 0x54c   : > { %16243 = vmatprep.mubr.msk.bf16.mxu1 %vm22558_vm3, %v14063_v26 }
 0x553   : > { %16244 = vmatmul.mubr.msk.bf16.vlgmr.msra.gmra.mrb[0].mxu1 %vm22559_vm5, %v14066_v50 }
 0x554   : > { %16247 = vmatprep.mubr.msk.bf16.mxu1 %vm22560_vm14, %v14069_v9 }
 0x55b   : > { %16248 = vmatmul.mubr.msk.bf16.gmra.mrb[4].mxu1 %vm22561_vm13, %v14072_v1 }
 0x55c   : > { %16251 = vmatprep.mubr.msk.bf16.mxu1 %vm22562_vm10, %v14075_v28 }
 0x563   : > { %16252 = vmatmul.mubr.msk.bf16.gmra.mrb[8].mxu1 %vm22563_vm8, %v14078_v6 }
 0x564   : > { %16255 = vmatprep.mubr.msk.bf16.mxu1 %vm22564_vm11, %v14081_v34 }
 0x56b   : > { %16256 = vmatmul.mubr.msk.bf16.gmra.mrb[12].mxu1 %vm22565_vm6, %v14084_v0 }
 0x56c   : > { %16259 = vmatprep.mubr.msk.bf16.mxu1 %vm22566_vm7, %v14087_v63 }
 0x573   : > { %16260 = vmatmul.mubr.msk.bf16.gmra.mrb[16].mxu1 %vm22543_vm15, %v14090_v44 }
 0x574   : > { %16263 = vmatprep.mubr.msk.bf16.mxu1 %vm22546_vm9, %v14093_v11 }
 0x57b   : > { %16264 = vmatmul.mubr.msk.bf16.gmra.mrb[20].mxu1 %vm22548_vm4, %v14096_v4 }
 0x57c   : > { %16267 = vmatprep.mubr.msk.bf16.mxu1 %vm22550_vm2, %v20229_v20  ;;  %v18347_v20 = vld [vmem:[#allocation3 + $0x4e8] sm:$0xff]   ;;  %vm22574_vm2 = vmmov 1  }
 0x57d   : > { %16285 = vmatprep.subr.bf16.mxu0 %v18347_v20 }
 0x57e   : > { %16286 = vmatpush3.bf16.msra.mxu0 %v18347_v20 }
 0x57f   : > { %16287 = vmatprep.subr.bf16.mxu0 %v18348_v55 }
 0x582   : > { %16288 = vmatpush3.bf16.msra.mxu0 %v18348_v55 }
 0x583   : > { %16268 = vmatmul.mubr.msk.bf16.gmra.mrb[24].mxu1 %vm20070_vm1, %v20244_v46  ;;  %16289 = vmatprep.subr.bf16.mxu0 %v18349_v48  ;;  %v18352_v46 = vld [vmem:[#allocation3 + $0x490] sm:$0xff]  }
 0x584   : > { %16271 = vmatprep.mubr.msk.bf16.mxu1 %vm20077_vm0, %v14105_v37 }
 0x586   : > { %16290 = vmatpush3.bf16.msra.mxu0 %v18349_v48 }
 0x587   : > { %16323 = vmatprep.subr.bf16.mxu0 %v18350_v22 }
 0x589   : > { %16292 = vmatmul.mubr.bf16.vlgmr.msra.gmra.mrb[32].mxu0 %v20238_v29 }
 0x58a   : > { %16295 = vmatprep.mubr.bf16.mxu0 %v20238_v29  ;;  %16324 = vmatpush3.bf16.msra.mxu0 %v18350_v22 }
 0x58b   : > { %16272 = vmatmul.mubr.msk.bf16.gmra.mrb[28].mxu1 %vm20091_vm12, %v14108_v24  ;;  %16325 = vmatprep.subr.bf16.mxu0 %v18351_v36 }
 0x58e   : > { %16326 = vmatpush3.bf16.msra.mxu0 %v18351_v36 }
 0x58f   : > { %16327 = vmatprep.subr.bf16.mxu0 %v18352_v46 }
 0x591   : > { %16296 = vmatmul.mubr.bf16.gmra.mrb[36].mxu0 %v20238_v29  ;;  %v20344_v29 = vld [vmem:[#allocation3 + $0x500] sm:$0xff]  }
 0x592   : > { %16328 = vmatpush3.bf16.msra.mxu0 %v18352_v46 }
 0x593   : > { %16329 = vmatprep.subr.bf16.mxu0 %v18353_v59 }
 0x596   : > { %16330 = vmatpush3.bf16.msra.mxu0 %v18353_v59 }
 0x597   : > { %16331 = vmatprep.subr.bf16.mxu0 %v18354_v52 }
 0x59a   : > { %16332 = vmatpush3.bf16.msra.mxu0 %v18354_v52 }
 0x59b   : > { %16333 = vmatprep.subr.bf16.mxu0 %v18355_v38 }
 0x59e   : > { %16334 = vmatpush3.bf16.msra.mxu0 %v18355_v38 }
 0x59f   : > { %16335 = vmatprep.subr.bf16.mxu0 %v18356_v19 }
 0x5a2   : > { %16336 = vmatpush3.bf16.msra.mxu0 %v18356_v19 }
 0x5a3   : > { %16337 = vmatprep.subr.bf16.mxu0 %v18357_v15 }
 0x5a6   : > { %16338 = vmatpush3.bf16.msra.mxu0 %v18357_v15 }
 0x5a7   : > { %16371 = vmatprep.subr.bf16.mxu0 %v20344_v29 }
 0x626   : > { %v16245_v21 = vpop.f32.mrb[0].mxu1 }
 0x627   : > { %v6565_v57 = vadd.f32 %v16245_v21, %v20347_v17  ;;  %v6396_v27 = vpop.f32.mrb[1].mxu1 }
 0x628   : > { %v6563_v42 = vadd.f32 %v20347_v17, %v6396_v27  ;;  %v16246_v45 = vpop.f32.mrb[2].mxu1 }
 0x629   : > { %v6597_v39 = vmax.f32 %v6565_v57, 0.0  ;;  %v20352_v47 = vadd.f32 %v16246_v45, %v20347_v17  ;;  %v6399_v43 = vpop.f32.mrb[3].mxu1 }
 0x62a   : > { %v6595_v35 = vmax.f32 %v6563_v42, 0.0  ;;  %v6564_v26 = vadd.f32 %v20347_v17, %v6399_v43 }
 0x62b   : > { %6629 = vst [vmem:[#allocation2 + $0xa0] sm:$0xff] %v6597_v39  ;;  %v6598_v10 = vmax.f32 %v20352_v47, 0.0 }
 0x62c   : > { %6627 = vst [vmem:[#allocation2 + $0x90] sm:$0xff] %v6595_v35  ;;  %v6596_v3 = vmax.f32 %v6564_v26, 0.0 }
 0x62d   : > { %6630 = vst [vmem:[#allocation2 + $0xa8] sm:$0xff] %v6598_v10 }
 0x62e   : > { %6628 = vst [vmem:[#allocation2 + $0x98] sm:$0xff] %v6596_v3  ;;  %v16249_v8 = vpop.f32.mrb[4].mxu1 }
 0x62f   : > { %v6569_v50 = vadd.f32 %v16249_v8, %v20347_v17  ;;  %v6412_v32 = vpop.f32.mrb[5].mxu1 }
 0x630   : > { %v6567_v9 = vadd.f32 %v20347_v17, %v6412_v32  ;;  %v16250_v12 = vpop.f32.mrb[6].mxu1 }
 0x631   : > { %v6601_v54 = vmax.f32 %v6569_v50, 0.0  ;;  %v20361_v18 = vadd.f32 %v16250_v12, %v20347_v17  ;;  %v6415_v1 = vpop.f32.mrb[7].mxu1 }
 0x632   : > { %v6599_v62 = vmax.f32 %v6567_v9, 0.0  ;;  %v6568_v28 = vadd.f32 %v20347_v17, %v6415_v1 }
 0x633   : > { %6633 = vst [vmem:[#allocation2 + $0xc0] sm:$0xff] %v6601_v54  ;;  %v6602_v14 = vmax.f32 %v20361_v18, 0.0 }
 0x634   : > { %6631 = vst [vmem:[#allocation2 + $0xb0] sm:$0xff] %v6599_v62  ;;  %v6600_v60 = vmax.f32 %v6568_v28, 0.0  ;;  %v6661_v58 = vld [vmem:[#allocation2 + $0xa2] sm:$0xff] }
 0x635   : > { %6634 = vst [vmem:[#allocation2 + $0xc8] sm:$0xff] %v6602_v14  ;;  %v6660_v53 = vld [vmem:[#allocation2 + $0x9a] sm:$0xff]  ;;  %v6659_v44 = vld [vmem:[#allocation2 + $0x92] sm:$0xff]  ;;  %v6729_v4 = vmax.f32 %v6597_v39, %v6661_v58 }
 0x636   : > { %6632 = vst [vmem:[#allocation2 + $0xb8] sm:$0xff] %v6600_v60  ;;  %v16253_v16 = vpop.f32.mrb[8].mxu1  ;;  %v6728_v24 = vmax.f32 %v6596_v3, %v6660_v53  ;;  %v6727_v48 = vmax.f32 %v6595_v35, %v6659_v44 }
 0x637   : > { %v6573_v6 = vadd.f32 %v16253_v16, %v20347_v17  ;;  %v6428_v31 = vpop.f32.mrb[9].mxu1 }
 0x638   : > { %v6571_v34 = vadd.f32 %v20347_v17, %v6428_v31  ;;  %v16254_v13 = vpop.f32.mrb[10].mxu1 }
 0x639   : > { %v6605_v41 = vmax.f32 %v6573_v6, 0.0  ;;  %v20368_v23 = vadd.f32 %v16254_v13, %v20347_v17  ;;  %v6431_v0 = vpop.f32.mrb[11].mxu1 }
 0x63a   : > { %v6603_v25 = vmax.f32 %v6571_v34, 0.0  ;;  %v6572_v63 = vadd.f32 %v20347_v17, %v6431_v0 }
 0x63b   : > { %6637 = vst [vmem:[#allocation2 + $0xe0] sm:$0xff] %v6605_v41  ;;  %v6606_v7 = vmax.f32 %v20368_v23, 0.0  ;;  %v6662_v42 = vld [vmem:[#allocation2 + $0xaa] sm:$0xff] }
 0x63c   : > { %6635 = vst [vmem:[#allocation2 + $0xd0] sm:$0xff] %v6603_v25  ;;  %v6604_v61 = vmax.f32 %v6572_v63, 0.0  ;;  %v6665_v11 = vld [vmem:[#allocation2 + $0xc2] sm:$0xff]  ;;  %v6730_v50 = vmax.f32 %v6598_v10, %v6662_v42 }
 0x63d   : > { %v6664_v30 = vld [vmem:[#allocation2 + $0xba] sm:$0xff]  ;;  %6638 = vst [vmem:[#allocation2 + $0xe8] sm:$0xff] %v6606_v7  ;;  %v6663_v51 = vld [vmem:[#allocation2 + $0xb2] sm:$0xff]  ;;  %v6733_v37 = vmax.f32 %v6601_v54, %v6665_v11 }
 0x63e   : > { %v6732_v20 = vmax.f32 %v6600_v60, %v6664_v30  ;;  %6636 = vst [vmem:[#allocation2 + $0xd8] sm:$0xff] %v6604_v61  ;;  %v16257_v55 = vpop.f32.mrb[12].mxu1  ;;  %v6731_v22 = vmax.f32 %v6599_v62, %v6663_v51 }
 0x63f   : > { %v20375_v36 = vadd.f32 %v16257_v55, %v20347_v17  ;;  %v6444_v46 = vpop.f32.mrb[13].mxu1  ;;  %v6793_v59 = vmax.f32 %v6729_v4, %v6733_v37 }
 0x640   : > { %v6792_v52 = vmax.f32 %v6728_v24, %v6732_v20  ;;  %v20378_v38 = vadd.f32 %v20347_v17, %v6444_v46  ;;  %v16258_v19 = vpop.f32.mrb[14].mxu1  ;;  %v6791_v15 = vmax.f32 %v6727_v48, %v6731_v22 }
 0x641   : > { %v6609_v21 = vmax.f32 %v20375_v36, 0.0  ;;  %v20382_v57 = vadd.f32 %v16258_v19, %v20347_v17  ;;  %v6447_v27 = vpop.f32.mrb[15].mxu1  ;;  %6825 = vst [vmem:[#allocation2 + $0xa0] sm:$0xff] %v6793_v59 }
 0x642   : > { %v6607_v45 = vmax.f32 %v20378_v38, 0.0  ;;  %v6576_v39 = vadd.f32 %v20347_v17, %v6447_v27  ;;  %6823 = vst [vmem:[#allocation2 + $0x90] sm:$0xff] %v6791_v15  ;;  %6824 = vst [vmem:[#allocation2 + $0x98] sm:$0xff] %v6792_v52  ;;  %v7052_v43 = vpack.c.bf16 %v6792_v52, %v6791_v15 }
 0x643   : > { %6641 = vst [vmem:[#allocation2 + $0x100] sm:$0xff] %v6609_v21  ;;  %v6610_v35 = vmax.f32 %v20382_v57, 0.0  ;;  %v6666_v26 = vld [vmem:[#allocation2 + $0xca] sm:$0xff] }
 0x644   : > { %6639 = vst [vmem:[#allocation2 + $0xf0] sm:$0xff] %v6607_v45  ;;  %v6608_v3 = vmax.f32 %v6576_v39, 0.0  ;;  %16299 = vmatprep.mubr.bf16.mxu0 %v7052_v43  ;;  %v6669_v8 = vld [vmem:[#allocation2 + $0xe2] sm:$0xff]  ;;  %v6734_v32 = vmax.f32 %v6602_v14, %v6666_v26 }
 0x645   : > { %v6668_v9 = vld [vmem:[#allocation2 + $0xda] sm:$0xff]  ;;  %6642 = vst [vmem:[#allocation2 + $0x108] sm:$0xff] %v6610_v35  ;;  %v6667_v12 = vld [vmem:[#allocation2 + $0xd2] sm:$0xff]  ;;  %v6737_v54 = vmax.f32 %v6605_v41, %v6669_v8 }
 0x646   : > { %v6736_v18 = vmax.f32 %v6604_v61, %v6668_v9  ;;  %6640 = vst [vmem:[#allocation2 + $0xf8] sm:$0xff] %v6608_v3  ;;  %v16261_v1 = vpop.f32.mrb[16].mxu1  ;;  %v6735_v62 = vmax.f32 %v6603_v25, %v6667_v12  ;;  %v6794_v28 = vmax.f32 %v6730_v50, %v6734_v32 }
 0x647   : > { %v20392_v60 = vadd.f32 %v16261_v1, %v20347_v17  ;;  %v6460_v16 = vpop.f32.mrb[17].mxu1  ;;  %v6797_v6 = vmax.f32 %v6733_v37, %v6737_v54 }
 0x648   : > { %v6796_v31 = vmax.f32 %v6732_v20, %v6736_v18  ;;  %v20395_v47 = vadd.f32 %v20347_v17, %v6460_v16  ;;  %v16262_v10 = vpop.f32.mrb[18].mxu1  ;;  %v6795_v14 = vmax.f32 %v6731_v22, %v6735_v62  ;;  %6826 = vst [vmem:[#allocation2 + $0xa8] sm:$0xff] %v6794_v28  ;;  %v7053_v34 = vpack.c.bf16 %v6794_v28, %v6793_v59 }
 0x649   : > { %v6613_v13 = vmax.f32 %v20392_v60, 0.0  ;;  %v20399_v41 = vadd.f32 %v16262_v10, %v20347_v17  ;;  %v6463_v0 = vpop.f32.mrb[19].mxu1  ;;  %6829 = vst [vmem:[#allocation2 + $0xc0] sm:$0xff] %v6797_v6 }
 0x64a   : > { %v6611_v25 = vmax.f32 %v20395_v47, 0.0  ;;  %v6580_v63 = vadd.f32 %v20347_v17, %v6463_v0  ;;  %6828 = vst [vmem:[#allocation2 + $0xb8] sm:$0xff] %v6796_v31  ;;  %16300 = vmatmul.mubr.bf16.gmra.mrb[40].mxu0 %v7053_v34  ;;  %6827 = vst [vmem:[#allocation2 + $0xb0] sm:$0xff] %v6795_v14  ;;  %v7054_v58 = vpack.c.bf16 %v6796_v31, %v6795_v14 }
 0x64b   : > { %6645 = vst [vmem:[#allocation2 + $0x120] sm:$0xff] %v6613_v13  ;;  %v6614_v53 = vmax.f32 %v20399_v41, 0.0  ;;  %v6670_v44 = vld [vmem:[#allocation2 + $0xea] sm:$0xff] }
 0x64c   : > { %6643 = vst [vmem:[#allocation2 + $0x110] sm:$0xff] %v6611_v25  ;;  %v6612_v61 = vmax.f32 %v6580_v63, 0.0  ;;  %v6673_v11 = vld [vmem:[#allocation2 + $0x102] sm:$0xff]  ;;  %v6766_v30 = vmax.f32 %v6606_v7, %v6670_v44  ;;  %16303 = vmatprep.mubr.bf16.mxu0 %v7054_v58 }
 0x64d   : > { %v6672_v51 = vld [vmem:[#allocation2 + $0xfa] sm:$0xff]  ;;  %6646 = vst [vmem:[#allocation2 + $0x128] sm:$0xff] %v6614_v53  ;;  %v6671_v4 = vld [vmem:[#allocation2 + $0xf2] sm:$0xff]  ;;  %v6741_v37 = vmax.f32 %v6609_v21, %v6673_v11 }
 0x64e   : > { %v6740_v24 = vmax.f32 %v6608_v3, %v6672_v51  ;;  %6644 = vst [vmem:[#allocation2 + $0x118] sm:$0xff] %v6612_v61  ;;  %v6739_v20 = vmax.f32 %v6607_v45, %v6671_v4  ;;  %v16265_v55 = vpop.f32.mrb[20].mxu1  ;;  %v6798_v48 = vmax.f32 %v6734_v32, %v6766_v30 }
 0x64f   : > { %v20409_v22 = vadd.f32 %v16265_v55, %v20347_v17  ;;  %v6476_v36 = vpop.f32.mrb[21].mxu1  ;;  %v6801_v46 = vmax.f32 %v6737_v54, %v6741_v37 }
 0x650   : > { %v6800_v59 = vmax.f32 %v6736_v18, %v6740_v24  ;;  %v6799_v23 = vmax.f32 %v6735_v62, %v6739_v20  ;;  %v20412_v7 = vadd.f32 %v20347_v17, %v6476_v36  ;;  %v16266_v52 = vpop.f32.mrb[22].mxu1  ;;  %6830 = vst [vmem:[#allocation2 + $0xc8] sm:$0xff] %v6798_v48  ;;  %v7055_v38 = vpack.c.bf16 %v6798_v48, %v6797_v6 }
 0x651   : > { %v6617_v19 = vmax.f32 %v20409_v22, 0.0  ;;  %v20416_v15 = vadd.f32 %v16266_v52, %v20347_v17  ;;  %v6479_v21 = vpop.f32.mrb[23].mxu1  ;;  %6833 = vst [vmem:[#allocation2 + $0xe0] sm:$0xff] %v6801_v46 }
 0x652   : > { %6832 = vst [vmem:[#allocation2 + $0xd8] sm:$0xff] %v6800_v59  ;;  %v6615_v27 = vmax.f32 %v20412_v7, 0.0  ;;  %v6584_v42 = vadd.f32 %v20347_v17, %v6479_v21  ;;  %6831 = vst [vmem:[#allocation2 + $0xd0] sm:$0xff] %v6799_v23  ;;  %16304 = vmatmul.mubr.bf16.gmra.mrb[44].mxu0 %v7055_v38  ;;  %v7056_v45 = vpack.c.bf16 %v6800_v59, %v6799_v23 }
 0x653   : > { %6649 = vst [vmem:[#allocation2 + $0x140] sm:$0xff] %v6617_v19  ;;  %v6618_v39 = vmax.f32 %v20416_v15, 0.0  ;;  %v6674_v43 = vld [vmem:[#allocation2 + $0x10a] sm:$0xff] }
 0x654   : > { %6647 = vst [vmem:[#allocation2 + $0x130] sm:$0xff] %v6615_v27  ;;  %v6616_v26 = vmax.f32 %v6584_v42, 0.0  ;;  %v6677_v3 = vld [vmem:[#allocation2 + $0x122] sm:$0xff]  ;;  %16307 = vmatprep.mubr.bf16.mxu0 %v7056_v45  ;;  %v6742_v8 = vmax.f32 %v6610_v35, %v6674_v43 }
 0x655   : > { %v6676_v50 = vld [vmem:[#allocation2 + $0x11a] sm:$0xff]  ;;  %v6675_v32 = vld [vmem:[#allocation2 + $0x112] sm:$0xff]  ;;  %6650 = vst [vmem:[#allocation2 + $0x148] sm:$0xff] %v6618_v39  ;;  %v6773_v9 = vmax.f32 %v6613_v13, %v6677_v3 }
 0x656   : > { %v6744_v12 = vmax.f32 %v6612_v61, %v6676_v50  ;;  %v6743_v54 = vmax.f32 %v6611_v25, %v6675_v32  ;;  %6648 = vst [vmem:[#allocation2 + $0x138] sm:$0xff] %v6616_v26  ;;  %v16269_v18 = vpop.f32.mrb[24].mxu1  ;;  %v20425_v1 = vmax.f32 %v6766_v30, %v6742_v8 }
 0x657   : > { %v6805_v62 = vmax.f32 %v6741_v37, %v6773_v9  ;;  %v20428_v28 = vadd.f32 %v16269_v18, %v20347_v17  ;;  %v6492_v60 = vpop.f32.mrb[25].mxu1 }
 0x658   : > { %22567 = vst [vmem:[#allocation32_spill] sm:$0xff] %v20425_v1  ;;  %v6804_v16 = vmax.f32 %v6740_v24, %v6744_v12  ;;  %v6803_v57 = vmax.f32 %v6739_v20, %v6743_v54  ;;  %v20431_v35 = vadd.f32 %v20347_v17, %v6492_v60  ;;  %v16270_v6 = vpop.f32.mrb[26].mxu1  ;;  %6834 = vst [vmem:[#allocation2 + $0xe8] sm:$0xff] %v20425_v1 }
 0x659   : > { %v7057_v31 = vpack.c.bf16 %v20425_v1, %v6801_v46  ;;  %6837 = vst [vmem:[#allocation2 + $0x100] sm:$0xff] %v6805_v62  ;;  %v6621_v47 = vmax.f32 %v20428_v28, 0.0  ;;  %v20437_v10 = vadd.f32 %v16270_v6, %v20347_v17  ;;  %v6495_v14 = vpop.f32.mrb[27].mxu1  ;;  %v6790_v60 = vmax.f32 %v20234_v56, %v20335_v40 }
 0x65a   : > { %6836 = vst [vmem:[#allocation2 + $0xf8] sm:$0xff] %v6804_v16  ;;  %6835 = vst [vmem:[#allocation2 + $0xf0] sm:$0xff] %v6803_v57  ;;  %v6619_v34 = vmax.f32 %v20431_v35, 0.0  ;;  %v6588_v13 = vadd.f32 %v20347_v17, %v6495_v14  ;;  %v7058_v0 = vpack.c.bf16 %v6804_v16, %v6803_v57  ;;  %v6919_v16 = vld [vmem:[#allocation2 + $0x4c] sm:$0xff]  ;;  %v20462_v57 = vld [vmem:[#allocation2 + $0x54] sm:$0xff] }
 0x65b   : > { %16308 = vmatmul.mubr.bf16.gmra.mrb[48].mxu0 %v7057_v31  ;;  %6653 = vst [vmem:[#allocation2 + $0x160] sm:$0xff] %v6621_v47  ;;  %v6622_v25 = vmax.f32 %v20437_v10, 0.0  ;;  %v6678_v63 = vld [vmem:[#allocation2 + $0x12a] sm:$0xff] }
 0x65c   : > { %6651 = vst [vmem:[#allocation2 + $0x150] sm:$0xff] %v6619_v34  ;;  %v6620_v58 = vmax.f32 %v6588_v13, 0.0  ;;  %v6681_v44 = vld [vmem:[#allocation2 + $0x142] sm:$0xff]  ;;  %v6746_v61 = vmax.f32 %v6614_v53, %v6678_v63  ;;  %16311 = vmatprep.mubr.bf16.mxu0 %v7058_v0 }
 0x65d   : > { %v6680_v11 = vld [vmem:[#allocation2 + $0x13a] sm:$0xff]  ;;  %6654 = vst [vmem:[#allocation2 + $0x168] sm:$0xff] %v6622_v25  ;;  %v6749_v30 = vmax.f32 %v6617_v19, %v6681_v44  ;;  %v6679_v51 = vld [vmem:[#allocation2 + $0x132] sm:$0xff]  ;;  %v22571_v0 = vld [vmem:[#allocation9_spill] sm:$0xff] }
 0x65e   : > { %v6748_v4 = vmax.f32 %v6616_v26, %v6680_v11  ;;  %6652 = vst [vmem:[#allocation2 + $0x158] sm:$0xff] %v6620_v58  ;;  %v16273_v37 = vpop.f32.mrb[28].mxu1  ;;  %v6806_v24 = vmax.f32 %v6742_v8, %v6746_v61  ;;  %v6747_v20 = vmax.f32 %v6615_v27, %v6679_v51  ;;  %vm6855_vm9 = vcmp.ge.s32.totalorder %v22571_v0, 4 }
 0x65f   : > { %v6593_v55 = vadd.f32 %v16273_v37, %v20347_v17  ;;  %v6508_v48 = vpop.f32.mrb[29].mxu1  ;;  %v6809_v22 = vmax.f32 %v6773_v9, %v6749_v30  ;;  %vm20482_vm12 = vmpackc.low %vm22574_vm2, %vm6855_vm9  ;;  %v22597_v0 = vmov 0 }
 0x660   : > { %v6808_v36 = vmax.f32 %v6744_v12, %v6748_v4  ;;  %v6591_v41 = vadd.f32 %v20347_v17, %v6508_v48  ;;  %v16274_v53 = vpop.f32.mrb[30].mxu1  ;;  %6838 = vst [vmem:[#allocation2 + $0x108] sm:$0xff] %v6806_v24  ;;  %v7059_v46 = vpack.c.bf16 %v6806_v24, %v6805_v62  ;;  %v20448_v59 = vmax.f32 %v6743_v54, %v6747_v20  ;;  %v20494_v48 = vld [vmem:[#allocation2 + $0x64] sm:$0xff]  ;;  %v18401_v24 = vld [vmem:[#allocation3 + $0x658] sm:$0xff]  }
 0x661   : > { %v6625_v23 = vmax.f32 %v6593_v55, 0.0  ;;  %v6594_v7 = vadd.f32 %v16274_v53, %v20347_v17  ;;  %6841 = vst [vmem:[#allocation2 + $0x120] sm:$0xff] %v6809_v22  ;;  %v6511_v52 = vpop.f32.mrb[31].mxu1  ;;  %v20492_v55 = vld [vmem:[#allocation2 + $0x5c] sm:$0xff]  ;;  %v22578_v53 = vld [vmem:[#allocation11_spill] sm:$0xff] }
 0x662   : > { %22568 = vst [vmem:[#allocation27_spill] sm:$0xff] %v20448_v59  ;;  %6840 = vst [vmem:[#allocation2 + $0x118] sm:$0xff] %v6808_v36  ;;  %v6623_v38 = vmax.f32 %v6591_v41, 0.0  ;;  %v6592_v19 = vadd.f32 %v20347_v17, %v6511_v52  ;;  %v7060_v21 = vpack.c.bf16 %v6808_v36, %v20448_v59  ;;  %v20497_v36 = vld [vmem:[#allocation2 + $0x6c] sm:$0xff]  ;;  %v20499_v41 = vld [vmem:[#allocation2 + $0x74] sm:$0xff]  ;;  %vm6859_vm0 = vcmp.ge.s32.totalorder %v22578_v53, 4 }
 0x663   : > { %16312 = vmatmul.mubr.bf16.gmra.mrb[52].mxu0 %v7059_v46  ;;  %6839 = vst [vmem:[#allocation2 + $0x110] sm:$0xff] %v20448_v59  ;;  %6657 = vst [vmem:[#allocation2 + $0x180] sm:$0xff] %v6625_v23  ;;  %v6626_v27 = vmax.f32 %v6594_v7, 0.0  ;;  %v6682_v42 = vld [vmem:[#allocation2 + $0x14a] sm:$0xff]  ;;  %v14131_v46 = vpack.c.bf16 %v20494_v48, %v20492_v55  ;;  %v14134_v7 = vpack.c.bf16 %v20499_v41, %v20497_v36 }
 0x664   : > { %6655 = vst [vmem:[#allocation2 + $0x170] sm:$0xff] %v6623_v38  ;;  %v6685_v45 = vld [vmem:[#allocation2 + $0x162] sm:$0xff]  ;;  %v6750_v43 = vmax.f32 %v6618_v39, %v6682_v42  ;;  %v6624_v26 = vmax.f32 %v6592_v19, 0.0  ;;  %16315 = vmatprep.mubr.bf16.mxu0 %v7060_v21  ;;  %v6789_v39 = vmax.f32 %v20234_v56, %v20331_v33  ;;  %vm20512_vm15 = vmpackc.low %vm22574_vm2, %vm6859_vm0  ;;  %v14184_v59 = vpack.c.bf16 %v20492_v55, %v20462_v57 }
 0x665   : > { %v6684_v3 = vld [vmem:[#allocation2 + $0x15a] sm:$0xff]  ;;  %6658 = vst [vmem:[#allocation2 + $0x188] sm:$0xff] %v6626_v27  ;;  %v6753_v8 = vmax.f32 %v6621_v47, %v6685_v45  ;;  %v6683_v50 = vld [vmem:[#allocation2 + $0x152] sm:$0xff]  ;;  %v20524_v42 = vld [vmem:[#allocation2 + $0x84] sm:$0xff]  ;;  %v22636_v55 = vmov 0 }
 0x666   : > { %v6752_v17 = vmax.f32 %v6620_v58, %v6684_v3  ;;  %v6810_v32 = vmax.f32 %v6746_v61, %v6750_v43  ;;  %6656 = vst [vmem:[#allocation2 + $0x178] sm:$0xff] %v6624_v26  ;;  %v6751_v9 = vmax.f32 %v6619_v34, %v6683_v50  ;;  %v20466_v47 = vld [vmem:[#allocation2] sm:$0xff]  ;;  %v20531_v3 = vld [vmem:[#allocation2 + $0x94] sm:$0xff]  ;;  %v18403_v52 = vld [vmem:[#allocation3 + $0x668] sm:$0xff]  }
 0x667   : > { %v6813_v12 = vmax.f32 %v6749_v30, %v6753_v8  ;;  %22570 = vst [vmem:[#allocation56_spill] sm:$0xff] %v20466_v47  ;;  %v6787_v14 = vmax.f32 %v20466_v47, %v20322_v5  ;;  %v6788_v33 = vmax.f32 %v20466_v47, %v20324_v2  ;;  %v20521_v19 = vld [vmem:[#allocation2 + $0x7c] sm:$0xff]  ;;  %v22584_v45 = vld [vmem:[#allocation13_spill] sm:$0xff] }
 0x668   : > { %v6812_v54 = vmax.f32 %v6748_v4, %v6752_v17  ;;  %6842 = vst [vmem:[#allocation2 + $0x128] sm:$0xff] %v6810_v32  ;;  %v6811_v18 = vmax.f32 %v6747_v20, %v6751_v9  ;;  %v7061_v62 = vpack.c.bf16 %v6810_v32, %v6809_v22  ;;  %v22577_v22 = vld [vmem:[#allocation10_spill] sm:$0xff]  ;;  %v22583_v21 = vld [vmem:[#allocation12_spill] sm:$0xff]  ;;  %vm6863_vm5 = vcmp.ge.s32.totalorder %v22584_v45, 4 }
 0x669   : > { %6845 = vst [vmem:[#allocation2 + $0x140] sm:$0xff] %v6813_v12  ;;  %vm6857_vm4 = vcmp.ge.s32.totalorder %v22577_v22, 4  ;;  %vm6861_vm3 = vcmp.ge.s32.totalorder %v22583_v21, 4  ;;  %vm20539_vm13 = vmpackc.low %vm22574_vm2, %vm6863_vm5  ;;  %v18361_v50 = vld [vmem:[#allocation3 + $0x518] sm:$0xff]   ;;  %v22589_v32 = vld [vmem:[#allocation14_spill] sm:$0xff]  ;;  %v22605_v22 = vmov 0 }
 0x66a   : > { %6843 = vst [vmem:[#allocation2 + $0x130] sm:$0xff] %v6811_v18  ;;  %6844 = vst [vmem:[#allocation2 + $0x138] sm:$0xff] %v6812_v54  ;;  %v20456_v15 = vpack.c.bf16 %v6812_v54, %v6811_v18  ;;  %vm6865_vm10 = vcmp.ge.s32.totalorder %v22589_v32, 4  ;;  %v22590_v54 = vld [vmem:[#allocation15_spill] sm:$0xff]  ;;  %v20556_v18 = vld [vmem:[#allocation2 + $0xac] sm:$0xff]  ;;  %v22613_v32 = vmov 0 }
 0x66b   : > { %16316 = vmatmul.mubr.bf16.gmra.mrb[56].mxu0 %v7061_v62  ;;  %v6686_v28 = vld [vmem:[#allocation2 + $0x16a] sm:$0xff]  ;;  %vm20505_vm1 = vmpackc.low %vm22574_vm2, %vm6857_vm4  ;;  %vm6867_vm8 = vcmp.ge.s32.totalorder %v22590_v54, 4  ;;  %v20558_v62 = vld [vmem:[#allocation2 + $0xb4] sm:$0xff]  ;;  %v22616_v54 = vmov 0 }
 0x66c   : > { %22569 = vst [vmem:[#allocation29_spill] sm:$0xff] %v20456_v15  ;;  %v6689_v35 = vld [vmem:[#allocation2 + $0x182] sm:$0xff]  ;;  %v6690_v6 = vld [vmem:[#allocation2 + $0x18a] sm:$0xff]  ;;  %v6754_v31 = vmax.f32 %v6622_v25, %v6686_v28  ;;  %16319 = vmatprep.mubr.bf16.mxu0 %v20456_v15  ;;  %v14128_v25 = vpack.c.bf16 %v20462_v57, %v6919_v16  ;;  %vm20534_vm14 = vmpackc.low %vm22574_vm2, %vm6861_vm3  ;;  %v22629_v15 = vmov 0  ;;  %v14187_v57 = vpack.c.bf16 %v20497_v36, %v20494_v48 }
 0x66d   : > { %v6757_v34 = vmax.f32 %v6625_v23, %v6689_v35  ;;  %v6758_v56 = vmax.f32 %v6626_v27, %v6690_v6  ;;  %v6687_v40 = vld [vmem:[#allocation2 + $0x172] sm:$0xff]  ;;  %v6688_v13 = vld [vmem:[#allocation2 + $0x17a] sm:$0xff]  ;;  %vm20563_vm11 = vmpackc.low %vm22574_vm2, %vm6865_vm10  ;;  %v20578_v6 = vpack.c.bf16 %v20558_v62, %v20556_v18 }
 0x66e   : > { %v6814_v63 = vmax.f32 %v6750_v43, %v6754_v31  ;;  %v6755_v58 = vmax.f32 %v6623_v38, %v6687_v40  ;;  %v6756_v10 = vmax.f32 %v6624_v26, %v6688_v13  ;;  %v18359_v38 = vld [vmem:[#allocation3 + $0x508] sm:$0xff]   ;;  %v18360_v27 = vld [vmem:[#allocation3 + $0x510] sm:$0xff]   ;;  %v14137_v43 = vpack.c.bf16 %v20524_v42, %v20521_v19  ;;  %vm20572_vm6 = vmpackc.low %vm22574_vm2, %vm6867_vm8 }
 0x66f   : > { %v6817_v44 = vmax.f32 %v6753_v8, %v6757_v34  ;;  %v6818_v61 = vmax.f32 %v6754_v31, %v6758_v56  ;;  %v6821_v11 = vmax.f32 %v6757_v34, %v6789_v39  ;;  %v6822_v5 = vmax.f32 %v6758_v56, %v6790_v60  ;;  %v20529_v26 = vld [vmem:[#allocation2 + $0x8c] sm:$0xff]  ;;  %v20560_v39 = vld [vmem:[#allocation2 + $0x9c] sm:$0xff]  ;;  %v22596_v34 = vld [vmem:[#allocation17_spill] sm:$0xff] }
 0x670   : > { %6846 = vst [vmem:[#allocation2 + $0x148] sm:$0xff] %v6814_v63  ;;  %v20475_v30 = vmax.f32 %v6751_v9, %v6755_v58  ;;  %v20477_v2 = vmax.f32 %v6752_v17, %v6756_v10  ;;  %v6819_v51 = vmax.f32 %v6755_v58, %v6787_v14  ;;  %v6820_v4 = vmax.f32 %v6756_v10, %v6788_v33  ;;  %v18362_v9 = vld [vmem:[#allocation3 + $0x520] sm:$0xff]   ;;  %v18363_v35 = vld [vmem:[#allocation3 + $0x528] sm:$0xff]   ;;  %v18364_v14 = vld [vmem:[#allocation3 + $0x530] sm:$0xff]  }
 0x671   : > { %6849 = vst [vmem:[#allocation2 + $0x160] sm:$0xff] %v6817_v44  ;;  %6850 = vst [vmem:[#allocation2 + $0x168] sm:$0xff] %v6818_v61  ;;  %v7063_v37 = vpack.c.bf16 %v6814_v63, %v6813_v12  ;;  %v20545_v17 = vpack.c.bf16 %v20531_v3, %v20529_v26  ;;  %v20553_v12 = vld [vmem:[#allocation2 + $0xa4] sm:$0xff]  ;;  %v22595_v31 = vld [vmem:[#allocation16_spill] sm:$0xff]  ;;  %vm6871_vm9 = vcmp.ge.s32.totalorder %v22596_v34, 4  ;;  %v22600_v58 = vmov 0 }
 0x672   : > { %22572 = vst [vmem:[#allocation30_spill] sm:$0xff] %v20475_v30  ;;  %22573 = vst [vmem:[#allocation34_spill] sm:$0xff] %v20477_v2  ;;  %v20569_v60 = vpack.c.bf16 %v20553_v12, %v20560_v39  ;;  %vm6869_vm7 = vcmp.ge.s32.totalorder %v22595_v31, 4  ;;  %v20587_v33 = vld [vmem:[#allocation2 + $0xc4] sm:$0xff]  ;;  %v20590_v56 = vld [vmem:[#allocation2 + $0xcc] sm:$0xff] }
 0x673   : > { %6854 = vst [vmem:[#allocation2 + $0x188] sm:$0xff] %v6822_v5  ;;  %6853 = vst [vmem:[#allocation2 + $0x180] sm:$0xff] %v6821_v11  ;;  %16320 = vmatmul.mubr.bf16.gmra.mrb[60].mxu0 %v7063_v37  ;;  %v20592_v40 = vld [vmem:[#allocation2 + $0xd4] sm:$0xff]  ;;  %v20594_v13 = vld [vmem:[#allocation2 + $0xbc] sm:$0xff] }
 0x674   : > { %6847 = vst [vmem:[#allocation2 + $0x150] sm:$0xff] %v20475_v30  ;;  %6848 = vst [vmem:[#allocation2 + $0x158] sm:$0xff] %v20477_v2  ;;  %16339 = vmatprep.mubr.msk.bf16.mxu0 %vm20482_vm12, %v14128_v25  ;;  %v20603_v63 = vpack.c.bf16 %v20587_v33, %v20594_v13  ;;  %v18365_v10 = vld [vmem:[#allocation3 + $0x538] sm:$0xff]   ;;  %v20612_v25 = vpack.c.bf16 %v20592_v40, %v20590_v56  ;;  %v22603_v44 = vld [vmem:[#allocation18_spill] sm:$0xff] }
 0x675   : > { %6851 = vst [vmem:[#allocation2 + $0x170] sm:$0xff] %v6819_v51  ;;  %6852 = vst [vmem:[#allocation2 + $0x178] sm:$0xff] %v6820_v4  ;;  %vm6873_vm3 = vcmp.ge.s32.totalorder %v22603_v44, 4  ;;  %v18366_v61 = vld [vmem:[#allocation3 + $0x540] sm:$0xff]   ;;  %v22604_v5 = vld [vmem:[#allocation19_spill] sm:$0xff] }
 0x676   : > { %vm20597_vm4 = vmpackc.low %vm22574_vm2, %vm6869_vm7  ;;  %v20621_v11 = vld [vmem:[#allocation2 + $0xe4] sm:$0xff]  ;;  %vm6875_vm5 = vcmp.ge.s32.totalorder %v22604_v5, 4  ;;  %v20624_v51 = vld [vmem:[#allocation2 + $0xec] sm:$0xff] }
 0x677   : > { %v22598_v0 = vsel %vm20597_vm4, 4294967295, %v22597_v0  ;;  %vm20606_vm0 = vmpackc.low %vm22574_vm2, %vm6871_vm9  ;;  %v20626_v4 = vld [vmem:[#allocation2 + $0xf4] sm:$0xff]  ;;  %v20628_v37 = vld [vmem:[#allocation2 + $0xdc] sm:$0xff] }
 0x678   : > { %22599 = vst [vmem:[#allocation57_spill] sm:$0xff] %v22598_v0  ;;  %v22601_v58 = vsel %vm20606_vm0, 4294967295, %v22600_v58  ;;  %vm20631_vm10 = vmpackc.low %vm22574_vm2, %vm6873_vm3  ;;  %v20637_v53 = vpack.c.bf16 %v20621_v11, %v20628_v37  ;;  %v20655_v21 = vld [vmem:[#allocation2 + $0x104] sm:$0xff]  ;;  %v20658_v45 = vld [vmem:[#allocation2 + $0x10c] sm:$0xff] }
 0x679   : > { %22602 = vst [vmem:[#allocation58_spill] sm:$0xff] %v22601_v58  ;;  %v22606_v22 = vsel %vm20631_vm10, 4294967295, %v22605_v22  ;;  %vm20640_vm8 = vmpackc.low %vm22574_vm2, %vm6875_vm5  ;;  %v22619_v31 = vld [vmem:[#allocation22_spill] sm:$0xff]  ;;  %v22620_v34 = vld [vmem:[#allocation23_spill] sm:$0xff] }
 0x67a   : > { %22607 = vst [vmem:[#allocation59_spill] sm:$0xff] %v22606_v22  ;;  %v20694_v44 = vld [vmem:[#allocation2 + $0x134] sm:$0xff]  ;;  %v20696_v5 = vld [vmem:[#allocation2 + $0x11c] sm:$0xff]  ;;  %v20723_v47 = vld [vmem:[#allocation2 + $0x144] sm:$0xff] }
 0x67b   : > { %16340 = vmatmul.mubr.msk.bf16.vlgmr.msra.gmra.mrb[32].mxu0 %vm20505_vm1, %v14131_v46  ;;  %v22608_v46 = vmov 0  ;;  %v22627_v20 = vld [vmem:[#allocation24_spill] sm:$0xff]  ;;  %v22628_v30 = vld [vmem:[#allocation25_spill] sm:$0xff]  ;;  %v18368_v36 = vld [vmem:[#allocation3 + $0x550] sm:$0xff]  }
 0x67c   : > { %16372 = vmatpush3.bf16.msra.mxu0 %v20344_v29  ;;  %16343 = vmatprep.mubr.msk.bf16.mxu0 %vm20512_vm15, %v14134_v7  ;;  %v22609_v46 = vsel %vm20640_vm8, 4294967295, %v22608_v46  ;;  %v20646_v7 = vpack.c.bf16 %v20626_v4, %v20624_v51  ;;  %v20726_v2 = vld [vmem:[#allocation2 + $0x13c] sm:$0xff]  ;;  %v22640_v48 = vld [vmem:[#allocation33_spill] sm:$0xff]  ;;  %v18384_v58 = vld [vmem:[#allocation3 + $0x5d0] sm:$0xff]  }
 0x67d   : > { %16373 = vmatprep.subr.bf16.mxu0 %v18359_v38  ;;  %22610 = vst [vmem:[#allocation60_spill] sm:$0xff] %v22609_v46  ;;  %v20737_v1 = vpack.c.bf16 %v20723_v47, %v20726_v2  ;;  %v8183_v0 = vld [vmem:[#allocation2 + $0xd0] sm:$0xff]  ;;  %v18402_v23 = vld [vmem:[#allocation3 + $0x660] sm:$0xff]   ;;  %v18405_v8 = vld [vmem:[#allocation3 + $0x678] sm:$0xff]  }
 0x67e   : > { %v18404_v29 = vld [vmem:[#allocation3 + $0x670] sm:$0xff]   ;;  %v18406_v28 = vld [vmem:[#allocation3 + $0x680] sm:$0xff]  }
 0x680   : > { %16374 = vmatpush3.bf16.msra.mxu0 %v18359_v38  ;;  %v22611_v38 = vld [vmem:[#allocation20_spill] sm:$0xff] }
 0x681   : > { %16375 = vmatprep.subr.bf16.mxu0 %v18360_v27  ;;  %vm6877_vm7 = vcmp.ge.s32.totalorder %v22611_v38, 4  ;;  %v22621_v38 = vmov 0 }
 0x682   : > { %vm20665_vm3 = vmpackc.low %vm22574_vm2, %vm6877_vm7  ;;  %vm6881_vm7 = vcmp.ge.s32.totalorder %v22619_v31, 4  ;;  %v22624_v31 = vmov 0 }
 0x683   : > { %16344 = vmatmul.mubr.msk.bf16.gmra.mrb[36].mxu0 %vm20534_vm14, %v14137_v43  ;;  %v20660_v43 = vld [vmem:[#allocation2 + $0x114] sm:$0xff]  ;;  %v22614_v32 = vsel %vm20665_vm3, 4294967295, %v22613_v32 }
 0x684   : > { %16347 = vmatprep.mubr.msk.bf16.mxu0 %vm20539_vm13, %v20545_v17  ;;  %16376 = vmatpush3.bf16.msra.mxu0 %v18360_v27  ;;  %v22612_v27 = vld [vmem:[#allocation21_spill] sm:$0xff]  ;;  %22615 = vst [vmem:[#allocation61_spill] sm:$0xff] %v22614_v32 }
 0x685   : > { %16377 = vmatprep.subr.bf16.mxu0 %v18361_v50  ;;  %vm6879_vm9 = vcmp.ge.s32.totalorder %v22612_v27, 4 }
 0x686   : > { %vm20674_vm5 = vmpackc.low %vm22574_vm2, %vm6879_vm9  ;;  %vm6883_vm9 = vcmp.ge.s32.totalorder %v22620_v34, 4 }
 0x687   : > { %v22617_v54 = vsel %vm20674_vm5, 4294967295, %v22616_v54 }
 0x688   : > { %16378 = vmatpush3.bf16.msra.mxu0 %v18361_v50  ;;  %v20662_v50 = vld [vmem:[#allocation2 + $0xfc] sm:$0xff]  ;;  %22618 = vst [vmem:[#allocation62_spill] sm:$0xff] %v22617_v54 }
 0x689   : > { %16379 = vmatprep.subr.bf16.mxu0 %v18362_v9 }
 0x68b   : > { %16348 = vmatmul.mubr.msk.bf16.gmra.mrb[40].mxu0 %vm20563_vm11, %v20569_v60 }
 0x68c   : > { %16351 = vmatprep.mubr.msk.bf16.mxu0 %vm20572_vm6, %v20578_v6  ;;  %16380 = vmatpush3.bf16.msra.mxu0 %v18362_v9  ;;  %v20671_v9 = vpack.c.bf16 %v20655_v21, %v20662_v50 }
 0x68d   : > { %16381 = vmatprep.subr.bf16.mxu0 %v18363_v35 }
 0x690   : > { %16382 = vmatpush3.bf16.msra.mxu0 %v18363_v35  ;;  %v20680_v35 = vpack.c.bf16 %v20660_v43, %v20658_v45 }
 0x691   : > { %16383 = vmatprep.subr.bf16.mxu0 %v18364_v14 }
 0x693   : > { %16352 = vmatmul.mubr.msk.bf16.gmra.mrb[44].mxu0 %vm20597_vm4, %v20603_v63 }
 0x694   : > { %16355 = vmatprep.mubr.msk.bf16.mxu0 %vm20606_vm0, %v20612_v25  ;;  %16384 = vmatpush3.bf16.msra.mxu0 %v18364_v14  ;;  %v20689_v14 = vld [vmem:[#allocation2 + $0x124] sm:$0xff] }
 0x695   : > { %16385 = vmatprep.subr.bf16.mxu0 %v18365_v10  ;;  %v20705_v27 = vpack.c.bf16 %v20689_v14, %v20696_v5 }
 0x698   : > { %16386 = vmatpush3.bf16.msra.mxu0 %v18365_v10  ;;  %v20692_v10 = vld [vmem:[#allocation2 + $0x12c] sm:$0xff] }
 0x699   : > { %16419 = vmatprep.subr.bf16.mxu0 %v18366_v61  ;;  %v20714_v34 = vpack.c.bf16 %v20694_v44, %v20692_v10 }
 0x69b   : > { %16356 = vmatmul.mubr.msk.bf16.gmra.mrb[48].mxu0 %vm20631_vm10, %v20637_v53 }
 0x69c   : > { %16359 = vmatprep.mubr.msk.bf16.mxu0 %vm20640_vm8, %v20646_v7  ;;  %vm20699_vm8 = vmpackc.low %vm22574_vm2, %vm6881_vm7  ;;  %vm6885_vm7 = vcmp.ge.s32.totalorder %v22627_v20, 4  ;;  %v22632_v20 = vmov 0 }
 0x69d   : > { %v22622_v38 = vsel %vm20699_vm8, 4294967295, %v22621_v38 }
 0x69e   : > { %22623 = vst [vmem:[#allocation55_spill] sm:$0xff] %v22622_v38  ;;  %v14190_v38 = vpack.c.bf16 %v20521_v19, %v20499_v41  ;;  %v22642_v41 = vmov 0  ;;  %v14193_v19 = vpack.c.bf16 %v20529_v26, %v20524_v42  ;;  %v22646_v42 = vld [vmem:[#allocation36_spill] sm:$0xff] }
 0x69f   : > { %v18370_v26 = vld [vmem:[#allocation3 + $0x560] sm:$0xff]  }
 0x6a3   : > { %16360 = vmatmul.mubr.msk.bf16.gmra.mrb[52].mxu0 %vm20665_vm3, %v20671_v9  ;;  %vm20729_vm3 = vmpackc.low %vm22574_vm2, %vm6885_vm7 }
 0x6a4   : > { %16363 = vmatprep.mubr.msk.bf16.mxu0 %vm20674_vm5, %v20680_v35  ;;  %vm20708_vm5 = vmpackc.low %vm22574_vm2, %vm6883_vm9  ;;  %vm6888_vm9 = vcmp.lt.s32.totalorder %v22628_v30, 12  ;;  %v22630_v15 = vsel %vm20729_vm3, 4294967295, %v22629_v15  ;;  %v22634_v30 = vld [vmem:[#allocation28_spill] sm:$0xff] }
 0x6a5   : > { %v22625_v31 = vsel %vm20708_vm5, 4294967295, %v22624_v31  ;;  %22631 = vst [vmem:[#allocation48_spill] sm:$0xff] %v22630_v15  ;;  %vm6890_vm7 = vcmp.lt.s32.totalorder %v22634_v30, 12  ;;  %v22638_v15 = vmov 0  ;;  %v20785_v30 = vpack.c.bf16 %v20560_v39, %v20531_v3 }
 0x6a6   : > { %22626 = vst [vmem:[#allocation42_spill] sm:$0xff] %v22625_v31  ;;  %v22635_v31 = vld [vmem:[#allocation31_spill] sm:$0xff]  ;;  %vm20754_vm10 = vmpackc.low %vm6890_vm7, %vm22574_vm2  ;;  %vm6894_vm7 = vcmp.lt.s32.totalorder %v22640_v48, 12  ;;  %v20801_v3 = vpack.c.bf16 %v20556_v18, %v20553_v12  ;;  %v22650_v39 = vmov 0  ;;  %v18371_v48 = vld [vmem:[#allocation3 + $0x568] sm:$0xff]  }
 0x6a7   : > { %v22637_v55 = vsel %vm20754_vm10, 4294967295, %v22636_v55  ;;  %v22652_v12 = vld [vmem:[#allocation39_spill] sm:$0xff] }
 0x6a8   : > { %v18372_v18 = vld [vmem:[#allocation3 + $0x570] sm:$0xff]  }
 0x6ab   : > { %16364 = vmatmul.mubr.msk.bf16.gmra.mrb[56].mxu0 %vm20699_vm8, %v20705_v27  ;;  %vm6892_vm8 = vcmp.lt.s32.totalorder %v22635_v31, 12  ;;  %v22641_v31 = vld [vmem:[#allocation35_spill] sm:$0xff] }
 0x6ac   : > { %16367 = vmatprep.mubr.msk.bf16.mxu0 %vm20708_vm5, %v20714_v34  ;;  %vm20740_vm5 = vmpackc.low %vm6888_vm9, %vm22574_vm2 }
 0x6ad   : > { %v22633_v20 = vsel %vm20740_vm5, 4294967295, %v22632_v20  ;;  %vm20761_vm9 = vmpackc.low %vm6892_vm8, %vm22574_vm2 }
 0x6ae   : > { %v22639_v15 = vsel %vm20761_vm9, 4294967295, %v22638_v15 }
 0x6b3   : > { %16368 = vmatmul.mubr.msk.bf16.gmra.mrb[60].mxu0 %vm20729_vm3, %v20737_v1  ;;  %vm20772_vm3 = vmpackc.low %vm6894_vm7, %vm22574_vm2  ;;  %vm6898_vm7 = vcmp.lt.s32.totalorder %v22646_v42, 12  ;;  %v20836_v42 = vpack.c.bf16 %v20628_v37, %v20592_v40  ;;  %v20853_v40 = vpack.c.bf16 %v20624_v51, %v20621_v11  ;;  %v22662_v37 = vmov 0  ;;  %v22664_v11 = vld [vmem:[#allocation49_spill] sm:$0xff]  ;;  %v22665_v51 = vld [vmem:[#allocation51_spill] sm:$0xff] }
 0x6b4   : > { %16387 = vmatprep.mubr.msk.bf16.mxu0 %vm20740_vm5, %v14184_v59  ;;  %v18367_v59 = vld [vmem:[#allocation3 + $0x548] sm:$0xff]   ;;  %vm6896_vm5 = vcmp.lt.s32.totalorder %v22641_v31, 12  ;;  %v22643_v41 = vsel %vm20772_vm3, 4294967295, %v22642_v41 }
 0x6b5   : > { %vm20779_vm8 = vmpackc.low %vm6896_vm5, %vm22574_vm2  ;;  %v22653_v31 = vld [vmem:[#allocation41_spill] sm:$0xff] }
 0x6bb   : > { %16388 = vmatmul.mubr.msk.bf16.vlgmr.msra.gmra.mrb[32].mxu0 %vm20754_vm10, %v14187_v57  ;;  %v22647_v57 = vld [vmem:[#allocation37_spill] sm:$0xff] }
 0x6bc   : > { %16420 = vmatpush3.bf16.msra.mxu0 %v18366_v61  ;;  %16391 = vmatprep.mubr.msk.bf16.mxu0 %vm20761_vm9, %v14190_v38  ;;  %v22644_v61 = vmov 0  ;;  %v18369_v38 = vld [vmem:[#allocation3 + $0x558] sm:$0xff]   ;;  %vm6900_vm5 = vcmp.lt.s32.totalorder %v22647_v57, 12  ;;  %vm20795_vm9 = vmpackc.low %vm6898_vm7, %vm22574_vm2  ;;  %vm6902_vm7 = vcmp.lt.s32.totalorder %v22652_v12, 12  ;;  %v22660_v57 = vmov 0  ;;  %v18423_v12 = vld [vmem:[#allocation3 + $0x6c8] sm:$0xff]  }
 0x6bd   : > { %16421 = vmatprep.subr.bf16.mxu0 %v18367_v59  ;;  %v22645_v61 = vsel %vm20779_vm8, 4294967295, %v22644_v61 }
 0x6c0   : > { %16422 = vmatpush3.bf16.msra.mxu0 %v18367_v59  ;;  %v22648_v59 = vmov 0 }
 0x6c1   : > { %16423 = vmatprep.subr.bf16.mxu0 %v18368_v36  ;;  %v22649_v59 = vsel %vm20795_vm9, 4294967295, %v22648_v59 }
 0x6c3   : > { %16392 = vmatmul.mubr.msk.bf16.gmra.mrb[36].mxu0 %vm20772_vm3, %v14193_v19  ;;  %vm20804_vm3 = vmpackc.low %vm6900_vm5, %vm22574_vm2  ;;  %vm6904_vm5 = vcmp.lt.s32.totalorder %v22653_v31, 12  ;;  %v22654_v19 = vmov 0  ;;  %v22670_v31 = vld [vmem:[#allocation52_spill] sm:$0xff] }
 0x6c4   : > { %16395 = vmatprep.mubr.msk.bf16.mxu0 %vm20779_vm8, %v20785_v30  ;;  %16424 = vmatpush3.bf16.msra.mxu0 %v18368_v36  ;;  %v22651_v39 = vsel %vm20804_vm3, 4294967295, %v22650_v39  ;;  %v20810_v36 = vpack.c.bf16 %v20594_v13, %v20558_v62  ;;  %vm20821_vm8 = vmpackc.low %vm6902_vm7, %vm22574_vm2  ;;  %v20827_v62 = vpack.c.bf16 %v20590_v56, %v20587_v33  ;;  %v22656_v13 = vmov 0  ;;  %v22658_v33 = vld [vmem:[#allocation44_spill] sm:$0xff] }
 0x6c5   : > { %16425 = vmatprep.subr.bf16.mxu0 %v18369_v38  ;;  %v22655_v19 = vsel %vm20821_vm8, 4294967295, %v22654_v19  ;;  %vm6906_vm7 = vcmp.lt.s32.totalorder %v22658_v33, 12  ;;  %v18374_v56 = vld [vmem:[#allocation3 + $0x580] sm:$0xff]  }
 0x6c8   : > { %16426 = vmatpush3.bf16.msra.mxu0 %v18369_v38  ;;  %v18373_v38 = vld [vmem:[#allocation3 + $0x578] sm:$0xff]  }
 0x6c9   : > { %16427 = vmatprep.subr.bf16.mxu0 %v18370_v26 }
 0x6cb   : > { %16396 = vmatmul.mubr.msk.bf16.gmra.mrb[40].mxu0 %vm20795_vm9, %v20801_v3  ;;  %vm20830_vm9 = vmpackc.low %vm6904_vm5, %vm22574_vm2 }
 0x6cc   : > { %16399 = vmatprep.mubr.msk.bf16.mxu0 %vm20804_vm3, %v20810_v36  ;;  %16428 = vmatpush3.bf16.msra.mxu0 %v18370_v26  ;;  %v22657_v13 = vsel %vm20830_vm9, 4294967295, %v22656_v13  ;;  %v22659_v26 = vld [vmem:[#allocation46_spill] sm:$0xff]  ;;  %vm20847_vm3 = vmpackc.low %vm6906_vm7, %vm22574_vm2  ;;  %vm6910_vm7 = vcmp.lt.s32.totalorder %v22664_v11, 12 }
 0x6cd   : > { %16429 = vmatprep.subr.bf16.mxu0 %v18371_v48  ;;  %vm6908_vm5 = vcmp.lt.s32.totalorder %v22659_v26, 12  ;;  %v22661_v57 = vsel %vm20847_vm3, 4294967295, %v22660_v57  ;;  %v20980_v26 = vld [vmem:[#allocation2 + $0x164] sm:$0xff]  ;;  %v20982_v11 = vld [vmem:[#allocation2 + $0x16c] sm:$0xff] }
 0x6d0   : > { %16430 = vmatpush3.bf16.msra.mxu0 %v18371_v48  ;;  %v20862_v48 = vpack.c.bf16 %v20662_v50, %v20626_v4  ;;  %v20879_v4 = vpack.c.bf16 %v20658_v45, %v20655_v21  ;;  %v22671_v21 = vld [vmem:[#allocation54_spill] sm:$0xff]  ;;  %v18425_v45 = vld [vmem:[#allocation3 + $0x6d8] sm:$0xff]  }
 0x6d1   : > { %16431 = vmatprep.subr.bf16.mxu0 %v18372_v18  ;;  %v18424_v50 = vld [vmem:[#allocation3 + $0x6d0] sm:$0xff]  }
 0x6d3   : > { %16400 = vmatmul.mubr.msk.bf16.gmra.mrb[44].mxu0 %vm20821_vm8, %v20827_v62  ;;  %vm20856_vm8 = vmpackc.low %vm6908_vm5, %vm22574_vm2  ;;  %vm6912_vm5 = vcmp.lt.s32.totalorder %v22665_v51, 12  ;;  %v20984_v51 = vld [vmem:[#allocation2 + $0x174] sm:$0xff] }
 0x6d4   : > { %16403 = vmatprep.mubr.msk.bf16.mxu0 %vm20830_vm9, %v20836_v42  ;;  %16432 = vmatpush3.bf16.msra.mxu0 %v18372_v18  ;;  %v22663_v37 = vsel %vm20856_vm8, 4294967295, %v22662_v37  ;;  %vm20873_vm9 = vmpackc.low %vm6910_vm7, %vm22574_vm2  ;;  %v20888_v18 = vpack.c.bf16 %v20696_v5, %v20660_v43  ;;  %vm6914_vm7 = vcmp.lt.s32.totalorder %v22670_v31, 12  ;;  %v20905_v43 = vpack.c.bf16 %v20692_v10, %v20689_v14  ;;  %v7530_v14 = vld [vmem:[#allocation2 + $0x14c] sm:$0xff]  ;;  %v18426_v5 = vld [vmem:[#allocation3 + $0x6e0] sm:$0xff]  }
 0x6d5   : > { %16433 = vmatprep.subr.bf16.mxu0 %v18373_v38  ;;  %vm20882_vm10 = vmpackc.low %vm6912_vm5, %vm22574_vm2  ;;  %v20929_v33 = vpack.c.bf16 %v7530_v14, %v20723_v47  ;;  %v18377_v47 = vld [vmem:[#allocation3 + $0x598] sm:$0xff]   ;;  %v18427_v10 = vld [vmem:[#allocation3 + $0x6e8] sm:$0xff]  }
 0x6d6   : > { %vm20899_vm5 = vmpackc.low %vm6914_vm7, %vm22574_vm2  ;;  %vm6918_vm7 = vcmp.lt.s32.totalorder %v22519_v49, 12  ;;  %v18376_v49 = vld [vmem:[#allocation3 + $0x590] sm:$0xff]  }
 0x6d8   : > { %16434 = vmatpush3.bf16.msra.mxu0 %v18373_v38  ;;  %v20914_v38 = vpack.c.bf16 %v20726_v2, %v20694_v44  ;;  %v18375_v2 = vld [vmem:[#allocation3 + $0x588] sm:$0xff]  }
 0x6d9   : > { %16467 = vmatprep.subr.bf16.mxu0 %v18374_v56 }
 0x6db   : > { %16404 = vmatmul.mubr.msk.bf16.gmra.mrb[48].mxu0 %vm20847_vm3, %v20853_v40 }
 0x6dc   : > { %16407 = vmatprep.mubr.msk.bf16.mxu0 %vm20856_vm8, %v20862_v48  ;;  %vm6916_vm8 = vcmp.lt.s32.totalorder %v22671_v21, 12  ;;  %v20992_v21 = vpack.c.bf16 %v20984_v51, %v20982_v11 }
 0x6dd   : > { %vm20908_vm3 = vmpackc.low %vm6916_vm8, %vm22574_vm2 }
 0x6de   : > { %vm20924_vm8 = vmpackc.low %vm6918_vm7, %vm22574_vm2  ;;  %vm22678_vm2 = vnez %v22606_v22  ;;  %vm22679_vm7 = vnez %v22609_v46  ;;  %22684 = vst [vmem:[#allocation47_spill] sm:$0xff] %v20992_v21  ;;  %v8177_v46 = vld [vmem:[#allocation2 + $0xa0] sm:$0xff]  ;;  %v18383_v22 = vld [vmem:[#allocation3 + $0x5c8] sm:$0xff]  }
 0x6e3   : > { %16408 = vmatmul.mubr.msk.bf16.gmra.mrb[52].mxu0 %vm20873_vm9, %v20879_v4 }
 0x6e4   : > { %16411 = vmatprep.mubr.msk.bf16.mxu0 %vm20882_vm10, %v20888_v18 }
 0x6eb   : > { %16412 = vmatmul.mubr.msk.bf16.gmra.mrb[56].mxu0 %vm20899_vm5, %v20905_v43 }
 0x6ec   : > { %16415 = vmatprep.mubr.msk.bf16.mxu0 %vm20908_vm3, %v20914_v38 }
 0x6f3   : > { %16416 = vmatmul.mubr.msk.bf16.gmra.mrb[60].mxu0 %vm20924_vm8, %v20929_v33 }
 0x6f4   : > { %16435 = vmatprep.mubr.msk.bf16.mxu0 %vm20482_vm12, %v20545_v17  ;;  %v18378_v17 = vld [vmem:[#allocation3 + $0x5a0] sm:$0xff]  }
 0x6fb   : > { %16436 = vmatmul.mubr.msk.bf16.vlgmr.msra.gmra.mrb[32].mxu0 %vm20505_vm1, %v20569_v60  ;;  %v18379_v60 = vld [vmem:[#allocation3 + $0x5a8] sm:$0xff]  }
 0x6fc   : > { %16439 = vmatprep.mubr.msk.bf16.mxu0 %vm20512_vm15, %v20578_v6  ;;  %16468 = vmatpush3.bf16.msra.mxu0 %v18374_v56  ;;  %v18380_v6 = vld [vmem:[#allocation3 + $0x5b0] sm:$0xff]   ;;  %v20978_v56 = vld [vmem:[#allocation2 + $0x15c] sm:$0xff] }
 0x6fd   : > { %16469 = vmatprep.subr.bf16.mxu0 %v18375_v2  ;;  %v20988_v31 = vpack.c.bf16 %v20980_v26, %v20978_v56 }
 0x6ff   : > { %22683 = vst [vmem:[#allocation45_spill] sm:$0xff] %v20988_v31 }
 0x700   : > { %16470 = vmatpush3.bf16.msra.mxu0 %v18375_v2  ;;  %v22687_v2 = vld [vmem:[#allocation42_spill] sm:$0xff] }
 0x701   : > { %16471 = vmatprep.subr.bf16.mxu0 %v18376_v49 }
 0x703   : > { %16440 = vmatmul.mubr.msk.bf16.gmra.mrb[36].mxu0 %vm20534_vm14, %v20603_v63  ;;  %v18381_v63 = vld [vmem:[#allocation3 + $0x5b8] sm:$0xff]  }
 0x704   : > { %16443 = vmatprep.mubr.msk.bf16.mxu0 %vm20539_vm13, %v20612_v25  ;;  %16472 = vmatpush3.bf16.msra.mxu0 %v18376_v49  ;;  %v18382_v25 = vld [vmem:[#allocation3 + $0x5c0] sm:$0xff]  }
 0x705   : > { %16473 = vmatprep.subr.bf16.mxu0 %v18377_v47  ;;  %v21000_v49 = vld [vmem:[#allocation2 + $0x17c] sm:$0xff] }
 0x706   : > { %v22719_v16 = vld [vmem:[#allocation45_spill] sm:$0xff] }
 0x708   : > { %16474 = vmatpush3.bf16.msra.mxu0 %v18377_v47  ;;  %v21002_v47 = vld [vmem:[#allocation2 + $0x184] sm:$0xff] }
 0x709   : > { %16475 = vmatprep.subr.bf16.mxu0 %v18378_v17 }
 0x70b   : > { %16444 = vmatmul.mubr.msk.bf16.gmra.mrb[40].mxu0 %vm20563_vm11, %v20637_v53  ;;  %v20967_v53 = vld [vmem:[#allocation2 + $0x154] sm:$0xff] }
 0x70c   : > { %16447 = vmatprep.mubr.msk.bf16.mxu0 %vm20572_vm6, %v20646_v7  ;;  %16476 = vmatpush3.bf16.msra.mxu0 %v18378_v17  ;;  %v20970_v44 = vpack.c.bf16 %v20967_v53, %v7530_v14  ;;  %v22685_v14 = vld [vmem:[#allocation55_spill] sm:$0xff] }
 0x70d   : > { %16477 = vmatprep.subr.bf16.mxu0 %v18379_v60  ;;  %v8175_v17 = vld [vmem:[#allocation2 + $0x90] sm:$0xff] }
 0x70e   : > { %22680 = vst [vmem:[#allocation38_spill] sm:$0xff] %v20970_v44 }
 0x710   : > { %16478 = vmatpush3.bf16.msra.mxu0 %v18379_v60  ;;  %v8176_v60 = vld [vmem:[#allocation2 + $0x98] sm:$0xff] }
 0x711   : > { %16479 = vmatprep.subr.bf16.mxu0 %v18380_v6 }
 0x713   : > { %16448 = vmatmul.mubr.msk.bf16.gmra.mrb[44].mxu0 %vm20597_vm4, %v20671_v9  ;;  %vm22682_vm4 = vnez %v22617_v54  ;;  %v22690_v54 = vld [vmem:[#allocation48_spill] sm:$0xff] }
 0x714   : > { %16451 = vmatprep.mubr.msk.bf16.mxu0 %vm20606_vm0, %v20680_v35  ;;  %16480 = vmatpush3.bf16.msra.mxu0 %v18380_v6  ;;  %vm22681_vm0 = vnez %v22614_v32  ;;  %v21006_v6 = vpack.c.bf16 %v21002_v47, %v21000_v49  ;;  %v8179_v32 = vld [vmem:[#allocation2 + $0xb0] sm:$0xff] }
 0x715   : > { %16481 = vmatprep.subr.bf16.mxu0 %v18381_v63 }
 0x716   : > { %22689 = vst [vmem:[#allocation40_spill] sm:$0xff] %v21006_v6 }
 0x718   : > { %16482 = vmatpush3.bf16.msra.mxu0 %v18381_v63  ;;  %v8207_v63 = vpack.c.bf16 %v8176_v60, %v8175_v17  ;;  %v8184_v17 = vld [vmem:[#allocation2 + $0xd8] sm:$0xff]  ;;  %v8181_v60 = vld [vmem:[#allocation2 + $0xc0] sm:$0xff] }
 0x719   : > { %16515 = vmatprep.subr.bf16.mxu0 %v18382_v25 }
 0x71b   : > { %16452 = vmatmul.mubr.msk.bf16.gmra.mrb[48].mxu0 %vm22678_vm2, %v20705_v27  ;;  %vm22705_vm2 = vnez %v22643_v41 }
 0x71c   : > { %16455 = vmatprep.mubr.msk.bf16.mxu0 %vm22679_vm7, %v20714_v34  ;;  %vm22691_vm7 = vnez %v22690_v54 }
 0x723   : > { %16456 = vmatmul.mubr.msk.bf16.gmra.mrb[52].mxu0 %vm22681_vm0, %v20737_v1  ;;  %vm22686_vm0 = vnez %v22685_v14  ;;  %v8178_v14 = vld [vmem:[#allocation2 + $0xa8] sm:$0xff] }
 0x724   : > { %16459 = vmatprep.mubr.msk.bf16.mxu0 %vm22682_vm4, %v20970_v44  ;;  %vm22688_vm4 = vnez %v22687_v2  ;;  %v8180_v2 = vld [vmem:[#allocation2 + $0xb8] sm:$0xff]  ;;  %v8182_v44 = vld [vmem:[#allocation2 + $0xc8] sm:$0xff] }
 0x725   : > { %v8210_v54 = vpack.c.bf16 %v8182_v44, %v8181_v60  ;;  %v18389_v60 = vld [vmem:[#allocation3 + $0x5f8] sm:$0xff]  }
 0x72b   : > { %16460 = vmatmul.mubr.msk.bf16.gmra.mrb[56].mxu0 %vm22686_vm0, %v20988_v31  ;;  %v8209_v31 = vpack.c.bf16 %v8180_v2, %v8179_v32  ;;  %v21014_v32 = vld [vmem:[#allocation2 + $0xe0] sm:$0xff]  ;;  %vm22704_vm0 = vnez %v22639_v15 }
 0x72c   : > { %16463 = vmatprep.mubr.msk.bf16.mxu0 %vm22688_vm4, %v20992_v21  ;;  %v8208_v21 = vpack.c.bf16 %v8178_v14, %v8177_v46  ;;  %v18386_v46 = vld [vmem:[#allocation3 + $0x5e0] sm:$0xff]   ;;  %22692 = vst [vmem:[#allocation26_spill] sm:$0xff] %v21014_v32  ;;  %vm22703_vm4 = vnez %v22637_v55 }
 0x72d   : > { %v8189_v2 = vld [vmem:[#allocation2 + $0x100] sm:$0xff] }
 0x733   : > { %16464 = vmatmul.mubr.msk.bf16.gmra.mrb[60].mxu0 %vm22691_vm7, %v21006_v6  ;;  %v21011_v6 = vpack.c.bf16 %v8184_v17, %v8183_v0  ;;  %v18388_v0 = vld [vmem:[#allocation3 + $0x5f0] sm:$0xff]   ;;  %vm22702_vm7 = vnez %v22633_v20 }
 0x734   : > { %16483 = vmatprep.mubr.bf16.mxu0 %v8207_v63  ;;  %v18385_v63 = vld [vmem:[#allocation3 + $0x5d8] sm:$0xff]  }
 0x73b   : > { %16484 = vmatmul.mubr.bf16.vlgmr.msra.gmra.mrb[32].mxu0 %v8208_v21  ;;  %v22693_v21 = vld [vmem:[#allocation32_spill] sm:$0xff] }
 0x73c   : > { %16487 = vmatprep.mubr.bf16.mxu0 %v8209_v31  ;;  %16516 = vmatpush3.bf16.msra.mxu0 %v18382_v25  ;;  %v8187_v25 = vld [vmem:[#allocation2 + $0xf0] sm:$0xff]  ;;  %v8188_v31 = vld [vmem:[#allocation2 + $0xf8] sm:$0xff]  ;;  %v8212_v14 = vpack.c.bf16 %v22693_v21, %v21014_v32 }
 0x73d   : > { %16517 = vmatprep.subr.bf16.mxu0 %v18383_v22  ;;  %v21018_v44 = vpack.c.bf16 %v8188_v31, %v8187_v25  ;;  %v8194_v25 = vld [vmem:[#allocation2 + $0x128] sm:$0xff]  ;;  %v8193_v31 = vld [vmem:[#allocation2 + $0x120] sm:$0xff] }
 0x73f   : > { %22694 = vst [vmem:[#allocation43_spill] sm:$0xff] %v21018_v44 }
 0x740   : > { %16518 = vmatpush3.bf16.msra.mxu0 %v18383_v22  ;;  %v18387_v22 = vld [vmem:[#allocation3 + $0x5e8] sm:$0xff]  }
 0x741   : > { %16519 = vmatprep.subr.bf16.mxu0 %v18384_v58 }
 0x743   : > { %16488 = vmatmul.mubr.bf16.gmra.mrb[36].mxu0 %v8210_v54  ;;  %v21021_v54 = vld [vmem:[#allocation2 + $0x118] sm:$0xff] }
 0x744   : > { %16491 = vmatprep.mubr.bf16.mxu0 %v21011_v6  ;;  %16520 = vmatpush3.bf16.msra.mxu0 %v18384_v58  ;;  %v8190_v58 = vld [vmem:[#allocation2 + $0x108] sm:$0xff]  ;;  %22695 = vst [vmem:[#allocation50_spill] sm:$0xff] %v21021_v54 }
 0x745   : > { %16521 = vmatprep.subr.bf16.mxu0 %v18385_v63  ;;  %v21023_v17 = vpack.c.bf16 %v8190_v58, %v8189_v2  ;;  %v8198_v58 = vld [vmem:[#allocation2 + $0x148] sm:$0xff]  ;;  %v8197_v2 = vld [vmem:[#allocation2 + $0x140] sm:$0xff] }
 0x747   : > { %22696 = vst [vmem:[#allocation53_spill] sm:$0xff] %v21023_v17 }
 0x748   : > { %16522 = vmatpush3.bf16.msra.mxu0 %v18385_v63  ;;  %v22697_v63 = vld [vmem:[#allocation27_spill] sm:$0xff] }
 0x749   : > { %16523 = vmatprep.subr.bf16.mxu0 %v18386_v46  ;;  %v8215_v21 = vpack.c.bf16 %v21021_v54, %v22697_v63  ;;  %v22699_v63 = vld [vmem:[#allocation34_spill] sm:$0xff] }
 0x74a   : > { %v8202_v54 = vld [vmem:[#allocation2 + $0x168] sm:$0xff] }
 0x74b   : > { %16492 = vmatmul.mubr.bf16.gmra.mrb[40].mxu0 %v8212_v14  ;;  %v21028_v14 = vpack.c.bf16 %v8194_v25, %v8193_v31  ;;  %v8204_v25 = vld [vmem:[#allocation2 + $0x178] sm:$0xff] }
 0x74c   : > { %16495 = vmatprep.mubr.bf16.mxu0 %v21018_v44  ;;  %16524 = vmatpush3.bf16.msra.mxu0 %v18386_v46  ;;  %v18390_v46 = vld [vmem:[#allocation3 + $0x600] sm:$0xff]   ;;  %v21032_v44 = vpack.c.bf16 %v8198_v58, %v8197_v2  ;;  %v8206_v58 = vld [vmem:[#allocation2 + $0x188] sm:$0xff] }
 0x74d   : > { %16525 = vmatprep.subr.bf16.mxu0 %v18387_v22 }
 0x750   : > { %16526 = vmatpush3.bf16.msra.mxu0 %v18387_v22  ;;  %v22698_v22 = vld [vmem:[#allocation29_spill] sm:$0xff] }
 0x751   : > { %16527 = vmatprep.subr.bf16.mxu0 %v18388_v0 }
 0x753   : > { %16496 = vmatmul.mubr.bf16.gmra.mrb[44].mxu0 %v21023_v17  ;;  %v8201_v17 = vld [vmem:[#allocation2 + $0x160] sm:$0xff] }
 0x754   : > { %16499 = vmatprep.mubr.bf16.mxu0 %v8215_v21  ;;  %16528 = vmatpush3.bf16.msra.mxu0 %v18388_v0  ;;  %v22700_v0 = vld [vmem:[#allocation30_spill] sm:$0xff]  ;;  %v21038_v31 = vpack.c.bf16 %v8202_v54, %v8201_v17  ;;  %v18393_v17 = vld [vmem:[#allocation3 + $0x618] sm:$0xff]  }
 0x755   : > { %16529 = vmatprep.subr.bf16.mxu0 %v18389_v60  ;;  %v22701_v21 = vpack.c.bf16 %v22699_v63, %v22700_v0  ;;  %v18391_v63 = vld [vmem:[#allocation3 + $0x608] sm:$0xff]   ;;  %v18392_v54 = vld [vmem:[#allocation3 + $0x610] sm:$0xff]   ;;  %v22723_v0 = vld [vmem:[#allocation60_spill] sm:$0xff] }
 0x758   : > { %16530 = vmatpush3.bf16.msra.mxu0 %v18389_v60  ;;  %v8203_v60 = vld [vmem:[#allocation2 + $0x170] sm:$0xff] }
 0x759   : > { %16563 = vmatprep.subr.bf16.mxu0 %v18390_v46  ;;  %v21040_v32 = vpack.c.bf16 %v8204_v25, %v8203_v60  ;;  %v22725_v60 = vld [vmem:[#allocation40_spill] sm:$0xff]  ;;  %v22726_v25 = vld [vmem:[#allocation61_spill] sm:$0xff] }
 0x75b   : > { %16500 = vmatmul.mubr.bf16.gmra.mrb[48].mxu0 %v21028_v14 }
 0x75c   : > { %16503 = vmatprep.mubr.bf16.mxu0 %v22698_v22  ;;  %v8205_v22 = vld [vmem:[#allocation2 + $0x180] sm:$0xff] }
 0x75d   : > { %v21044_v2 = vpack.c.bf16 %v8206_v58, %v8205_v22  ;;  %v22728_v22 = vld [vmem:[#allocation62_spill] sm:$0xff]  ;;  %v21163_v58 = vld [vmem:[#allocation2 + $0x19c] sm:$0xff] }
 0x763   : > { %16504 = vmatmul.mubr.bf16.gmra.mrb[52].mxu0 %v21032_v44 }
 0x764   : > { %16507 = vmatprep.mubr.bf16.mxu0 %v22701_v21  ;;  %v21155_v21 = vld [vmem:[#allocation2 + $0x194] sm:$0xff] }
 0x76b   : > { %16508 = vmatmul.mubr.bf16.gmra.mrb[56].mxu0 %v21038_v31 }
 0x76c   : > { %16511 = vmatprep.mubr.bf16.mxu0 %v21040_v32 }
 0x773   : > { %16512 = vmatmul.mubr.bf16.gmra.mrb[60].mxu0 %v21044_v2 }
 0x774   : > { %16531 = vmatprep.mubr.msk.bf16.mxu0 %vm22702_vm7, %v20785_v30  ;;  %vm22706_vm7 = vnez %v22645_v61  ;;  %v18394_v30 = vld [vmem:[#allocation3 + $0x620] sm:$0xff]  }
 0x77b   : > { %16532 = vmatmul.mubr.msk.bf16.vlgmr.msra.gmra.mrb[32].mxu0 %vm22703_vm4, %v20801_v3  ;;  %v18395_v3 = vld [vmem:[#allocation3 + $0x628] sm:$0xff]   ;;  %vm22708_vm4 = vnez %v22651_v39 }
 0x77c   : > { %16535 = vmatprep.mubr.msk.bf16.mxu0 %vm22704_vm0, %v20810_v36  ;;  %16564 = vmatpush3.bf16.msra.mxu0 %v18390_v46  ;;  %vm22707_vm0 = vnez %v22649_v59  ;;  %v18396_v36 = vld [vmem:[#allocation3 + $0x630] sm:$0xff]   ;;  %v18399_v46 = vld [vmem:[#allocation3 + $0x648] sm:$0xff]  }
 0x77d   : > { %16565 = vmatprep.subr.bf16.mxu0 %v18391_v63 }
 0x780   : > { %16566 = vmatpush3.bf16.msra.mxu0 %v18391_v63  ;;  %v21165_v63 = vld [vmem:[#allocation2 + $0x1a4] sm:$0xff] }
 0x781   : > { %16567 = vmatprep.subr.bf16.mxu0 %v18392_v54 }
 0x783   : > { %16536 = vmatmul.mubr.msk.bf16.gmra.mrb[36].mxu0 %vm22705_vm2, %v20827_v62  ;;  %v18397_v62 = vld [vmem:[#allocation3 + $0x638] sm:$0xff]   ;;  %vm22710_vm2 = vnez %v22657_v13  ;;  %v18420_v13 = vld [vmem:[#allocation3 + $0x730] sm:$0xff]  }
 0x784   : > { %16539 = vmatprep.mubr.msk.bf16.mxu0 %vm22706_vm7, %v20836_v42  ;;  %16568 = vmatpush3.bf16.msra.mxu0 %v18392_v54  ;;  %vm22709_vm7 = vnez %v22655_v19  ;;  %v18398_v42 = vld [vmem:[#allocation3 + $0x640] sm:$0xff]   ;;  %v21167_v54 = vld [vmem:[#allocation2 + $0x1ac] sm:$0xff] }
 0x785   : > { %16569 = vmatprep.subr.bf16.mxu0 %v18393_v17 }
 0x788   : > { %16570 = vmatpush3.bf16.msra.mxu0 %v18393_v17  ;;  %v21169_v17 = vld [vmem:[#allocation2 + $0x1b4] sm:$0xff] }
 0x789   : > { %16571 = vmatprep.subr.bf16.mxu0 %v18394_v30 }
 0x78b   : > { %16540 = vmatmul.mubr.msk.bf16.gmra.mrb[40].mxu0 %vm22707_vm0, %v20853_v40  ;;  %vm22712_vm0 = vnez %v22663_v37  ;;  %v21082_v40 = vpack.c.bf16 %v20978_v56, %v20967_v53  ;;  %v21109_v53 = vld [vmem:[#allocation2 + $0xd4] sm:$0xff]  ;;  %v18422_v37 = vld [vmem:[#allocation3 + $0x6c0] sm:$0xff]  }
 0x78c   : > { %16543 = vmatprep.mubr.msk.bf16.mxu0 %vm22708_vm4, %v20862_v48  ;;  %16572 = vmatpush3.bf16.msra.mxu0 %v18394_v30  ;;  %vm22711_vm4 = vnez %v22661_v57  ;;  %v22713_v48 = vld [vmem:[#allocation56_spill] sm:$0xff]  ;;  %v14399_v30 = vpack.c.bf16 %v21165_v63, %v21163_v58 }
 0x78d   : > { %16573 = vmatprep.subr.bf16.mxu0 %v18395_v3  ;;  %v18421_v57 = vld [vmem:[#allocation3 + $0x738] sm:$0xff]  }
 0x790   : > { %16574 = vmatpush3.bf16.msra.mxu0 %v18395_v3  ;;  %v14402_v3 = vpack.c.bf16 %v21169_v17, %v21167_v54 }
 0x791   : > { %16575 = vmatprep.subr.bf16.mxu0 %v18396_v36 }
 0x793   : > { %16544 = vmatmul.mubr.msk.bf16.gmra.mrb[44].mxu0 %vm22709_vm7, %v20879_v4  ;;  %v21089_v4 = vpack.c.bf16 %v22713_v48, %v22713_v48  ;;  %v21181_v48 = vld [vmem:[#allocation2 + $0x1c4] sm:$0xff] }
 0x794   : > { %16547 = vmatprep.mubr.msk.bf16.mxu0 %vm22710_vm2, %v20888_v18  ;;  %16576 = vmatpush3.bf16.msra.mxu0 %v18396_v36  ;;  %v21097_v18 = vpack.c.bf16 %v20982_v11, %v20980_v26  ;;  %v21120_v11 = vld [vmem:[#allocation2 + $0xe4] sm:$0xff]  ;;  %v22730_v36 = vld [vmem:[#allocation55_spill] sm:$0xff] }
 0x795   : > { %16577 = vmatprep.subr.bf16.mxu0 %v18397_v62  ;;  %16723 = vmatprep.mubr.bf16.mxu1 %v21089_v4 }
 0x798   : > { %16578 = vmatpush3.bf16.msra.mxu0 %v18397_v62  ;;  %v22732_v62 = vld [vmem:[#allocation42_spill] sm:$0xff] }
 0x799   : > { %16611 = vmatprep.subr.bf16.mxu0 %v18398_v42 }
 0x79b   : > { %16548 = vmatmul.mubr.msk.bf16.gmra.mrb[48].mxu0 %vm22711_vm4, %v20905_v43  ;;  %v21101_v43 = vpack.c.bf16 %v21000_v49, %v20984_v51  ;;  %v21122_v51 = vld [vmem:[#allocation2 + $0xdc] sm:$0xff] }
 0x79c   : > { %16551 = vmatprep.mubr.msk.bf16.mxu0 %vm22712_vm0, %v20914_v38  ;;  %v8512_v38 = vld [vmem:[#allocation2 + $0x18c] sm:$0xff]  ;;  %v14363_v49 = vpack.c.bf16 %v21120_v11, %v21122_v51 }
 0x79d   : > { %v21112_v56 = vpack.c.bf16 %v8512_v38, %v21002_v47  ;;  %v18400_v47 = vld [vmem:[#allocation3 + $0x650] sm:$0xff]  }
 0x7a3   : > { %16552 = vmatmul.mubr.msk.bf16.gmra.mrb[52].mxu0 %vm20873_vm9, %v20929_v33  ;;  %v8819_v33 = vld [vmem:[#allocation2 + $0xcc] sm:$0xff] }
 0x7a4   : > { %16555 = vmatprep.mubr.msk.bf16.mxu0 %vm20882_vm10, %v21082_v40  ;;  %v14360_v26 = vpack.c.bf16 %v21109_v53, %v8819_v33  ;;  %v22734_v33 = vld [vmem:[#allocation48_spill] sm:$0xff] }
 0x7ab   : > { %16556 = vmatmul.mubr.msk.bf16.gmra.mrb[56].mxu0 %vm20899_vm5, %v21097_v18 }
 0x7ac   : > { %16559 = vmatprep.mubr.msk.bf16.mxu0 %vm20908_vm3, %v21101_v43 }
 0x7b3   : > { %16560 = vmatmul.mubr.msk.bf16.gmra.mrb[60].mxu0 %vm20924_vm8, %v21112_v56 }
 0x7b4   : > { %16579 = vmatprep.mubr.msk.bf16.mxu0 %vm20482_vm12, %v14360_v26  ;;  %v18414_v26 = vld [vmem:[#allocation3 + $0x700] sm:$0xff]  }
 0x7b5   : > { %16707 = vmatprep.subr.bf16.mxu1 %v18414_v26 }
 0x7b6   : > { %16708 = vmatpush3.bf16.msra.mxu1 %v18414_v26  ;;  %v9470_v26 = vld [vmem:[#allocation2 + $0x10c] sm:$0xff] }
 0x7bb   : > { %16580 = vmatmul.mubr.msk.bf16.vlgmr.msra.gmra.mrb[32].mxu0 %vm20505_vm1, %v14363_v49  ;;  %v18415_v49 = vld [vmem:[#allocation3 + $0x708] sm:$0xff]  }
 0x7bc   : > { %16583 = vmatprep.mubr.msk.bf16.mxu0 %vm20512_vm15, %v20646_v7  ;;  %16612 = vmatpush3.bf16.msra.mxu0 %v18398_v42  ;;  %v22714_v7 = vld [vmem:[#allocation57_spill] sm:$0xff]  ;;  %v21179_v42 = vld [vmem:[#allocation2 + $0x1bc] sm:$0xff] }
 0x7bd   : > { %16613 = vmatprep.subr.bf16.mxu0 %v18399_v46  ;;  %vm22715_vm12 = vnez %v22714_v7  ;;  %16709 = vmatprep.subr.bf16.mxu1 %v18415_v49  ;;  %v18408_v7 = vld [vmem:[#allocation3 + $0x690] sm:$0xff]  }
 0x7be   : > { %16710 = vmatpush3.bf16.msra.mxu1 %v18415_v49  ;;  %v9471_v49 = vld [vmem:[#allocation2 + $0x114] sm:$0xff] }
 0x7c0   : > { %16614 = vmatpush3.bf16.msra.mxu0 %v18399_v46  ;;  %v9160_v46 = vld [vmem:[#allocation2 + $0xe8] sm:$0xff] }
 0x7c1   : > { %16615 = vmatprep.subr.bf16.mxu0 %v18400_v47 }
 0x7c3   : > { %16584 = vmatmul.mubr.msk.bf16.gmra.mrb[36].mxu0 %vm20534_vm14, %v20671_v9  ;;  %v22716_v9 = vld [vmem:[#allocation38_spill] sm:$0xff]  ;;  %vm22724_vm14 = vnez %v22723_v0 }
 0x7c4   : > { %16587 = vmatprep.mubr.msk.bf16.mxu0 %vm20539_vm13, %v20680_v35  ;;  %16616 = vmatpush3.bf16.msra.mxu0 %v18400_v47  ;;  %v22717_v35 = vld [vmem:[#allocation58_spill] sm:$0xff]  ;;  %vm22727_vm13 = vnez %v22726_v25 }
 0x7c5   : > { %16617 = vmatprep.subr.bf16.mxu0 %v18401_v24  ;;  %vm22718_vm1 = vnez %v22717_v35  ;;  %v18416_v47 = vld [vmem:[#allocation3 + $0x710] sm:$0xff]   ;;  %v18409_v35 = vld [vmem:[#allocation3 + $0x698] sm:$0xff]   ;;  %v18419_v0 = vld [vmem:[#allocation3 + $0x728] sm:$0xff]  }
 0x7c6   : > { %16711 = vmatprep.subr.bf16.mxu1 %v18416_v47  ;;  %v18411_v25 = vld [vmem:[#allocation3 + $0x6a8] sm:$0xff]  }
 0x7c7   : > { %16712 = vmatpush3.bf16.msra.mxu1 %v18416_v47 }
 0x7c8   : > { %16618 = vmatpush3.bf16.msra.mxu0 %v18401_v24  ;;  %v22736_v24 = vld [vmem:[#allocation26_spill] sm:$0xff] }
 0x7c9   : > { %16619 = vmatprep.subr.bf16.mxu0 %v18402_v23 }
 0x7cb   : > { %16588 = vmatmul.mubr.msk.bf16.gmra.mrb[40].mxu0 %vm20563_vm11, %v20705_v27  ;;  %v22720_v27 = vld [vmem:[#allocation59_spill] sm:$0xff]  ;;  %vm22729_vm11 = vnez %v22728_v22 }
 0x7cc   : > { %16591 = vmatprep.mubr.msk.bf16.mxu0 %vm20572_vm6, %v20714_v34  ;;  %16620 = vmatpush3.bf16.msra.mxu0 %v18402_v23  ;;  %vm22721_vm15 = vnez %v22720_v27  ;;  %v22722_v34 = vld [vmem:[#allocation47_spill] sm:$0xff]  ;;  %vm22731_vm6 = vnez %v22730_v36  ;;  %v9190_v23 = vpack.c.bf16 %v9160_v46, %v22736_v24  ;;  %v9476_v24 = vld [vmem:[#allocation2 + $0x13c] sm:$0xff] }
 0x7cd   : > { %16621 = vmatprep.subr.bf16.mxu0 %v18403_v52  ;;  %v9174_v36 = vld [vmem:[#allocation2 + $0x158] sm:$0xff] }
 0x7d0   : > { %16622 = vmatpush3.bf16.msra.mxu0 %v18403_v52  ;;  %v18407_v52 = vld [vmem:[#allocation3 + $0x688] sm:$0xff]  }
 0x7d1   : > { %16623 = vmatprep.subr.bf16.mxu0 %v18404_v29 }
 0x7d3   : > { %16592 = vmatmul.mubr.msk.bf16.gmra.mrb[44].mxu0 %vm22715_vm12, %v20737_v1  ;;  %v14396_v1 = vpack.c.bf16 %v21155_v21, %v8512_v38  ;;  %vm22733_vm12 = vnez %v22732_v62  ;;  %v14405_v38 = vpack.c.bf16 %v21181_v48, %v21179_v42  ;;  %v18413_v62 = vld [vmem:[#allocation3 + $0x6b8] sm:$0xff]  }
 0x7d4   : > { %16595 = vmatprep.mubr.msk.bf16.mxu0 %vm22718_vm1, %v22716_v9  ;;  %16624 = vmatpush3.bf16.msra.mxu0 %v18404_v29  ;;  %vm22735_vm1 = vnez %v22734_v33  ;;  %v18417_v29 = vld [vmem:[#allocation3 + $0x718] sm:$0xff]   ;;  %v9165_v9 = vld [vmem:[#allocation2 + $0x110] sm:$0xff] }
 0x7d5   : > { %16625 = vmatprep.subr.bf16.mxu0 %v18405_v8  ;;  %16713 = vmatprep.subr.bf16.mxu1 %v18417_v29  ;;  %v9468_v33 = vld [vmem:[#allocation2 + $0xfc] sm:$0xff] }
 0x7d6   : > { %16714 = vmatpush3.bf16.msra.mxu1 %v18417_v29  ;;  %v9477_v29 = vld [vmem:[#allocation2 + $0x144] sm:$0xff] }
 0x7d8   : > { %16626 = vmatpush3.bf16.msra.mxu0 %v18405_v8  ;;  %v22737_v8 = vld [vmem:[#allocation43_spill] sm:$0xff] }
 0x7d9   : > { %16659 = vmatprep.subr.bf16.mxu0 %v18406_v28 }
 0x7db   : > { %16596 = vmatmul.mubr.msk.bf16.gmra.mrb[48].mxu0 %vm22721_vm15, %v22719_v16  ;;  %v22738_v16 = vld [vmem:[#allocation50_spill] sm:$0xff]  ;;  %vm22740_vm15 = vnez %v22633_v20 }
 0x7dc   : > { %16599 = vmatprep.mubr.msk.bf16.mxu0 %vm22724_vm14, %v22722_v34  ;;  %v9193_v27 = vpack.c.bf16 %v22738_v16, %v9165_v9  ;;  %v22739_v34 = vld [vmem:[#allocation53_spill] sm:$0xff]  ;;  %vm22741_vm14 = vnez %v22637_v55  ;;  %v9474_v20 = vld [vmem:[#allocation2 + $0x12c] sm:$0xff] }
 0x7dd   : > { %v9473_v55 = vld [vmem:[#allocation2 + $0x124] sm:$0xff] }
 0x7e3   : > { %16600 = vmatmul.mubr.msk.bf16.gmra.mrb[52].mxu0 %vm22727_vm13, %v22725_v60  ;;  %v9170_v60 = vld [vmem:[#allocation2 + $0x138] sm:$0xff]  ;;  %vm22742_vm13 = vnez %v22639_v15  ;;  %v9478_v15 = vld [vmem:[#allocation2 + $0x14c] sm:$0xff] }
 0x7e4   : > { %16603 = vmatprep.mubr.msk.bf16.mxu0 %vm22729_vm11, %v14396_v1  ;;  %v9169_v1 = vld [vmem:[#allocation2 + $0x130] sm:$0xff]  ;;  %vm22743_vm11 = vnez %v22643_v41  ;;  %v14460_v41 = vpack.c.bf16 %v21163_v58, %v21155_v21 }
 0x7e5   : > { %v9195_v22 = vpack.c.bf16 %v9170_v60, %v9169_v1 }
 0x7eb   : > { %16604 = vmatmul.mubr.msk.bf16.gmra.mrb[56].mxu0 %vm22731_vm6, %v14399_v30  ;;  %v18412_v30 = vld [vmem:[#allocation3 + $0x6b0] sm:$0xff]   ;;  %vm22744_vm6 = vnez %v22645_v61  ;;  %v14463_v61 = vpack.c.bf16 %v21167_v54, %v21165_v63 }
 0x7ec   : > { %16607 = vmatprep.mubr.msk.bf16.mxu0 %vm22733_vm12, %v14402_v3  ;;  %v9173_v3 = vld [vmem:[#allocation2 + $0x150] sm:$0xff]  ;;  %vm22745_vm12 = vnez %v22649_v59  ;;  %v14466_v59 = vpack.c.bf16 %v21179_v42, %v21169_v17 }
 0x7f3   : > { %16608 = vmatmul.mubr.msk.bf16.gmra.mrb[60].mxu0 %vm22735_vm1, %v14405_v38  ;;  %v9197_v38 = vpack.c.bf16 %v9174_v36, %v9173_v3  ;;  %vm22746_vm1 = vnez %v22651_v39  ;;  %v21244_v39 = vld [vmem:[#allocation2 + $0x1cc] sm:$0xff] }
 0x7f4   : > { %16627 = vmatprep.mubr.bf16.mxu0 %v21011_v6  ;;  %v18418_v6 = vld [vmem:[#allocation3 + $0x720] sm:$0xff]   ;;  %v14469_v19 = vpack.c.bf16 %v21244_v39, %v21181_v48 }
 0x7f5   : > { %16715 = vmatprep.subr.bf16.mxu1 %v18418_v6 }
 0x7f6   : > { %16716 = vmatpush3.bf16.msra.mxu1 %v18418_v6 }
 0x7f7   : > { %16717 = vmatprep.subr.bf16.mxu1 %v18419_v0 }
 0x7fa   : > { %16718 = vmatpush3.bf16.msra.mxu1 %v18419_v0 }
 0x7fb   : > { %16628 = vmatmul.mubr.bf16.vlgmr.msra.gmra.mrb[32].mxu0 %v9190_v23  ;;  %v14439_v23 = vpack.c.bf16 %v9474_v20, %v9473_v55  ;;  %16719 = vmatprep.subr.bf16.mxu1 %v18420_v13 }
 0x7fc   : > { %16631 = vmatprep.mubr.bf16.mxu0 %v22737_v8  ;;  %16660 = vmatpush3.bf16.msra.mxu0 %v18406_v28  ;;  %v18410_v28 = vld [vmem:[#allocation3 + $0x6a0] sm:$0xff]   ;;  %v14445_v8 = vpack.c.bf16 %v9478_v15, %v9477_v29 }
 0x7fd   : > { %16661 = vmatprep.subr.bf16.mxu0 %v18407_v52 }
 0x7fe   : > { %16720 = vmatpush3.bf16.msra.mxu1 %v18420_v13 }
 0x7ff   : > { %16721 = vmatprep.subr.bf16.mxu1 %v18421_v57 }
 0x800   : > { %16662 = vmatpush3.bf16.msra.mxu0 %v18407_v52 }
 0x801   : > { %16663 = vmatprep.subr.bf16.mxu0 %v18408_v7 }
 0x802   : > { %16722 = vmatpush3.bf16.msra.mxu1 %v18421_v57 }
 0x803   : > { %16632 = vmatmul.mubr.bf16.gmra.mrb[36].mxu0 %v22739_v34  ;;  %16755 = vmatprep.subr.bf16.mxu1 %v18422_v37 }
 0x804   : > { %16635 = vmatprep.mubr.bf16.mxu0 %v9193_v27  ;;  %16664 = vmatpush3.bf16.msra.mxu0 %v18408_v7 }
 0x805   : > { %16665 = vmatprep.subr.bf16.mxu0 %v18409_v35  ;;  %16724 = vmatmul.mubr.bf16.vlgmr.msra.gmra.mrb[32].mxu1 %v21089_v4 }
 0x806   : > { %16727 = vmatprep.mubr.bf16.mxu1 %v21089_v4  ;;  %16756 = vmatpush3.bf16.msra.mxu1 %v18422_v37 }
 0x807   : > { %16757 = vmatprep.subr.bf16.mxu1 %v18423_v12 }
 0x808   : > { %16666 = vmatpush3.bf16.msra.mxu0 %v18409_v35 }
 0x809   : > { %16667 = vmatprep.subr.bf16.mxu0 %v18410_v28 }
 0x80a   : > { %16758 = vmatpush3.bf16.msra.mxu1 %v18423_v12 }
 0x80b   : > { %16636 = vmatmul.mubr.bf16.gmra.mrb[40].mxu0 %v21028_v14  ;;  %v14424_v14 = vpack.c.bf16 %v21122_v51, %v21109_v53  ;;  %v9472_v53 = vld [vmem:[#allocation2 + $0x11c] sm:$0xff]  ;;  %v9469_v51 = vld [vmem:[#allocation2 + $0x104] sm:$0xff]  ;;  %16759 = vmatprep.subr.bf16.mxu1 %v18424_v50 }
 0x80c   : > { %16639 = vmatprep.mubr.bf16.mxu0 %v9195_v22  ;;  %16668 = vmatpush3.bf16.msra.mxu0 %v18410_v28  ;;  %v14433_v46 = vpack.c.bf16 %v9470_v26, %v9469_v51  ;;  %v14436_v47 = vpack.c.bf16 %v9472_v53, %v9471_v49 }
 0x80d   : > { %16669 = vmatprep.subr.bf16.mxu0 %v18411_v25  ;;  %16728 = vmatmul.mubr.bf16.gmra.mrb[36].mxu1 %v21089_v4 }
 0x80e   : > { %16731 = vmatprep.mubr.bf16.mxu1 %v21089_v4  ;;  %16760 = vmatpush3.bf16.msra.mxu1 %v18424_v50 }
 0x80f   : > { %16761 = vmatprep.subr.bf16.mxu1 %v18425_v45 }
 0x810   : > { %16670 = vmatpush3.bf16.msra.mxu0 %v18411_v25 }
 0x811   : > { %16671 = vmatprep.subr.bf16.mxu0 %v18412_v30 }
 0x812   : > { %16762 = vmatpush3.bf16.msra.mxu1 %v18425_v45 }
 0x813   : > { %16640 = vmatmul.mubr.bf16.gmra.mrb[44].mxu0 %v21032_v44  ;;  %v9466_v44 = vld [vmem:[#allocation2 + $0xec] sm:$0xff]  ;;  %16763 = vmatprep.subr.bf16.mxu1 %v18426_v5 }
 0x814   : > { %16643 = vmatprep.mubr.bf16.mxu0 %v9197_v38  ;;  %16672 = vmatpush3.bf16.msra.mxu0 %v18412_v30 }
 0x815   : > { %16673 = vmatprep.subr.bf16.mxu0 %v18413_v62  ;;  %16732 = vmatmul.mubr.bf16.gmra.mrb[40].mxu1 %v21089_v4 }
 0x816   : > { %16735 = vmatprep.mubr.bf16.mxu1 %v21089_v4  ;;  %16764 = vmatpush3.bf16.msra.mxu1 %v18426_v5 }
 0x817   : > { %16765 = vmatprep.subr.bf16.mxu1 %v18427_v10 }
 0x818   : > { %16674 = vmatpush3.bf16.msra.mxu0 %v18413_v62 }
 0x81a   : > { %16766 = vmatpush3.bf16.msra.mxu1 %v18427_v10 }
 0x81b   : > { %16644 = vmatmul.mubr.bf16.gmra.mrb[48].mxu0 %v21038_v31  ;;  %v9467_v31 = vld [vmem:[#allocation2 + $0xf4] sm:$0xff] }
 0x81c   : > { %16647 = vmatprep.mubr.bf16.mxu0 %v21040_v32  ;;  %v14427_v32 = vpack.c.bf16 %v9466_v44, %v21120_v11  ;;  %v9475_v11 = vld [vmem:[#allocation2 + $0x134] sm:$0xff] }
 0x81d   : > { %v14442_v52 = vpack.c.bf16 %v9476_v24, %v9475_v11  ;;  %16736 = vmatmul.mubr.bf16.gmra.mrb[44].mxu1 %v21089_v4 }
 0x823   : > { %16648 = vmatmul.mubr.bf16.gmra.mrb[52].mxu0 %v21044_v2  ;;  %v14430_v2 = vpack.c.bf16 %v9468_v33, %v9467_v31 }
 0x824   : > { %16651 = vmatprep.mubr.bf16.mxu0 %v21089_v4 }
 0x82b   : > { %16652 = vmatmul.mubr.bf16.gmra.mrb[56].mxu0 %v21089_v4 }
 0x82c   : > { %16655 = vmatprep.mubr.bf16.mxu0 %v21089_v4 }
 0x833   : > { %16656 = vmatmul.mubr.bf16.gmra.mrb[60].mxu0 %v21089_v4  ;;  %v21260_v4 = vld [vmem:[#allocation5 + $0x2] ss:$0 sm:$0xff] }
 0x834   : > { %16675 = vmatprep.mubr.msk.bf16.mxu0 %vm22740_vm15, %v14424_v14 }
 0x83b   : > { %16676 = vmatmul.mubr.msk.bf16.vlgmr.msra.gmra.mrb[32].mxu0 %vm22741_vm14, %v14427_v32 }
 0x83c   : > { %16679 = vmatprep.mubr.msk.bf16.mxu0 %vm22742_vm13, %v14430_v2 }
 0x843   : > { %16680 = vmatmul.mubr.msk.bf16.gmra.mrb[36].mxu0 %vm22743_vm11, %v14433_v46 }
 0x844   : > { %16683 = vmatprep.mubr.msk.bf16.mxu0 %vm22744_vm6, %v14436_v47 }
 0x84b   : > { %16684 = vmatmul.mubr.msk.bf16.gmra.mrb[40].mxu0 %vm22745_vm12, %v14439_v23 }
 0x84c   : > { %16687 = vmatprep.mubr.msk.bf16.mxu0 %vm22746_vm1, %v14442_v52 }
 0x853   : > { %16688 = vmatmul.mubr.msk.bf16.gmra.mrb[44].mxu0 %vm22709_vm7, %v14445_v8 }
 0x854   : > { %16691 = vmatprep.mubr.msk.bf16.mxu0 %vm22710_vm2, %v21082_v40  ;;  %v18428_v40 = vld [vmem:[#allocation3 + $0x6f0] sm:$0xff]  }
 0x855   : > { %16767 = vmatprep.subr.bf16.mxu1 %v18428_v40 }
 0x856   : > { %16768 = vmatpush3.bf16.msra.mxu1 %v18428_v40 }
 0x85b   : > { %16692 = vmatmul.mubr.msk.bf16.gmra.mrb[48].mxu0 %vm22711_vm4, %v21097_v18  ;;  %v18429_v18 = vld [vmem:[#allocation3 + $0x6f8] sm:$0xff]  }
 0x85c   : > { %16695 = vmatprep.mubr.msk.bf16.mxu0 %vm22712_vm0, %v21101_v43  ;;  %16769 = vmatprep.subr.bf16.mxu1 %v18429_v18  ;;  %v21257_v43 = vld [vmem:[#allocation3 + $0x740] sm:$0xff]  }
 0x85d   : > { %16770 = vmatpush3.bf16.msra.mxu1 %v18429_v18 }
 0x85e   : > { %16803 = vmatprep.subr.bf16.mxu1 %v21257_v43 }
 0x863   : > { %16696 = vmatmul.mubr.msk.bf16.gmra.mrb[52].mxu0 %vm20873_vm9, %v21112_v56 }
 0x864   : > { %16699 = vmatprep.mubr.msk.bf16.mxu0 %vm20882_vm10, %v14460_v41 }
 0x86b   : > { %16700 = vmatmul.mubr.msk.bf16.gmra.mrb[56].mxu0 %vm20899_vm5, %v14463_v61 }
 0x86c   : > { %16703 = vmatprep.mubr.msk.bf16.mxu0 %vm20908_vm3, %v14466_v59 }
 0x873   : > { %16704 = vmatmul.mubr.msk.bf16.gmra.mrb[60].mxu0 %vm20924_vm8, %v14469_v19 }
 0x90e   : > { %v16677_v56 = vpop.f32.mrb[32].mxu0 }
 0x90f   : > { %v21263_v63 = vadd.f32 %v16677_v56, %v21260_v4  ;;  %v9642_v54 = vpop.f32.mrb[33].mxu0 }
 0x910   : > { %v21266_v42 = vadd.f32 %v21260_v4, %v9642_v54  ;;  %v16678_v7 = vpop.f32.mrb[34].mxu0 }
 0x911   : > { %v9843_v9 = vmax.f32 %v21263_v63, 0.0  ;;  %v21270_v6 = vadd.f32 %v16678_v7, %v21260_v4  ;;  %v9645_v35 = vpop.f32.mrb[35].mxu0 }
 0x912   : > { %v9841_v16 = vmax.f32 %v21266_v42, 0.0  ;;  %v21274_v27 = vadd.f32 %v21260_v4, %v9645_v35 }
 0x913   : > { %9875 = vst [vmem:[#allocation2 + $0xa0] sm:$0xff] %v9843_v9  ;;  %v9844_v34 = vmax.f32 %v21270_v6, 0.0 }
 0x914   : > { %9873 = vst [vmem:[#allocation2 + $0x90] sm:$0xff] %v9841_v16  ;;  %v9842_v0 = vmax.f32 %v21274_v27, 0.0 }
 0x915   : > { %9876 = vst [vmem:[#allocation2 + $0xa8] sm:$0xff] %v9844_v34 }
 0x916   : > { %9874 = vst [vmem:[#allocation2 + $0x98] sm:$0xff] %v9842_v0  ;;  %v16681_v28 = vpop.f32.mrb[36].mxu0 }
 0x917   : > { %v21285_v1 = vadd.f32 %v16681_v28, %v21260_v4  ;;  %v9658_v60 = vpop.f32.mrb[37].mxu0 }
 0x918   : > { %v21288_v25 = vadd.f32 %v21260_v4, %v9658_v60  ;;  %v16682_v22 = vpop.f32.mrb[38].mxu0 }
 0x919   : > { %v9847_v30 = vmax.f32 %v21285_v1, 0.0  ;;  %v21292_v3 = vadd.f32 %v16682_v22, %v21260_v4  ;;  %v9661_v36 = vpop.f32.mrb[39].mxu0 }
 0x91a   : > { %v9845_v62 = vmax.f32 %v21288_v25, 0.0  ;;  %v21296_v38 = vadd.f32 %v21260_v4, %v9661_v36 }
 0x91b   : > { %9879 = vst [vmem:[#allocation2 + $0xc0] sm:$0xff] %v9847_v30  ;;  %v9848_v14 = vmax.f32 %v21292_v3, 0.0 }
 0x91c   : > { %9877 = vst [vmem:[#allocation2 + $0xb0] sm:$0xff] %v9845_v62  ;;  %v9846_v44 = vmax.f32 %v21296_v38, 0.0  ;;  %v9907_v19 = vld [vmem:[#allocation2 + $0xa4] sm:$0xff] }
 0x91d   : > { %9880 = vst [vmem:[#allocation2 + $0xc8] sm:$0xff] %v9848_v14  ;;  %v9906_v13 = vld [vmem:[#allocation2 + $0x9c] sm:$0xff]  ;;  %v9905_v37 = vld [vmem:[#allocation2 + $0x94] sm:$0xff]  ;;  %v9979_v10 = vmax.f32 %v9843_v9, %v9907_v19 }
 0x91e   : > { %9878 = vst [vmem:[#allocation2 + $0xb8] sm:$0xff] %v9846_v44  ;;  %v16685_v31 = vpop.f32.mrb[40].mxu0  ;;  %v9978_v18 = vmax.f32 %v9842_v0, %v9906_v13  ;;  %v9977_v7 = vmax.f32 %v9841_v16, %v9905_v37 }
 0x91f   : > { %v9819_v33 = vadd.f32 %v16685_v31, %v21260_v4  ;;  %v9674_v32 = vpop.f32.mrb[41].mxu0 }
 0x920   : > { %v9817_v2 = vadd.f32 %v21260_v4, %v9674_v32  ;;  %v16686_v26 = vpop.f32.mrb[42].mxu0 }
 0x921   : > { %v9851_v49 = vmax.f32 %v9819_v33, 0.0  ;;  %v21311_v53 = vadd.f32 %v16686_v26, %v21260_v4  ;;  %v9677_v51 = vpop.f32.mrb[43].mxu0 }
 0x922   : > { %v9849_v46 = vmax.f32 %v9817_v2, 0.0  ;;  %v9818_v47 = vadd.f32 %v21260_v4, %v9677_v51 }
 0x923   : > { %9883 = vst [vmem:[#allocation2 + $0xe0] sm:$0xff] %v9851_v49  ;;  %v9852_v20 = vmax.f32 %v21311_v53, 0.0  ;;  %v9908_v31 = vld [vmem:[#allocation2 + $0xac] sm:$0xff] }
 0x924   : > { %9881 = vst [vmem:[#allocation2 + $0xd0] sm:$0xff] %v9849_v46  ;;  %v9850_v11 = vmax.f32 %v9818_v47, 0.0 }
 0x925   : > { %9884 = vst [vmem:[#allocation2 + $0xe8] sm:$0xff] %v9852_v20  ;;  %v9910_v33 = vld [vmem:[#allocation2 + $0xbc] sm:$0xff] }
 0x926   : > { %9882 = vst [vmem:[#allocation2 + $0xd8] sm:$0xff] %v9850_v11  ;;  %v16689_v24 = vpop.f32.mrb[44].mxu0 }
 0x927   : > { %v9823_v55 = vadd.f32 %v16689_v24, %v21260_v4  ;;  %v9690_v23 = vpop.f32.mrb[45].mxu0 }
 0x928   : > { %v21317_v52 = vadd.f32 %v21260_v4, %v9690_v23  ;;  %v16690_v15 = vpop.f32.mrb[46].mxu0  ;;  %v9982_v23 = vmax.f32 %v9846_v44, %v9910_v33 }
 0x929   : > { %v9855_v29 = vmax.f32 %v9823_v55, 0.0  ;;  %v21320_v8 = vadd.f32 %v16690_v15, %v21260_v4  ;;  %v9693_v41 = vpop.f32.mrb[47].mxu0 }
 0x92a   : > { %v9853_v61 = vmax.f32 %v21317_v52, 0.0  ;;  %v9822_v59 = vadd.f32 %v21260_v4, %v9693_v41 }
 0x92b   : > { %9887 = vst [vmem:[#allocation2 + $0x100] sm:$0xff] %v9855_v29  ;;  %v9856_v57 = vmax.f32 %v21320_v8, 0.0 }
 0x92c   : > { %9885 = vst [vmem:[#allocation2 + $0xf0] sm:$0xff] %v9853_v61  ;;  %v9854_v12 = vmax.f32 %v9822_v59, 0.0  ;;  %v9915_v50 = vld [vmem:[#allocation2 + $0xe4] sm:$0xff] }
 0x92d   : > { %v9914_v45 = vld [vmem:[#allocation2 + $0xdc] sm:$0xff]  ;;  %9888 = vst [vmem:[#allocation2 + $0x108] sm:$0xff] %v9856_v57  ;;  %v9913_v5 = vld [vmem:[#allocation2 + $0xd4] sm:$0xff]  ;;  %v21329_v40 = vmax.f32 %v9851_v49, %v9915_v50  ;;  %v9911_v49 = vld [vmem:[#allocation2 + $0xc4] sm:$0xff] }
 0x92e   : > { %v21331_v56 = vmax.f32 %v9850_v11, %v9914_v45  ;;  %9886 = vst [vmem:[#allocation2 + $0xf8] sm:$0xff] %v9854_v12  ;;  %v16693_v54 = vpop.f32.mrb[48].mxu0  ;;  %v21335_v35 = vmax.f32 %v9849_v46, %v9913_v5  ;;  %v9909_v46 = vld [vmem:[#allocation2 + $0xb4] sm:$0xff]  ;;  %v9980_v11 = vmax.f32 %v9844_v34, %v9908_v31  ;;  %v9983_v41 = vmax.f32 %v9847_v30, %v9911_v49  ;;  %v9912_v45 = vld [vmem:[#allocation2 + $0xcc] sm:$0xff] }
 0x92f   : > { %v21338_v27 = vadd.f32 %v16693_v54, %v21260_v4  ;;  %v9706_v28 = vpop.f32.mrb[49].mxu0  ;;  %v21341_v60 = vmax.f32 %v9979_v10, %v21329_v40  ;;  %v9981_v38 = vmax.f32 %v9845_v62, %v9909_v46 }
 0x930   : > { %v21344_v63 = vmax.f32 %v9978_v18, %v21331_v56  ;;  %v21347_v9 = vadd.f32 %v21260_v4, %v9706_v28  ;;  %v16694_v0 = vpop.f32.mrb[50].mxu0  ;;  %v21350_v22 = vmax.f32 %v9977_v7, %v21335_v35 }
 0x931   : > { %v9859_v42 = vmax.f32 %v21338_v27, 0.0  ;;  %v21354_v16 = vadd.f32 %v16694_v0, %v21260_v4  ;;  %v9709_v36 = vpop.f32.mrb[51].mxu0 }
 0x932   : > { %v9857_v32 = vmax.f32 %v21347_v9, 0.0  ;;  %v9826_v2 = vadd.f32 %v21260_v4, %v9709_v36  ;;  %10074 = vst [vmem:[#allocation2 + $0x98] sm:$0xff] %v21344_v63  ;;  %v21361_v26 = vpack.c.bf16 %v21344_v63, %v21350_v22  ;;  %v9984_v9 = vmax.f32 %v9848_v14, %v9912_v45 }
 0x933   : > { %9891 = vst [vmem:[#allocation2 + $0x120] sm:$0xff] %v9859_v42  ;;  %v9860_v53 = vmax.f32 %v21354_v16, 0.0  ;;  %v9916_v51 = vld [vmem:[#allocation2 + $0xec] sm:$0xff] }
 0x934   : > { %9889 = vst [vmem:[#allocation2 + $0x110] sm:$0xff] %v9857_v32  ;;  %v9858_v47 = vmax.f32 %v9826_v2, 0.0  ;;  %16739 = vmatprep.mubr.bf16.mxu1 %v21361_v26  ;;  %v21367_v24 = vmax.f32 %v9852_v20, %v9916_v51  ;;  %v9919_v55 = vld [vmem:[#allocation2 + $0x104] sm:$0xff] }
 0x935   : > { %v9918_v52 = vld [vmem:[#allocation2 + $0xfc] sm:$0xff]  ;;  %9892 = vst [vmem:[#allocation2 + $0x128] sm:$0xff] %v9860_v53  ;;  %v9917_v15 = vld [vmem:[#allocation2 + $0xf4] sm:$0xff]  ;;  %v21375_v59 = vmax.f32 %v9855_v29, %v9919_v55 }
 0x936   : > { %v21377_v19 = vmax.f32 %v9854_v12, %v9918_v52  ;;  %9890 = vst [vmem:[#allocation2 + $0x118] sm:$0xff] %v9858_v47  ;;  %v16697_v6 = vpop.f32.mrb[52].mxu0  ;;  %v21380_v34 = vmax.f32 %v9980_v11, %v21367_v24  ;;  %v21384_v44 = vmax.f32 %v9853_v61, %v9917_v15 }
 0x937   : > { %v21387_v20 = vadd.f32 %v16697_v6, %v21260_v4  ;;  %v9722_v13 = vpop.f32.mrb[53].mxu0  ;;  %v21390_v1 = vmax.f32 %v9983_v41, %v21375_v59 }
 0x938   : > { %v21393_v30 = vmax.f32 %v9982_v23, %v21377_v19  ;;  %v21396_v29 = vadd.f32 %v21260_v4, %v9722_v13  ;;  %v16698_v37 = vpop.f32.mrb[54].mxu0  ;;  %10076 = vst [vmem:[#allocation2 + $0xa8] sm:$0xff] %v21380_v34  ;;  %v21401_v25 = vpack.c.bf16 %v21380_v34, %v21341_v60  ;;  %v21404_v62 = vmax.f32 %v9981_v38, %v21384_v44 }
 0x939   : > { %v9863_v61 = vmax.f32 %v21387_v20, 0.0  ;;  %v21408_v12 = vadd.f32 %v16698_v37, %v21260_v4  ;;  %v9725_v50 = vpop.f32.mrb[55].mxu0 }
 0x93a   : > { %v9861_v5 = vmax.f32 %v21396_v29, 0.0  ;;  %v9830_v10 = vadd.f32 %v21260_v4, %v9725_v50  ;;  %16740 = vmatmul.mubr.bf16.gmra.mrb[48].mxu1 %v21401_v25  ;;  %v21415_v18 = vpack.c.bf16 %v21393_v30, %v21404_v62 }
 0x93b   : > { %9895 = vst [vmem:[#allocation2 + $0x140] sm:$0xff] %v9863_v61  ;;  %v9864_v54 = vmax.f32 %v21408_v12, 0.0  ;;  %v9920_v7 = vld [vmem:[#allocation2 + $0x10c] sm:$0xff] }
 0x93c   : > { %9893 = vst [vmem:[#allocation2 + $0x130] sm:$0xff] %v9861_v5  ;;  %v9862_v27 = vmax.f32 %v9830_v10, 0.0  ;;  %v9923_v28 = vld [vmem:[#allocation2 + $0x124] sm:$0xff]  ;;  %16743 = vmatprep.mubr.bf16.mxu1 %v21415_v18  ;;  %v21423_v0 = vmax.f32 %v9856_v57, %v9920_v7 }
 0x93d   : > { %v9922_v36 = vld [vmem:[#allocation2 + $0x11c] sm:$0xff]  ;;  %9896 = vst [vmem:[#allocation2 + $0x148] sm:$0xff] %v9864_v54  ;;  %v9921_v31 = vld [vmem:[#allocation2 + $0x114] sm:$0xff]  ;;  %v21427_v33 = vmax.f32 %v9859_v42, %v9923_v28 }
 0x93e   : > { %v21429_v2 = vmax.f32 %v9858_v47, %v9922_v36  ;;  %9894 = vst [vmem:[#allocation2 + $0x138] sm:$0xff] %v9862_v27  ;;  %v21431_v49 = vmax.f32 %v9857_v32, %v9921_v31  ;;  %v16701_v51 = vpop.f32.mrb[56].mxu0  ;;  %v21434_v3 = vmax.f32 %v9984_v9, %v21423_v0 }
 0x93f   : > { %v21437_v14 = vadd.f32 %v16701_v51, %v21260_v4  ;;  %v9738_v8 = vpop.f32.mrb[57].mxu0  ;;  %v21441_v57 = vmax.f32 %v21329_v40, %v21427_v33 }
 0x940   : > { %v21445_v42 = vmax.f32 %v21331_v56, %v21429_v2  ;;  %v21449_v32 = vmax.f32 %v21335_v35, %v21431_v49  ;;  %v21452_v46 = vadd.f32 %v21260_v4, %v9738_v8  ;;  %v16702_v47 = vpop.f32.mrb[58].mxu0  ;;  %v21456_v11 = vpack.c.bf16 %v21434_v3, %v21390_v1  ;;  %v21521_v8 = vld [vmem:[#allocation2] sm:$0xff] }
 0x941   : > { %v9867_v55 = vmax.f32 %v21437_v14, 0.0  ;;  %v21460_v40 = vadd.f32 %v16702_v47, %v21260_v4  ;;  %v9741_v23 = vpop.f32.mrb[59].mxu0  ;;  %v21541_v12 = vpack.c.bf16 %v21521_v8, %v21521_v8 }
 0x942   : > { %10082 = vst [vmem:[#allocation2 + $0xd8] sm:$0xff] %v21445_v42  ;;  %v9865_v56 = vmax.f32 %v21452_v46, 0.0  ;;  %v9834_v35 = vadd.f32 %v21260_v4, %v9741_v23  ;;  %16744 = vmatmul.mubr.bf16.gmra.mrb[52].mxu1 %v21456_v11  ;;  %v21468_v52 = vpack.c.bf16 %v21445_v42, %v21449_v32 }
 0x943   : > { %9899 = vst [vmem:[#allocation2 + $0x160] sm:$0xff] %v9867_v55  ;;  %v9868_v15 = vmax.f32 %v21460_v40, 0.0  ;;  %v9924_v41 = vld [vmem:[#allocation2 + $0x12c] sm:$0xff] }
 0x944   : > { %9897 = vst [vmem:[#allocation2 + $0x150] sm:$0xff] %v9865_v56  ;;  %v9866_v6 = vmax.f32 %v9834_v35, 0.0  ;;  %v21473_v38 = vmax.f32 %v9860_v53, %v9924_v41  ;;  %v9927_v20 = vld [vmem:[#allocation2 + $0x144] sm:$0xff]  ;;  %16747 = vmatprep.mubr.bf16.mxu1 %v21468_v52  ;;  %v10033_v35 = vmax.f32 %v21521_v8, %v21155_v21  ;;  %v10034_v41 = vmax.f32 %v21521_v8, %v21163_v58  ;;  %v9972_v21 = vld [vmem:[#allocation2 + $0x1ac] sm:$0xff] }
 0x945   : > { %v9926_v13 = vld [vmem:[#allocation2 + $0x13c] sm:$0xff]  ;;  %9900 = vst [vmem:[#allocation2 + $0x168] sm:$0xff] %v9868_v15  ;;  %v9925_v29 = vld [vmem:[#allocation2 + $0x134] sm:$0xff]  ;;  %v21478_v37 = vmax.f32 %v9863_v61, %v9927_v20  ;;  %v9971_v61 = vld [vmem:[#allocation2 + $0x1a4] sm:$0xff] }
 0x946   : > { %v21480_v50 = vmax.f32 %v9862_v27, %v9926_v13  ;;  %9898 = vst [vmem:[#allocation2 + $0x158] sm:$0xff] %v9866_v6  ;;  %v21484_v45 = vmax.f32 %v21367_v24, %v21473_v38  ;;  %v21486_v16 = vmax.f32 %v9861_v5, %v9925_v29  ;;  %v16705_v53 = vpop.f32.mrb[60].mxu0  ;;  %v10035_v46 = vmax.f32 %v21521_v8, %v9971_v61 }
 0x947   : > { %v21489_v10 = vadd.f32 %v16705_v53, %v21260_v4  ;;  %v9754_v7 = vpop.f32.mrb[61].mxu0  ;;  %v21493_v28 = vmax.f32 %v21375_v59, %v21478_v37 }
 0x948   : > { %v21497_v27 = vmax.f32 %v21377_v19, %v21480_v50  ;;  %10084 = vst [vmem:[#allocation2 + $0xe8] sm:$0xff] %v21484_v45  ;;  %v21502_v24 = vmax.f32 %v21384_v44, %v21486_v16  ;;  %v21505_v5 = vadd.f32 %v21260_v4, %v9754_v7  ;;  %v16706_v9 = vpop.f32.mrb[62].mxu0  ;;  %v21509_v36 = vpack.c.bf16 %v21484_v45, %v21441_v57 }
 0x949   : > { %v9871_v59 = vmax.f32 %v21489_v10, 0.0  ;;  %v9840_v31 = vadd.f32 %v16706_v9, %v21260_v4  ;;  %v9757_v19 = vpop.f32.mrb[63].mxu0 }
 0x94a   : > { %10086 = vst [vmem:[#allocation2 + $0xf8] sm:$0xff] %v21497_v27  ;;  %v9869_v51 = vmax.f32 %v21505_v5, 0.0  ;;  %v9838_v44 = vadd.f32 %v21260_v4, %v9757_v19  ;;  %16748 = vmatmul.mubr.bf16.gmra.mrb[56].mxu1 %v21509_v36  ;;  %v21519_v14 = vpack.c.bf16 %v21497_v27, %v21502_v24  ;;  %v10040_v19 = vmax.f32 %v21521_v8, %v21244_v39 }
 0x94b   : > { %9903 = vst [vmem:[#allocation2 + $0x180] sm:$0xff] %v9871_v59  ;;  %v9872_v47 = vmax.f32 %v9840_v31, 0.0  ;;  %v9928_v23 = vld [vmem:[#allocation2 + $0x14c] sm:$0xff]  ;;  %v10036_v31 = vmax.f32 %v21521_v8, %v9972_v21 }
 0x94c   : > { %v9931_v4 = vld [vmem:[#allocation2 + $0x164] sm:$0xff]  ;;  %9901 = vst [vmem:[#allocation2 + $0x170] sm:$0xff] %v9869_v51  ;;  %v10000_v20 = vmax.f32 %v9864_v54, %v9928_v23  ;;  %v9870_v13 = vmax.f32 %v9838_v44, 0.0  ;;  %16751 = vmatprep.mubr.bf16.mxu1 %v21519_v14 }
 0x94d   : > { %v9929_v29 = vld [vmem:[#allocation2 + $0x154] sm:$0xff]  ;;  %v9930_v53 = vld [vmem:[#allocation2 + $0x15c] sm:$0xff]  ;;  %v10003_v10 = vmax.f32 %v9867_v55, %v9931_v4  ;;  %9904 = vst [vmem:[#allocation2 + $0x188] sm:$0xff] %v9872_v47 }
 0x94e   : > { %v10001_v7 = vmax.f32 %v9865_v56, %v9929_v29  ;;  %v10002_v61 = vmax.f32 %v9866_v6, %v9930_v53  ;;  %v21532_v5 = vmax.f32 %v21423_v0, %v10000_v20  ;;  %9902 = vst [vmem:[#allocation2 + $0x178] sm:$0xff] %v9870_v13 }
 0x94f   : > { %v21535_v58 = vmax.f32 %v21427_v33, %v10003_v10  ;;  %v21537_v9 = vmax.f32 %v10003_v10, %v10035_v46  ;;  %v9974_v33 = vld [vmem:[#allocation2 + $0x1bc] sm:$0xff]  ;;  %v10037_v46 = vmax.f32 %v21521_v8, %v21169_v17 }
 0x950   : > { %v21544_v54 = vmax.f32 %v21431_v49, %v10001_v7  ;;  %v21547_v55 = vmax.f32 %v21429_v2, %v10002_v61  ;;  %v21549_v56 = vmax.f32 %v10001_v7, %v10033_v35  ;;  %v10066_v0 = vmax.f32 %v10002_v61, %v10034_v41 }
 0x951   : > { %10091 = vst [vmem:[#allocation2 + $0x120] sm:$0xff] %v21535_v58  ;;  %10099 = vst [vmem:[#allocation2 + $0x160] sm:$0xff] %v21537_v9  ;;  %v21555_v6 = vpack.c.bf16 %v21532_v5, %v21493_v28  ;;  %v10039_v49 = vmax.f32 %v21521_v8, %v21181_v48  ;;  %v10038_v41 = vmax.f32 %v21521_v8, %v9974_v33 }
 0x952   : > { %10090 = vst [vmem:[#allocation2 + $0x118] sm:$0xff] %v21547_v55  ;;  %10098 = vst [vmem:[#allocation2 + $0x158] sm:$0xff] %v10066_v0  ;;  %v11434_v2 = vpack.c.bf16 %v21547_v55, %v21544_v54 }
 0x953   : > { %10089 = vst [vmem:[#allocation2 + $0x110] sm:$0xff] %v21544_v54  ;;  %10097 = vst [vmem:[#allocation2 + $0x150] sm:$0xff] %v21549_v56  ;;  %16752 = vmatmul.mubr.bf16.gmra.mrb[60].mxu1 %v21555_v6  ;;  %v9932_v44 = vld [vmem:[#allocation2 + $0x16c] sm:$0xff] }
 0x954   : > { %v9935_v23 = vld [vmem:[#allocation2 + $0x184] sm:$0xff]  ;;  %v9936_v35 = vld [vmem:[#allocation2 + $0x18c] sm:$0xff]  ;;  %16771 = vmatprep.mubr.bf16.mxu1 %v21541_v12  ;;  %v10004_v4 = vmax.f32 %v9868_v15, %v9932_v44 }
 0x955   : > { %v10007_v29 = vmax.f32 %v9871_v59, %v9935_v23  ;;  %v10008_v48 = vmax.f32 %v9872_v47, %v9936_v35  ;;  %v9933_v53 = vld [vmem:[#allocation2 + $0x174] sm:$0xff]  ;;  %v9934_v10 = vld [vmem:[#allocation2 + $0x17c] sm:$0xff]  ;;  %v21626_v35 = vpack.c.bf16 %v21350_v22, %v21521_v8  ;;  %v21642_v22 = vpack.c.bf16 %v21390_v1, %v21521_v8 }
 0x956   : > { %v10005_v39 = vmax.f32 %v9869_v51, %v9933_v53  ;;  %v10006_v7 = vmax.f32 %v9870_v13, %v9934_v10  ;;  %v21575_v61 = vmax.f32 %v21473_v38, %v10004_v4  ;;  %v21577_v21 = vmax.f32 %v10004_v4, %v10036_v31  ;;  %v18434_v44 = vld [vmem:[#allocation3 + $0x760] sm:$0xff]   ;;  %v18437_v23 = vld [vmem:[#allocation3 + $0x778] sm:$0xff]   ;;  %v18443_v53 = vld [vmem:[#allocation3 + $0x7a8] sm:$0xff]  }
 0x957   : > { %v21580_v17 = vmax.f32 %v21478_v37, %v10007_v29  ;;  %v21582_v0 = vmax.f32 %v10000_v20, %v10008_v48  ;;  %v21584_v33 = vmax.f32 %v10007_v29, %v10039_v49  ;;  %v21586_v40 = vmax.f32 %v10008_v48, %v10040_v19  ;;  %v18431_v37 = vld [vmem:[#allocation3 + $0x748] sm:$0xff]   ;;  %v18432_v49 = vld [vmem:[#allocation3 + $0x750] sm:$0xff]   ;;  %v18433_v19 = vld [vmem:[#allocation3 + $0x758] sm:$0xff]  }
 0x958   : > { %v21589_v15 = vmax.f32 %v21486_v16, %v10005_v39  ;;  %v21592_v59 = vmax.f32 %v21480_v50, %v10006_v7  ;;  %v21594_v51 = vmax.f32 %v10005_v39, %v10037_v46  ;;  %v21596_v38 = vmax.f32 %v10006_v7, %v10038_v41  ;;  %v18435_v46 = vld [vmem:[#allocation3 + $0x768] sm:$0xff]   ;;  %v18438_v41 = vld [vmem:[#allocation3 + $0x780] sm:$0xff]   ;;  %v18444_v10 = vld [vmem:[#allocation3 + $0x7b0] sm:$0xff]  }
 0x959   : > { %10096 = vst [vmem:[#allocation2 + $0x148] sm:$0xff] %v21582_v0  ;;  %10104 = vst [vmem:[#allocation2 + $0x188] sm:$0xff] %v21586_v40  ;;  %v11435_v16 = vpack.c.bf16 %v21575_v61, %v21535_v58  ;;  %v11437_v50 = vpack.c.bf16 %v21582_v0, %v21580_v17  ;;  %v11439_v20 = vpack.c.bf16 %v21577_v21, %v21537_v9  ;;  %v18445_v39 = vld [vmem:[#allocation3 + $0x7b8] sm:$0xff]  }
 0x95a   : > { %10103 = vst [vmem:[#allocation2 + $0x180] sm:$0xff] %v21584_v33  ;;  %10095 = vst [vmem:[#allocation2 + $0x140] sm:$0xff] %v21580_v17  ;;  %v11436_v47 = vpack.c.bf16 %v21592_v59, %v21589_v15  ;;  %v11440_v13 = vpack.c.bf16 %v21596_v38, %v21594_v51  ;;  %v11441_v31 = vpack.c.bf16 %v21586_v40, %v21584_v33  ;;  %v11710_v40 = vld [vmem:[#allocation2 + $0xe8] sm:$0xff] }
 0x95b   : > { %10093 = vst [vmem:[#allocation2 + $0x130] sm:$0xff] %v21589_v15  ;;  %10094 = vst [vmem:[#allocation2 + $0x138] sm:$0xff] %v21592_v59  ;;  %16772 = vmatmul.mubr.bf16.vlgmr.msra.gmra.mrb[32].mxu1 %v21541_v12  ;;  %v21632_v4 = vpack.c.bf16 %v21341_v60, %v21521_v8  ;;  %v21636_v29 = vpack.c.bf16 %v21404_v62, %v21521_v8  ;;  %v21646_v48 = vpack.c.bf16 %v21449_v32, %v21521_v8  ;;  %v18439_v32 = vld [vmem:[#allocation3 + $0x788] sm:$0xff]  }
 0x95c   : > { %10102 = vst [vmem:[#allocation2 + $0x178] sm:$0xff] %v21596_v38  ;;  %16804 = vmatpush3.bf16.msra.mxu1 %v21257_v43  ;;  %16775 = vmatprep.mubr.bf16.mxu1 %v21541_v12  ;;  %v18436_v43 = vld [vmem:[#allocation3 + $0x770] sm:$0xff]   ;;  %v21652_v60 = vpack.c.bf16 %v21441_v57, %v21521_v8  ;;  %v21656_v62 = vpack.c.bf16 %v21502_v24, %v21521_v8  ;;  %v18441_v24 = vld [vmem:[#allocation3 + $0x798] sm:$0xff]  }
 0x95d   : > { %16805 = vmatprep.subr.bf16.mxu1 %v18431_v37  ;;  %v21662_v1 = vpack.c.bf16 %v21493_v28, %v21521_v8  ;;  %v18440_v57 = vld [vmem:[#allocation3 + $0x790] sm:$0xff]   ;;  %v18442_v28 = vld [vmem:[#allocation3 + $0x7a0] sm:$0xff]   ;;  %v10790_v7 = vpack.c.bf16 %v21521_v8, %v21344_v63  ;;  %v21684_v63 = vpack.c.bf16 %v21521_v8, %v21434_v3  ;;  %v18447_v3 = vld [vmem:[#allocation3 + $0x7c8] sm:$0xff]  }
 0x960   : > { %16806 = vmatpush3.bf16.msra.mxu1 %v18431_v37  ;;  %v18446_v37 = vld [vmem:[#allocation3 + $0x7c0] sm:$0xff]  }
 0x961   : > { %16807 = vmatprep.subr.bf16.mxu1 %v18432_v49 }
 0x963   : > { %16776 = vmatmul.mubr.bf16.gmra.mrb[36].mxu1 %v21541_v12 }
 0x964   : > { %16779 = vmatprep.mubr.bf16.mxu1 %v21541_v12  ;;  %16808 = vmatpush3.bf16.msra.mxu1 %v18432_v49  ;;  %v10791_v49 = vpack.c.bf16 %v21521_v8, %v21380_v34  ;;  %v10795_v34 = vpack.c.bf16 %v21521_v8, %v21484_v45  ;;  %v18449_v45 = vld [vmem:[#allocation3 + $0x7d8] sm:$0xff]  }
 0x965   : > { %16809 = vmatprep.subr.bf16.mxu1 %v18433_v19 }
 0x968   : > { %16810 = vmatpush3.bf16.msra.mxu1 %v18433_v19  ;;  %v21679_v19 = vpack.c.bf16 %v21521_v8, %v21393_v30  ;;  %v10796_v30 = vpack.c.bf16 %v21521_v8, %v21497_v27  ;;  %v18450_v27 = vld [vmem:[#allocation3 + $0x7e0] sm:$0xff]  }
 0x969   : > { %16811 = vmatprep.subr.bf16.mxu1 %v18434_v44 }
 0x96b   : > { %16780 = vmatmul.mubr.bf16.gmra.mrb[40].mxu1 %v21541_v12 }
 0x96c   : > { %16783 = vmatprep.mubr.bf16.mxu1 %v21541_v12  ;;  %16812 = vmatpush3.bf16.msra.mxu1 %v18434_v44  ;;  %v10794_v44 = vpack.c.bf16 %v21521_v8, %v21445_v42  ;;  %v18448_v42 = vld [vmem:[#allocation3 + $0x7d0] sm:$0xff]  }
 0x96d   : > { %16813 = vmatprep.subr.bf16.mxu1 %v18435_v46 }
 0x970   : > { %16814 = vmatpush3.bf16.msra.mxu1 %v18435_v46  ;;  %v21695_v46 = vpack.c.bf16 %v21521_v8, %v21532_v5  ;;  %v18451_v5 = vld [vmem:[#allocation3 + $0x7e8] sm:$0xff]  }
 0x971   : > { %16815 = vmatprep.subr.bf16.mxu1 %v18436_v43 }
 0x973   : > { %16784 = vmatmul.mubr.bf16.gmra.mrb[44].mxu1 %v21541_v12 }
 0x974   : > { %16787 = vmatprep.mubr.bf16.mxu1 %v21626_v35  ;;  %16816 = vmatpush3.bf16.msra.mxu1 %v18436_v43  ;;  %v18452_v43 = vld [vmem:[#allocation3 + $0x7f0] sm:$0xff]  }
 0x975   : > { %16817 = vmatprep.subr.bf16.mxu1 %v18437_v23 }
 0x978   : > { %16818 = vmatpush3.bf16.msra.mxu1 %v18437_v23  ;;  %v18453_v23 = vld [vmem:[#allocation3 + $0x7f8] sm:$0xff]  }
 0x979   : > { %16851 = vmatprep.subr.bf16.mxu1 %v18438_v41 }
 0x97b   : > { %16788 = vmatmul.mubr.bf16.gmra.mrb[48].mxu1 %v21632_v4 }
 0x97c   : > { %16791 = vmatprep.mubr.bf16.mxu1 %v21636_v29 }
 0x983   : > { %16792 = vmatmul.mubr.bf16.gmra.mrb[52].mxu1 %v21642_v22 }
 0x984   : > { %16795 = vmatprep.mubr.bf16.mxu1 %v21646_v48 }
 0x98b   : > { %16796 = vmatmul.mubr.bf16.gmra.mrb[56].mxu1 %v21652_v60 }
 0x98c   : > { %16799 = vmatprep.mubr.bf16.mxu1 %v21656_v62 }
 0x993   : > { %16800 = vmatmul.mubr.bf16.gmra.mrb[60].mxu1 %v21662_v1 }
 0x994   : > { %16819 = vmatprep.mubr.bf16.mxu1 %v21541_v12 }
 0x99b   : > { %16820 = vmatmul.mubr.bf16.vlgmr.msra.gmra.mrb[32].mxu1 %v21541_v12 }
 0x99c   : > { %16852 = vmatpush3.bf16.msra.mxu1 %v18438_v41  ;;  %16823 = vmatprep.mubr.bf16.mxu1 %v21541_v12  ;;  %v18454_v41 = vld [vmem:[#allocation3 + $0x800] sm:$0xff]  }
 0x99d   : > { %16853 = vmatprep.subr.bf16.mxu1 %v18439_v32 }
 0x9a0   : > { %16854 = vmatpush3.bf16.msra.mxu1 %v18439_v32  ;;  %v18455_v32 = vld [vmem:[#allocation3 + $0x808] sm:$0xff]  }
 0x9a1   : > { %16855 = vmatprep.subr.bf16.mxu1 %v18440_v57 }
 0x9a3   : > { %16824 = vmatmul.mubr.bf16.gmra.mrb[36].mxu1 %v21541_v12 }
 0x9a4   : > { %16827 = vmatprep.mubr.bf16.mxu1 %v21541_v12  ;;  %16856 = vmatpush3.bf16.msra.mxu1 %v18440_v57  ;;  %v18456_v57 = vld [vmem:[#allocation3 + $0x810] sm:$0xff]  }
 0x9a5   : > { %16857 = vmatprep.subr.bf16.mxu1 %v18441_v24 }
 0x9a8   : > { %16858 = vmatpush3.bf16.msra.mxu1 %v18441_v24  ;;  %v18457_v24 = vld [vmem:[#allocation3 + $0x818] sm:$0xff]  }
 0x9a9   : > { %16859 = vmatprep.subr.bf16.mxu1 %v18442_v28 }
 0x9ab   : > { %16828 = vmatmul.mubr.bf16.gmra.mrb[40].mxu1 %v21541_v12 }
 0x9ac   : > { %16831 = vmatprep.mubr.bf16.mxu1 %v21541_v12  ;;  %16860 = vmatpush3.bf16.msra.mxu1 %v18442_v28  ;;  %v18458_v28 = vld [vmem:[#allocation3 + $0x820] sm:$0xff]  }
 0x9ad   : > { %16861 = vmatprep.subr.bf16.mxu1 %v18443_v53 }
 0x9b0   : > { %16862 = vmatpush3.bf16.msra.mxu1 %v18443_v53 }
 0x9b1   : > { %16863 = vmatprep.subr.bf16.mxu1 %v18444_v10 }
 0x9b3   : > { %16832 = vmatmul.mubr.bf16.gmra.mrb[44].mxu1 %v21541_v12 }
 0x9b4   : > { %16835 = vmatprep.mubr.bf16.mxu1 %v10790_v7  ;;  %16864 = vmatpush3.bf16.msra.mxu1 %v18444_v10  ;;  %v18470_v10 = vld [vmem:[#allocation3 + $0x880] sm:$0xff]   ;;  %v11774_v7 = vpack.c.bf16 %v21521_v8, %v21592_v59  ;;  %v11778_v59 = vpack.c.bf16 %v21521_v8, %v21596_v38  ;;  %v18471_v38 = vld [vmem:[#allocation3 + $0x888] sm:$0xff]  }
 0x9b5   : > { %16865 = vmatprep.subr.bf16.mxu1 %v18445_v39 }
 0x9b8   : > { %16866 = vmatpush3.bf16.msra.mxu1 %v18445_v39  ;;  %v21778_v39 = vpack.c.bf16 %v21521_v8, %v21575_v61 }
 0x9b9   : > { %16899 = vmatprep.subr.bf16.mxu1 %v18446_v37 }
 0x9bb   : > { %16836 = vmatmul.mubr.bf16.gmra.mrb[48].mxu1 %v10791_v49 }
 0x9bc   : > { %16839 = vmatprep.mubr.bf16.mxu1 %v21679_v19 }
 0x9c3   : > { %16840 = vmatmul.mubr.bf16.gmra.mrb[52].mxu1 %v21684_v63 }
 0x9c4   : > { %16843 = vmatprep.mubr.bf16.mxu1 %v10794_v44 }
 0x9cb   : > { %16844 = vmatmul.mubr.bf16.gmra.mrb[56].mxu1 %v10795_v34 }
 0x9cc   : > { %16847 = vmatprep.mubr.bf16.mxu1 %v10796_v30  ;;  %v12041_v30 = vld [vmem:[#allocation2 + $0x120] sm:$0xff] }
 0x9d3   : > { %16848 = vmatmul.mubr.bf16.gmra.mrb[60].mxu1 %v21695_v46 }
 0x9d4   : > { %16867 = vmatprep.mubr.bf16.mxu1 %v21626_v35  ;;  %v11128_v35 = vpack.c.bf16 %v21544_v54, %v21521_v8  ;;  %v11702_v54 = vld [vmem:[#allocation2 + $0xa8] sm:$0xff] }
 0x9d5   : > { %v11765_v55 = vpack.c.bf16 %v21521_v8, %v11702_v54 }
 0x9db   : > { %16868 = vmatmul.mubr.bf16.vlgmr.msra.gmra.mrb[32].mxu1 %v21632_v4  ;;  %v11129_v4 = vpack.c.bf16 %v21535_v58, %v21521_v8 }
 0x9dc   : > { %16871 = vmatprep.mubr.bf16.mxu1 %v21636_v29  ;;  %16900 = vmatpush3.bf16.msra.mxu1 %v18446_v37  ;;  %v11130_v29 = vpack.c.bf16 %v21589_v15, %v21521_v8  ;;  %v11712_v15 = vld [vmem:[#allocation2 + $0xf8] sm:$0xff]  ;;  %v11775_v37 = vpack.c.bf16 %v21521_v8, %v21582_v0  ;;  %v12039_v0 = vld [vmem:[#allocation2 + $0x110] sm:$0xff] }
 0x9dd   : > { %16901 = vmatprep.subr.bf16.mxu1 %v18447_v3  ;;  %v12102_v34 = vpack.c.bf16 %v12039_v0, %v21521_v8 }
 0x9e0   : > { %16902 = vmatpush3.bf16.msra.mxu1 %v18447_v3  ;;  %v12103_v3 = vpack.c.bf16 %v12041_v30, %v21521_v8 }
 0x9e1   : > { %16903 = vmatprep.subr.bf16.mxu1 %v18448_v42 }
 0x9e3   : > { %16872 = vmatmul.mubr.bf16.gmra.mrb[36].mxu1 %v21642_v22  ;;  %v21714_v22 = vpack.c.bf16 %v21580_v17, %v21521_v8 }
 0x9e4   : > { %16875 = vmatprep.mubr.bf16.mxu1 %v21646_v48  ;;  %16904 = vmatpush3.bf16.msra.mxu1 %v18448_v42  ;;  %v11132_v48 = vpack.c.bf16 %v21549_v56, %v21521_v8 }
 0x9e5   : > { %16905 = vmatprep.subr.bf16.mxu1 %v18449_v45 }
 0x9e8   : > { %16906 = vmatpush3.bf16.msra.mxu1 %v18449_v45  ;;  %v18472_v45 = vld [vmem:[#allocation3 + $0x890] sm:$0xff]  }
 0x9e9   : > { %16907 = vmatprep.subr.bf16.mxu1 %v18450_v27 }
 0x9eb   : > { %16876 = vmatmul.mubr.bf16.gmra.mrb[40].mxu1 %v21652_v60  ;;  %v11133_v60 = vpack.c.bf16 %v21537_v9, %v21521_v8  ;;  %v18464_v9 = vld [vmem:[#allocation3 + $0x850] sm:$0xff]  }
 0x9ec   : > { %16879 = vmatprep.mubr.bf16.mxu1 %v21656_v62  ;;  %16908 = vmatpush3.bf16.msra.mxu1 %v18450_v27  ;;  %v21723_v62 = vpack.c.bf16 %v21594_v51, %v21521_v8  ;;  %v12047_v27 = vld [vmem:[#allocation2 + $0x150] sm:$0xff] }
 0x9ed   : > { %16909 = vmatprep.subr.bf16.mxu1 %v18451_v5 }
 0x9f0   : > { %16910 = vmatpush3.bf16.msra.mxu1 %v18451_v5  ;;  %v18473_v5 = vld [vmem:[#allocation3 + $0x898] sm:$0xff]  }
 0x9f1   : > { %16911 = vmatprep.subr.bf16.mxu1 %v18452_v43 }
 0x9f3   : > { %16880 = vmatmul.mubr.bf16.gmra.mrb[44].mxu1 %v21662_v1  ;;  %v11135_v1 = vpack.c.bf16 %v21584_v33, %v21521_v8  ;;  %v18466_v33 = vld [vmem:[#allocation3 + $0x860] sm:$0xff]  }
 0x9f4   : > { %16883 = vmatprep.mubr.bf16.mxu1 %v11128_v35  ;;  %16912 = vmatpush3.bf16.msra.mxu1 %v18452_v43  ;;  %v12106_v43 = vpack.c.bf16 %v12047_v27, %v21521_v8  ;;  %v12049_v35 = vld [vmem:[#allocation2 + $0x160] sm:$0xff] }
 0x9f5   : > { %16913 = vmatprep.subr.bf16.mxu1 %v18453_v23  ;;  %v12413_v54 = vpack.c.bf16 %v21577_v21, %v12049_v35 }
 0x9f8   : > { %16914 = vmatpush3.bf16.msra.mxu1 %v18453_v23  ;;  %v18474_v23 = vld [vmem:[#allocation3 + $0x8a0] sm:$0xff]  }
 0x9f9   : > { %16947 = vmatprep.subr.bf16.mxu1 %v18454_v41 }
 0x9fb   : > { %16884 = vmatmul.mubr.bf16.gmra.mrb[48].mxu1 %v11129_v4  ;;  %v18475_v4 = vld [vmem:[#allocation3 + $0x8a8] sm:$0xff]  }
 0x9fc   : > { %16887 = vmatprep.mubr.bf16.mxu1 %v11130_v29  ;;  %v18476_v29 = vld [vmem:[#allocation3 + $0x8b0] sm:$0xff]  }
 0xa03   : > { %16888 = vmatmul.mubr.bf16.gmra.mrb[52].mxu1 %v21714_v22 }
 0xa04   : > { %16891 = vmatprep.mubr.bf16.mxu1 %v11132_v48  ;;  %v12053_v48 = vld [vmem:[#allocation2 + $0x180] sm:$0xff] }
 0xa0b   : > { %16892 = vmatmul.mubr.bf16.gmra.mrb[56].mxu1 %v11133_v60  ;;  %v18477_v60 = vld [vmem:[#allocation3 + $0x8b8] sm:$0xff]  }
 0xa0c   : > { %16895 = vmatprep.mubr.bf16.mxu1 %v21723_v62 }
 0xa13   : > { %16896 = vmatmul.mubr.bf16.gmra.mrb[60].mxu1 %v11135_v1  ;;  %v18478_v1 = vld [vmem:[#allocation3 + $0x8c0] sm:$0xff]  }
 0xa14   : > { %16915 = vmatprep.mubr.bf16.mxu1 %v21361_v26  ;;  %v18459_v26 = vld [vmem:[#allocation3 + $0x828] sm:$0xff]  }
 0xa1b   : > { %16916 = vmatmul.mubr.bf16.vlgmr.msra.gmra.mrb[32].mxu1 %v21401_v25  ;;  %v18460_v25 = vld [vmem:[#allocation3 + $0x830] sm:$0xff]  }
 0xa1c   : > { %16919 = vmatprep.mubr.bf16.mxu1 %v21415_v18  ;;  %16948 = vmatpush3.bf16.msra.mxu1 %v18454_v41  ;;  %v18461_v18 = vld [vmem:[#allocation3 + $0x838] sm:$0xff]   ;;  %v12107_v41 = vpack.c.bf16 %v12049_v35, %v21521_v8 }
 0xa1d   : > { %16949 = vmatprep.subr.bf16.mxu1 %v18455_v32 }
 0xa20   : > { %16950 = vmatpush3.bf16.msra.mxu1 %v18455_v32  ;;  %v12381_v32 = vld [vmem:[#allocation2 + $0x138] sm:$0xff] }
 0xa21   : > { %16951 = vmatprep.subr.bf16.mxu1 %v18456_v57 }
 0xa23   : > { %16920 = vmatmul.mubr.bf16.gmra.mrb[36].mxu1 %v21456_v11  ;;  %v18462_v11 = vld [vmem:[#allocation3 + $0x840] sm:$0xff]  }
 0xa24   : > { %16923 = vmatprep.mubr.bf16.mxu1 %v21468_v52  ;;  %16952 = vmatpush3.bf16.msra.mxu1 %v18456_v57  ;;  %v21745_v52 = vld [vmem:[#allocation2 + $0x158] sm:$0xff]  ;;  %v12409_v57 = vpack.c.bf16 %v21575_v61, %v12041_v30  ;;  %v18482_v61 = vld [vmem:[#allocation3 + $0x8e0] sm:$0xff]  }
 0xa25   : > { %16953 = vmatprep.subr.bf16.mxu1 %v18457_v24  ;;  %v21787_v49 = vpack.c.bf16 %v21521_v8, %v21745_v52 }
 0xa28   : > { %16954 = vmatpush3.bf16.msra.mxu1 %v18457_v24  ;;  %v18479_v24 = vld [vmem:[#allocation3 + $0x8c8] sm:$0xff]  }
 0xa29   : > { %16955 = vmatprep.subr.bf16.mxu1 %v18458_v28 }
 0xa2b   : > { %16924 = vmatmul.mubr.bf16.gmra.mrb[40].mxu1 %v21509_v36  ;;  %v11438_v36 = vpack.c.bf16 %v21745_v52, %v21549_v56  ;;  %v18463_v56 = vld [vmem:[#allocation3 + $0x848] sm:$0xff]  }
 0xa2c   : > { %16927 = vmatprep.mubr.bf16.mxu1 %v21519_v14  ;;  %16956 = vmatpush3.bf16.msra.mxu1 %v18458_v28  ;;  %v11700_v14 = vld [vmem:[#allocation2 + $0x98] sm:$0xff] }
 0xa2d   : > { %16957 = vmatprep.subr.bf16.mxu1 %v18459_v26  ;;  %v11764_v58 = vpack.c.bf16 %v21521_v8, %v11700_v14  ;;  %v12412_v14 = vpack.c.bf16 %v21745_v52, %v12047_v27 }
 0xa30   : > { %16958 = vmatpush3.bf16.msra.mxu1 %v18459_v26  ;;  %v18480_v26 = vld [vmem:[#allocation3 + $0x8d0] sm:$0xff]  }
 0xa31   : > { %16959 = vmatprep.subr.bf16.mxu1 %v18460_v25 }
 0xa33   : > { %16928 = vmatmul.mubr.bf16.gmra.mrb[44].mxu1 %v21555_v6  ;;  %v11708_v6 = vld [vmem:[#allocation2 + $0xd8] sm:$0xff] }
 0xa34   : > { %16931 = vmatprep.mubr.bf16.mxu1 %v11434_v2  ;;  %16960 = vmatpush3.bf16.msra.mxu1 %v18460_v25  ;;  %v18465_v2 = vld [vmem:[#allocation3 + $0x858] sm:$0xff]   ;;  %v11768_v17 = vpack.c.bf16 %v21521_v8, %v11708_v6  ;;  %v12382_v25 = vld [vmem:[#allocation2 + $0x140] sm:$0xff] }
 0xa35   : > { %16961 = vmatprep.subr.bf16.mxu1 %v18461_v18  ;;  %v18485_v6 = vld [vmem:[#allocation3 + $0x8f8] sm:$0xff]  }
 0xa38   : > { %16962 = vmatpush3.bf16.msra.mxu1 %v18461_v18  ;;  %v12383_v18 = vld [vmem:[#allocation2 + $0x148] sm:$0xff] }
 0xa39   : > { %16995 = vmatprep.subr.bf16.mxu1 %v18462_v11 }
 0xa3b   : > { %16932 = vmatmul.mubr.bf16.gmra.mrb[48].mxu1 %v11435_v16  ;;  %v11769_v16 = vpack.c.bf16 %v21521_v8, %v11710_v40 }
 0xa3c   : > { %16935 = vmatprep.mubr.bf16.mxu1 %v11436_v47  ;;  %v11770_v47 = vpack.c.bf16 %v21521_v8, %v11712_v15 }
 0xa43   : > { %16936 = vmatmul.mubr.bf16.gmra.mrb[52].mxu1 %v11437_v50  ;;  %v18467_v50 = vld [vmem:[#allocation3 + $0x868] sm:$0xff]  }
 0xa44   : > { %16939 = vmatprep.mubr.bf16.mxu1 %v11438_v36  ;;  %v18481_v36 = vld [vmem:[#allocation3 + $0x8d8] sm:$0xff]  }
 0xa4b   : > { %16940 = vmatmul.mubr.bf16.gmra.mrb[56].mxu1 %v11439_v20  ;;  %v18468_v20 = vld [vmem:[#allocation3 + $0x870] sm:$0xff]  }
 0xa4c   : > { %16943 = vmatprep.mubr.bf16.mxu1 %v11440_v13  ;;  %v21768_v13 = vld [vmem:[#allocation2 + $0x118] sm:$0xff] }
 0xa4d   : > { %v21772_v53 = vpack.c.bf16 %v21521_v8, %v21768_v13 }
 0xa53   : > { %16944 = vmatmul.mubr.bf16.gmra.mrb[60].mxu1 %v11441_v31  ;;  %v18469_v31 = vld [vmem:[#allocation3 + $0x878] sm:$0xff]  }
 0xa54   : > { %16963 = vmatprep.mubr.bf16.mxu1 %v11764_v58  ;;  %v12389_v58 = vld [vmem:[#allocation2 + $0x178] sm:$0xff] }
 0xa5b   : > { %16964 = vmatmul.mubr.bf16.vlgmr.msra.gmra.mrb[32].mxu1 %v11765_v55  ;;  %v18483_v55 = vld [vmem:[#allocation3 + $0x8e8] sm:$0xff]  }
 0xa5c   : > { %16967 = vmatprep.mubr.bf16.mxu1 %v21679_v19  ;;  %16996 = vmatpush3.bf16.msra.mxu1 %v18462_v11  ;;  %v21792_v19 = vpack.c.bf16 %v21521_v8, %v21577_v21  ;;  %v12411_v11 = vpack.c.bf16 %v12383_v18, %v12382_v25  ;;  %v12748_v21 = vpack.c.bf16 %v21521_v8, %v12381_v32 }
 0xa5d   : > { %16997 = vmatprep.subr.bf16.mxu1 %v18463_v56 }
 0xa60   : > { %16998 = vmatpush3.bf16.msra.mxu1 %v18463_v56  ;;  %v12414_v56 = vpack.c.bf16 %v12389_v58, %v21594_v51  ;;  %v12749_v51 = vpack.c.bf16 %v21521_v8, %v12383_v18 }
 0xa61   : > { %16999 = vmatprep.subr.bf16.mxu1 %v18464_v9 }
 0xa63   : > { %16968 = vmatmul.mubr.bf16.gmra.mrb[36].mxu1 %v21684_v63  ;;  %v21797_v63 = vld [vmem:[#allocation2 + $0x188] sm:$0xff] }
 0xa64   : > { %16971 = vmatprep.mubr.bf16.mxu1 %v11768_v17  ;;  %17000 = vmatpush3.bf16.msra.mxu1 %v18464_v9  ;;  %v21801_v44 = vpack.c.bf16 %v21521_v8, %v21797_v63  ;;  %v18484_v9 = vld [vmem:[#allocation3 + $0x8f0] sm:$0xff]   ;;  %v12415_v52 = vpack.c.bf16 %v21797_v63, %v12053_v48 }
 0xa65   : > { %17001 = vmatprep.subr.bf16.mxu1 %v18465_v2 }
 0xa68   : > { %17002 = vmatpush3.bf16.msra.mxu1 %v18465_v2  ;;  %v12752_v2 = vpack.c.bf16 %v21521_v8, %v12389_v58 }
 0xa69   : > { %17003 = vmatprep.subr.bf16.mxu1 %v18466_v33 }
 0xa6b   : > { %16972 = vmatmul.mubr.bf16.gmra.mrb[40].mxu1 %v11769_v16 }
 0xa6c   : > { %16975 = vmatprep.mubr.bf16.mxu1 %v11770_v47  ;;  %17004 = vmatpush3.bf16.msra.mxu1 %v18466_v33 }
 0xa6d   : > { %17005 = vmatprep.subr.bf16.mxu1 %v18467_v50 }
 0xa70   : > { %17006 = vmatpush3.bf16.msra.mxu1 %v18467_v50 }
 0xa71   : > { %17007 = vmatprep.subr.bf16.mxu1 %v18468_v20 }
 0xa73   : > { %16976 = vmatmul.mubr.bf16.gmra.mrb[44].mxu1 %v21695_v46  ;;  %v12043_v46 = vld [vmem:[#allocation2 + $0x130] sm:$0xff] }
 0xa74   : > { %16979 = vmatprep.mubr.bf16.mxu1 %v21772_v53  ;;  %17008 = vmatpush3.bf16.msra.mxu1 %v18468_v20  ;;  %v12104_v42 = vpack.c.bf16 %v12043_v46, %v21521_v8  ;;  %v12410_v28 = vpack.c.bf16 %v12381_v32, %v12043_v46 }
 0xa75   : > { %17009 = vmatprep.subr.bf16.mxu1 %v18469_v31 }
 0xa78   : > { %17010 = vmatpush3.bf16.msra.mxu1 %v18469_v31 }
 0xa79   : > { %17043 = vmatprep.subr.bf16.mxu1 %v18470_v10 }
 0xa7b   : > { %16980 = vmatmul.mubr.bf16.gmra.mrb[48].mxu1 %v21778_v39 }
 0xa7c   : > { %16983 = vmatprep.mubr.bf16.mxu1 %v11774_v7 }
 0xa83   : > { %16984 = vmatmul.mubr.bf16.gmra.mrb[52].mxu1 %v11775_v37 }
 0xa84   : > { %16987 = vmatprep.mubr.bf16.mxu1 %v21787_v49 }
 0xa8b   : > { %16988 = vmatmul.mubr.bf16.gmra.mrb[56].mxu1 %v21792_v19 }
 0xa8c   : > { %16991 = vmatprep.mubr.bf16.mxu1 %v11778_v59 }
 0xa93   : > { %16992 = vmatmul.mubr.bf16.gmra.mrb[60].mxu1 %v21801_v44 }
 0xa94   : > { %17011 = vmatprep.mubr.bf16.mxu1 %v12102_v34 }
 0xa9b   : > { %17012 = vmatmul.mubr.bf16.vlgmr.msra.gmra.mrb[32].mxu1 %v12103_v3 }
 0xa9c   : > { %17015 = vmatprep.mubr.bf16.mxu1 %v12104_v42  ;;  %17044 = vmatpush3.bf16.msra.mxu1 %v18470_v10 }
 0xa9d   : > { %17045 = vmatprep.subr.bf16.mxu1 %v18471_v38 }
 0xaa0   : > { %17046 = vmatpush3.bf16.msra.mxu1 %v18471_v38 }
 0xaa1   : > { %17047 = vmatprep.subr.bf16.mxu1 %v18472_v45 }
 0xaa3   : > { %17016 = vmatmul.mubr.bf16.gmra.mrb[36].mxu1 %v21714_v22  ;;  %v12109_v22 = vpack.c.bf16 %v12053_v48, %v21521_v8  ;;  %v21850_v8 = vld [vmem:[#allocation5 + $0x3] ss:$0 sm:$0xff] }
 0xaa4   : > { %17019 = vmatprep.mubr.bf16.mxu1 %v12106_v43  ;;  %17048 = vmatpush3.bf16.msra.mxu1 %v18472_v45 }
 0xaa5   : > { %17049 = vmatprep.subr.bf16.mxu1 %v18473_v5 }
 0xaa8   : > { %17050 = vmatpush3.bf16.msra.mxu1 %v18473_v5 }
 0xaa9   : > { %17051 = vmatprep.subr.bf16.mxu1 %v18474_v23 }
 0xaab   : > { %17020 = vmatmul.mubr.bf16.gmra.mrb[40].mxu1 %v12107_v41 }
 0xaac   : > { %17023 = vmatprep.mubr.bf16.mxu1 %v21723_v62  ;;  %17052 = vmatpush3.bf16.msra.mxu1 %v18474_v23  ;;  %v12408_v62 = vpack.c.bf16 %v21768_v13, %v12039_v0 }
 0xaad   : > { %17053 = vmatprep.subr.bf16.mxu1 %v18475_v4 }
 0xab0   : > { %17054 = vmatpush3.bf16.msra.mxu1 %v18475_v4 }
 0xab1   : > { %17055 = vmatprep.subr.bf16.mxu1 %v18476_v29 }
 0xab3   : > { %17024 = vmatmul.mubr.bf16.gmra.mrb[44].mxu1 %v12109_v22 }
 0xab4   : > { %17027 = vmatprep.mubr.bf16.mxu1 %v21541_v12  ;;  %17056 = vmatpush3.bf16.msra.mxu1 %v18476_v29 }
 0xab5   : > { %17057 = vmatprep.subr.bf16.mxu1 %v18477_v60 }
 0xab8   : > { %17058 = vmatpush3.bf16.msra.mxu1 %v18477_v60 }
 0xab9   : > { %17091 = vmatprep.subr.bf16.mxu1 %v18478_v1 }
 0xabb   : > { %17028 = vmatmul.mubr.bf16.gmra.mrb[48].mxu1 %v21541_v12 }
 0xabc   : > { %17031 = vmatprep.mubr.bf16.mxu1 %v21541_v12 }
 0xac3   : > { %17032 = vmatmul.mubr.bf16.gmra.mrb[52].mxu1 %v21541_v12 }
 0xac4   : > { %17035 = vmatprep.mubr.bf16.mxu1 %v21541_v12 }
 0xacb   : > { %17036 = vmatmul.mubr.bf16.gmra.mrb[56].mxu1 %v21541_v12 }
 0xacc   : > { %17039 = vmatprep.mubr.bf16.mxu1 %v21541_v12 }
 0xad3   : > { %17040 = vmatmul.mubr.bf16.gmra.mrb[60].mxu1 %v21541_v12 }
 0xad4   : > { %17059 = vmatprep.mubr.bf16.mxu1 %v12408_v62 }
 0xadb   : > { %17060 = vmatmul.mubr.bf16.vlgmr.msra.gmra.mrb[32].mxu1 %v12409_v57 }
 0xadc   : > { %17063 = vmatprep.mubr.bf16.mxu1 %v12410_v28  ;;  %17092 = vmatpush3.bf16.msra.mxu1 %v18478_v1 }
 0xadd   : > { %17093 = vmatprep.subr.bf16.mxu1 %v18479_v24 }
 0xae0   : > { %17094 = vmatpush3.bf16.msra.mxu1 %v18479_v24 }
 0xae1   : > { %17095 = vmatprep.subr.bf16.mxu1 %v18480_v26 }
 0xae3   : > { %17064 = vmatmul.mubr.bf16.gmra.mrb[36].mxu1 %v12411_v11 }
 0xae4   : > { %17067 = vmatprep.mubr.bf16.mxu1 %v12412_v14  ;;  %17096 = vmatpush3.bf16.msra.mxu1 %v18480_v26 }
 0xae5   : > { %17097 = vmatprep.subr.bf16.mxu1 %v18481_v36 }
 0xae8   : > { %17098 = vmatpush3.bf16.msra.mxu1 %v18481_v36 }
 0xae9   : > { %17099 = vmatprep.subr.bf16.mxu1 %v18482_v61 }
 0xaeb   : > { %17068 = vmatmul.mubr.bf16.gmra.mrb[40].mxu1 %v12413_v54 }
 0xaec   : > { %17071 = vmatprep.mubr.bf16.mxu1 %v12414_v56  ;;  %17100 = vmatpush3.bf16.msra.mxu1 %v18482_v61 }
 0xaed   : > { %17101 = vmatprep.subr.bf16.mxu1 %v18483_v55 }
 0xaf0   : > { %17102 = vmatpush3.bf16.msra.mxu1 %v18483_v55 }
 0xaf1   : > { %17103 = vmatprep.subr.bf16.mxu1 %v18484_v9 }
 0xaf3   : > { %17072 = vmatmul.mubr.bf16.gmra.mrb[44].mxu1 %v12415_v52 }
 0xaf4   : > { %17075 = vmatprep.mubr.bf16.mxu1 %v21541_v12  ;;  %17104 = vmatpush3.bf16.msra.mxu1 %v18484_v9 }
 0xaf5   : > { %17105 = vmatprep.subr.bf16.mxu1 %v18485_v6 }
 0xaf8   : > { %17106 = vmatpush3.bf16.msra.mxu1 %v18485_v6 }
 0xafb   : > { %17076 = vmatmul.mubr.bf16.gmra.mrb[48].mxu1 %v21541_v12 }
 0xafc   : > { %17079 = vmatprep.mubr.bf16.mxu1 %v21541_v12 }
 0xb03   : > { %17080 = vmatmul.mubr.bf16.gmra.mrb[52].mxu1 %v21541_v12 }
 0xb04   : > { %17083 = vmatprep.mubr.bf16.mxu1 %v21541_v12 }
 0xb0b   : > { %17084 = vmatmul.mubr.bf16.gmra.mrb[56].mxu1 %v21541_v12 }
 0xb0c   : > { %17087 = vmatprep.mubr.bf16.mxu1 %v21541_v12 }
 0xb13   : > { %17088 = vmatmul.mubr.bf16.gmra.mrb[60].mxu1 %v21541_v12 }
 0xb14   : > { %17107 = vmatprep.mubr.bf16.mxu1 %v21772_v53 }
 0xb1b   : > { %17108 = vmatmul.mubr.bf16.vlgmr.msra.gmra.mrb[32].mxu1 %v21778_v39 }
 0xb1c   : > { %17111 = vmatprep.mubr.bf16.mxu1 %v12748_v21 }
 0xb23   : > { %17112 = vmatmul.mubr.bf16.gmra.mrb[36].mxu1 %v12749_v51 }
 0xb24   : > { %17115 = vmatprep.mubr.bf16.mxu1 %v21787_v49 }
 0xb2b   : > { %17116 = vmatmul.mubr.bf16.gmra.mrb[40].mxu1 %v21792_v19 }
 0xb2c   : > { %17119 = vmatprep.mubr.bf16.mxu1 %v12752_v2 }
 0xb33   : > { %17120 = vmatmul.mubr.bf16.gmra.mrb[44].mxu1 %v21801_v44 }
 0xb34   : > { %17123 = vmatprep.mubr.bf16.mxu1 %v21541_v12 }
 0xb3b   : > { %17124 = vmatmul.mubr.bf16.gmra.mrb[48].mxu1 %v21541_v12 }
 0xb3c   : > { %17127 = vmatprep.mubr.bf16.mxu1 %v21541_v12 }
 0xb43   : > { %17128 = vmatmul.mubr.bf16.gmra.mrb[52].mxu1 %v21541_v12 }
 0xb44   : > { %17131 = vmatprep.mubr.bf16.mxu1 %v21541_v12 }
 0xb4b   : > { %17132 = vmatmul.mubr.bf16.gmra.mrb[56].mxu1 %v21541_v12 }
 0xb4c   : > { %17135 = vmatprep.mubr.bf16.mxu1 %v21541_v12 }
 0xb53   : > { %17136 = vmatmul.mubr.bf16.gmra.mrb[60].mxu1 %v21541_v12 }
 0xbee   : > { %v17109_v17 = vpop.f32.mrb[32].mxu1 }
 0xbef   : > { %v13030_v33 = vadd.f32 %v17109_v17, %v21850_v8  ;;  %v12861_v40 = vpop.f32.mrb[33].mxu1 }
 0xbf0   : > { %v13028_v15 = vadd.f32 %v21850_v8, %v12861_v40  ;;  %v17110_v16 = vpop.f32.mrb[34].mxu1 }
 0xbf1   : > { %v13031_v50 = vadd.f32 %v17110_v16, %v21850_v8  ;;  %v12864_v47 = vpop.f32.mrb[35].mxu1  ;;  %v13062_v13 = vmax.f32 %v13030_v33, 0.0 }
 0xbf2   : > { %v13029_v20 = vadd.f32 %v21850_v8, %v12864_v47  ;;  %v13060_v53 = vmax.f32 %v13028_v15, 0.0 }
 0xbf3   : > { %v13063_v31 = vmax.f32 %v13031_v50, 0.0 }
 0xbf4   : > { %v13061_v10 = vmax.f32 %v13029_v20, 0.0 }
 0xbf5   : > { %v21856_v39 = vmax.f32 %v13062_v13, %v13063_v31 }
 0xbf6   : > { %v21858_v12 = vmax.f32 %v13061_v10, %v13062_v13  ;;  %v17113_v7 = vpop.f32.mrb[36].mxu1  ;;  %v21860_v37 = vmax.f32 %v13060_v53, %v13061_v10  ;;  %v21904_v10 = vld [vmem:[#allocation2] sm:$0xff] }
 0xbf7   : > { %v13034_v49 = vadd.f32 %v17113_v7, %v21850_v8  ;;  %v12877_v19 = vpop.f32.mrb[37].mxu1 }
 0xbf8   : > { %v13032_v59 = vadd.f32 %v21850_v8, %v12877_v19  ;;  %v17114_v63 = vpop.f32.mrb[38].mxu1 }
 0xbf9   : > { %v13035_v0 = vadd.f32 %v17114_v63, %v21850_v8  ;;  %v12880_v44 = vpop.f32.mrb[39].mxu1  ;;  %v13066_v46 = vmax.f32 %v13034_v49, 0.0 }
 0xbfa   : > { %v13064_v34 = vmax.f32 %v13032_v59, 0.0  ;;  %v13033_v30 = vadd.f32 %v21850_v8, %v12880_v44 }
 0xbfb   : > { %v13067_v3 = vmax.f32 %v13035_v0, 0.0 }
 0xbfc   : > { %v13065_v38 = vmax.f32 %v13033_v30, 0.0  ;;  %v21866_v42 = vmax.f32 %v13063_v31, %v13064_v34 }
 0xbfd   : > { %v21868_v45 = vmax.f32 %v13066_v46, %v13067_v3 }
 0xbfe   : > { %v21870_v27 = vmax.f32 %v13065_v38, %v13066_v46  ;;  %v17117_v5 = vpop.f32.mrb[40].mxu1  ;;  %v21872_v43 = vmax.f32 %v13064_v34, %v13065_v38 }
 0xbff   : > { %v13038_v23 = vadd.f32 %v17117_v5, %v21850_v8  ;;  %v12893_v35 = vpop.f32.mrb[41].mxu1 }
 0xc00   : > { %v13036_v41 = vadd.f32 %v21850_v8, %v12893_v35  ;;  %v17118_v4 = vpop.f32.mrb[42].mxu1 }
 0xc01   : > { %v13039_v29 = vadd.f32 %v17118_v4, %v21850_v8  ;;  %v12896_v48 = vpop.f32.mrb[43].mxu1  ;;  %v13070_v1 = vmax.f32 %v13038_v23, 0.0 }
 0xc02   : > { %v13068_v22 = vmax.f32 %v13036_v41, 0.0  ;;  %v13037_v60 = vadd.f32 %v21850_v8, %v12896_v48 }
 0xc03   : > { %v13071_v62 = vmax.f32 %v13039_v29, 0.0 }
 0xc04   : > { %v13069_v32 = vmax.f32 %v13037_v60, 0.0  ;;  %v21878_v57 = vmax.f32 %v13067_v3, %v13068_v22 }
 0xc05   : > { %v21880_v24 = vmax.f32 %v13070_v1, %v13071_v62 }
 0xc06   : > { %v21882_v28 = vmax.f32 %v13069_v32, %v13070_v1  ;;  %v17121_v26 = vpop.f32.mrb[44].mxu1  ;;  %v21884_v25 = vmax.f32 %v13068_v22, %v13069_v32 }
 0xc07   : > { %v13042_v18 = vadd.f32 %v17121_v26, %v21850_v8  ;;  %v12909_v11 = vpop.f32.mrb[45].mxu1 }
 0xc08   : > { %v13040_v36 = vadd.f32 %v21850_v8, %v12909_v11  ;;  %v17122_v14 = vpop.f32.mrb[46].mxu1 }
 0xc09   : > { %v13043_v61 = vadd.f32 %v17122_v14, %v21850_v8  ;;  %v12912_v58 = vpop.f32.mrb[47].mxu1  ;;  %v13074_v56 = vmax.f32 %v13042_v18, 0.0 }
 0xc0a   : > { %v13072_v54 = vmax.f32 %v13040_v36, 0.0  ;;  %v13041_v55 = vadd.f32 %v21850_v8, %v12912_v58 }
 0xc0b   : > { %v13075_v9 = vmax.f32 %v13043_v61, 0.0 }
 0xc0c   : > { %v13073_v52 = vmax.f32 %v13041_v55, 0.0  ;;  %v21891_v6 = vmax.f32 %v13071_v62, %v13072_v54 }
 0xc0d   : > { %v21893_v21 = vmax.f32 %v13074_v56, %v13075_v9 }
 0xc0e   : > { %v21895_v51 = vmax.f32 %v13073_v52, %v13074_v56  ;;  %v17125_v2 = vpop.f32.mrb[48].mxu1  ;;  %v21897_v17 = vmax.f32 %v13072_v54, %v13073_v52 }
 0xc0f   : > { %v13046_v33 = vadd.f32 %v17125_v2, %v21850_v8  ;;  %v12925_v40 = vpop.f32.mrb[49].mxu1 }
 0xc10   : > { %v13044_v15 = vadd.f32 %v21850_v8, %v12925_v40  ;;  %v17126_v16 = vpop.f32.mrb[50].mxu1 }
 0xc11   : > { %v13047_v50 = vadd.f32 %v17126_v16, %v21850_v8  ;;  %v12928_v47 = vpop.f32.mrb[51].mxu1  ;;  %v13078_v31 = vmax.f32 %v13046_v33, 0.0 }
 0xc12   : > { %v13076_v20 = vmax.f32 %v13044_v15, 0.0  ;;  %v13045_v13 = vadd.f32 %v21850_v8, %v12928_v47 }
 0xc13   : > { %v13079_v53 = vmax.f32 %v13047_v50, 0.0 }
 0xc14   : > { %v13077_v7 = vmax.f32 %v13045_v13, 0.0  ;;  %v21906_v49 = vmax.f32 %v13075_v9, %v13076_v20 }
 0xc15   : > { %v13190_v19 = vmax.f32 %v13078_v31, %v13079_v53 }
 0xc16   : > { %v13189_v59 = vmax.f32 %v13077_v7, %v13078_v31  ;;  %v17129_v63 = vpop.f32.mrb[52].mxu1  ;;  %v13188_v0 = vmax.f32 %v13076_v20, %v13077_v7 }
 0xc17   : > { %v13238_v44 = vmax.f32 %v21856_v39, %v13190_v19  ;;  %v13254_v34 = vmax.f32 %v13190_v19, %v21904_v10  ;;  %v13050_v30 = vadd.f32 %v17129_v63, %v21850_v8  ;;  %v12941_v46 = vpop.f32.mrb[53].mxu1 }
 0xc18   : > { %v13237_v3 = vmax.f32 %v21858_v12, %v13189_v59  ;;  %v13253_v38 = vmax.f32 %v13189_v59, %v21904_v10  ;;  %v13048_v5 = vadd.f32 %v21850_v8, %v12941_v46  ;;  %v17130_v23 = vpop.f32.mrb[54].mxu1  ;;  %v13236_v35 = vmax.f32 %v21860_v37, %v13188_v0 }
 0xc19   : > { %13270 = vst [vmem:[#allocation2 + $0xa0] sm:$0xff] %v13238_v44  ;;  %13286 = vst [vmem:[#allocation2 + $0x120] sm:$0xff] %v13254_v34  ;;  %v13051_v39 = vadd.f32 %v17130_v23, %v21850_v8  ;;  %v12944_v41 = vpop.f32.mrb[55].mxu1  ;;  %v13252_v4 = vmax.f32 %v13188_v0, %v21904_v10  ;;  %v13082_v12 = vmax.f32 %v13050_v30, 0.0 }
 0xc1a   : > { %13285 = vst [vmem:[#allocation2 + $0x118] sm:$0xff] %v13253_v38  ;;  %v13080_v29 = vmax.f32 %v13048_v5, 0.0  ;;  %v13049_v48 = vadd.f32 %v21850_v8, %v12944_v41  ;;  %13268 = vst [vmem:[#allocation2 + $0x90] sm:$0xff] %v13236_v35 }
 0xc1b   : > { %13269 = vst [vmem:[#allocation2 + $0x98] sm:$0xff] %v13237_v3  ;;  %13301 = vst [vmem:[%s200_s27] sm:$0xff] %v13236_v35  ;;  %v13083_v22 = vmax.f32 %v13051_v39, 0.0 }
 0xc1c   : > { %13284 = vst [vmem:[#allocation2 + $0x110] sm:$0xff] %v13252_v4  ;;  %v13081_v60 = vmax.f32 %v13049_v48, 0.0  ;;  %v13191_v1 = vmax.f32 %v13079_v53, %v13080_v29 }
 0xc1d   : > { %v13194_v37 = vmax.f32 %v13082_v12, %v13083_v22 }
 0xc1e   : > { %v13192_v62 = vmax.f32 %v13080_v29, %v13081_v60  ;;  %v13193_v32 = vmax.f32 %v13081_v60, %v13082_v12  ;;  %v13239_v26 = vmax.f32 %v21866_v42, %v13191_v1  ;;  %v13255_v18 = vmax.f32 %v13191_v1, %v21904_v10  ;;  %v17133_v11 = vpop.f32.mrb[56].mxu1 }
 0xc1f   : > { %v13242_v36 = vmax.f32 %v21868_v45, %v13194_v37  ;;  %v13258_v14 = vmax.f32 %v13194_v37, %v21904_v10  ;;  %v13054_v61 = vadd.f32 %v17133_v11, %v21850_v8  ;;  %v12957_v58 = vpop.f32.mrb[57].mxu1 }
 0xc20   : > { %v13240_v54 = vmax.f32 %v21872_v43, %v13192_v62  ;;  %v13241_v55 = vmax.f32 %v21870_v27, %v13193_v32  ;;  %v13256_v56 = vmax.f32 %v13192_v62, %v21904_v10  ;;  %v13257_v9 = vmax.f32 %v13193_v32, %v21904_v10  ;;  %13271 = vst [vmem:[#allocation2 + $0xa8] sm:$0xff] %v13239_v26  ;;  %v17134_v42 = vpop.f32.mrb[58].mxu1 }
 0xc21   : > { %13287 = vst [vmem:[#allocation2 + $0x128] sm:$0xff] %v13255_v18  ;;  %13274 = vst [vmem:[#allocation2 + $0xc0] sm:$0xff] %v13242_v36  ;;  %v13052_v45 = vadd.f32 %v21850_v8, %v12957_v58  ;;  %v13055_v52 = vadd.f32 %v17134_v42, %v21850_v8  ;;  %v12960_v2 = vpop.f32.mrb[59].mxu1  ;;  %v13086_v43 = vmax.f32 %v13054_v61, 0.0 }
 0xc22   : > { %13290 = vst [vmem:[#allocation2 + $0x140] sm:$0xff] %v13258_v14  ;;  %13272 = vst [vmem:[#allocation2 + $0xb0] sm:$0xff] %v13240_v54  ;;  %v13053_v27 = vadd.f32 %v21850_v8, %v12960_v2 }
 0xc23   : > { %13273 = vst [vmem:[#allocation2 + $0xb8] sm:$0xff] %v13241_v55  ;;  %13288 = vst [vmem:[#allocation2 + $0x130] sm:$0xff] %v13256_v56  ;;  %v13084_v33 = vmax.f32 %v13052_v45, 0.0  ;;  %v13087_v40 = vmax.f32 %v13055_v52, 0.0 }
 0xc24   : > { %13289 = vst [vmem:[#allocation2 + $0x138] sm:$0xff] %v13257_v9  ;;  %v13085_v15 = vmax.f32 %v13053_v27, 0.0 }
 0xc25   : > { %v13195_v16 = vmax.f32 %v13083_v22, %v13084_v33  ;;  %v13198_v50 = vmax.f32 %v13086_v43, %v13087_v40 }
 0xc26   : > { %v13196_v47 = vmax.f32 %v13084_v33, %v13085_v15  ;;  %v13197_v20 = vmax.f32 %v13085_v15, %v13086_v43  ;;  %v17137_v13 = vpop.f32.mrb[60].mxu1 }
 0xc27   : > { %v13243_v31 = vmax.f32 %v21878_v57, %v13195_v16  ;;  %v13246_v53 = vmax.f32 %v21880_v24, %v13198_v50  ;;  %v13259_v7 = vmax.f32 %v13195_v16, %v21904_v10  ;;  %v13262_v19 = vmax.f32 %v13198_v50, %v21904_v10  ;;  %v12973_v59 = vpop.f32.mrb[61].mxu1 }
 0xc28   : > { %v13244_v63 = vmax.f32 %v21884_v25, %v13196_v47  ;;  %v13245_v0 = vmax.f32 %v21882_v28, %v13197_v20  ;;  %v13260_v44 = vmax.f32 %v13196_v47, %v21904_v10  ;;  %v13261_v34 = vmax.f32 %v13197_v20, %v21904_v10  ;;  %v17138_v30 = vpop.f32.mrb[62].mxu1 }
 0xc29   : > { %13275 = vst [vmem:[#allocation2 + $0xc8] sm:$0xff] %v13243_v31  ;;  %13278 = vst [vmem:[#allocation2 + $0xe0] sm:$0xff] %v13246_v53  ;;  %v13058_v57 = vadd.f32 %v17137_v13, %v21850_v8  ;;  %v13056_v24 = vadd.f32 %v21850_v8, %v12973_v59  ;;  %v13059_v46 = vadd.f32 %v17138_v30, %v21850_v8  ;;  %v12976_v3 = vpop.f32.mrb[63].mxu1 }
 0xc2a   : > { %13291 = vst [vmem:[#allocation2 + $0x148] sm:$0xff] %v13259_v7  ;;  %13294 = vst [vmem:[#allocation2 + $0x160] sm:$0xff] %v13262_v19  ;;  %v13057_v28 = vadd.f32 %v21850_v8, %v12976_v3 }
 0xc2b   : > { %13276 = vst [vmem:[#allocation2 + $0xd0] sm:$0xff] %v13244_v63  ;;  %13277 = vst [vmem:[#allocation2 + $0xd8] sm:$0xff] %v13245_v0  ;;  %v13090_v25 = vmax.f32 %v13058_v57, 0.0  ;;  %v13088_v38 = vmax.f32 %v13056_v24, 0.0  ;;  %v13091_v5 = vmax.f32 %v13059_v46, 0.0 }
 0xc2c   : > { %13292 = vst [vmem:[#allocation2 + $0x150] sm:$0xff] %v13260_v44  ;;  %13293 = vst [vmem:[#allocation2 + $0x158] sm:$0xff] %v13261_v34  ;;  %v13089_v23 = vmax.f32 %v13057_v28, 0.0 }
 0xc2d   : > { %v13203_v35 = vmax.f32 %v13091_v5, %v21904_v10  ;;  %v13199_v39 = vmax.f32 %v13087_v40, %v13088_v38  ;;  %v13202_v41 = vmax.f32 %v13090_v25, %v13091_v5 }
 0xc2e   : > { %v13200_v4 = vmax.f32 %v13088_v38, %v13089_v23  ;;  %v13201_v29 = vmax.f32 %v13089_v23, %v13090_v25 }
 0xc2f   : > { %v13251_v48 = vmax.f32 %v21906_v49, %v13203_v35  ;;  %v13267_v12 = vmax.f32 %v13203_v35, %v21904_v10  ;;  %v13247_v22 = vmax.f32 %v21891_v6, %v13199_v39  ;;  %v13250_v60 = vmax.f32 %v21893_v21, %v13202_v41 }
 0xc30   : > { %v13248_v8 = vmax.f32 %v21897_v17, %v13200_v4  ;;  %v13249_v1 = vmax.f32 %v21895_v51, %v13201_v29  ;;  %v13263_v37 = vmax.f32 %v13199_v39, %v21904_v10  ;;  %v13264_v62 = vmax.f32 %v13200_v4, %v21904_v10 }
 0xc31   : > { %13299 = vst [vmem:[#allocation2 + $0x188] sm:$0xff] %v13267_v12  ;;  %v13265_v32 = vmax.f32 %v13201_v29, %v21904_v10  ;;  %v13266_v26 = vmax.f32 %v13202_v41, %v21904_v10  ;;  %13279 = vst [vmem:[#allocation2 + $0xe8] sm:$0xff] %v13247_v22 }
 0xc32   : > { %13282 = vst [vmem:[#allocation2 + $0x100] sm:$0xff] %v13250_v60  ;;  %13283 = vst [vmem:[#allocation2 + $0x108] sm:$0xff] %v13251_v48 }
 0xc33   : > { %13280 = vst [vmem:[#allocation2 + $0xf0] sm:$0xff] %v13248_v8  ;;  %13281 = vst [vmem:[#allocation2 + $0xf8] sm:$0xff] %v13249_v1 }
 0xc34   : > { %13295 = vst [vmem:[#allocation2 + $0x168] sm:$0xff] %v13263_v37  ;;  %13296 = vst [vmem:[#allocation2 + $0x170] sm:$0xff] %v13264_v62 }
 0xc35   : > { %13297 = vst [vmem:[#allocation2 + $0x178] sm:$0xff] %v13265_v32  ;;  %13298 = vst [vmem:[#allocation2 + $0x180] sm:$0xff] %v13266_v26 }
 0xc36 PF: > { %s15_s12 = sadd.s32 1, %s18575_s12  }
 0xc37   : > { %p12_p10 = scmp.ge.s32.totalorder %s15_s12, 4  }
 0xc39   :  { %14 = sbr.rel (!%p12_p10) target bundleno = 2 (0x2), region = 109 }
 0xc40   :  { %13321 = vsyncpa [#allocation4], 1 }
 0xc41   :  { %13323 = vsyncpa [#allocation4 + $0x1], 1 }
 0xc42   :  { %13324 = vsyncpa [#allocation6], 1 }

</bundles_post_ra>
